<compile_context>
chip_gen: v7x
topology: tpu7x:2x2x1
jax: 0.10.0
libtpu: 0.0.40
codegen_flags: <defaults>
</compile_context>

<pallas_src>
import math

import numpy as np
import jax
import jax.numpy as jnp
from jax import lax
from jax.experimental import pallas as pl
from jax.experimental.pallas import tpu as pltpu

TAU = 0.1
A_CONST = -1e-06
B_CONST = 1.0
PRELU_ALPHA = 0.25      # torch default nn.PReLU() init
BN_EPS = 1e-5
LANES = 128


def _round_up(v, m):
    return ((v + m - 1) // m) * m


# ----------------------------------------------------------------------------- fused kernel
def _build_kernel(meta):
    N = meta["N"]
    F2 = meta["F2"]
    EP = meta["EP"]          # padded edge count (lane axis for per-edge rows)
    SLOT = meta["SLOT"]      # padded compacted-slot count
    FLATW = meta["FLATW"]    # padded length of the row-major flat compacted slab (>= 14*E)
    OUTR = meta["OUTR"]
    L = meta["layout"]       # name -> (row, h, w) inside the parameter slab (static)
    f32 = jnp.float32
    inv_tau = 1.0 / TAU
    b_minus_a = B_CONST - A_CONST

    def rd(ref, name):
        r, h, w = L[name]
        return ref[r:r + h, 0:w]

    def kernel(edge_ref, src_oh_ref, prm_ref, out_ref):
        # -------- unpack edge slab (edges on lanes, zero-padded to EP) --------
        w_e    = edge_ref[0:14, :]        # (14, EP) original edge_weight
        r1t    = edge_ref[14:28, :]       # (14, EP) literal torch reshape(-1,14), transposed
        srcf   = edge_ref[28:29, :]       # (1, EP) source node id (float)
        dstf   = edge_ref[29:30, :]       # (1, EP) dest node id (float)
        evalid = edge_ref[30:31, :]       # (1, EP) 1.0 for real edges
        s_oh   = src_oh_ref[...]          # (EP, N) one-hot(source), edges on sublanes

        # -------- unpack parameter slab --------
        x    = rd(prm_ref, "x")
        g1w  = rd(prm_ref, "g1w"); g1b = rd(prm_ref, "g1b")
        g2w  = rd(prm_ref, "g2w"); g2b = rd(prm_ref, "g2b")
        pw1  = rd(prm_ref, "pw1"); pb1 = rd(prm_ref, "pb1")
        pg   = rd(prm_ref, "pg");  pbe = rd(prm_ref, "pbe")
        pw2  = rd(prm_ref, "pw2"); pb2 = rd(prm_ref, "pb2")
        e0w1 = rd(prm_ref, "e0w1"); e0b1 = rd(prm_ref, "e0b1")
        e0w2 = rd(prm_ref, "e0w2"); e0b2 = rd(prm_ref, "e0b2")
        e1w1 = rd(prm_ref, "e1w1"); e1b1 = rd(prm_ref, "e1b1")
        e1w2 = rd(prm_ref, "e1w2"); e1b2 = rd(prm_ref, "e1b2")
        rnd  = rd(prm_ref, "rnd")
        rand0 = rnd[0:1, 0:1]
        rand1 = rnd[0:1, 1:2]

        def edge_gate(feat_t, w1, b1c, w2r, b2, r11):
            # Edgedropping MLP (Linear(14,7)/ReLU/Linear(7,1)) + thresholded sigmoid gate.
            h = jnp.maximum(jnp.dot(w1, feat_t, preferred_element_type=f32) + b1c, 0.0)
            s = jnp.dot(w2r, h, preferred_element_type=f32) + b2
            g = jax.nn.sigmoid((r11 + s) * inv_tau) * b_minus_a + A_CONST
            return jnp.where(g > 0.0, 1.0, 0.0)

        # -------- layer-1 Edgedropping gate --------
        keep1 = edge_gate(r1t, e0w1, e0b1, e0w2, e0b2, rand0) * evalid          # (1, EP)

        # -------- incidence pieces shared by both GCN layers --------
        nid = lax.broadcasted_iota(jnp.int32, (N, EP), 0).astype(f32)
        d_t = jnp.where(nid == dstf, 1.0, 0.0)                                   # (N, EP) one-hot(dst)^T
        selfloop = jnp.where(srcf == dstf, 1.0, 0.0)                              # (1, EP)

        def gcn_prelu(xin, keep_row, w, b):
            # GCNConv (add_remaining_self_loops + symmetric norm, edge_weight=None) + PReLU.
            # Incidence-factored: the dense NxN adjacency is never materialized.
            xw   = jnp.dot(xin, w, preferred_element_type=f32)                    # (N, F)
            dk   = d_t * keep_row                                                  # (N, EP)
            diag = jnp.sum(dk * selfloop, axis=1, keepdims=True)                   # kept self-edges
            loop = jnp.where(diag == 0.0, 1.0, 0.0)                                # remaining self loops
            deg  = jnp.sum(dk, axis=1, keepdims=True) + loop                       # in-degree incl. loops
            dinv = jnp.where(deg > 0.0, lax.rsqrt(deg), 0.0)
            y    = dinv * xw
            sy   = jnp.dot(s_oh, y, preferred_element_type=f32)                    # (EP, F) = y[src[e]]
            agg  = jnp.dot(dk, sy, preferred_element_type=f32) + loop * y          # (N, F)
            out  = dinv * agg + b
            return jnp.where(out >= 0.0, out, PRELU_ALPHA * out)

        h1 = gcn_prelu(x, keep1, g1w, g1b)                                         # (N, F1)

        # -------- surviving-edge rank / compaction (all in-kernel, matmul-based) --------
        jj = lax.broadcasted_iota(jnp.int32, (EP, EP), 0)
        kk = lax.broadcasted_iota(jnp.int32, (EP, EP), 1)
        upper = jnp.where(jj < kk, 1.0, 0.0)                                        # [j' < j]
        rank = jnp.dot(keep1, upper, preferred_element_type=f32)                    # exclusive rank (1, EP)
        k1 = jnp.sum(keep1)                                                         # kept-edge count

        prow = lax.broadcasted_iota(jnp.int32, (SLOT, EP), 0).astype(f32)
        perm = jnp.where(prow == rank, keep1, 0.0)                                   # (SLOT, EP): slot p <- edge j
        # compacted edge_weight slab: comp[r, p] = edge_weight[r, p-th kept edge]
        comp = lax.dot_general(w_e, perm, (((1,), (1,)), ((), ())),
                               preferred_element_type=f32)                           # (14, SLOT)

        # row-major flat buffer of the compacted (14, k1) slab: flat[m] = comp[m // k1, m % k1]
        m_io = lax.broadcasted_iota(jnp.int32, (SLOT, FLATW), 1).astype(f32)
        p_io = lax.broadcasted_iota(jnp.int32, (SLOT, FLATW), 0).astype(f32)
        flat = jnp.zeros((1, FLATW), f32)
        for r in range(14):
            shift_r = jnp.where(m_io == p_io + (r * k1), 1.0, 0.0)                   # (SLOT, FLATW)
            flat = flat + jnp.dot(comp[r:r + 1, :], shift_r, preferred_element_type=f32)

        # layer-2 Edgedropping on torch's literal reshape(-1, 14) of the compacted slab:
        # row p of the MLP input is flat[14p : 14p + 14]
        p14 = 14.0 * p_io
        hid2 = jnp.zeros((7, SLOT), f32) + e1b1
        for t in range(14):
            win_t = jnp.where(m_io == p14 + float(t), 1.0, 0.0)                       # (SLOT, FLATW)
            g_t = lax.dot_general(flat, win_t, (((1,), (1,)), ((), ())),
                                  preferred_element_type=f32)                         # (1, SLOT)
            hid2 = hid2 + e1w1[:, t:t + 1] * g_t
        hid2 = jnp.maximum(hid2, 0.0)
        s2 = jnp.dot(e1w2, hid2, preferred_element_type=f32) + e1b2                   # (1, SLOT)
        g2 = jax.nn.sigmoid((rand1 + s2) * inv_tau) * b_minus_a + A_CONST
        slot_io = lax.broadcasted_iota(jnp.int32, (1, SLOT), 1).astype(f32)
        keep2_slot = jnp.where((g2 > 0.0) & (slot_io < k1), 1.0, 0.0)                 # (1, SLOT)
        keep2 = jnp.dot(keep2_slot, perm, preferred_element_type=f32)                 # (1, EP) original order

        # -------- GCN layer 2 + student predictor --------
        student = gcn_prelu(h1, keep2, g2w, g2b)                                      # (N, F2)

        z = jnp.dot(student, pw1, preferred_element_type=f32) + pb1                   # (N, PH)
        mu = jnp.mean(z, axis=0, keepdims=True)
        zc = z - mu
        var = jnp.mean(zc * zc, axis=0, keepdims=True)                                 # biased (torch training)
        zn = zc * lax.rsqrt(var + BN_EPS) * pg + pbe
        zn = jnp.where(zn >= 0.0, zn, PRELU_ALPHA * zn)
        pred = jnp.dot(zn, pw2, preferred_element_type=f32) + pb2                      # (N, F2)

        # -------- MSE(pred, teacher == x) fused; loss folded into a padded output row --------
        d = pred - x
        loss = jnp.sum(d * d) * (1.0 / (N * F2))

        out_ref[...] = jnp.zeros((OUTR, LANES), f32)
        out_ref[0:N, 0:F2] = pred
        out_ref[N:N + 1, 0:1] = jnp.reshape(loss, (1, 1))

    return kernel


# ----------------------------------------------------------------------------- forward wrapper
def self_pgo_forward(params, x, edge_index, edge_weight, rands):
    f32 = jnp.float32
    N, F0 = x.shape
    E = edge_index.shape[1]
    enc = params["encoder"]
    pp = params["pred"]
    assert len(enc) == 2, "fused kernel covers a 2-GCN-layer encoder (layer_config of length 3)"
    F2 = enc[1]["gcn_w"].shape[1]
    assert F2 == F0, "rep_dim must equal input feature dim so MSE(pred, teacher=x) is valid"

    EP = _round_up(E, LANES)
    SLOT = _round_up(E, 64)
    FLATW = _round_up(14 * E, LANES)
    OUTR = _round_up(N + 1, 8)

    # ---- edge slab: raw edge_weight, its literal reshape(-1,14).T, src/dst ids, validity ----
    ew = edge_weight.astype(f32)                                     # (14, E)
    r1t = jnp.transpose(jnp.reshape(ew, (E, 14)))                    # (14, E)
    srcf = edge_index[0].astype(f32)[None, :]
    dstf = edge_index[1].astype(f32)[None, :]
    evalid = jnp.ones((1, E), f32)
    edge_rows = jnp.concatenate([ew, r1t, srcf, dstf, evalid], axis=0)        # (31, E)
    ER = _round_up(edge_rows.shape[0], 8)
    edge_slab = jnp.pad(edge_rows, ((0, ER - edge_rows.shape[0]), (0, EP - E)))

    # ---- source one-hot (edges on sublanes) for the incidence-factored GCN ----
    nid = jnp.arange(N, dtype=jnp.int32)[None, :]
    src_col = jnp.pad(edge_index[0].astype(jnp.int32)[:, None], ((0, EP - E), (0, 0)),
                      constant_values=-1)
    src_oh = (src_col == nid).astype(f32)                            # (EP, N)

    # ---- parameter slab (all weights / biases / Edgedropping rand scalars packed) ----
    entries = [
        ("x",    x.astype(f32)),
        ("g1w",  enc[0]["gcn_w"]), ("g1b", enc[0]["gcn_b"]),
        ("g2w",  enc[1]["gcn_w"]), ("g2b", enc[1]["gcn_b"]),
        ("pw1",  pp["w1"]), ("pb1", pp["b1"]), ("pg", pp["gamma"]), ("pbe", pp["beta"]),
        ("pw2",  pp["w2"]), ("pb2", pp["b2"]),
        ("e0w1", enc[0]["ed_w1"]), ("e0b1", enc[0]["ed_b1"]),
        ("e0w2", enc[0]["ed_w2"]), ("e0b2", enc[0]["ed_b2"]),
        ("e1w1", enc[1]["ed_w1"]), ("e1b1", enc[1]["ed_b1"]),
        ("e1w2", enc[1]["ed_w2"]), ("e1b2", enc[1]["ed_b2"]),
        ("rnd",  jnp.reshape(jnp.asarray(rands, f32)[:2], (1, 2))),
    ]
    layout = {}
    blocks = []
    row = 0
    for name, a in entries:
        a = jnp.asarray(a, f32)
        layout[name] = (row, a.shape[0], a.shape[1])
        blocks.append(jnp.pad(a, ((0, 0), (0, LANES - a.shape[1]))))
        row += a.shape[0]
    prm_slab = jnp.concatenate(blocks, axis=0)
    prm_slab = jnp.pad(prm_slab, ((0, _round_up(row, 8) - row), (0, 0)))

    meta = dict(N=N, F2=F2, EP=EP, SLOT=SLOT, FLATW=FLATW, OUTR=OUTR, layout=layout)
    kernel = _build_kernel(meta)

    out = pl.pallas_call(
        kernel,
        out_shape=jax.ShapeDtypeStruct((OUTR, LANES), f32),
        grid=(1,),
        in_specs=[
            pl.BlockSpec(edge_slab.shape, lambda i: (0, 0)),
            pl.BlockSpec(src_oh.shape, lambda i: (0, 0)),
            pl.BlockSpec(prm_slab.shape, lambda i: (0, 0)),
        ],
        out_specs=pl.BlockSpec((OUTR, LANES), lambda i: (0, 0)),
        compiler_params=pltpu.CompilerParams(dimension_semantics=("arbitrary",)),
    )(edge_slab, src_oh, prm_slab)

    pred = out[0:N, 0:F2]
    loss = out[N, 0]
    return pred, loss


# ----------------------------------------------------------------------------- params
def make_params(key, layer_config, pred_hid):
    def nrm(k, shape, scale=0.1):
        return scale * jax.random.normal(k, shape, jnp.float32)

    keys = iter(jax.random.split(key, 64))
    encoder = []
    for i in range(1, len(layer_config)):
        fin, fout = layer_config[i - 1], layer_config[i]
        encoder.append(dict(
            ed_w1=nrm(next(keys), (7, 14)),    # torch Linear(14,7).weight (out, in)
            ed_b1=nrm(next(keys), (7, 1)),     # its bias, stored as a column
            ed_w2=nrm(next(keys), (1, 7)),     # torch Linear(7,1).weight (out, in)
            ed_b2=nrm(next(keys), (1, 1)),
            # NOTE: Edgedropping.mlp_weight (Linear(14,14)) is never used in forward -> omitted.
            gcn_w=nrm(next(keys), (fin, fout)),
            gcn_b=nrm(next(keys), (1, fout)),
        ))
    rep = layer_config[-1]
    pred = dict(
        w1=nrm(next(keys), (rep, pred_hid)), b1=nrm(next(keys), (1, pred_hid)),
        gamma=jnp.ones((1, pred_hid), jnp.float32), beta=jnp.zeros((1, pred_hid), jnp.float32),
        w2=nrm(next(keys), (pred_hid, rep)), b2=nrm(next(keys), (1, rep)),
    )
    return dict(encoder=encoder, pred=pred)


def make_edgedrop_randoms(n_layers):
    # deterministic stand-in for Edgedropping.random = logit(torch.rand(1)) buffers
    rs = np.random.RandomState(0)
    r = rs.rand(n_layers)
    return tuple(float(math.log(v) - math.log(1.0 - v)) for v in r)


# ----------------------------------------------------------------------------- main
if __name__ == "__main__":
    N, E = 16, 48
    layer_config = [16, 32, 16]     # rep_dim == input feature dim so MSE(pred, teacher) is valid
    pred_hid = 32

    key = jax.random.PRNGKey(0)
    kx, ke, kw = jax.random.split(key, 3)
    x = jax.random.normal(kx, (N, layer_config[0]), jnp.float32)
    edge_index = jax.random.randint(ke, (2, E), 0, N, dtype=jnp.int32)
    edge_weight = jax.random.normal(kw, (14, E), jnp.float32)

    params = make_params(jax.random.PRNGKey(42), layer_config, pred_hid)
    rands = jnp.asarray(make_edgedrop_randoms(len(layer_config) - 1), jnp.float32)

    fwd = jax.jit(self_pgo_forward)
    pred, loss = fwd(params, x, edge_index, edge_weight, rands)
    jax.block_until_ready((pred, loss))

    assert pred.shape == (N, layer_config[-1])
    assert loss.shape == ()
    assert bool(jnp.isfinite(loss))
    print("KERNEL_OK")
</pallas_src>

<mosaic_0001>
module attributes {stable_mosaic.version = 11 : i64} {
  func.func @kernel(%arg0: i32, %arg1: memref<32x128xf32, #tpu.memory_space<vmem>>, %arg2: memref<128x16xf32, #tpu.memory_space<vmem>>, %arg3: memref<152x128xf32, #tpu.memory_space<vmem>>, %arg4: memref<24x128xf32, #tpu.memory_space<vmem>>) attributes {dimension_semantics = [#tpu.dimension_semantics<arbitrary>], iteration_bounds = array<i64: 1>, scalar_prefetch = 0 : i64, scratch_operands = 0 : i64, tpu.core_type = #tpu.core_type<tc>, window_params = [{pipeline_mode = #tpu.pipeline_mode<synchronous>, transform_indices = @transform_0, window_bounds = array<i64: 32, 128>}, {pipeline_mode = #tpu.pipeline_mode<synchronous>, transform_indices = @transform_1, window_bounds = array<i64: 128, 16>}, {pipeline_mode = #tpu.pipeline_mode<synchronous>, transform_indices = @transform_2, window_bounds = array<i64: 152, 128>}, {pipeline_mode = #tpu.pipeline_mode<synchronous>, transform_indices = @transform_3, window_bounds = array<i64: 24, 128>}]} {
    %c0 = arith.constant 0 : index
    %c0_0 = arith.constant 0 : index
    %0 = vector.load %arg1[%c0, %c0_0] : memref<32x128xf32, #tpu.memory_space<vmem>>, vector<14x128xf32>
    %c14 = arith.constant 14 : index
    %c0_1 = arith.constant 0 : index
    %1 = vector.load %arg1[%c14, %c0_1] : memref<32x128xf32, #tpu.memory_space<vmem>>, vector<14x128xf32>
    %c28 = arith.constant 28 : index
    %c0_2 = arith.constant 0 : index
    %2 = vector.load %arg1[%c28, %c0_2] : memref<32x128xf32, #tpu.memory_space<vmem>>, vector<1x128xf32>
    %c29 = arith.constant 29 : index
    %c0_3 = arith.constant 0 : index
    %3 = vector.load %arg1[%c29, %c0_3] : memref<32x128xf32, #tpu.memory_space<vmem>>, vector<1x128xf32>
    %c30 = arith.constant 30 : index
    %c0_4 = arith.constant 0 : index
    %4 = vector.load %arg1[%c30, %c0_4] : memref<32x128xf32, #tpu.memory_space<vmem>>, vector<1x128xf32>
    %c0_5 = arith.constant 0 : index
    %c0_6 = arith.constant 0 : index
    %5 = vector.load %arg2[%c0_5, %c0_6] : memref<128x16xf32, #tpu.memory_space<vmem>>, vector<128x16xf32>
    %c0_7 = arith.constant 0 : index
    %c0_8 = arith.constant 0 : index
    %6 = vector.load %arg3[%c0_7, %c0_8] : memref<152x128xf32, #tpu.memory_space<vmem>>, vector<16x16xf32>
    %c16 = arith.constant 16 : index
    %c0_9 = arith.constant 0 : index
    %7 = vector.load %arg3[%c16, %c0_9] : memref<152x128xf32, #tpu.memory_space<vmem>>, vector<16x32xf32>
    %c32 = arith.constant 32 : index
    %c0_10 = arith.constant 0 : index
    %8 = vector.load %arg3[%c32, %c0_10] : memref<152x128xf32, #tpu.memory_space<vmem>>, vector<1x32xf32>
    %c33 = arith.constant 33 : index
    %c0_11 = arith.constant 0 : index
    %9 = vector.load %arg3[%c33, %c0_11] : memref<152x128xf32, #tpu.memory_space<vmem>>, vector<32x16xf32>
    %c65 = arith.constant 65 : index
    %c0_12 = arith.constant 0 : index
    %10 = vector.load %arg3[%c65, %c0_12] : memref<152x128xf32, #tpu.memory_space<vmem>>, vector<1x16xf32>
    %c66 = arith.constant 66 : index
    %c0_13 = arith.constant 0 : index
    %11 = vector.load %arg3[%c66, %c0_13] : memref<152x128xf32, #tpu.memory_space<vmem>>, vector<16x32xf32>
    %c82 = arith.constant 82 : index
    %c0_14 = arith.constant 0 : index
    %12 = vector.load %arg3[%c82, %c0_14] : memref<152x128xf32, #tpu.memory_space<vmem>>, vector<1x32xf32>
    %c83 = arith.constant 83 : index
    %c0_15 = arith.constant 0 : index
    %13 = vector.load %arg3[%c83, %c0_15] : memref<152x128xf32, #tpu.memory_space<vmem>>, vector<1x32xf32>
    %c84 = arith.constant 84 : index
    %c0_16 = arith.constant 0 : index
    %14 = vector.load %arg3[%c84, %c0_16] : memref<152x128xf32, #tpu.memory_space<vmem>>, vector<1x32xf32>
    %c85 = arith.constant 85 : index
    %c0_17 = arith.constant 0 : index
    %15 = vector.load %arg3[%c85, %c0_17] : memref<152x128xf32, #tpu.memory_space<vmem>>, vector<32x16xf32>
    %c117 = arith.constant 117 : index
    %c0_18 = arith.constant 0 : index
    %16 = vector.load %arg3[%c117, %c0_18] : memref<152x128xf32, #tpu.memory_space<vmem>>, vector<1x16xf32>
    %c118 = arith.constant 118 : index
    %c0_19 = arith.constant 0 : index
    %17 = vector.load %arg3[%c118, %c0_19] : memref<152x128xf32, #tpu.memory_space<vmem>>, vector<7x14xf32>
    %c125 = arith.constant 125 : index
    %c0_20 = arith.constant 0 : index
    %18 = vector.load %arg3[%c125, %c0_20] : memref<152x128xf32, #tpu.memory_space<vmem>>, vector<7x1xf32>
    %c132 = arith.constant 132 : index
    %c0_21 = arith.constant 0 : index
    %19 = vector.load %arg3[%c132, %c0_21] : memref<152x128xf32, #tpu.memory_space<vmem>>, vector<1x7xf32>
    %c133 = arith.constant 133 : index
    %c0_22 = arith.constant 0 : index
    %20 = vector.load %arg3[%c133, %c0_22] : memref<152x128xf32, #tpu.memory_space<vmem>>, vector<1x1xf32>
    %c134 = arith.constant 134 : index
    %c0_23 = arith.constant 0 : index
    %21 = vector.load %arg3[%c134, %c0_23] : memref<152x128xf32, #tpu.memory_space<vmem>>, vector<7x14xf32>
    %c141 = arith.constant 141 : index
    %c0_24 = arith.constant 0 : index
    %22 = vector.load %arg3[%c141, %c0_24] : memref<152x128xf32, #tpu.memory_space<vmem>>, vector<7x1xf32>
    %c148 = arith.constant 148 : index
    %c0_25 = arith.constant 0 : index
    %23 = vector.load %arg3[%c148, %c0_25] : memref<152x128xf32, #tpu.memory_space<vmem>>, vector<1x7xf32>
    %c149 = arith.constant 149 : index
    %c0_26 = arith.constant 0 : index
    %24 = vector.load %arg3[%c149, %c0_26] : memref<152x128xf32, #tpu.memory_space<vmem>>, vector<1x1xf32>
    %c150 = arith.constant 150 : index
    %c0_27 = arith.constant 0 : index
    %25 = vector.load %arg3[%c150, %c0_27] : memref<152x128xf32, #tpu.memory_space<vmem>>, vector<1x2xf32>
    %26 = vector.extract_strided_slice %25 {offsets = [0, 0], sizes = [1, 1], strides = [1, 1]} : vector<1x2xf32> to vector<1x1xf32>
    %27 = vector.extract_strided_slice %25 {offsets = [0, 1], sizes = [1, 1], strides = [1, 1]} : vector<1x2xf32> to vector<1x1xf32>
    %cst = arith.constant dense<0.000000e+00> : vector<7x128xf32>
    %28 = tpu.matmul %17, %1, %cst {dimension_numbers = #tpu.dot_dimension_numbers<[1], [0], [0], [1], [0, 0, 1, 1], [], []>} : vector<7x14xf32>, vector<14x128xf32>, vector<7x128xf32> -> vector<7x128xf32>
    %29 = vector.broadcast %18 : vector<7x1xf32> to vector<7x128xf32>
    %30 = arith.addf %28, %29 : vector<7x128xf32>
    %cst_28 = arith.constant 0.000000e+00 : f32
    %31 = vector.broadcast %cst_28 : f32 to vector<7x128xf32>
    %32 = arith.maximumf %30, %31 : vector<7x128xf32>
    %cst_29 = arith.constant dense<0.000000e+00> : vector<1x128xf32>
    %33 = tpu.matmul %19, %32, %cst_29 {dimension_numbers = #tpu.dot_dimension_numbers<[1], [0], [0], [1], [0, 0, 1, 1], [], []>} : vector<1x7xf32>, vector<7x128xf32>, vector<1x128xf32> -> vector<1x128xf32>
    %34 = vector.broadcast %20 : vector<1x1xf32> to vector<1x128xf32>
    %35 = arith.addf %33, %34 : vector<1x128xf32>
    %36 = vector.broadcast %26 : vector<1x1xf32> to vector<1x128xf32>
    %37 = arith.addf %36, %35 : vector<1x128xf32>
    %cst_30 = arith.constant 1.000000e+01 : f32
    %38 = vector.broadcast %cst_30 : f32 to vector<1x128xf32>
    %39 = arith.mulf %37, %38 : vector<1x128xf32>
    %40 = arith.negf %39 : vector<1x128xf32>
    %41 = math.exp %40 : vector<1x128xf32>
    %cst_31 = arith.constant 1.000000e+00 : f32
    %42 = vector.broadcast %cst_31 : f32 to vector<1x128xf32>
    %43 = arith.addf %42, %41 : vector<1x128xf32>
    %44 = arith.divf %42, %43 : vector<1x128xf32>
    %cst_32 = arith.constant 1.00000095 : f32
    %45 = vector.broadcast %cst_32 : f32 to vector<1x128xf32>
    %46 = arith.mulf %44, %45 : vector<1x128xf32>
    %cst_33 = arith.constant -9.99999997E-7 : f32
    %47 = vector.broadcast %cst_33 : f32 to vector<1x128xf32>
    %48 = arith.addf %46, %47 : vector<1x128xf32>
    %cst_34 = arith.constant 0.000000e+00 : f32
    %49 = vector.broadcast %cst_34 : f32 to vector<1x128xf32>
    %50 = arith.cmpf ogt, %48, %49 : vector<1x128xf32>
    %cst_35 = arith.constant 1.000000e+00 : f32
    %cst_36 = arith.constant 0.000000e+00 : f32
    %51 = vector.broadcast %cst_35 : f32 to vector<1x128xf32>
    %52 = vector.broadcast %cst_36 : f32 to vector<1x128xf32>
    %53 = arith.select %50, %51, %52 : vector<1x128xi1>, vector<1x128xf32>
    %54 = arith.mulf %53, %4 : vector<1x128xf32>
    %55 = tpu.iota {dimensions = array<i32: 0>} : vector<16x128xi32>
    %56 = arith.sitofp %55 : vector<16x128xi32> to vector<16x128xf32>
    %57 = vector.broadcast %3 : vector<1x128xf32> to vector<16x128xf32>
    %58 = arith.cmpf oeq, %56, %57 : vector<16x128xf32>
    %cst_37 = arith.constant 1.000000e+00 : f32
    %cst_38 = arith.constant 0.000000e+00 : f32
    %59 = vector.broadcast %cst_37 : f32 to vector<16x128xf32>
    %60 = vector.broadcast %cst_38 : f32 to vector<16x128xf32>
    %61 = arith.select %58, %59, %60 : vector<16x128xi1>, vector<16x128xf32>
    %62 = arith.cmpf oeq, %2, %3 : vector<1x128xf32>
    %cst_39 = arith.constant 1.000000e+00 : f32
    %cst_40 = arith.constant 0.000000e+00 : f32
    %63 = vector.broadcast %cst_39 : f32 to vector<1x128xf32>
    %64 = vector.broadcast %cst_40 : f32 to vector<1x128xf32>
    %65 = arith.select %62, %63, %64 : vector<1x128xi1>, vector<1x128xf32>
    %cst_41 = arith.constant dense<0.000000e+00> : vector<16x32xf32>
    %66 = tpu.matmul %6, %7, %cst_41 {dimension_numbers = #tpu.dot_dimension_numbers<[1], [0], [0], [1], [0, 0, 1, 1], [], []>} : vector<16x16xf32>, vector<16x32xf32>, vector<16x32xf32> -> vector<16x32xf32>
    %67 = vector.broadcast %54 : vector<1x128xf32> to vector<16x128xf32>
    %68 = arith.mulf %61, %67 : vector<16x128xf32>
    %69 = vector.broadcast %65 : vector<1x128xf32> to vector<16x128xf32>
    %70 = arith.mulf %68, %69 : vector<16x128xf32>
    %cst_42 = arith.constant dense<0.000000e+00> : vector<16xf32>
    %71 = vector.multi_reduction <add>, %70, %cst_42 [1] : vector<16x128xf32> to vector<16xf32>
    %72 = vector.shape_cast %71 : vector<16xf32> to vector<16x1xf32>
    %cst_43 = arith.constant 0.000000e+00 : f32
    %73 = vector.broadcast %cst_43 : f32 to vector<16x1xf32>
    %74 = arith.cmpf oeq, %72, %73 : vector<16x1xf32>
    %cst_44 = arith.constant 1.000000e+00 : f32
    %cst_45 = arith.constant 0.000000e+00 : f32
    %75 = vector.broadcast %cst_44 : f32 to vector<16x1xf32>
    %76 = vector.broadcast %cst_45 : f32 to vector<16x1xf32>
    %77 = arith.select %74, %75, %76 : vector<16x1xi1>, vector<16x1xf32>
    %cst_46 = arith.constant dense<0.000000e+00> : vector<16xf32>
    %78 = vector.multi_reduction <add>, %68, %cst_46 [1] : vector<16x128xf32> to vector<16xf32>
    %79 = vector.shape_cast %78 : vector<16xf32> to vector<16x1xf32>
    %80 = arith.addf %79, %77 : vector<16x1xf32>
    %cst_47 = arith.constant 0.000000e+00 : f32
    %81 = vector.broadcast %cst_47 : f32 to vector<16x1xf32>
    %82 = arith.cmpf ogt, %80, %81 : vector<16x1xf32>
    %83 = math.rsqrt %80 : vector<16x1xf32>
    %cst_48 = arith.constant 0.000000e+00 : f32
    %84 = vector.broadcast %cst_48 : f32 to vector<16x1xf32>
    %85 = arith.select %82, %83, %84 : vector<16x1xi1>, vector<16x1xf32>
    %86 = vector.broadcast %85 : vector<16x1xf32> to vector<16x32xf32>
    %87 = arith.mulf %86, %66 : vector<16x32xf32>
    %cst_49 = arith.constant dense<0.000000e+00> : vector<128x32xf32>
    %88 = tpu.matmul %5, %87, %cst_49 {dimension_numbers = #tpu.dot_dimension_numbers<[1], [0], [0], [1], [0, 0, 1, 1], [], []>} : vector<128x16xf32>, vector<16x32xf32>, vector<128x32xf32> -> vector<128x32xf32>
    %cst_50 = arith.constant dense<0.000000e+00> : vector<16x32xf32>
    %89 = tpu.matmul %68, %88, %cst_50 {dimension_numbers = #tpu.dot_dimension_numbers<[1], [0], [0], [1], [0, 0, 1, 1], [], []>} : vector<16x128xf32>, vector<128x32xf32>, vector<16x32xf32> -> vector<16x32xf32>
    %90 = vector.broadcast %77 : vector<16x1xf32> to vector<16x32xf32>
    %91 = arith.mulf %90, %87 : vector<16x32xf32>
    %92 = arith.addf %89, %91 : vector<16x32xf32>
    %93 = vector.broadcast %85 : vector<16x1xf32> to vector<16x32xf32>
    %94 = arith.mulf %93, %92 : vector<16x32xf32>
    %95 = vector.broadcast %8 : vector<1x32xf32> to vector<16x32xf32>
    %96 = arith.addf %94, %95 : vector<16x32xf32>
    %cst_51 = arith.constant 0.000000e+00 : f32
    %97 = vector.broadcast %cst_51 : f32 to vector<16x32xf32>
    %98 = arith.cmpf oge, %96, %97 : vector<16x32xf32>
    %cst_52 = arith.constant 2.500000e-01 : f32
    %99 = vector.broadcast %cst_52 : f32 to vector<16x32xf32>
    %100 = arith.mulf %99, %96 : vector<16x32xf32>
    %101 = arith.select %98, %96, %100 : vector<16x32xi1>, vector<16x32xf32>
    %102 = tpu.iota {dimensions = array<i32: 0>} : vector<128x128xi32>
    %103 = tpu.iota {dimensions = array<i32: 1>} : vector<128x128xi32>
    %104 = arith.cmpi slt, %102, %103 : vector<128x128xi32>
    %cst_53 = arith.constant 1.000000e+00 : f32
    %cst_54 = arith.constant 0.000000e+00 : f32
    %105 = vector.broadcast %cst_53 : f32 to vector<128x128xf32>
    %106 = vector.broadcast %cst_54 : f32 to vector<128x128xf32>
    %107 = arith.select %104, %105, %106 : vector<128x128xi1>, vector<128x128xf32>
    %cst_55 = arith.constant dense<0.000000e+00> : vector<1x128xf32>
    %108 = tpu.matmul %54, %107, %cst_55 {dimension_numbers = #tpu.dot_dimension_numbers<[1], [0], [0], [1], [0, 0, 1, 1], [], []>} : vector<1x128xf32>, vector<128x128xf32>, vector<1x128xf32> -> vector<1x128xf32>
    %109 = vector.shape_cast %54 : vector<1x128xf32> to vector<1x1x128xf32>
    %cst_56 = arith.constant dense<0.000000e+00> : vector<1xf32>
    %110 = vector.multi_reduction <add>, %109, %cst_56 [1, 2] : vector<1x1x128xf32> to vector<1xf32>
    %111 = vector.shape_cast %110 : vector<1xf32> to vector<1x1x1xf32>
    %112 = vector.extract %111[0, 0, 0] : f32 from vector<1x1x1xf32>
    %113 = tpu.iota {dimensions = array<i32: 0>} : vector<64x128xi32>
    %114 = arith.sitofp %113 : vector<64x128xi32> to vector<64x128xf32>
    %115 = vector.broadcast %108 : vector<1x128xf32> to vector<64x128xf32>
    %116 = arith.cmpf oeq, %114, %115 : vector<64x128xf32>
    %cst_57 = arith.constant 0.000000e+00 : f32
    %117 = vector.shape_cast %54 : vector<1x128xf32> to vector<1x128xf32>
    %118 = vector.broadcast %117 : vector<1x128xf32> to vector<64x128xf32>
    %119 = vector.broadcast %cst_57 : f32 to vector<64x128xf32>
    %120 = arith.select %116, %118, %119 : vector<64x128xi1>, vector<64x128xf32>
    %cst_58 = arith.constant dense<0.000000e+00> : vector<14x64xf32>
    %121 = tpu.matmul %0, %120, %cst_58 {dimension_numbers = #tpu.dot_dimension_numbers<[1], [1], [0], [0], [0, 0, 1, 0], [], []>} : vector<14x128xf32>, vector<64x128xf32>, vector<14x64xf32> -> vector<14x64xf32>
    %122 = tpu.iota {dimensions = array<i32: 1>} : vector<64x768xi32>
    %123 = arith.sitofp %122 : vector<64x768xi32> to vector<64x768xf32>
    %124 = tpu.iota {dimensions = array<i32: 0>} : vector<64x768xi32>
    %125 = arith.sitofp %124 : vector<64x768xi32> to vector<64x768xf32>
    %cst_59 = arith.constant 0.000000e+00 : f32
    %126 = vector.broadcast %cst_59 : f32 to vector<1x768xf32>
    %cst_60 = arith.constant 0.000000e+00 : f32
    %127 = arith.mulf %cst_60, %112 : f32
    %128 = vector.broadcast %127 : f32 to vector<64x768xf32>
    %129 = arith.addf %125, %128 : vector<64x768xf32>
    %130 = arith.cmpf oeq, %123, %129 : vector<64x768xf32>
    %cst_61 = arith.constant 1.000000e+00 : f32
    %cst_62 = arith.constant 0.000000e+00 : f32
    %131 = vector.broadcast %cst_61 : f32 to vector<64x768xf32>
    %132 = vector.broadcast %cst_62 : f32 to vector<64x768xf32>
    %133 = arith.select %130, %131, %132 : vector<64x768xi1>, vector<64x768xf32>
    %134 = vector.extract_strided_slice %121 {offsets = [0, 0], sizes = [1, 64], strides = [1, 1]} : vector<14x64xf32> to vector<1x64xf32>
    %cst_63 = arith.constant dense<0.000000e+00> : vector<1x768xf32>
    %135 = tpu.matmul %134, %133, %cst_63 {dimension_numbers = #tpu.dot_dimension_numbers<[1], [0], [0], [1], [0, 0, 1, 1], [], []>} : vector<1x64xf32>, vector<64x768xf32>, vector<1x768xf32> -> vector<1x768xf32>
    %136 = arith.addf %126, %135 : vector<1x768xf32>
    %cst_64 = arith.constant 1.000000e+00 : f32
    %137 = arith.mulf %cst_64, %112 : f32
    %138 = vector.broadcast %137 : f32 to vector<64x768xf32>
    %139 = arith.addf %125, %138 : vector<64x768xf32>
    %140 = arith.cmpf oeq, %123, %139 : vector<64x768xf32>
    %cst_65 = arith.constant 1.000000e+00 : f32
    %cst_66 = arith.constant 0.000000e+00 : f32
    %141 = vector.broadcast %cst_65 : f32 to vector<64x768xf32>
    %142 = vector.broadcast %cst_66 : f32 to vector<64x768xf32>
    %143 = arith.select %140, %141, %142 : vector<64x768xi1>, vector<64x768xf32>
    %144 = vector.extract_strided_slice %121 {offsets = [1, 0], sizes = [1, 64], strides = [1, 1]} : vector<14x64xf32> to vector<1x64xf32>
    %cst_67 = arith.constant dense<0.000000e+00> : vector<1x768xf32>
    %145 = tpu.matmul %144, %143, %cst_67 {dimension_numbers = #tpu.dot_dimension_numbers<[1], [0], [0], [1], [0, 0, 1, 1], [], []>} : vector<1x64xf32>, vector<64x768xf32>, vector<1x768xf32> -> vector<1x768xf32>
    %146 = arith.addf %136, %145 : vector<1x768xf32>
    %cst_68 = arith.constant 2.000000e+00 : f32
    %147 = arith.mulf %cst_68, %112 : f32
    %148 = vector.broadcast %147 : f32 to vector<64x768xf32>
    %149 = arith.addf %125, %148 : vector<64x768xf32>
    %150 = arith.cmpf oeq, %123, %149 : vector<64x768xf32>
    %cst_69 = arith.constant 1.000000e+00 : f32
    %cst_70 = arith.constant 0.000000e+00 : f32
    %151 = vector.broadcast %cst_69 : f32 to vector<64x768xf32>
    %152 = vector.broadcast %cst_70 : f32 to vector<64x768xf32>
    %153 = arith.select %150, %151, %152 : vector<64x768xi1>, vector<64x768xf32>
    %154 = vector.extract_strided_slice %121 {offsets = [2, 0], sizes = [1, 64], strides = [1, 1]} : vector<14x64xf32> to vector<1x64xf32>
    %cst_71 = arith.constant dense<0.000000e+00> : vector<1x768xf32>
    %155 = tpu.matmul %154, %153, %cst_71 {dimension_numbers = #tpu.dot_dimension_numbers<[1], [0], [0], [1], [0, 0, 1, 1], [], []>} : vector<1x64xf32>, vector<64x768xf32>, vector<1x768xf32> -> vector<1x768xf32>
    %156 = arith.addf %146, %155 : vector<1x768xf32>
    %cst_72 = arith.constant 3.000000e+00 : f32
    %157 = arith.mulf %cst_72, %112 : f32
    %158 = vector.broadcast %157 : f32 to vector<64x768xf32>
    %159 = arith.addf %125, %158 : vector<64x768xf32>
    %160 = arith.cmpf oeq, %123, %159 : vector<64x768xf32>
    %cst_73 = arith.constant 1.000000e+00 : f32
    %cst_74 = arith.constant 0.000000e+00 : f32
    %161 = vector.broadcast %cst_73 : f32 to vector<64x768xf32>
    %162 = vector.broadcast %cst_74 : f32 to vector<64x768xf32>
    %163 = arith.select %160, %161, %162 : vector<64x768xi1>, vector<64x768xf32>
    %164 = vector.extract_strided_slice %121 {offsets = [3, 0], sizes = [1, 64], strides = [1, 1]} : vector<14x64xf32> to vector<1x64xf32>
    %cst_75 = arith.constant dense<0.000000e+00> : vector<1x768xf32>
    %165 = tpu.matmul %164, %163, %cst_75 {dimension_numbers = #tpu.dot_dimension_numbers<[1], [0], [0], [1], [0, 0, 1, 1], [], []>} : vector<1x64xf32>, vector<64x768xf32>, vector<1x768xf32> -> vector<1x768xf32>
    %166 = arith.addf %156, %165 : vector<1x768xf32>
    %cst_76 = arith.constant 4.000000e+00 : f32
    %167 = arith.mulf %cst_76, %112 : f32
    %168 = vector.broadcast %167 : f32 to vector<64x768xf32>
    %169 = arith.addf %125, %168 : vector<64x768xf32>
    %170 = arith.cmpf oeq, %123, %169 : vector<64x768xf32>
    %cst_77 = arith.constant 1.000000e+00 : f32
    %cst_78 = arith.constant 0.000000e+00 : f32
    %171 = vector.broadcast %cst_77 : f32 to vector<64x768xf32>
    %172 = vector.broadcast %cst_78 : f32 to vector<64x768xf32>
    %173 = arith.select %170, %171, %172 : vector<64x768xi1>, vector<64x768xf32>
    %174 = vector.extract_strided_slice %121 {offsets = [4, 0], sizes = [1, 64], strides = [1, 1]} : vector<14x64xf32> to vector<1x64xf32>
    %cst_79 = arith.constant dense<0.000000e+00> : vector<1x768xf32>
    %175 = tpu.matmul %174, %173, %cst_79 {dimension_numbers = #tpu.dot_dimension_numbers<[1], [0], [0], [1], [0, 0, 1, 1], [], []>} : vector<1x64xf32>, vector<64x768xf32>, vector<1x768xf32> -> vector<1x768xf32>
    %176 = arith.addf %166, %175 : vector<1x768xf32>
    %cst_80 = arith.constant 5.000000e+00 : f32
    %177 = arith.mulf %cst_80, %112 : f32
    %178 = vector.broadcast %177 : f32 to vector<64x768xf32>
    %179 = arith.addf %125, %178 : vector<64x768xf32>
    %180 = arith.cmpf oeq, %123, %179 : vector<64x768xf32>
    %cst_81 = arith.constant 1.000000e+00 : f32
    %cst_82 = arith.constant 0.000000e+00 : f32
    %181 = vector.broadcast %cst_81 : f32 to vector<64x768xf32>
    %182 = vector.broadcast %cst_82 : f32 to vector<64x768xf32>
    %183 = arith.select %180, %181, %182 : vector<64x768xi1>, vector<64x768xf32>
    %184 = vector.extract_strided_slice %121 {offsets = [5, 0], sizes = [1, 64], strides = [1, 1]} : vector<14x64xf32> to vector<1x64xf32>
    %cst_83 = arith.constant dense<0.000000e+00> : vector<1x768xf32>
    %185 = tpu.matmul %184, %183, %cst_83 {dimension_numbers = #tpu.dot_dimension_numbers<[1], [0], [0], [1], [0, 0, 1, 1], [], []>} : vector<1x64xf32>, vector<64x768xf32>, vector<1x768xf32> -> vector<1x768xf32>
    %186 = arith.addf %176, %185 : vector<1x768xf32>
    %cst_84 = arith.constant 6.000000e+00 : f32
    %187 = arith.mulf %cst_84, %112 : f32
    %188 = vector.broadcast %187 : f32 to vector<64x768xf32>
    %189 = arith.addf %125, %188 : vector<64x768xf32>
    %190 = arith.cmpf oeq, %123, %189 : vector<64x768xf32>
    %cst_85 = arith.constant 1.000000e+00 : f32
    %cst_86 = arith.constant 0.000000e+00 : f32
    %191 = vector.broadcast %cst_85 : f32 to vector<64x768xf32>
    %192 = vector.broadcast %cst_86 : f32 to vector<64x768xf32>
    %193 = arith.select %190, %191, %192 : vector<64x768xi1>, vector<64x768xf32>
    %194 = vector.extract_strided_slice %121 {offsets = [6, 0], sizes = [1, 64], strides = [1, 1]} : vector<14x64xf32> to vector<1x64xf32>
    %cst_87 = arith.constant dense<0.000000e+00> : vector<1x768xf32>
    %195 = tpu.matmul %194, %193, %cst_87 {dimension_numbers = #tpu.dot_dimension_numbers<[1], [0], [0], [1], [0, 0, 1, 1], [], []>} : vector<1x64xf32>, vector<64x768xf32>, vector<1x768xf32> -> vector<1x768xf32>
    %196 = arith.addf %186, %195 : vector<1x768xf32>
    %cst_88 = arith.constant 7.000000e+00 : f32
    %197 = arith.mulf %cst_88, %112 : f32
    %198 = vector.broadcast %197 : f32 to vector<64x768xf32>
    %199 = arith.addf %125, %198 : vector<64x768xf32>
    %200 = arith.cmpf oeq, %123, %199 : vector<64x768xf32>
    %cst_89 = arith.constant 1.000000e+00 : f32
    %cst_90 = arith.constant 0.000000e+00 : f32
    %201 = vector.broadcast %cst_89 : f32 to vector<64x768xf32>
    %202 = vector.broadcast %cst_90 : f32 to vector<64x768xf32>
    %203 = arith.select %200, %201, %202 : vector<64x768xi1>, vector<64x768xf32>
    %204 = vector.extract_strided_slice %121 {offsets = [7, 0], sizes = [1, 64], strides = [1, 1]} : vector<14x64xf32> to vector<1x64xf32>
    %cst_91 = arith.constant dense<0.000000e+00> : vector<1x768xf32>
    %205 = tpu.matmul %204, %203, %cst_91 {dimension_numbers = #tpu.dot_dimension_numbers<[1], [0], [0], [1], [0, 0, 1, 1], [], []>} : vector<1x64xf32>, vector<64x768xf32>, vector<1x768xf32> -> vector<1x768xf32>
    %206 = arith.addf %196, %205 : vector<1x768xf32>
    %cst_92 = arith.constant 8.000000e+00 : f32
    %207 = arith.mulf %cst_92, %112 : f32
    %208 = vector.broadcast %207 : f32 to vector<64x768xf32>
    %209 = arith.addf %125, %208 : vector<64x768xf32>
    %210 = arith.cmpf oeq, %123, %209 : vector<64x768xf32>
    %cst_93 = arith.constant 1.000000e+00 : f32
    %cst_94 = arith.constant 0.000000e+00 : f32
    %211 = vector.broadcast %cst_93 : f32 to vector<64x768xf32>
    %212 = vector.broadcast %cst_94 : f32 to vector<64x768xf32>
    %213 = arith.select %210, %211, %212 : vector<64x768xi1>, vector<64x768xf32>
    %214 = vector.extract_strided_slice %121 {offsets = [8, 0], sizes = [1, 64], strides = [1, 1]} : vector<14x64xf32> to vector<1x64xf32>
    %cst_95 = arith.constant dense<0.000000e+00> : vector<1x768xf32>
    %215 = tpu.matmul %214, %213, %cst_95 {dimension_numbers = #tpu.dot_dimension_numbers<[1], [0], [0], [1], [0, 0, 1, 1], [], []>} : vector<1x64xf32>, vector<64x768xf32>, vector<1x768xf32> -> vector<1x768xf32>
    %216 = arith.addf %206, %215 : vector<1x768xf32>
    %cst_96 = arith.constant 9.000000e+00 : f32
    %217 = arith.mulf %cst_96, %112 : f32
    %218 = vector.broadcast %217 : f32 to vector<64x768xf32>
    %219 = arith.addf %125, %218 : vector<64x768xf32>
    %220 = arith.cmpf oeq, %123, %219 : vector<64x768xf32>
    %cst_97 = arith.constant 1.000000e+00 : f32
    %cst_98 = arith.constant 0.000000e+00 : f32
    %221 = vector.broadcast %cst_97 : f32 to vector<64x768xf32>
    %222 = vector.broadcast %cst_98 : f32 to vector<64x768xf32>
    %223 = arith.select %220, %221, %222 : vector<64x768xi1>, vector<64x768xf32>
    %224 = vector.extract_strided_slice %121 {offsets = [9, 0], sizes = [1, 64], strides = [1, 1]} : vector<14x64xf32> to vector<1x64xf32>
    %cst_99 = arith.constant dense<0.000000e+00> : vector<1x768xf32>
    %225 = tpu.matmul %224, %223, %cst_99 {dimension_numbers = #tpu.dot_dimension_numbers<[1], [0], [0], [1], [0, 0, 1, 1], [], []>} : vector<1x64xf32>, vector<64x768xf32>, vector<1x768xf32> -> vector<1x768xf32>
    %226 = arith.addf %216, %225 : vector<1x768xf32>
    %cst_100 = arith.constant 1.000000e+01 : f32
    %227 = arith.mulf %cst_100, %112 : f32
    %228 = vector.broadcast %227 : f32 to vector<64x768xf32>
    %229 = arith.addf %125, %228 : vector<64x768xf32>
    %230 = arith.cmpf oeq, %123, %229 : vector<64x768xf32>
    %cst_101 = arith.constant 1.000000e+00 : f32
    %cst_102 = arith.constant 0.000000e+00 : f32
    %231 = vector.broadcast %cst_101 : f32 to vector<64x768xf32>
    %232 = vector.broadcast %cst_102 : f32 to vector<64x768xf32>
    %233 = arith.select %230, %231, %232 : vector<64x768xi1>, vector<64x768xf32>
    %234 = vector.extract_strided_slice %121 {offsets = [10, 0], sizes = [1, 64], strides = [1, 1]} : vector<14x64xf32> to vector<1x64xf32>
    %cst_103 = arith.constant dense<0.000000e+00> : vector<1x768xf32>
    %235 = tpu.matmul %234, %233, %cst_103 {dimension_numbers = #tpu.dot_dimension_numbers<[1], [0], [0], [1], [0, 0, 1, 1], [], []>} : vector<1x64xf32>, vector<64x768xf32>, vector<1x768xf32> -> vector<1x768xf32>
    %236 = arith.addf %226, %235 : vector<1x768xf32>
    %cst_104 = arith.constant 1.100000e+01 : f32
    %237 = arith.mulf %cst_104, %112 : f32
    %238 = vector.broadcast %237 : f32 to vector<64x768xf32>
    %239 = arith.addf %125, %238 : vector<64x768xf32>
    %240 = arith.cmpf oeq, %123, %239 : vector<64x768xf32>
    %cst_105 = arith.constant 1.000000e+00 : f32
    %cst_106 = arith.constant 0.000000e+00 : f32
    %241 = vector.broadcast %cst_105 : f32 to vector<64x768xf32>
    %242 = vector.broadcast %cst_106 : f32 to vector<64x768xf32>
    %243 = arith.select %240, %241, %242 : vector<64x768xi1>, vector<64x768xf32>
    %244 = vector.extract_strided_slice %121 {offsets = [11, 0], sizes = [1, 64], strides = [1, 1]} : vector<14x64xf32> to vector<1x64xf32>
    %cst_107 = arith.constant dense<0.000000e+00> : vector<1x768xf32>
    %245 = tpu.matmul %244, %243, %cst_107 {dimension_numbers = #tpu.dot_dimension_numbers<[1], [0], [0], [1], [0, 0, 1, 1], [], []>} : vector<1x64xf32>, vector<64x768xf32>, vector<1x768xf32> -> vector<1x768xf32>
    %246 = arith.addf %236, %245 : vector<1x768xf32>
    %cst_108 = arith.constant 1.200000e+01 : f32
    %247 = arith.mulf %cst_108, %112 : f32
    %248 = vector.broadcast %247 : f32 to vector<64x768xf32>
    %249 = arith.addf %125, %248 : vector<64x768xf32>
    %250 = arith.cmpf oeq, %123, %249 : vector<64x768xf32>
    %cst_109 = arith.constant 1.000000e+00 : f32
    %cst_110 = arith.constant 0.000000e+00 : f32
    %251 = vector.broadcast %cst_109 : f32 to vector<64x768xf32>
    %252 = vector.broadcast %cst_110 : f32 to vector<64x768xf32>
    %253 = arith.select %250, %251, %252 : vector<64x768xi1>, vector<64x768xf32>
    %254 = vector.extract_strided_slice %121 {offsets = [12, 0], sizes = [1, 64], strides = [1, 1]} : vector<14x64xf32> to vector<1x64xf32>
    %cst_111 = arith.constant dense<0.000000e+00> : vector<1x768xf32>
    %255 = tpu.matmul %254, %253, %cst_111 {dimension_numbers = #tpu.dot_dimension_numbers<[1], [0], [0], [1], [0, 0, 1, 1], [], []>} : vector<1x64xf32>, vector<64x768xf32>, vector<1x768xf32> -> vector<1x768xf32>
    %256 = arith.addf %246, %255 : vector<1x768xf32>
    %cst_112 = arith.constant 1.300000e+01 : f32
    %257 = arith.mulf %cst_112, %112 : f32
    %258 = vector.broadcast %257 : f32 to vector<64x768xf32>
    %259 = arith.addf %125, %258 : vector<64x768xf32>
    %260 = arith.cmpf oeq, %123, %259 : vector<64x768xf32>
    %cst_113 = arith.constant 1.000000e+00 : f32
    %cst_114 = arith.constant 0.000000e+00 : f32
    %261 = vector.broadcast %cst_113 : f32 to vector<64x768xf32>
    %262 = vector.broadcast %cst_114 : f32 to vector<64x768xf32>
    %263 = arith.select %260, %261, %262 : vector<64x768xi1>, vector<64x768xf32>
    %264 = vector.extract_strided_slice %121 {offsets = [13, 0], sizes = [1, 64], strides = [1, 1]} : vector<14x64xf32> to vector<1x64xf32>
    %cst_115 = arith.constant dense<0.000000e+00> : vector<1x768xf32>
    %265 = tpu.matmul %264, %263, %cst_115 {dimension_numbers = #tpu.dot_dimension_numbers<[1], [0], [0], [1], [0, 0, 1, 1], [], []>} : vector<1x64xf32>, vector<64x768xf32>, vector<1x768xf32> -> vector<1x768xf32>
    %266 = arith.addf %256, %265 : vector<1x768xf32>
    %cst_116 = arith.constant 1.400000e+01 : f32
    %267 = vector.broadcast %cst_116 : f32 to vector<64x768xf32>
    %268 = arith.mulf %267, %125 : vector<64x768xf32>
    %cst_117 = arith.constant 0.000000e+00 : f32
    %269 = vector.broadcast %cst_117 : f32 to vector<7x64xf32>
    %270 = vector.broadcast %22 : vector<7x1xf32> to vector<7x64xf32>
    %271 = arith.addf %269, %270 : vector<7x64xf32>
    %cst_118 = arith.constant 0.000000e+00 : f32
    %272 = vector.broadcast %cst_118 : f32 to vector<64x768xf32>
    %273 = arith.addf %268, %272 : vector<64x768xf32>
    %274 = arith.cmpf oeq, %123, %273 : vector<64x768xf32>
    %cst_119 = arith.constant 1.000000e+00 : f32
    %cst_120 = arith.constant 0.000000e+00 : f32
    %275 = vector.broadcast %cst_119 : f32 to vector<64x768xf32>
    %276 = vector.broadcast %cst_120 : f32 to vector<64x768xf32>
    %277 = arith.select %274, %275, %276 : vector<64x768xi1>, vector<64x768xf32>
    %cst_121 = arith.constant dense<0.000000e+00> : vector<1x64xf32>
    %278 = tpu.matmul %266, %277, %cst_121 {dimension_numbers = #tpu.dot_dimension_numbers<[1], [1], [0], [0], [0, 0, 1, 0], [], []>} : vector<1x768xf32>, vector<64x768xf32>, vector<1x64xf32> -> vector<1x64xf32>
    %279 = vector.extract_strided_slice %21 {offsets = [0, 0], sizes = [7, 1], strides = [1, 1]} : vector<7x14xf32> to vector<7x1xf32>
    %280 = vector.broadcast %279 : vector<7x1xf32> to vector<7x64xf32>
    %281 = vector.broadcast %278 : vector<1x64xf32> to vector<7x64xf32>
    %282 = arith.mulf %280, %281 : vector<7x64xf32>
    %283 = arith.addf %271, %282 : vector<7x64xf32>
    %cst_122 = arith.constant 1.000000e+00 : f32
    %284 = vector.broadcast %cst_122 : f32 to vector<64x768xf32>
    %285 = arith.addf %268, %284 : vector<64x768xf32>
    %286 = arith.cmpf oeq, %123, %285 : vector<64x768xf32>
    %cst_123 = arith.constant 1.000000e+00 : f32
    %cst_124 = arith.constant 0.000000e+00 : f32
    %287 = vector.broadcast %cst_123 : f32 to vector<64x768xf32>
    %288 = vector.broadcast %cst_124 : f32 to vector<64x768xf32>
    %289 = arith.select %286, %287, %288 : vector<64x768xi1>, vector<64x768xf32>
    %cst_125 = arith.constant dense<0.000000e+00> : vector<1x64xf32>
    %290 = tpu.matmul %266, %289, %cst_125 {dimension_numbers = #tpu.dot_dimension_numbers<[1], [1], [0], [0], [0, 0, 1, 0], [], []>} : vector<1x768xf32>, vector<64x768xf32>, vector<1x64xf32> -> vector<1x64xf32>
    %291 = vector.extract_strided_slice %21 {offsets = [0, 1], sizes = [7, 1], strides = [1, 1]} : vector<7x14xf32> to vector<7x1xf32>
    %292 = vector.broadcast %291 : vector<7x1xf32> to vector<7x64xf32>
    %293 = vector.broadcast %290 : vector<1x64xf32> to vector<7x64xf32>
    %294 = arith.mulf %292, %293 : vector<7x64xf32>
    %295 = arith.addf %283, %294 : vector<7x64xf32>
    %cst_126 = arith.constant 2.000000e+00 : f32
    %296 = vector.broadcast %cst_126 : f32 to vector<64x768xf32>
    %297 = arith.addf %268, %296 : vector<64x768xf32>
    %298 = arith.cmpf oeq, %123, %297 : vector<64x768xf32>
    %cst_127 = arith.constant 1.000000e+00 : f32
    %cst_128 = arith.constant 0.000000e+00 : f32
    %299 = vector.broadcast %cst_127 : f32 to vector<64x768xf32>
    %300 = vector.broadcast %cst_128 : f32 to vector<64x768xf32>
    %301 = arith.select %298, %299, %300 : vector<64x768xi1>, vector<64x768xf32>
    %cst_129 = arith.constant dense<0.000000e+00> : vector<1x64xf32>
    %302 = tpu.matmul %266, %301, %cst_129 {dimension_numbers = #tpu.dot_dimension_numbers<[1], [1], [0], [0], [0, 0, 1, 0], [], []>} : vector<1x768xf32>, vector<64x768xf32>, vector<1x64xf32> -> vector<1x64xf32>
    %303 = vector.extract_strided_slice %21 {offsets = [0, 2], sizes = [7, 1], strides = [1, 1]} : vector<7x14xf32> to vector<7x1xf32>
    %304 = vector.broadcast %303 : vector<7x1xf32> to vector<7x64xf32>
    %305 = vector.broadcast %302 : vector<1x64xf32> to vector<7x64xf32>
    %306 = arith.mulf %304, %305 : vector<7x64xf32>
    %307 = arith.addf %295, %306 : vector<7x64xf32>
    %cst_130 = arith.constant 3.000000e+00 : f32
    %308 = vector.broadcast %cst_130 : f32 to vector<64x768xf32>
    %309 = arith.addf %268, %308 : vector<64x768xf32>
    %310 = arith.cmpf oeq, %123, %309 : vector<64x768xf32>
    %cst_131 = arith.constant 1.000000e+00 : f32
    %cst_132 = arith.constant 0.000000e+00 : f32
    %311 = vector.broadcast %cst_131 : f32 to vector<64x768xf32>
    %312 = vector.broadcast %cst_132 : f32 to vector<64x768xf32>
    %313 = arith.select %310, %311, %312 : vector<64x768xi1>, vector<64x768xf32>
    %cst_133 = arith.constant dense<0.000000e+00> : vector<1x64xf32>
    %314 = tpu.matmul %266, %313, %cst_133 {dimension_numbers = #tpu.dot_dimension_numbers<[1], [1], [0], [0], [0, 0, 1, 0], [], []>} : vector<1x768xf32>, vector<64x768xf32>, vector<1x64xf32> -> vector<1x64xf32>
    %315 = vector.extract_strided_slice %21 {offsets = [0, 3], sizes = [7, 1], strides = [1, 1]} : vector<7x14xf32> to vector<7x1xf32>
    %316 = vector.broadcast %315 : vector<7x1xf32> to vector<7x64xf32>
    %317 = vector.broadcast %314 : vector<1x64xf32> to vector<7x64xf32>
    %318 = arith.mulf %316, %317 : vector<7x64xf32>
    %319 = arith.addf %307, %318 : vector<7x64xf32>
    %cst_134 = arith.constant 4.000000e+00 : f32
    %320 = vector.broadcast %cst_134 : f32 to vector<64x768xf32>
    %321 = arith.addf %268, %320 : vector<64x768xf32>
    %322 = arith.cmpf oeq, %123, %321 : vector<64x768xf32>
    %cst_135 = arith.constant 1.000000e+00 : f32
    %cst_136 = arith.constant 0.000000e+00 : f32
    %323 = vector.broadcast %cst_135 : f32 to vector<64x768xf32>
    %324 = vector.broadcast %cst_136 : f32 to vector<64x768xf32>
    %325 = arith.select %322, %323, %324 : vector<64x768xi1>, vector<64x768xf32>
    %cst_137 = arith.constant dense<0.000000e+00> : vector<1x64xf32>
    %326 = tpu.matmul %266, %325, %cst_137 {dimension_numbers = #tpu.dot_dimension_numbers<[1], [1], [0], [0], [0, 0, 1, 0], [], []>} : vector<1x768xf32>, vector<64x768xf32>, vector<1x64xf32> -> vector<1x64xf32>
    %327 = vector.extract_strided_slice %21 {offsets = [0, 4], sizes = [7, 1], strides = [1, 1]} : vector<7x14xf32> to vector<7x1xf32>
    %328 = vector.broadcast %327 : vector<7x1xf32> to vector<7x64xf32>
    %329 = vector.broadcast %326 : vector<1x64xf32> to vector<7x64xf32>
    %330 = arith.mulf %328, %329 : vector<7x64xf32>
    %331 = arith.addf %319, %330 : vector<7x64xf32>
    %cst_138 = arith.constant 5.000000e+00 : f32
    %332 = vector.broadcast %cst_138 : f32 to vector<64x768xf32>
    %333 = arith.addf %268, %332 : vector<64x768xf32>
    %334 = arith.cmpf oeq, %123, %333 : vector<64x768xf32>
    %cst_139 = arith.constant 1.000000e+00 : f32
    %cst_140 = arith.constant 0.000000e+00 : f32
    %335 = vector.broadcast %cst_139 : f32 to vector<64x768xf32>
    %336 = vector.broadcast %cst_140 : f32 to vector<64x768xf32>
    %337 = arith.select %334, %335, %336 : vector<64x768xi1>, vector<64x768xf32>
    %cst_141 = arith.constant dense<0.000000e+00> : vector<1x64xf32>
    %338 = tpu.matmul %266, %337, %cst_141 {dimension_numbers = #tpu.dot_dimension_numbers<[1], [1], [0], [0], [0, 0, 1, 0], [], []>} : vector<1x768xf32>, vector<64x768xf32>, vector<1x64xf32> -> vector<1x64xf32>
    %339 = vector.extract_strided_slice %21 {offsets = [0, 5], sizes = [7, 1], strides = [1, 1]} : vector<7x14xf32> to vector<7x1xf32>
    %340 = vector.broadcast %339 : vector<7x1xf32> to vector<7x64xf32>
    %341 = vector.broadcast %338 : vector<1x64xf32> to vector<7x64xf32>
    %342 = arith.mulf %340, %341 : vector<7x64xf32>
    %343 = arith.addf %331, %342 : vector<7x64xf32>
    %cst_142 = arith.constant 6.000000e+00 : f32
    %344 = vector.broadcast %cst_142 : f32 to vector<64x768xf32>
    %345 = arith.addf %268, %344 : vector<64x768xf32>
    %346 = arith.cmpf oeq, %123, %345 : vector<64x768xf32>
    %cst_143 = arith.constant 1.000000e+00 : f32
    %cst_144 = arith.constant 0.000000e+00 : f32
    %347 = vector.broadcast %cst_143 : f32 to vector<64x768xf32>
    %348 = vector.broadcast %cst_144 : f32 to vector<64x768xf32>
    %349 = arith.select %346, %347, %348 : vector<64x768xi1>, vector<64x768xf32>
    %cst_145 = arith.constant dense<0.000000e+00> : vector<1x64xf32>
    %350 = tpu.matmul %266, %349, %cst_145 {dimension_numbers = #tpu.dot_dimension_numbers<[1], [1], [0], [0], [0, 0, 1, 0], [], []>} : vector<1x768xf32>, vector<64x768xf32>, vector<1x64xf32> -> vector<1x64xf32>
    %351 = vector.extract_strided_slice %21 {offsets = [0, 6], sizes = [7, 1], strides = [1, 1]} : vector<7x14xf32> to vector<7x1xf32>
    %352 = vector.broadcast %351 : vector<7x1xf32> to vector<7x64xf32>
    %353 = vector.broadcast %350 : vector<1x64xf32> to vector<7x64xf32>
    %354 = arith.mulf %352, %353 : vector<7x64xf32>
    %355 = arith.addf %343, %354 : vector<7x64xf32>
    %cst_146 = arith.constant 7.000000e+00 : f32
    %356 = vector.broadcast %cst_146 : f32 to vector<64x768xf32>
    %357 = arith.addf %268, %356 : vector<64x768xf32>
    %358 = arith.cmpf oeq, %123, %357 : vector<64x768xf32>
    %cst_147 = arith.constant 1.000000e+00 : f32
    %cst_148 = arith.constant 0.000000e+00 : f32
    %359 = vector.broadcast %cst_147 : f32 to vector<64x768xf32>
    %360 = vector.broadcast %cst_148 : f32 to vector<64x768xf32>
    %361 = arith.select %358, %359, %360 : vector<64x768xi1>, vector<64x768xf32>
    %cst_149 = arith.constant dense<0.000000e+00> : vector<1x64xf32>
    %362 = tpu.matmul %266, %361, %cst_149 {dimension_numbers = #tpu.dot_dimension_numbers<[1], [1], [0], [0], [0, 0, 1, 0], [], []>} : vector<1x768xf32>, vector<64x768xf32>, vector<1x64xf32> -> vector<1x64xf32>
    %363 = vector.extract_strided_slice %21 {offsets = [0, 7], sizes = [7, 1], strides = [1, 1]} : vector<7x14xf32> to vector<7x1xf32>
    %364 = vector.broadcast %363 : vector<7x1xf32> to vector<7x64xf32>
    %365 = vector.broadcast %362 : vector<1x64xf32> to vector<7x64xf32>
    %366 = arith.mulf %364, %365 : vector<7x64xf32>
    %367 = arith.addf %355, %366 : vector<7x64xf32>
    %cst_150 = arith.constant 8.000000e+00 : f32
    %368 = vector.broadcast %cst_150 : f32 to vector<64x768xf32>
    %369 = arith.addf %268, %368 : vector<64x768xf32>
    %370 = arith.cmpf oeq, %123, %369 : vector<64x768xf32>
    %cst_151 = arith.constant 1.000000e+00 : f32
    %cst_152 = arith.constant 0.000000e+00 : f32
    %371 = vector.broadcast %cst_151 : f32 to vector<64x768xf32>
    %372 = vector.broadcast %cst_152 : f32 to vector<64x768xf32>
    %373 = arith.select %370, %371, %372 : vector<64x768xi1>, vector<64x768xf32>
    %cst_153 = arith.constant dense<0.000000e+00> : vector<1x64xf32>
    %374 = tpu.matmul %266, %373, %cst_153 {dimension_numbers = #tpu.dot_dimension_numbers<[1], [1], [0], [0], [0, 0, 1, 0], [], []>} : vector<1x768xf32>, vector<64x768xf32>, vector<1x64xf32> -> vector<1x64xf32>
    %375 = vector.extract_strided_slice %21 {offsets = [0, 8], sizes = [7, 1], strides = [1, 1]} : vector<7x14xf32> to vector<7x1xf32>
    %376 = vector.broadcast %375 : vector<7x1xf32> to vector<7x64xf32>
    %377 = vector.broadcast %374 : vector<1x64xf32> to vector<7x64xf32>
    %378 = arith.mulf %376, %377 : vector<7x64xf32>
    %379 = arith.addf %367, %378 : vector<7x64xf32>
    %cst_154 = arith.constant 9.000000e+00 : f32
    %380 = vector.broadcast %cst_154 : f32 to vector<64x768xf32>
    %381 = arith.addf %268, %380 : vector<64x768xf32>
    %382 = arith.cmpf oeq, %123, %381 : vector<64x768xf32>
    %cst_155 = arith.constant 1.000000e+00 : f32
    %cst_156 = arith.constant 0.000000e+00 : f32
    %383 = vector.broadcast %cst_155 : f32 to vector<64x768xf32>
    %384 = vector.broadcast %cst_156 : f32 to vector<64x768xf32>
    %385 = arith.select %382, %383, %384 : vector<64x768xi1>, vector<64x768xf32>
    %cst_157 = arith.constant dense<0.000000e+00> : vector<1x64xf32>
    %386 = tpu.matmul %266, %385, %cst_157 {dimension_numbers = #tpu.dot_dimension_numbers<[1], [1], [0], [0], [0, 0, 1, 0], [], []>} : vector<1x768xf32>, vector<64x768xf32>, vector<1x64xf32> -> vector<1x64xf32>
    %387 = vector.extract_strided_slice %21 {offsets = [0, 9], sizes = [7, 1], strides = [1, 1]} : vector<7x14xf32> to vector<7x1xf32>
    %388 = vector.broadcast %387 : vector<7x1xf32> to vector<7x64xf32>
    %389 = vector.broadcast %386 : vector<1x64xf32> to vector<7x64xf32>
    %390 = arith.mulf %388, %389 : vector<7x64xf32>
    %391 = arith.addf %379, %390 : vector<7x64xf32>
    %cst_158 = arith.constant 1.000000e+01 : f32
    %392 = vector.broadcast %cst_158 : f32 to vector<64x768xf32>
    %393 = arith.addf %268, %392 : vector<64x768xf32>
    %394 = arith.cmpf oeq, %123, %393 : vector<64x768xf32>
    %cst_159 = arith.constant 1.000000e+00 : f32
    %cst_160 = arith.constant 0.000000e+00 : f32
    %395 = vector.broadcast %cst_159 : f32 to vector<64x768xf32>
    %396 = vector.broadcast %cst_160 : f32 to vector<64x768xf32>
    %397 = arith.select %394, %395, %396 : vector<64x768xi1>, vector<64x768xf32>
    %cst_161 = arith.constant dense<0.000000e+00> : vector<1x64xf32>
    %398 = tpu.matmul %266, %397, %cst_161 {dimension_numbers = #tpu.dot_dimension_numbers<[1], [1], [0], [0], [0, 0, 1, 0], [], []>} : vector<1x768xf32>, vector<64x768xf32>, vector<1x64xf32> -> vector<1x64xf32>
    %399 = vector.extract_strided_slice %21 {offsets = [0, 10], sizes = [7, 1], strides = [1, 1]} : vector<7x14xf32> to vector<7x1xf32>
    %400 = vector.broadcast %399 : vector<7x1xf32> to vector<7x64xf32>
    %401 = vector.broadcast %398 : vector<1x64xf32> to vector<7x64xf32>
    %402 = arith.mulf %400, %401 : vector<7x64xf32>
    %403 = arith.addf %391, %402 : vector<7x64xf32>
    %cst_162 = arith.constant 1.100000e+01 : f32
    %404 = vector.broadcast %cst_162 : f32 to vector<64x768xf32>
    %405 = arith.addf %268, %404 : vector<64x768xf32>
    %406 = arith.cmpf oeq, %123, %405 : vector<64x768xf32>
    %cst_163 = arith.constant 1.000000e+00 : f32
    %cst_164 = arith.constant 0.000000e+00 : f32
    %407 = vector.broadcast %cst_163 : f32 to vector<64x768xf32>
    %408 = vector.broadcast %cst_164 : f32 to vector<64x768xf32>
    %409 = arith.select %406, %407, %408 : vector<64x768xi1>, vector<64x768xf32>
    %cst_165 = arith.constant dense<0.000000e+00> : vector<1x64xf32>
    %410 = tpu.matmul %266, %409, %cst_165 {dimension_numbers = #tpu.dot_dimension_numbers<[1], [1], [0], [0], [0, 0, 1, 0], [], []>} : vector<1x768xf32>, vector<64x768xf32>, vector<1x64xf32> -> vector<1x64xf32>
    %411 = vector.extract_strided_slice %21 {offsets = [0, 11], sizes = [7, 1], strides = [1, 1]} : vector<7x14xf32> to vector<7x1xf32>
    %412 = vector.broadcast %411 : vector<7x1xf32> to vector<7x64xf32>
    %413 = vector.broadcast %410 : vector<1x64xf32> to vector<7x64xf32>
    %414 = arith.mulf %412, %413 : vector<7x64xf32>
    %415 = arith.addf %403, %414 : vector<7x64xf32>
    %cst_166 = arith.constant 1.200000e+01 : f32
    %416 = vector.broadcast %cst_166 : f32 to vector<64x768xf32>
    %417 = arith.addf %268, %416 : vector<64x768xf32>
    %418 = arith.cmpf oeq, %123, %417 : vector<64x768xf32>
    %cst_167 = arith.constant 1.000000e+00 : f32
    %cst_168 = arith.constant 0.000000e+00 : f32
    %419 = vector.broadcast %cst_167 : f32 to vector<64x768xf32>
    %420 = vector.broadcast %cst_168 : f32 to vector<64x768xf32>
    %421 = arith.select %418, %419, %420 : vector<64x768xi1>, vector<64x768xf32>
    %cst_169 = arith.constant dense<0.000000e+00> : vector<1x64xf32>
    %422 = tpu.matmul %266, %421, %cst_169 {dimension_numbers = #tpu.dot_dimension_numbers<[1], [1], [0], [0], [0, 0, 1, 0], [], []>} : vector<1x768xf32>, vector<64x768xf32>, vector<1x64xf32> -> vector<1x64xf32>
    %423 = vector.extract_strided_slice %21 {offsets = [0, 12], sizes = [7, 1], strides = [1, 1]} : vector<7x14xf32> to vector<7x1xf32>
    %424 = vector.broadcast %423 : vector<7x1xf32> to vector<7x64xf32>
    %425 = vector.broadcast %422 : vector<1x64xf32> to vector<7x64xf32>
    %426 = arith.mulf %424, %425 : vector<7x64xf32>
    %427 = arith.addf %415, %426 : vector<7x64xf32>
    %cst_170 = arith.constant 1.300000e+01 : f32
    %428 = vector.broadcast %cst_170 : f32 to vector<64x768xf32>
    %429 = arith.addf %268, %428 : vector<64x768xf32>
    %430 = arith.cmpf oeq, %123, %429 : vector<64x768xf32>
    %cst_171 = arith.constant 1.000000e+00 : f32
    %cst_172 = arith.constant 0.000000e+00 : f32
    %431 = vector.broadcast %cst_171 : f32 to vector<64x768xf32>
    %432 = vector.broadcast %cst_172 : f32 to vector<64x768xf32>
    %433 = arith.select %430, %431, %432 : vector<64x768xi1>, vector<64x768xf32>
    %cst_173 = arith.constant dense<0.000000e+00> : vector<1x64xf32>
    %434 = tpu.matmul %266, %433, %cst_173 {dimension_numbers = #tpu.dot_dimension_numbers<[1], [1], [0], [0], [0, 0, 1, 0], [], []>} : vector<1x768xf32>, vector<64x768xf32>, vector<1x64xf32> -> vector<1x64xf32>
    %435 = vector.extract_strided_slice %21 {offsets = [0, 13], sizes = [7, 1], strides = [1, 1]} : vector<7x14xf32> to vector<7x1xf32>
    %436 = vector.broadcast %435 : vector<7x1xf32> to vector<7x64xf32>
    %437 = vector.broadcast %434 : vector<1x64xf32> to vector<7x64xf32>
    %438 = arith.mulf %436, %437 : vector<7x64xf32>
    %439 = arith.addf %427, %438 : vector<7x64xf32>
    %cst_174 = arith.constant 0.000000e+00 : f32
    %440 = vector.broadcast %cst_174 : f32 to vector<7x64xf32>
    %441 = arith.maximumf %439, %440 : vector<7x64xf32>
    %cst_175 = arith.constant dense<0.000000e+00> : vector<1x64xf32>
    %442 = tpu.matmul %23, %441, %cst_175 {dimension_numbers = #tpu.dot_dimension_numbers<[1], [0], [0], [1], [0, 0, 1, 1], [], []>} : vector<1x7xf32>, vector<7x64xf32>, vector<1x64xf32> -> vector<1x64xf32>
    %443 = vector.broadcast %24 : vector<1x1xf32> to vector<1x64xf32>
    %444 = arith.addf %442, %443 : vector<1x64xf32>
    %445 = vector.broadcast %27 : vector<1x1xf32> to vector<1x64xf32>
    %446 = arith.addf %445, %444 : vector<1x64xf32>
    %cst_176 = arith.constant 1.000000e+01 : f32
    %447 = vector.broadcast %cst_176 : f32 to vector<1x64xf32>
    %448 = arith.mulf %446, %447 : vector<1x64xf32>
    %449 = arith.negf %448 : vector<1x64xf32>
    %450 = math.exp %449 : vector<1x64xf32>
    %cst_177 = arith.constant 1.000000e+00 : f32
    %451 = vector.broadcast %cst_177 : f32 to vector<1x64xf32>
    %452 = arith.addf %451, %450 : vector<1x64xf32>
    %453 = arith.divf %451, %452 : vector<1x64xf32>
    %cst_178 = arith.constant 1.00000095 : f32
    %454 = vector.broadcast %cst_178 : f32 to vector<1x64xf32>
    %455 = arith.mulf %453, %454 : vector<1x64xf32>
    %cst_179 = arith.constant -9.99999997E-7 : f32
    %456 = vector.broadcast %cst_179 : f32 to vector<1x64xf32>
    %457 = arith.addf %455, %456 : vector<1x64xf32>
    %458 = tpu.iota {dimensions = array<i32: 1>} : vector<1x64xi32>
    %459 = arith.sitofp %458 : vector<1x64xi32> to vector<1x64xf32>
    %cst_180 = arith.constant 0.000000e+00 : f32
    %460 = vector.broadcast %cst_180 : f32 to vector<1x64xf32>
    %461 = arith.cmpf ogt, %457, %460 : vector<1x64xf32>
    %462 = vector.broadcast %112 : f32 to vector<1x64xf32>
    %463 = arith.cmpf olt, %459, %462 : vector<1x64xf32>
    %464 = arith.andi %461, %463 : vector<1x64xi1>
    %cst_181 = arith.constant 1.000000e+00 : f32
    %cst_182 = arith.constant 0.000000e+00 : f32
    %465 = vector.broadcast %cst_181 : f32 to vector<1x64xf32>
    %466 = vector.broadcast %cst_182 : f32 to vector<1x64xf32>
    %467 = arith.select %464, %465, %466 : vector<1x64xi1>, vector<1x64xf32>
    %cst_183 = arith.constant dense<0.000000e+00> : vector<1x128xf32>
    %468 = tpu.matmul %467, %120, %cst_183 {dimension_numbers = #tpu.dot_dimension_numbers<[1], [0], [0], [1], [0, 0, 1, 1], [], []>} : vector<1x64xf32>, vector<64x128xf32>, vector<1x128xf32> -> vector<1x128xf32>
    %cst_184 = arith.constant dense<0.000000e+00> : vector<16x16xf32>
    %469 = tpu.matmul %101, %9, %cst_184 {dimension_numbers = #tpu.dot_dimension_numbers<[1], [0], [0], [1], [0, 0, 1, 1], [], []>} : vector<16x32xf32>, vector<32x16xf32>, vector<16x16xf32> -> vector<16x16xf32>
    %470 = vector.broadcast %468 : vector<1x128xf32> to vector<16x128xf32>
    %471 = arith.mulf %61, %470 : vector<16x128xf32>
    %472 = vector.broadcast %65 : vector<1x128xf32> to vector<16x128xf32>
    %473 = arith.mulf %471, %472 : vector<16x128xf32>
    %cst_185 = arith.constant dense<0.000000e+00> : vector<16xf32>
    %474 = vector.multi_reduction <add>, %473, %cst_185 [1] : vector<16x128xf32> to vector<16xf32>
    %475 = vector.shape_cast %474 : vector<16xf32> to vector<16x1xf32>
    %cst_186 = arith.constant 0.000000e+00 : f32
    %476 = vector.broadcast %cst_186 : f32 to vector<16x1xf32>
    %477 = arith.cmpf oeq, %475, %476 : vector<16x1xf32>
    %cst_187 = arith.constant 1.000000e+00 : f32
    %cst_188 = arith.constant 0.000000e+00 : f32
    %478 = vector.broadcast %cst_187 : f32 to vector<16x1xf32>
    %479 = vector.broadcast %cst_188 : f32 to vector<16x1xf32>
    %480 = arith.select %477, %478, %479 : vector<16x1xi1>, vector<16x1xf32>
    %cst_189 = arith.constant dense<0.000000e+00> : vector<16xf32>
    %481 = vector.multi_reduction <add>, %471, %cst_189 [1] : vector<16x128xf32> to vector<16xf32>
    %482 = vector.shape_cast %481 : vector<16xf32> to vector<16x1xf32>
    %483 = arith.addf %482, %480 : vector<16x1xf32>
    %cst_190 = arith.constant 0.000000e+00 : f32
    %484 = vector.broadcast %cst_190 : f32 to vector<16x1xf32>
    %485 = arith.cmpf ogt, %483, %484 : vector<16x1xf32>
    %486 = math.rsqrt %483 : vector<16x1xf32>
    %cst_191 = arith.constant 0.000000e+00 : f32
    %487 = vector.broadcast %cst_191 : f32 to vector<16x1xf32>
    %488 = arith.select %485, %486, %487 : vector<16x1xi1>, vector<16x1xf32>
    %489 = vector.broadcast %488 : vector<16x1xf32> to vector<16x16xf32>
    %490 = arith.mulf %489, %469 : vector<16x16xf32>
    %cst_192 = arith.constant dense<0.000000e+00> : vector<128x16xf32>
    %491 = tpu.matmul %5, %490, %cst_192 {dimension_numbers = #tpu.dot_dimension_numbers<[1], [0], [0], [1], [0, 0, 1, 1], [], []>} : vector<128x16xf32>, vector<16x16xf32>, vector<128x16xf32> -> vector<128x16xf32>
    %cst_193 = arith.constant dense<0.000000e+00> : vector<16x16xf32>
    %492 = tpu.matmul %471, %491, %cst_193 {dimension_numbers = #tpu.dot_dimension_numbers<[1], [0], [0], [1], [0, 0, 1, 1], [], []>} : vector<16x128xf32>, vector<128x16xf32>, vector<16x16xf32> -> vector<16x16xf32>
    %493 = vector.broadcast %480 : vector<16x1xf32> to vector<16x16xf32>
    %494 = arith.mulf %493, %490 : vector<16x16xf32>
    %495 = arith.addf %492, %494 : vector<16x16xf32>
    %496 = vector.broadcast %488 : vector<16x1xf32> to vector<16x16xf32>
    %497 = arith.mulf %496, %495 : vector<16x16xf32>
    %498 = vector.broadcast %10 : vector<1x16xf32> to vector<16x16xf32>
    %499 = arith.addf %497, %498 : vector<16x16xf32>
    %cst_194 = arith.constant 0.000000e+00 : f32
    %500 = vector.broadcast %cst_194 : f32 to vector<16x16xf32>
    %501 = arith.cmpf oge, %499, %500 : vector<16x16xf32>
    %cst_195 = arith.constant 2.500000e-01 : f32
    %502 = vector.broadcast %cst_195 : f32 to vector<16x16xf32>
    %503 = arith.mulf %502, %499 : vector<16x16xf32>
    %504 = arith.select %501, %499, %503 : vector<16x16xi1>, vector<16x16xf32>
    %cst_196 = arith.constant dense<0.000000e+00> : vector<16x32xf32>
    %505 = tpu.matmul %504, %11, %cst_196 {dimension_numbers = #tpu.dot_dimension_numbers<[1], [0], [0], [1], [0, 0, 1, 1], [], []>} : vector<16x16xf32>, vector<16x32xf32>, vector<16x32xf32> -> vector<16x32xf32>
    %506 = vector.broadcast %12 : vector<1x32xf32> to vector<16x32xf32>
    %507 = arith.addf %505, %506 : vector<16x32xf32>
    %cst_197 = arith.constant dense<0.000000e+00> : vector<32xf32>
    %508 = vector.multi_reduction <add>, %507, %cst_197 [0] : vector<16x32xf32> to vector<32xf32>
    %509 = vector.shape_cast %508 : vector<32xf32> to vector<1x32xf32>
    %cst_198 = arith.constant 1.600000e+01 : f32
    %510 = vector.broadcast %cst_198 : f32 to vector<1x32xf32>
    %511 = arith.divf %509, %510 : vector<1x32xf32>
    %512 = vector.broadcast %511 : vector<1x32xf32> to vector<16x32xf32>
    %513 = arith.subf %507, %512 : vector<16x32xf32>
    %514 = arith.mulf %513, %513 : vector<16x32xf32>
    %cst_199 = arith.constant dense<0.000000e+00> : vector<32xf32>
    %515 = vector.multi_reduction <add>, %514, %cst_199 [0] : vector<16x32xf32> to vector<32xf32>
    %516 = vector.shape_cast %515 : vector<32xf32> to vector<1x32xf32>
    %cst_200 = arith.constant 1.600000e+01 : f32
    %517 = vector.broadcast %cst_200 : f32 to vector<1x32xf32>
    %518 = arith.divf %516, %517 : vector<1x32xf32>
    %cst_201 = arith.constant 9.99999974E-6 : f32
    %519 = vector.broadcast %cst_201 : f32 to vector<1x32xf32>
    %520 = arith.addf %518, %519 : vector<1x32xf32>
    %521 = math.rsqrt %520 : vector<1x32xf32>
    %522 = vector.broadcast %521 : vector<1x32xf32> to vector<16x32xf32>
    %523 = arith.mulf %513, %522 : vector<16x32xf32>
    %524 = vector.broadcast %13 : vector<1x32xf32> to vector<16x32xf32>
    %525 = arith.mulf %523, %524 : vector<16x32xf32>
    %526 = vector.broadcast %14 : vector<1x32xf32> to vector<16x32xf32>
    %527 = arith.addf %525, %526 : vector<16x32xf32>
    %cst_202 = arith.constant 0.000000e+00 : f32
    %528 = vector.broadcast %cst_202 : f32 to vector<16x32xf32>
    %529 = arith.cmpf oge, %527, %528 : vector<16x32xf32>
    %cst_203 = arith.constant 2.500000e-01 : f32
    %530 = vector.broadcast %cst_203 : f32 to vector<16x32xf32>
    %531 = arith.mulf %530, %527 : vector<16x32xf32>
    %532 = arith.select %529, %527, %531 : vector<16x32xi1>, vector<16x32xf32>
    %cst_204 = arith.constant dense<0.000000e+00> : vector<16x16xf32>
    %533 = tpu.matmul %532, %15, %cst_204 {dimension_numbers = #tpu.dot_dimension_numbers<[1], [0], [0], [1], [0, 0, 1, 1], [], []>} : vector<16x32xf32>, vector<32x16xf32>, vector<16x16xf32> -> vector<16x16xf32>
    %534 = vector.broadcast %16 : vector<1x16xf32> to vector<16x16xf32>
    %535 = arith.addf %533, %534 : vector<16x16xf32>
    %536 = arith.subf %535, %6 : vector<16x16xf32>
    %537 = arith.mulf %536, %536 : vector<16x16xf32>
    %538 = vector.shape_cast %537 : vector<16x16xf32> to vector<1x16x16xf32>
    %cst_205 = arith.constant dense<0.000000e+00> : vector<1xf32>
    %539 = vector.multi_reduction <add>, %538, %cst_205 [1, 2] : vector<1x16x16xf32> to vector<1xf32>
    %540 = vector.shape_cast %539 : vector<1xf32> to vector<1x1x1xf32>
    %541 = vector.extract %540[0, 0, 0] : f32 from vector<1x1x1xf32>
    %cst_206 = arith.constant 3.906250e-03 : f32
    %542 = arith.mulf %541, %cst_206 : f32
    %cst_207 = arith.constant 0.000000e+00 : f32
    %543 = vector.broadcast %cst_207 : f32 to vector<24x128xf32>
    %c0_208 = arith.constant 0 : index
    %c0_209 = arith.constant 0 : index
    %544 = vector.load %arg4[%c0_208, %c0_209] : memref<24x128xf32, #tpu.memory_space<vmem>>, vector<24x128xf32>
    tpu.vector_store %arg4[%c0_208, %c0_209], %543 {strides = array<i32>} : memref<24x128xf32, #tpu.memory_space<vmem>>, vector<24x128xf32>,
    %c0_210 = arith.constant 0 : index
    %c0_211 = arith.constant 0 : index
    %545 = vector.load %arg4[%c0_210, %c0_211] : memref<24x128xf32, #tpu.memory_space<vmem>>, vector<16x16xf32>
    tpu.vector_store %arg4[%c0_210, %c0_211], %535 {strides = array<i32>} : memref<24x128xf32, #tpu.memory_space<vmem>>, vector<16x16xf32>,
    %546 = vector.broadcast %542 : f32 to vector<1x1xf32>
    %c16_212 = arith.constant 16 : index
    %c0_213 = arith.constant 0 : index
    %547 = vector.load %arg4[%c16_212, %c0_213] : memref<24x128xf32, #tpu.memory_space<vmem>>, vector<1x1xf32>
    tpu.vector_store %arg4[%c16_212, %c0_213], %546 {strides = array<i32>} : memref<24x128xf32, #tpu.memory_space<vmem>>, vector<1x1xf32>,
    return
  }
  func.func @transform_0(%arg0: i32) -> (i32, i32) {
    %c0_i32 = arith.constant 0 : i32
    %c0_i32_0 = arith.constant 0 : i32
    %c0_i32_1 = arith.constant 0 : i32
    return %c0_i32, %c0_i32_0 : i32, i32
  }
  func.func @transform_1(%arg0: i32) -> (i32, i32) {
    %c0_i32 = arith.constant 0 : i32
    %c0_i32_0 = arith.constant 0 : i32
    %c0_i32_1 = arith.constant 0 : i32
    return %c0_i32, %c0_i32_0 : i32, i32
  }
  func.func @transform_2(%arg0: i32) -> (i32, i32) {
    %c0_i32 = arith.constant 0 : i32
    %c0_i32_0 = arith.constant 0 : i32
    %c0_i32_1 = arith.constant 0 : i32
    return %c0_i32, %c0_i32_0 : i32, i32
  }
  func.func @transform_3(%arg0: i32) -> (i32, i32) {
    %c0_i32 = arith.constant 0 : i32
    %c0_i32_0 = arith.constant 0 : i32
    %c0_i32_1 = arith.constant 0 : i32
    return %c0_i32, %c0_i32_0 : i32, i32
  }
}

</mosaic_0001>

<bundles_post_ra>
// kernel: self_pgo_forward.1
= control target key start
LH: loop header
LB: loop body
LE: loop exit
PB: predicated region body
PF: predicated region fallthrough
CT: control target
= control target key end

     0   :  { %vm75_vm0 = vcmask 1045504   ;;  %v20798_v0 = vmov 0.0|0.0   ;;  %vm14388_vm1 = vmmov 1   ;;  %vm20796_vm3 = vmmov 0   ;;  %s20789_s0 = inlined_call_operand.vmem [shape: f32[32,128], index: 0, kind: input, shape index: {}]   ;;  %s20790_s2 = inlined_call_operand.vmem [shape: f32[152,128], index: 2, kind: input, shape index: {}]   ;;  %s20791_s1 = inlined_call_operand.vmem [shape: f32[128,16], index: 1, kind: input, shape index: {}]   ;;  %s20792_s3 = inlined_call_operand.vmem [shape: f32[24,128], index: 3, kind: output, shape index: {}]  }
   0x1   :  { %12665 = vmatprep.subr.bf16.mxu0 %v20798_v0  ;;  %v16_v1 = vld [vmem:[%s20789_s0 + $0xe] sm:$0xff]  ;;  %v17_v2 = vld [vmem:[%s20789_s0 + $0x16] sm:$0x3f]  ;;  %vm12667_vm2 = vmpackc.low %vm75_vm0, %vm14388_vm1  ;;  %v20801_v4 = vmov 0.0   ;;  %v20800_v5 = vmov 0   ;;  %vm71_vm4 = vcmask 113664   ;;  %v251_v31 = vlaneseq }
   0x2   :  { %v12666_v3 = vpack.c.bf16 %v17_v2, %v16_v1  ;;  %12417 = vmatprep.mubr.msk.f32.mxu0 %vm20796_vm3, %v20801_v4  ;;  %14330 = vset.pattern.permute.xlu0 %v20800_v5  ;;  %v58_v6 = vld [vmem:[%s20790_s2 + $0x7d] sm:$0x7f]  ;;  %v57_v7 = vld [vmem:[%s20790_s2 + $0x76] sm:$0x7f]  ;;  %v60_v8 = vld [vmem:[%s20790_s2 + $0x85] sm:$0x1] }
   0x3   :  { %68 = vperm.xlu0 %14330, %v58_v6   ;;  %12420 = vmatprep.subr.mxu1 %v20801_v4  ;;  %v65_v9 = vld [vmem:[%s20790_s2 + $0x96] sm:$0x1]  ;;  %v40_v11 = vld [vmem:[%s20790_s2 + $0x18] sm:$0xff]  ;;  %vm20795_vm5 = vcmask 1046528   ;;  %v59_v18 = vld [vmem:[%s20790_s2 + $0x84] sm:$0x1] }
   0x4   :  { %12668 = vmatpush3.bf16.msk.msra.mxu0 %vm12667_vm2, %v12666_v3  ;;  %12422 = vmatprep.mubr.msk.f32.mxu1 %vm20796_vm3, %v20801_v4  ;;  %v39_v10 = vld [vmem:[%s20790_s2 + $0x10] sm:$0xff]  ;;  %vm20794_vm6 = vcmask 56320   ;;  %v37_v19 = vld [vmem:[%s20790_s2] sm:$0xff]  ;;  %vm20793_vm7 = vcmask 130048   ;;  %v38_v20 = vld [vmem:[%s20790_s2 + $0x8] sm:$0xff]  ;;  %v14472_v32 = vshrl.u32 %v251_v31, 7 }
   0x5   :  { %14331 = vset.pattern.permute.xlu1 %v20800_v5  ;;  %v12669_v16 = vpack.c.bf16 %v40_v11, %v39_v10  ;;  %v19_v35 = vld [vmem:[%s20789_s0 + $0x1d] sm:$0x1]  ;;  %v18_v37 = vld [vmem:[%s20789_s0 + $0x1c] sm:$0x1]  ;;  %v20_v43 = vld [vmem:[%s20789_s0 + $0x1e] sm:$0x1] }
   0x6   :  { %235 = vperm.xlu1 %14331, %v65_v9   ;;  %v14475_v33 = vsub.s32 0, %v14472_v32  ;;  %v14478_v34 = vadd.s32 8, %v14472_v32  ;;  %v14487_v39 = vcvt.s32.f32 %v14472_v32  ;;  %vm264_vm8 = vcmp.eq.f32.partialorder %v18_v37, %v19_v35  ;;  %v61_v56 = vld [vmem:[%s20790_s2 + $0x86] sm:$0x7f]  ;;  %v62_v57 = vld [vmem:[%s20790_s2 + $0x8d] sm:$0x7f] }
   0x7   :  { %12418 = vmatmul.mubr.msk.f32.vlgmr.msra.gmra.mrb[0].mxu0 %vm71_vm4, %v57_v7  ;;  %152 = vperm.xlu0 %14330, %v60_v8   ;;  %v265_v45 = vsel %vm264_vm8, 1.0, %v20801_v4  ;;  %vm784_vm12 = vcmask 1040384   ;;  %v21_v60 = vld [vmem:[%s20791_s1] sm:$0xff]  ;;  %v14596_v37 = vadd.s32 56, %v14472_v32  ;;  %v21016_v5 = vmov 0 }
   0x8   :  { %20951 = vst [vmem:[#allocation2_spill] sm:$0xff] %v14475_v33  ;;  %v259_v40 = vrot.slane %v19_v35, %v14475_v33  ;;  %v14491_v41 = vcvt.s32.f32 %v14478_v34  ;;  %v14513_v50 = vrot.slane %v265_v45, %v14475_v33  ;;  %12436 = vmatprep.mubr.msk.f32.mxu0 %vm20793_vm7, %v21_v60  ;;  %v25_v35 = vld [vmem:[%s20791_s1 + $0x20] sm:$0xff]  ;;  %v678_v60 = vadd.s32 112, %v14472_v32 }
   0x9   :  { %v29_v45 = vld [vmem:[%s20791_s1 + $0x40] sm:$0xff] }
   0xa   :  { %vm260_vm10 = vcmp.eq.f32.partialorder %v14487_v39, %v259_v40  ;;  %vm261_vm11 = vcmp.eq.f32.partialorder %v14491_v41, %v259_v40  ;;  %20954 = vst [vmem:[#allocation5_spill] sm:$0xff] %v14513_v50  ;;  %v27_v40 = vld [vmem:[%s20791_s1 + $0x30] sm:$0xff] }
   0xb   :  { %v14503_v47 = vsel %vm260_vm10, 1.0, %v20801_v4  ;;  %v14506_v48 = vsel %vm261_vm11, 1.0, %v20801_v4 }
   0xc   :  { %20952 = vst [vmem:[#allocation3_spill] sm:$0xff] %v14503_v47  ;;  %20953 = vst [vmem:[#allocation4_spill] sm:$0xff] %v14506_v48 }
  0x82   :  { %v69_v12 = vpop.permute.xlu0 %68 }
  0x85   :  { %v236_v23 = vpop.permute.xlu1 %235 }
  0x86   :  { %v153_v21 = vpop.permute.xlu0 %152 }
  0xda   :  { %v145_v13 = vpop.f32.mrb[0].mxu0 }
  0xdb   :  { %v146_v14 = vadd.f32 %v145_v13, %v69_v12  ;;  %v12419_v15 = vpop.f32.mrb[1].mxu0 }
  0xdd   :  { %v149_v17 = vmax.f32 %v146_v14, 0.0 }
  0xdf   :  { %12421 = vmatpush3.msk.msra.mxu1 %vm20795_vm5, %v149_v17 }
  0xe0   :  { %12423 = vmatmul.mubr.msk.f32.vlgmr.msra.gmra.mrb[0].mxu1 %vm20794_vm6, %v59_v18  ;;  %12670 = vmatprep.subr.bf16.mxu1 %v12669_v16 }
  0xe1   :  { %12672 = vmatpush3.bf16.msra.mxu1 %v12669_v16  ;;  %12429 = vmatprep.mubr.msk.f32.mxu1 %vm20793_vm7, %v37_v19 }
  0xe4   :  { %12430 = vmatmul.mubr.msk.f32.vlgmr.msra.gmra.mrb[2].mxu1 %vm20793_vm7, %v38_v20  ;;  %v14544_v20 = vand.u32 127, %v251_v31  ;;  %v20803_v31 = vmov 1.0|1.0  }
  0xe6   :  { %vm682_vm1 = vcmp.lt.s32.totalorder %v14472_v32, %v14544_v20  ;;  %vm683_vm2 = vcmp.lt.s32.totalorder %v14478_v34, %v14544_v20  ;;  %v24_v34 = vld [vmem:[%s20791_s1 + $0x18] sm:$0xff] }
  0xe7   :  { %vm12710_vm4 = vmpackc.low %vm683_vm2, %vm682_vm1 }
 0x1b3   :  { %v229_v22 = vpop.f32.mrb[0].mxu1 }
 0x1b4   :  { %v230_v24 = vadd.f32 %v229_v22, %v153_v21  ;;  %v12424_v25 = vpop.f32.mrb[1].mxu1 }
 0x1b5   :  { %v14556_v25 = vadd.s32 16, %v14472_v32 }
 0x1b6   :  { %v238_v26 = vadd.f32 %v236_v23, %v230_v24 }
 0x1b7   :  { %v12431_v58 = vpop.f32.mrb[2].mxu1  ;;  %vm684_vm8 = vcmp.lt.s32.totalorder %v14556_v25, %v14544_v20 }
 0x1b8   :  { %v10809_v27 = vmul.f32 -10.0, %v238_v26  ;;  %v339_v59 = vpop.f32.mrb[3].mxu1  ;;  %v14559_v26 = vadd.s32 24, %v14472_v32 }
 0x1ba   :  { %v241_v28 = vmul.f32 1.442695, %v10809_v27  ;;  %v22_v27 = vld [vmem:[%s20791_s1 + $0x8] sm:$0xff] }
 0x1bc   :  { %14347 = vpow2.f32 %v241_v28  ;;  %v23_v28 = vld [vmem:[%s20791_s1 + $0x10] sm:$0xff] }
 0x1c6   :  { %v14348_v29 = vpop.eup %14347 }
 0x1c7   :  { %v243_v30 = vadd.f32 1.0, %v14348_v29  ;;  %v14573_v29 = vadd.s32 32, %v14472_v32 }
 0x1c9   :  { %14349 = vrcp.f32 %v243_v30  ;;  %v14576_v30 = vadd.s32 40, %v14472_v32  ;;  %vm686_vm11 = vcmp.lt.s32.totalorder %v14573_v29, %v14544_v20 }
 0x1d3   :  { %v14350_v36 = vpop.eup %14349 }
 0x1d4   :  { %v246_v38 = vmul.f32 1.000001, %v14350_v36  ;;  %v14593_v36 = vadd.s32 48, %v14472_v32 }
 0x1d6   :  { %v247_v42 = vadd.f32 -1e-06, %v246_v38  ;;  %v26_v38 = vld [vmem:[%s20791_s1 + $0x28] sm:$0xff] }
 0x1d8   :  { %vm248_vm9 = vcmp.gt.f32.partialorder %v247_v42, 0.0  ;;  %v672_v42 = vadd.s32 64, %v14472_v32 }
 0x1d9   :  { %v249_v44 = vsel %vm248_vm9, 1.0, %v20801_v4  ;;  %vm685_vm9 = vcmp.lt.s32.totalorder %v14559_v26, %v14544_v20 }
 0x1da   :  { %v14500_v46 = vmul.f32 %v249_v44, %v20_v43  ;;  %vm12713_vm10 = vmpackc.low %vm685_vm9, %vm684_vm8  ;;  %v673_v43 = vadd.s32 72, %v14472_v32  ;;  %v28_v44 = vld [vmem:[%s20791_s1 + $0x38] sm:$0xff]  ;;  %vm690_vm1 = vcmp.lt.s32.totalorder %v672_v42, %v14544_v20 }
 0x1dc   :  { %v14510_v49 = vrot.slane %v14500_v46, %v14475_v33  ;;  %v785_v55 = vsel %vm784_vm12, %v14500_v46, 0.0  ;;  %vm687_vm12 = vcmp.lt.s32.totalorder %v14576_v30, %v14544_v20  ;;  %vm691_vm2 = vcmp.lt.s32.totalorder %v673_v43, %v14544_v20 }
 0x1de   :  { %v352_v51 = vmul.f32 %v14510_v49, %v14503_v47  ;;  %v14519_v52 = vmul.f32 %v14510_v49, %v14506_v48  ;;  %v21027_v48 = vmov 0 }
 0x1e0   :  { %12492 = vmatprep.mubr.f32.mxu1 %v352_v51  ;;  %v359_v53 = vmul.f32 %v14513_v50, %v14519_v52  ;;  %v358_v54 = vmul.f32 %v14513_v50, %v352_v51  ;;  %v21024_v50 = vmov 0 }
 0x1e2   :  { %362 = vadd.xlane.f32.xlu0 %v359_v53  ;;  %360 = vadd.xlane.f32.xlu1 %v358_v54  ;;  %v675_v53 = vadd.s32 88, %v14472_v32  ;;  %v30_v54 = vld [vmem:[%s20791_s1 + $0x48] sm:$0xff] }
 0x1e4   :  { %vm693_vm9 = vcmp.lt.s32.totalorder %v675_v53, %v14544_v20 }
 0x1e6   :  { %368 = vadd.xlane.f32.xlu0 %v352_v51  ;;  %370 = vadd.xlane.f32.xlu1 %v14519_v52  ;;  %v674_v51 = vadd.s32 80, %v14472_v32 }
 0x1e8   :  { %vm692_vm8 = vcmp.lt.s32.totalorder %v674_v51, %v14544_v20 }
 0x1ea   :  { %786 = vadd.xlane.f32.xlu0 %v785_v55  ;;  %v31_v55 = vld [vmem:[%s20791_s1 + $0x50] sm:$0xff] }
 0x1f7   :  { %5817 = vperm.xlu1 %14331, %v61_v56   ;;  %v676_v56 = vadd.s32 96, %v14472_v32 }
 0x200   :  { %5497 = vperm.xlu0 %14330, %v62_v57   ;;  %v677_v57 = vadd.s32 104, %v14472_v32 }
 0x26f   :  { %v363_v61 = vpop.xlane.xlu0 %362  ;;  %v361_v62 = vpop.xlane.xlu1 %360 }
 0x270   :  { %vm365_vm13 = vcmp.eq.f32.partialorder %v363_v61, 0.0  ;;  %vm364_vm14 = vcmp.eq.f32.partialorder %v361_v62, 0.0  ;;  %v679_v61 = vadd.s32 120, %v14472_v32  ;;  %v34_v62 = vld [vmem:[%s20791_s1 + $0x68] sm:$0xff]  ;;  %v36_v32 = vld [vmem:[%s20791_s1 + $0x78] sm:$0xff] }
 0x271   :  { %v366_v1 = vsel %vm364_vm14, 1.0, %v20801_v4  ;;  %v367_v2 = vsel %vm365_vm13, 1.0, %v20801_v4  ;;  %vm12716_vm13 = vmpackc.low %vm687_vm12, %vm686_vm11  ;;  %vm688_vm14 = vcmp.lt.s32.totalorder %v14593_v36, %v14544_v20  ;;  %vm694_vm11 = vcmp.lt.s32.totalorder %v676_v56, %v14544_v20 }
 0x272   :  { %vm695_vm12 = vcmp.lt.s32.totalorder %v677_v57, %v14544_v20  ;;  %v20980_v57 = vmov 0  ;;  %v21163_v56 = vmov 0 }
 0x273   :  { %v369_v63 = vpop.xlane.xlu0 %368  ;;  %v371_v3 = vpop.xlane.xlu1 %370 }
 0x274   :  { %v372_v6 = vadd.f32 %v369_v63, %v366_v1  ;;  %v373_v7 = vadd.f32 %v371_v3, %v367_v2  ;;  %v35_v63 = vld [vmem:[%s20791_s1 + $0x70] sm:$0xff]  ;;  %v14686_v3 = vcvt.s32.f32 %v14559_v26 }
 0x276   :  { %14351 = vrsqrt.f32 %v372_v6  ;;  %vm374_vm15 = vcmp.gt.f32.partialorder %v372_v6, 0.0  ;;  %vm375_vm0 = vcmp.gt.f32.partialorder %v373_v7, 0.0  ;;  %v14689_v6 = vcvt.s32.f32 %v14573_v29 }
 0x277   :  { %14353 = vrsqrt.f32 %v373_v7  ;;  %v787_v8 = vpop.xlane.xlu0 %786  ;;  %v14692_v7 = vcvt.s32.f32 %v14576_v30 }
 0x278   :  { %v788_v9 = vrot.slane %v787_v8, 4 }
 0x27a   :  { %v789_v10 = vadd.f32 %v788_v9, %v787_v8  ;;  %v14695_v8 = vcvt.s32.f32 %v14593_v36  ;;  %v898_v9 = vadd.s32 384, %v14544_v20  ;;  %v897_v36 = vadd.s32 256, %v14544_v20 }
 0x27c   :  { %v790_v11 = vrot.slane %v789_v10, 2  ;;  %v14843_v43 = vcvt.s32.f32 %v897_v36  ;;  %v21012_v36 = vmov 0 }
 0x27e   :  { %v791_v12 = vadd.f32 %v790_v11, %v789_v10  ;;  %v899_v11 = vadd.s32 512, %v14544_v20 }
 0x280   :  { %v14352_v13 = vpop.eup %14351  ;;  %v792_v14 = vrot.slane %v791_v12, 1  ;;  %v14775_v30 = vcvt.s32.f32 %v899_v11  ;;  %v21000_v11 = vmov 0 }
 0x281   :  { %v14354_v15 = vpop.eup %14353  ;;  %v14538_v16 = vsel %vm374_vm15, %v14352_v13, 0.0  ;;  %vm689_vm15 = vcmp.lt.s32.totalorder %v14596_v37, %v14544_v20  ;;  %v14708_v13 = vcvt.s32.f32 %v14544_v20 }
 0x282   :  { %20955 = vst [vmem:[#allocation6_spill] sm:$0xff] %v14538_v16  ;;  %v14540_v17 = vsel %vm375_vm0, %v14354_v15, 0.0  ;;  %v380_v18 = vmul.f32 %v14538_v16, %v339_v59  ;;  %v793_v19 = vadd.f32 %v792_v14, %v791_v12  ;;  %vm12719_vm0 = vmpackc.low %vm689_vm15, %vm688_vm14  ;;  %v33_v59 = vld [vmem:[%s20791_s1 + $0x60] sm:$0xff]  ;;  %vm696_vm14 = vcmp.lt.s32.totalorder %v678_v60, %v14544_v20 }
 0x283   :  { %20956 = vst [vmem:[#allocation7_spill] sm:$0xff] %v14540_v17  ;;  %v381_v21 = vmul.f32 %v12431_v58, %v14540_v17  ;;  %v32_v58 = vld [vmem:[%s20791_s1 + $0x58] sm:$0xff]  ;;  %vm697_vm15 = vcmp.lt.s32.totalorder %v679_v61, %v14544_v20  ;;  %v900_v12 = vadd.s32 640, %v14544_v20  ;;  %v20986_v60 = vmov 0 }
 0x284   :  { %14307 = vpush %v793_v19  ;;  %v14547_v22 = vmul.f32 %v380_v18, %v366_v1  ;;  %v896_v1 = vadd.s32 128, %v14544_v20  ;;  %v20988_v61 = vmov 0  ;;  %v21032_v17 = vmov 0 }
 0x285   :  { %v12673_v23 = vpack.c.bf16 %v381_v21, %v380_v18  ;;  %v14549_v24 = vmul.f32 %v381_v21, %v367_v2  ;;  %v14683_v2 = vcvt.s32.f32 %v14556_v25  ;;  %v14768_v29 = vcvt.s32.f32 %v900_v12 }
 0x286   :  { %v14701_v10 = vcvt.s32.f32 %v896_v1  ;;  %v20996_v1 = vmov 0  ;;  %v21002_v12 = vmov 0  ;;  %v21035_v16 = vmov 0 }
 0x287   :  { %12674 = vmatprep.subr.bf16.mxu0 %v12673_v23 }
 0x288   :  { %12676 = vmatpush3.bf16.msra.mxu0 %v12673_v23 }
 0x289   :  { %12709 = vmatprep.subr.bf16.mxu0 %v20798_v0 }
 0x28b   :  { %12437 = vmatmul.mubr.msk.f32.vlgmr.msra.gmra.mrb[2].mxu0 %vm20793_vm7, %v22_v27 }
 0x28c   :  { %12711 = vmatpush3.bf16.msk.msra.mxu0 %vm12710_vm4, %v20803_v31  ;;  %12439 = vmatprep.mubr.msk.f32.mxu0 %vm20793_vm7, %v23_v28  ;;  %vm12722_vm4 = vmpackc.low %vm691_vm2, %vm690_vm1  ;;  %v14761_v28 = vcvt.s32.f32 %v898_v9  ;;  %v20998_v9 = vmov 0 }
 0x28d   :  { %12712 = vmatprep.subr.bf16.mxu0 %v20798_v0 }
 0x28f   :  { %12440 = vmatmul.mubr.msk.f32.gmra.mrb[4].mxu0 %vm20793_vm7, %v24_v34 }
 0x290   :  { %12714 = vmatpush3.bf16.msk.msra.mxu0 %vm12713_vm10, %v20803_v31  ;;  %12442 = vmatprep.mubr.msk.f32.mxu0 %vm20793_vm7, %v25_v35  ;;  %vm12725_vm10 = vmpackc.low %vm693_vm9, %vm692_vm8  ;;  %v21009_v35 = vmov 0 }
 0x291   :  { %12715 = vmatprep.subr.bf16.mxu0 %v20798_v0 }
 0x293   :  { %12443 = vmatmul.mubr.msk.f32.gmra.mrb[6].mxu0 %vm20793_vm7, %v26_v38 }
 0x294   :  { %12717 = vmatpush3.bf16.msk.msra.mxu0 %vm12716_vm13, %v20803_v31  ;;  %12445 = vmatprep.mubr.msk.f32.mxu0 %vm20793_vm7, %v27_v40  ;;  %vm12728_vm13 = vmpackc.low %vm695_vm12, %vm694_vm11 }
 0x295   :  { %12718 = vmatprep.subr.bf16.mxu0 %v20798_v0 }
 0x297   :  { %12446 = vmatmul.mubr.msk.f32.gmra.mrb[8].mxu0 %vm20793_vm7, %v28_v44 }
 0x298   :  { %12720 = vmatpush3.bf16.msk.msra.mxu0 %vm12719_vm0, %v20803_v31  ;;  %12448 = vmatprep.mubr.msk.f32.mxu0 %vm20793_vm7, %v29_v45  ;;  %vm12731_vm0 = vmpackc.low %vm697_vm15, %vm696_vm14  ;;  %v20972_v45 = vmov 0 }
 0x299   :  { %12721 = vmatprep.subr.bf16.mxu0 %v20798_v0 }
 0x29b   :  { %12449 = vmatmul.mubr.msk.f32.gmra.mrb[10].mxu0 %vm20793_vm7, %v30_v54  ;;  %v20974_v54 = vmov 0 }
 0x29c   :  { %12723 = vmatpush3.bf16.msk.msra.mxu0 %vm12722_vm4, %v20803_v31  ;;  %12451 = vmatprep.mubr.msk.f32.mxu0 %vm20793_vm7, %v31_v55 }
 0x29d   :  { %12724 = vmatprep.subr.bf16.mxu0 %v20798_v0 }
 0x29f   :  { %12452 = vmatmul.mubr.msk.f32.gmra.mrb[12].mxu0 %vm20793_vm7, %v32_v58 }
 0x2a0   :  { %12726 = vmatpush3.bf16.msk.msra.mxu0 %vm12725_vm10, %v20803_v31  ;;  %12454 = vmatprep.mubr.msk.f32.mxu0 %vm20793_vm7, %v33_v59  ;;  %v20984_v59 = vmov 0 }
 0x2a1   :  { %12727 = vmatprep.subr.bf16.mxu0 %v20798_v0 }
 0x2a3   :  { %12455 = vmatmul.mubr.msk.f32.gmra.mrb[14].mxu0 %vm20793_vm7, %v34_v62  ;;  %v20990_v62 = vmov 0 }
 0x2a4   :  { %12729 = vmatpush3.bf16.msk.msra.mxu0 %vm12728_vm13, %v20803_v31  ;;  %12457 = vmatprep.mubr.msk.f32.mxu0 %vm20793_vm7, %v35_v63  ;;  %v20992_v63 = vmov 0 }
 0x2a5   :  { %12730 = vmatprep.subr.bf16.mxu0 %v20798_v0 }
 0x2a7   :  { %12458 = vmatmul.mubr.msk.f32.gmra.mrb[16].mxu0 %vm20793_vm7, %v36_v32  ;;  %v20994_v32 = vmov 0 }
 0x2a8   :  { %12732 = vmatpush3.bf16.msk.msra.mxu0 %vm12731_vm0, %v20803_v31  ;;  %12527 = vmatprep.mubr.msk.f32.mxu0 %vm20796_vm3, %v20801_v4 }
 0x2ab   :  { %12528 = vmatmul.mubr.f32.vlgmr.msra.gmra.mrb[18].mxu0 %v14500_v46  ;;  %v14698_v46 = vcvt.s32.f32 %v14596_v37 }
 0x2ac   :  { %1187 = vmatprep.mubr.f32.mxu0 %v20801_v4 }
 0x2b5   :  { %s14703_s22 = spop %14307 }
 0x2b6   :  { %v14711_v14 = vstv %s14703_s22  ;;  %s907_s23 = smul.f32 0.0, %s14703_s22 }
 0x2b7   :  { %20957 = vst [vmem:[#allocation8_spill] sm:$0xff] %v14711_v14  ;;  %v14715_v15 = vadd.f32 %v14711_v14, %v14487_v39  ;;  %v14719_v18 = vadd.f32 %v14711_v14, %v14491_v41  ;;  %v14723_v19 = vadd.f32 %v14711_v14, %v14683_v2  ;;  %v14727_v21 = vadd.f32 %v14711_v14, %v14686_v3  ;;  %s1879_s24 = smul.f32 3.0, %s14703_s22 }
 0x2b8   :  { %v14731_v23 = vadd.f32 %v14711_v14, %v14689_v6  ;;  %v14735_v25 = vadd.f32 %v14711_v14, %v14692_v7  ;;  %v14739_v26 = vadd.f32 %v14711_v14, %v14695_v8  ;;  %v14743_v27 = vadd.f32 %v14711_v14, %v14698_v46  ;;  %s2207_s25 = smul.f32 4.0, %s14703_s22 }
 0x2b9   :  { %vm1023_vm1 = vcmp.eq.f32.partialorder %v14701_v10, %v14715_v15  ;;  %vm1029_vm2 = vcmp.eq.f32.partialorder %v14701_v10, %v14719_v18  ;;  %vm1022_vm4 = vcmp.eq.f32.partialorder %v14708_v13, %v14715_v15  ;;  %vm1028_vm8 = vcmp.eq.f32.partialorder %v14708_v13, %v14719_v18  ;;  %s2535_s26 = smul.f32 5.0, %s14703_s22 }
 0x2ba   :  { %vm12757_vm9 = vmpackc.low %vm1029_vm2, %vm1023_vm1  ;;  %vm1035_vm10 = vcmp.eq.f32.partialorder %v14701_v10, %v14723_v19  ;;  %vm1041_vm11 = vcmp.eq.f32.partialorder %v14701_v10, %v14727_v21  ;;  %vm1034_vm12 = vcmp.eq.f32.partialorder %v14708_v13, %v14723_v19  ;;  %vm1040_vm13 = vcmp.eq.f32.partialorder %v14708_v13, %v14727_v21  ;;  %s4503_s4 = smul.f32 11.0, %s14703_s22 }
 0x2bb   :  { %12758 = vmatprep.subr.msk.bf16.mxu0 %vm12757_vm9, %v20803_v31  ;;  %vm12759_vm14 = vmpackc.low %vm1028_vm8, %vm1022_vm4  ;;  %vm1047_vm15 = vcmp.eq.f32.partialorder %v14701_v10, %v14731_v23  ;;  %vm1053_vm0 = vcmp.eq.f32.partialorder %v14701_v10, %v14735_v25  ;;  %vm1046_vm2 = vcmp.eq.f32.partialorder %v14708_v13, %v14731_v23  ;;  %vm1052_vm7 = vcmp.eq.f32.partialorder %v14708_v13, %v14735_v25  ;;  %s4831_s5 = smul.f32 12.0, %s14703_s22 }
 0x2bc   :  { %12760 = vmatpush1.bf16.msk.msra.mxu0 %vm12759_vm14, %v20803_v31  ;;  %vm12761_vm1 = vmpackc.low %vm1041_vm11, %vm1035_vm10  ;;  %vm1059_vm8 = vcmp.eq.f32.partialorder %v14701_v10, %v14739_v26  ;;  %vm1065_vm9 = vcmp.eq.f32.partialorder %v14701_v10, %v14743_v27  ;;  %vm1058_vm10 = vcmp.eq.f32.partialorder %v14708_v13, %v14739_v26  ;;  %vm1064_vm11 = vcmp.eq.f32.partialorder %v14708_v13, %v14743_v27  ;;  %s1551_s6 = smul.f32 2.0, %s14703_s22 }
 0x2bd   :  { %12762 = vmatprep.subr.msk.bf16.mxu0 %vm12761_vm1, %v20803_v31  ;;  %vm12763_vm4 = vmpackc.low %vm1040_vm13, %vm1034_vm12  ;;  %vm1025_vm12 = vcmp.eq.f32.partialorder %v14761_v28, %v14715_v15  ;;  %vm1031_vm13 = vcmp.eq.f32.partialorder %v14761_v28, %v14719_v18  ;;  %vm1044_vm5 = vcmp.eq.f32.partialorder %v14775_v30, %v14727_v21  ;;  %v14830_v40 = vstv %s907_s23  ;;  %s2863_s7 = smul.f32 6.0, %s14703_s22 }
 0x2be   :  { %vm12765_vm6 = vmpackc.low %vm1053_vm0, %vm1047_vm15  ;;  %vm1027_vm0 = vcmp.eq.f32.partialorder %v14768_v29, %v14715_v15  ;;  %vm1063_vm3 = vcmp.eq.f32.partialorder %v14768_v29, %v14739_v26  ;;  %v14866_v51 = vadd.f32 %v14830_v40, %v14487_v39  ;;  %v14870_v53 = vadd.f32 %v14830_v40, %v14491_v41  ;;  %s3191_s8 = smul.f32 7.0, %s14703_s22 }
 0x2bf   :  { %vm14786_vm14 = vmpackc.low %vm1052_vm7, %vm1046_vm2  ;;  %vm1033_vm7 = vcmp.eq.f32.partialorder %v14768_v29, %v14719_v18  ;;  %vm1026_vm2 = vcmp.eq.f32.partialorder %v14775_v30, %v14715_v15  ;;  %v2208_v0 = vstv %s2207_s25  ;;  %v15523_v55 = vstv %s4503_s4  ;;  %s3519_s9 = smul.f32 8.0, %s14703_s22 }
 0x2c0   :  { %12764 = vmatpush1.bf16.msk.msra.mxu0 %vm12763_vm4, %v20803_v31  ;;  %vm14796_vm15 = vmpackc.low %vm1065_vm9, %vm1059_vm8  ;;  %vm1032_vm4 = vcmp.eq.f32.partialorder %v14775_v30, %v14719_v18  ;;  %vm1039_vm9 = vcmp.eq.f32.partialorder %v14768_v29, %v14723_v19  ;;  %v15065_v4 = vadd.f32 %v2208_v0, %v14487_v39  ;;  %v15087_v47 = vadd.f32 %v2208_v0, %v14683_v2  ;;  %s3847_s10 = smul.f32 9.0, %s14703_s22 }
 0x2c1   :  { %12766 = vmatprep.subr.msk.bf16.mxu0 %vm12765_vm6, %v20803_v31  ;;  %vm14806_vm1 = vmpackc.low %vm1064_vm11, %vm1058_vm10  ;;  %vm1045_vm6 = vcmp.eq.f32.partialorder %v14768_v29, %v14727_v21  ;;  %vm1038_vm11 = vcmp.eq.f32.partialorder %v14775_v30, %v14723_v19  ;;  %v15090_v14 = vadd.f32 %v2208_v0, %v14686_v3  ;;  %v15826_v58 = vadd.f32 %v14830_v40, %v14698_v46  ;;  %s5159_s11 = smul.f32 13.0, %s14703_s22 }
 0x2c2   :  { %vm14814_vm8 = vmpackc.low %vm1031_vm13, %vm1025_vm12  ;;  %vm1051_vm13 = vcmp.eq.f32.partialorder %v14768_v29, %v14731_v23  ;;  %21022 = vst [vmem:[#allocation15_spill] sm:$0xff] %v15065_v4 }
 0x2c3   :  { %vm14822_vm10 = vmpackc.low %vm1033_vm7, %vm1027_vm0  ;;  %vm1057_vm0 = vcmp.eq.f32.partialorder %v14768_v29, %v14735_v25  ;;  %21030 = vst [vmem:[#allocation19_spill] sm:$0xff] %v15087_v47 }
 0x2c4   :  { %12768 = vmatpush1.bf16.msk.msra.mxu0 %vm14786_vm14, %v20803_v31  ;;  %vm14835_vm12 = vmpackc.low %vm1032_vm4, %vm1026_vm2  ;;  %vm1050_vm14 = vcmp.eq.f32.partialorder %v14775_v30, %v14731_v23  ;;  %vm1056_vm2 = vcmp.eq.f32.partialorder %v14775_v30, %v14735_v25  ;;  %21031 = vst [vmem:[#allocation20_spill] sm:$0xff] %v15090_v14 }
 0x2c5   :  { %12770 = vmatprep.subr.msk.bf16.mxu0 %vm14796_vm15, %v20803_v31  ;;  %vm14848_vm7 = vmpackc.low %vm1045_vm6, %vm1039_vm9  ;;  %vm1069_vm15 = vcmp.eq.f32.partialorder %v14768_v29, %v14743_v27  ;;  %vm1068_vm6 = vcmp.eq.f32.partialorder %v14775_v30, %v14743_v27 }
 0x2c6   :  { %vm14856_vm4 = vmpackc.low %vm1044_vm5, %vm1038_vm11  ;;  %vm1062_vm5 = vcmp.eq.f32.partialorder %v14775_v30, %v14739_v26 }
 0x2c7   :  { %v20973_v45 = vsel %vm14856_vm4, 4294967295, %v20972_v45  ;;  %vm14872_vm9 = vmpackc.low %vm1057_vm0, %vm1051_vm13  ;;  %vm1024_vm0 = vcmp.eq.f32.partialorder %v14843_v43, %v14715_v15  ;;  %v21004_v15 = vmov 0 }
 0x2c8   :  { %v20975_v54 = vsel %vm14872_vm9, 4294967295, %v20974_v54  ;;  %12772 = vmatpush1.bf16.msk.msra.mxu0 %vm14806_vm1, %v20803_v31  ;;  %vm14883_vm11 = vmpackc.low %vm1056_vm2, %vm1050_vm14  ;;  %vm1030_vm9 = vcmp.eq.f32.partialorder %v14843_v43, %v14719_v18  ;;  %vm921_vm1 = vcmp.eq.f32.partialorder %v14775_v30, %v14866_v51  ;;  %vm1043_vm14 = vcmp.eq.f32.partialorder %v14761_v28, %v14727_v21 }
 0x2c9   :  { %12774 = vmatprep.subr.msk.bf16.mxu0 %vm14814_vm8, %v20803_v31  ;;  %vm14890_vm13 = vmpackc.low %vm1069_vm15, %vm1063_vm3  ;;  %vm927_vm8 = vcmp.eq.f32.partialorder %v14775_v30, %v14870_v53  ;;  %vm1037_vm3 = vcmp.eq.f32.partialorder %v14761_v28, %v14723_v19  ;;  %v1880_v18 = vstv %s1879_s24  ;;  %v15068_v31 = vadd.f32 %v2208_v0, %v14491_v41 }
 0x2ca   :  { %vm14898_vm4 = vmpackc.low %vm1068_vm6, %vm1062_vm5  ;;  %vm1036_vm5 = vcmp.eq.f32.partialorder %v14843_v43, %v14723_v19  ;;  %vm1042_vm6 = vcmp.eq.f32.partialorder %v14843_v43, %v14727_v21  ;;  %v14996_v19 = vadd.f32 %v1880_v18, %v14487_v39  ;;  %v14999_v21 = vadd.f32 %v1880_v18, %v14491_v41 }
 0x2cb   :  { %v20981_v57 = vsel %vm14898_vm4, 4294967295, %v20980_v57  ;;  %vm14910_vm2 = vmpackc.low %vm1030_vm9, %vm1024_vm0  ;;  %vm1049_vm9 = vcmp.eq.f32.partialorder %v14761_v28, %v14731_v23  ;;  %vm1055_vm0 = vcmp.eq.f32.partialorder %v14761_v28, %v14735_v25  ;;  %v15023_v34 = vadd.f32 %v1880_v18, %v14692_v7  ;;  %21023 = vst [vmem:[#allocation16_spill] sm:$0xff] %v15068_v31 }
 0x2cc   :  { %vm14914_vm15 = vmpackc.low %vm927_vm8, %vm921_vm1  ;;  %vm1048_vm8 = vcmp.eq.f32.partialorder %v14843_v43, %v14731_v23  ;;  %v15002_v23 = vadd.f32 %v1880_v18, %v14683_v2  ;;  %v15043_v37 = vadd.f32 %v1880_v18, %v14695_v8  ;;  %v15046_v38 = vadd.f32 %v1880_v18, %v14698_v46 }
 0x2cd   :  { %v20985_v59 = vsel %vm14914_vm15, 4294967295, %v20984_v59  ;;  %vm14922_vm4 = vmpackc.low %vm1043_vm14, %vm1037_vm3  ;;  %vm1054_vm15 = vcmp.eq.f32.partialorder %v14843_v43, %v14735_v25  ;;  %vm1061_vm14 = vcmp.eq.f32.partialorder %v14761_v28, %v14739_v26  ;;  %v15005_v25 = vadd.f32 %v1880_v18, %v14686_v3 }
 0x2ce   :  { %v20987_v60 = vsel %vm14922_vm4, 4294967295, %v20986_v60  ;;  %vm14930_vm1 = vmpackc.low %vm1042_vm6, %vm1036_vm5  ;;  %vm1067_vm4 = vcmp.eq.f32.partialorder %v14761_v28, %v14743_v27  ;;  %vm1060_vm6 = vcmp.eq.f32.partialorder %v14843_v43, %v14739_v26  ;;  %v21006_v26 = vmov 0  ;;  %21015 = vst [vmem:[#allocation12_spill] sm:$0xff] %v15046_v38 }
 0x2cf   :  { %v20989_v61 = vsel %vm14930_vm1, 4294967295, %v20988_v61  ;;  %vm14938_vm3 = vmpackc.low %vm1055_vm0, %vm1049_vm9  ;;  %vm1066_vm9 = vcmp.eq.f32.partialorder %v14843_v43, %v14743_v27  ;;  %vm923_vm1 = vcmp.eq.f32.partialorder %v14708_v13, %v14870_v53  ;;  %v15020_v27 = vadd.f32 %v1880_v18, %v14689_v6 }
 0x2d0   :  { %v20991_v62 = vsel %vm14938_vm3, 4294967295, %v20990_v62  ;;  %vm14946_vm5 = vmpackc.low %vm1054_vm15, %vm1048_vm8  ;;  %vm918_vm3 = vcmp.eq.f32.partialorder %v14701_v10, %v14866_v51  ;;  %vm924_vm15 = vcmp.eq.f32.partialorder %v14701_v10, %v14870_v53  ;;  %v21019_v18 = vmov 0 }
 0x2d1   :  { %v20993_v63 = vsel %vm14946_vm5, 4294967295, %v20992_v63  ;;  %vm14954_vm0 = vmpackc.low %vm1067_vm4, %vm1061_vm14  ;;  %vm917_vm5 = vcmp.eq.f32.partialorder %v14708_v13, %v14866_v51 }
 0x2d2   :  { %v20995_v32 = vsel %vm14954_vm0, 4294967295, %v20994_v32  ;;  %vm14962_vm8 = vmpackc.low %vm1066_vm9, %vm1060_vm6  ;;  %vm920_vm6 = vcmp.eq.f32.partialorder %v14761_v28, %v14866_v51  ;;  %vm926_vm9 = vcmp.eq.f32.partialorder %v14761_v28, %v14870_v53  ;;  %vm925_vm0 = vcmp.eq.f32.partialorder %v14843_v43, %v14870_v53 }
 0x2d3   :  { %v20997_v1 = vsel %vm14962_vm8, 4294967295, %v20996_v1  ;;  %vm14970_vm4 = vmpackc.low %vm924_vm15, %vm918_vm3  ;;  %vm919_vm8 = vcmp.eq.f32.partialorder %v14843_v43, %v14866_v51  ;;  %vm1891_vm15 = vcmp.eq.f32.partialorder %v14843_v43, %v14996_v19 }
 0x2d4   :  { %v20999_v9 = vsel %vm14970_vm4, 4294967295, %v20998_v9  ;;  %vm14974_vm14 = vmpackc.low %vm923_vm1, %vm917_vm5  ;;  %vm1892_vm5 = vcmp.eq.f32.partialorder %v14761_v28, %v14996_v19 }
 0x2d5   :  { %v21001_v11 = vsel %vm14974_vm14, 4294967295, %v21000_v11  ;;  %vm14986_vm3 = vmpackc.low %vm926_vm9, %vm920_vm6  ;;  %vm1904_vm9 = vcmp.eq.f32.partialorder %v14761_v28, %v15002_v23 }
 0x2d6   :  { %v21003_v12 = vsel %vm14986_vm3, 4294967295, %v21002_v12  ;;  %vm14990_vm1 = vmpackc.low %vm925_vm0, %vm919_vm8  ;;  %vm1898_vm0 = vcmp.eq.f32.partialorder %v14761_v28, %v14999_v21  ;;  %vm1897_vm8 = vcmp.eq.f32.partialorder %v14843_v43, %v14999_v21 }
 0x2d7   :  { %v21005_v15 = vsel %vm14990_vm1, 4294967295, %v21004_v15  ;;  %vm15015_vm6 = vmpackc.low %vm1898_vm0, %vm1892_vm5  ;;  %vm1910_vm1 = vcmp.eq.f32.partialorder %v14761_v28, %v15005_v25  ;;  %vm1903_vm5 = vcmp.eq.f32.partialorder %v14843_v43, %v15002_v23  ;;  %vm1909_vm0 = vcmp.eq.f32.partialorder %v14843_v43, %v15005_v25 }
 0x2d8   :  { %v21007_v26 = vsel %vm15015_vm6, 4294967295, %v21006_v26  ;;  %vm15030_vm3 = vmpackc.low %vm1897_vm8, %vm1891_vm15  ;;  %vm1916_vm15 = vcmp.eq.f32.partialorder %v14761_v28, %v15020_v27  ;;  %vm1922_vm8 = vcmp.eq.f32.partialorder %v14761_v28, %v15023_v34 }
 0x2d9   :  { %21008 = vst [vmem:[#allocation9_spill] sm:$0xff] %v21007_v26  ;;  %v21010_v35 = vsel %vm15030_vm3, 4294967295, %v21009_v35  ;;  %vm15038_vm6 = vmpackc.low %vm1910_vm1, %vm1904_vm9  ;;  %vm1915_vm1 = vcmp.eq.f32.partialorder %v14843_v43, %v15020_v27  ;;  %vm1921_vm9 = vcmp.eq.f32.partialorder %v14843_v43, %v15023_v34 }
 0x2da   :  { %21011 = vst [vmem:[#allocation10_spill] sm:$0xff] %v21010_v35  ;;  %v21013_v36 = vsel %vm15038_vm6, 4294967295, %v21012_v36  ;;  %vm15052_vm3 = vmpackc.low %vm1909_vm0, %vm1903_vm5  ;;  %vm1928_vm5 = vcmp.eq.f32.partialorder %v14761_v28, %v15043_v37  ;;  %vm1934_vm0 = vcmp.eq.f32.partialorder %v14761_v28, %v15046_v38 }
 0x2db   :  { %21014 = vst [vmem:[#allocation11_spill] sm:$0xff] %v21013_v36  ;;  %v21017_v5 = vsel %vm15052_vm3, 4294967295, %v21016_v5  ;;  %vm15060_vm6 = vmpackc.low %vm1922_vm8, %vm1916_vm15  ;;  %vm1927_vm15 = vcmp.eq.f32.partialorder %v14843_v43, %v15043_v37  ;;  %vm1933_vm8 = vcmp.eq.f32.partialorder %v14843_v43, %v15046_v38  ;;  %v21072_v36 = vmov 0 }
 0x2dc   :  { %21018 = vst [vmem:[#allocation13_spill] sm:$0xff] %v21017_v5  ;;  %v21020_v18 = vsel %vm15060_vm6, 4294967295, %v21019_v18  ;;  %vm15074_vm3 = vmpackc.low %vm1921_vm9, %vm1915_vm1  ;;  %vm2218_vm1 = vcmp.eq.f32.partialorder %v14701_v10, %v15065_v4  ;;  %vm2224_vm9 = vcmp.eq.f32.partialorder %v14701_v10, %v15068_v31  ;;  %v15134_v5 = vadd.f32 %v2208_v0, %v14698_v46 }
 0x2dd   :  { %21021 = vst [vmem:[#allocation14_spill] sm:$0xff] %v21020_v18  ;;  %v21025_v50 = vsel %vm15074_vm3, 4294967295, %v21024_v50  ;;  %vm15082_vm6 = vmpackc.low %vm1934_vm0, %vm1928_vm5  ;;  %vm2217_vm5 = vcmp.eq.f32.partialorder %v14708_v13, %v15065_v4  ;;  %vm2223_vm0 = vcmp.eq.f32.partialorder %v14708_v13, %v15068_v31  ;;  %v15131_v18 = vadd.f32 %v2208_v0, %v14695_v8 }
 0x2de   :  { %21026 = vst [vmem:[#allocation17_spill] sm:$0xff] %v21025_v50  ;;  %v21028_v48 = vsel %vm15082_vm6, 4294967295, %v21027_v48  ;;  %vm15096_vm3 = vmpackc.low %vm1933_vm8, %vm1927_vm15  ;;  %v15112_v50 = vadd.f32 %v2208_v0, %v14692_v7  ;;  %vm2230_vm15 = vcmp.eq.f32.partialorder %v14701_v10, %v15087_v47  ;;  %vm2236_vm8 = vcmp.eq.f32.partialorder %v14701_v10, %v15090_v14 }
 0x2df   :  { %21029 = vst [vmem:[#allocation18_spill] sm:$0xff] %v21028_v48  ;;  %v21033_v17 = vsel %vm15096_vm3, 4294967295, %v21032_v17  ;;  %vm15104_vm6 = vmpackc.low %vm2224_vm9, %vm2218_vm1  ;;  %v15109_v48 = vadd.f32 %v2208_v0, %v14689_v6  ;;  %vm2229_vm1 = vcmp.eq.f32.partialorder %v14708_v13, %v15087_v47  ;;  %vm2235_vm9 = vcmp.eq.f32.partialorder %v14708_v13, %v15090_v14 }
 0x2e0   :  { %21034 = vst [vmem:[#allocation21_spill] sm:$0xff] %v21033_v17  ;;  %v21036_v16 = vsel %vm15104_vm6, 4294967295, %v21035_v16  ;;  %21039 = vst [vmem:[#allocation24_spill] sm:$0xff] %v15112_v50  ;;  %v21040_v17 = vmov 0  ;;  %v21051_v0 = vmov 0  ;;  %vm2254_vm14 = vcmp.eq.f32.partialorder %v14701_v10, %v15131_v18 }
 0x2e1   :  { %21037 = vst [vmem:[#allocation22_spill] sm:$0xff] %v21036_v16  ;;  %21038 = vst [vmem:[#allocation23_spill] sm:$0xff] %v15109_v48  ;;  %v21043_v16 = vmov 0  ;;  %vm2259_vm4 = vcmp.eq.f32.partialorder %v14708_v13, %v15134_v5 }
 0x2e2   :  { %vm15118_vm3 = vmpackc.low %vm2223_vm0, %vm2217_vm5  ;;  %21046 = vst [vmem:[#allocation27_spill] sm:$0xff] %v15131_v18  ;;  %vm2242_vm5 = vcmp.eq.f32.partialorder %v14701_v10, %v15109_v48  ;;  %vm2248_vm0 = vcmp.eq.f32.partialorder %v14701_v10, %v15112_v50 }
 0x2e3   :  { %v21041_v17 = vsel %vm15118_vm3, 4294967295, %v21040_v17  ;;  %vm15126_vm6 = vmpackc.low %vm2236_vm8, %vm2230_vm15  ;;  %21047 = vst [vmem:[#allocation28_spill] sm:$0xff] %v15134_v5  ;;  %vm2241_vm15 = vcmp.eq.f32.partialorder %v14708_v13, %v15109_v48  ;;  %vm2247_vm8 = vcmp.eq.f32.partialorder %v14708_v13, %v15112_v50 }
 0x2e4   :  { %21042 = vst [vmem:[#allocation25_spill] sm:$0xff] %v21041_v17  ;;  %v21044_v16 = vsel %vm15126_vm6, 4294967295, %v21043_v16  ;;  %vm15140_vm3 = vmpackc.low %vm2235_vm9, %vm2229_vm1  ;;  %v21048_v17 = vmov 0  ;;  %vm2260_vm1 = vcmp.eq.f32.partialorder %v14701_v10, %v15134_v5 }
 0x2e5   :  { %21045 = vst [vmem:[#allocation26_spill] sm:$0xff] %v21044_v16  ;;  %v21049_v17 = vsel %vm15140_vm3, 4294967295, %v21048_v17  ;;  %vm15148_vm6 = vmpackc.low %vm2248_vm0, %vm2242_vm5  ;;  %v21054_v16 = vmov 0  ;;  %vm2253_vm3 = vcmp.eq.f32.partialorder %v14708_v13, %v15131_v18  ;;  %vm2220_vm0 = vcmp.eq.f32.partialorder %v14761_v28, %v15065_v4 }
 0x2e6   :  { %21050 = vst [vmem:[#allocation29_spill] sm:$0xff] %v21049_v17  ;;  %v21052_v0 = vsel %vm15148_vm6, 4294967295, %v21051_v0  ;;  %vm15156_vm9 = vmpackc.low %vm2247_vm8, %vm2241_vm15  ;;  %v21057_v17 = vmov 0  ;;  %vm2226_vm6 = vcmp.eq.f32.partialorder %v14761_v28, %v15068_v31  ;;  %vm2219_vm8 = vcmp.eq.f32.partialorder %v14843_v43, %v15065_v4 }
 0x2e7   :  { %21053 = vst [vmem:[#allocation30_spill] sm:$0xff] %v21052_v0  ;;  %v21055_v16 = vsel %vm15156_vm9, 4294967295, %v21054_v16  ;;  %vm15164_vm5 = vmpackc.low %vm2260_vm1, %vm2254_vm14  ;;  %v21060_v0 = vmov 0  ;;  %vm2225_vm9 = vcmp.eq.f32.partialorder %v14843_v43, %v15068_v31  ;;  %vm2232_vm1 = vcmp.eq.f32.partialorder %v14761_v28, %v15087_v47 }
 0x2e8   :  { %21056 = vst [vmem:[#allocation31_spill] sm:$0xff] %v21055_v16  ;;  %v21058_v17 = vsel %vm15164_vm5, 4294967295, %v21057_v17  ;;  %vm15172_vm15 = vmpackc.low %vm2259_vm4, %vm2253_vm3  ;;  %v21063_v16 = vmov 0  ;;  %vm2238_vm5 = vcmp.eq.f32.partialorder %v14761_v28, %v15090_v14  ;;  %vm2231_vm3 = vcmp.eq.f32.partialorder %v14843_v43, %v15087_v47 }
 0x2e9   :  { %21059 = vst [vmem:[#allocation32_spill] sm:$0xff] %v21058_v17  ;;  %v21061_v0 = vsel %vm15172_vm15, 4294967295, %v21060_v0  ;;  %vm15180_vm14 = vmpackc.low %vm2226_vm6, %vm2220_vm0  ;;  %v21066_v17 = vmov 0  ;;  %vm2237_vm6 = vcmp.eq.f32.partialorder %v14843_v43, %v15090_v14  ;;  %vm2250_vm15 = vcmp.eq.f32.partialorder %v14761_v28, %v15112_v50 }
 0x2ea   :  { %21062 = vst [vmem:[#allocation33_spill] sm:$0xff] %v21061_v0  ;;  %v21064_v16 = vsel %vm15180_vm14, 4294967295, %v21063_v16  ;;  %vm15189_vm4 = vmpackc.low %vm2225_vm9, %vm2219_vm8  ;;  %v21069_v0 = vmov 0  ;;  %vm2244_vm14 = vcmp.eq.f32.partialorder %v14761_v28, %v15109_v48  ;;  %vm2243_vm8 = vcmp.eq.f32.partialorder %v14843_v43, %v15109_v48 }
 0x2eb   :  { %21065 = vst [vmem:[#allocation34_spill] sm:$0xff] %v21064_v16  ;;  %v21067_v17 = vsel %vm15189_vm4, 4294967295, %v21066_v17  ;;  %vm15197_vm0 = vmpackc.low %vm2238_vm5, %vm2232_vm1  ;;  %v2536_v16 = vstv %s2535_s26  ;;  %vm2249_vm5 = vcmp.eq.f32.partialorder %v14843_v43, %v15112_v50  ;;  %v21096_v48 = vmov 0 }
 0x2ec   :  { %21068 = vst [vmem:[#allocation35_spill] sm:$0xff] %v21067_v17  ;;  %v21070_v0 = vsel %vm15197_vm0, 4294967295, %v21069_v0  ;;  %vm15205_vm9 = vmpackc.low %vm2237_vm6, %vm2231_vm3  ;;  %v21075_v17 = vmov 0  ;;  %v15221_v35 = vadd.f32 %v2536_v16, %v14491_v41  ;;  %vm2256_vm3 = vcmp.eq.f32.partialorder %v14761_v28, %v15131_v18 }
 0x2ed   :  { %21071 = vst [vmem:[#allocation36_spill] sm:$0xff] %v21070_v0  ;;  %v21073_v36 = vsel %vm15205_vm9, 4294967295, %v21072_v36  ;;  %vm15213_vm1 = vmpackc.low %vm2250_vm15, %vm2244_vm14  ;;  %v15218_v0 = vadd.f32 %v2536_v16, %v14487_v39  ;;  %vm2262_vm6 = vcmp.eq.f32.partialorder %v14761_v28, %v15134_v5  ;;  %vm2255_vm15 = vcmp.eq.f32.partialorder %v14843_v43, %v15131_v18 }
 0x2ee   :  { %21074 = vst [vmem:[#allocation37_spill] sm:$0xff] %v21073_v36  ;;  %v21076_v17 = vsel %vm15213_vm1, 4294967295, %v21075_v17  ;;  %vm15227_vm9 = vmpackc.low %vm2249_vm5, %vm2243_vm8  ;;  %v21078_v36 = vmov 0  ;;  %vm2261_vm14 = vcmp.eq.f32.partialorder %v14843_v43, %v15134_v5  ;;  %v15240_v26 = vadd.f32 %v2536_v16, %v14683_v2 }
 0x2ef   :  { %21077 = vst [vmem:[#allocation38_spill] sm:$0xff] %v21076_v17  ;;  %v21079_v36 = vsel %vm15227_vm9, 4294967295, %v21078_v36  ;;  %vm15235_vm1 = vmpackc.low %vm2262_vm6, %vm2256_vm3  ;;  %v21081_v17 = vmov 0  ;;  %v15243_v50 = vadd.f32 %v2536_v16, %v14686_v3  ;;  %vm2546_vm8 = vcmp.eq.f32.partialorder %v14701_v10, %v15218_v0 }
 0x2f0   :  { %21080 = vst [vmem:[#allocation39_spill] sm:$0xff] %v21079_v36  ;;  %v21082_v17 = vsel %vm15235_vm1, 4294967295, %v21081_v17  ;;  %vm2552_vm5 = vcmp.eq.f32.partialorder %v14701_v10, %v15221_v35  ;;  %vm15249_vm9 = vmpackc.low %vm2261_vm14, %vm2255_vm15  ;;  %v21085_v36 = vmov 0  ;;  %vm2545_vm3 = vcmp.eq.f32.partialorder %v14708_v13, %v15218_v0 }
 0x2f1   :  { %21083 = vst [vmem:[#allocation40_spill] sm:$0xff] %v21082_v17  ;;  %21084 = vst [vmem:[#allocation41_spill] sm:$0xff] %v15243_v50  ;;  %v21086_v36 = vsel %vm15249_vm9, 4294967295, %v21085_v36  ;;  %vm2551_vm6 = vcmp.eq.f32.partialorder %v14708_v13, %v15221_v35  ;;  %v21088_v17 = vmov 0  ;;  %v15262_v5 = vadd.f32 %v2536_v16, %v14689_v6 }
 0x2f2   :  { %21087 = vst [vmem:[#allocation42_spill] sm:$0xff] %v21086_v36  ;;  %vm15257_vm1 = vmpackc.low %vm2552_vm5, %vm2546_vm8  ;;  %v15265_v18 = vadd.f32 %v2536_v16, %v14692_v7  ;;  %vm2558_vm15 = vcmp.eq.f32.partialorder %v14701_v10, %v15240_v26  ;;  %vm2564_vm14 = vcmp.eq.f32.partialorder %v14701_v10, %v15243_v50  ;;  %v21093_v36 = vmov 0 }
 0x2f3   :  { %v21089_v17 = vsel %vm15257_vm1, 4294967295, %v21088_v17  ;;  %21091 = vst [vmem:[#allocation44_spill] sm:$0xff] %v15262_v5  ;;  %vm15271_vm9 = vmpackc.low %vm2551_vm6, %vm2545_vm3  ;;  %vm2557_vm8 = vcmp.eq.f32.partialorder %v14708_v13, %v15240_v26  ;;  %vm2563_vm5 = vcmp.eq.f32.partialorder %v14708_v13, %v15243_v50  ;;  %v15284_v47 = vadd.f32 %v2536_v16, %v14695_v8 }
 0x2f4   :  { %21090 = vst [vmem:[#allocation43_spill] sm:$0xff] %v21089_v17  ;;  %21092 = vst [vmem:[#allocation45_spill] sm:$0xff] %v15265_v18  ;;  %v21094_v36 = vsel %vm15271_vm9, 4294967295, %v21093_v36  ;;  %v15287_v31 = vadd.f32 %v2536_v16, %v14698_v46  ;;  %vm2570_vm3 = vcmp.eq.f32.partialorder %v14701_v10, %v15262_v5  ;;  %vm2576_vm6 = vcmp.eq.f32.partialorder %v14701_v10, %v15265_v18 }
 0x2f5   :  { %21095 = vst [vmem:[#allocation46_spill] sm:$0xff] %v21094_v36  ;;  %vm15279_vm1 = vmpackc.low %vm2564_vm14, %vm2558_vm15  ;;  %v21101_v4 = vmov 0  ;;  %vm2569_vm15 = vcmp.eq.f32.partialorder %v14708_v13, %v15262_v5  ;;  %vm2575_vm14 = vcmp.eq.f32.partialorder %v14708_v13, %v15265_v18  ;;  %v21104_v16 = vmov 0 }
 0x2f6   :  { %v21097_v48 = vsel %vm15279_vm1, 4294967295, %v21096_v48  ;;  %21099 = vst [vmem:[#allocation48_spill] sm:$0xff] %v15284_v47  ;;  %21100 = vst [vmem:[#allocation49_spill] sm:$0xff] %v15287_v31  ;;  %vm2581_vm0 = vcmp.eq.f32.partialorder %v14708_v13, %v15284_v47 }
 0x2f7   :  { %21098 = vst [vmem:[#allocation47_spill] sm:$0xff] %v21097_v48  ;;  %vm15293_vm9 = vmpackc.low %vm2563_vm5, %vm2557_vm8  ;;  %vm2582_vm8 = vcmp.eq.f32.partialorder %v14701_v10, %v15284_v47  ;;  %vm2588_vm5 = vcmp.eq.f32.partialorder %v14701_v10, %v15287_v31 }
 0x2f8   :  { %v21102_v4 = vsel %vm15293_vm9, 4294967295, %v21101_v4  ;;  %vm15301_vm1 = vmpackc.low %vm2576_vm6, %vm2570_vm3  ;;  %vm2587_vm3 = vcmp.eq.f32.partialorder %v14708_v13, %v15287_v31 }
 0x2f9   :  { %21103 = vst [vmem:[#allocation50_spill] sm:$0xff] %v21102_v4  ;;  %v21105_v16 = vsel %vm15301_vm1, 4294967295, %v21104_v16  ;;  %vm15309_vm9 = vmpackc.low %vm2575_vm14, %vm2569_vm15  ;;  %vm2548_vm15 = vcmp.eq.f32.partialorder %v14761_v28, %v15218_v0  ;;  %vm2554_vm14 = vcmp.eq.f32.partialorder %v14761_v28, %v15221_v35  ;;  %vm2547_vm1 = vcmp.eq.f32.partialorder %v14843_v43, %v15218_v0 }
 0x2fa   :  { %21106 = vst [vmem:[#allocation51_spill] sm:$0xff] %v21105_v16  ;;  %vm15317_vm6 = vmpackc.low %vm2588_vm5, %vm2582_vm8  ;;  %vm2553_vm8 = vcmp.eq.f32.partialorder %v14843_v43, %v15221_v35 }
 0x2fb   :  { %vm15333_vm5 = vmpackc.low %vm2554_vm14, %vm2548_vm15  ;;  %vm2565_vm15 = vcmp.eq.f32.partialorder %v14843_v43, %v15243_v50 }
 0x35e   :  { %v12438_v17 = vpop.f32.mrb[2].mxu0 }
 0x35f   :  { %v496_v14 = vpop.f32.mrb[3].mxu0 }
 0x360   :  { %v12677_v36 = vpack.c.bf16 %v12438_v17, %v496_v14  ;;  %v21107_v14 = vmov 0 }
 0x361   :  { %v21108_v14 = vsel %vm15309_vm9, 4294967295, %v21107_v14  ;;  %vm15325_vm9 = vmpackc.low %vm2587_vm3, %vm2581_vm0  ;;  %vm2560_vm0 = vcmp.eq.f32.partialorder %v14761_v28, %v15240_v26  ;;  %vm2566_vm3 = vcmp.eq.f32.partialorder %v14761_v28, %v15243_v50 }
 0x362   :  { %v12441_v48 = vpop.f32.mrb[4].mxu0  ;;  %12678 = vmatprep.subr.bf16.mxu1 %v12677_v36  ;;  %21109 = vst [vmem:[#allocation52_spill] sm:$0xff] %v21108_v14  ;;  %vm15349_vm14 = vmpackc.low %vm2566_vm3, %vm2560_vm0  ;;  %vm2577_vm0 = vcmp.eq.f32.partialorder %v14843_v43, %v15265_v18 }
 0x363   :  { %v506_v38 = vpop.f32.mrb[5].mxu0  ;;  %12680 = vmatpush3.bf16.msra.mxu1 %v12677_v36  ;;  %v21110_v36 = vmov 0 }
 0x364   :  { %v12681_v17 = vpack.c.bf16 %v12441_v48, %v506_v38  ;;  %v21111_v36 = vsel %vm15317_vm6, 4294967295, %v21110_v36  ;;  %v21113_v38 = vmov 0  ;;  %vm2559_vm6 = vcmp.eq.f32.partialorder %v14843_v43, %v15240_v26 }
 0x365   :  { %21112 = vst [vmem:[#allocation53_spill] sm:$0xff] %v21111_v36  ;;  %v21114_v38 = vsel %vm15325_vm9, 4294967295, %v21113_v38  ;;  %vm15341_vm9 = vmpackc.low %vm2553_vm8, %vm2547_vm1  ;;  %vm2572_vm1 = vcmp.eq.f32.partialorder %v14761_v28, %v15262_v5  ;;  %vm2578_vm8 = vcmp.eq.f32.partialorder %v14761_v28, %v15265_v18 }
 0x366   :  { %v12444_v16 = vpop.f32.mrb[6].mxu0  ;;  %12682 = vmatprep.subr.bf16.mxu1 %v12681_v17  ;;  %21115 = vst [vmem:[#allocation54_spill] sm:$0xff] %v21114_v38  ;;  %vm15365_vm3 = vmpackc.low %vm2578_vm8, %vm2572_vm1  ;;  %vm2589_vm1 = vcmp.eq.f32.partialorder %v14843_v43, %v15287_v31 }
 0x367   :  { %v516_v4 = vpop.f32.mrb[7].mxu0  ;;  %12684 = vmatpush3.bf16.msra.mxu1 %v12681_v17  ;;  %v21116_v17 = vmov 0 }
 0x368   :  { %v12685_v48 = vpack.c.bf16 %v12444_v16, %v516_v4  ;;  %v21117_v17 = vsel %vm15333_vm5, 4294967295, %v21116_v17  ;;  %v21119_v16 = vmov 0  ;;  %vm2571_vm5 = vcmp.eq.f32.partialorder %v14843_v43, %v15262_v5 }
 0x369   :  { %21118 = vst [vmem:[#allocation55_spill] sm:$0xff] %v21117_v17  ;;  %v21120_v16 = vsel %vm15341_vm9, 4294967295, %v21119_v16  ;;  %vm15357_vm9 = vmpackc.low %vm2565_vm15, %vm2559_vm6  ;;  %vm2584_vm6 = vcmp.eq.f32.partialorder %v14761_v28, %v15284_v47  ;;  %vm2590_vm15 = vcmp.eq.f32.partialorder %v14761_v28, %v15287_v31 }
 0x36a   :  { %v12447_v36 = vpop.f32.mrb[8].mxu0  ;;  %12686 = vmatprep.subr.bf16.mxu1 %v12685_v48  ;;  %21121 = vst [vmem:[#allocation56_spill] sm:$0xff] %v21120_v16  ;;  %vm15381_vm8 = vmpackc.low %vm2590_vm15, %vm2584_vm6 }
 0x36b   :  { %v526_v14 = vpop.f32.mrb[9].mxu0  ;;  %12688 = vmatpush3.bf16.msra.mxu1 %v12685_v48  ;;  %v21122_v48 = vmov 0 }
 0x36c   :  { %v12689_v4 = vpack.c.bf16 %v12447_v36, %v526_v14  ;;  %v21123_v48 = vsel %vm15349_vm14, 4294967295, %v21122_v48  ;;  %v21125_v36 = vmov 0  ;;  %vm2583_vm14 = vcmp.eq.f32.partialorder %v14843_v43, %v15284_v47 }
 0x36d   :  { %21124 = vst [vmem:[#allocation57_spill] sm:$0xff] %v21123_v48  ;;  %v21126_v36 = vsel %vm15357_vm9, 4294967295, %v21125_v36  ;;  %vm15373_vm9 = vmpackc.low %vm2577_vm0, %vm2571_vm5 }
 0x36e   :  { %v12450_v17 = vpop.f32.mrb[10].mxu0  ;;  %12690 = vmatprep.subr.bf16.mxu1 %v12689_v4  ;;  %21127 = vst [vmem:[#allocation58_spill] sm:$0xff] %v21126_v36 }
 0x36f   :  { %v536_v38 = vpop.f32.mrb[11].mxu0  ;;  %12692 = vmatpush3.bf16.msra.mxu1 %v12689_v4  ;;  %v21128_v4 = vmov 0 }
 0x370   :  { %v12693_v14 = vpack.c.bf16 %v12450_v17, %v536_v38  ;;  %v21129_v4 = vsel %vm15365_vm3, 4294967295, %v21128_v4  ;;  %v21131_v17 = vmov 0  ;;  %vm15385_vm3 = vmpackc.low %vm2589_vm1, %vm2583_vm14 }
 0x371   :  { %21130 = vst [vmem:[#allocation59_spill] sm:$0xff] %v21129_v4  ;;  %v21132_v17 = vsel %vm15373_vm9, 4294967295, %v21131_v17 }
 0x372   :  { %v12453_v48 = vpop.f32.mrb[12].mxu0  ;;  %12694 = vmatprep.subr.bf16.mxu1 %v12693_v14  ;;  %21133 = vst [vmem:[#allocation60_spill] sm:$0xff] %v21132_v17 }
 0x373   :  { %v546_v16 = vpop.f32.mrb[13].mxu0  ;;  %12696 = vmatpush3.bf16.msra.mxu1 %v12693_v14  ;;  %v21134_v14 = vmov 0 }
 0x374   :  { %v12697_v38 = vpack.c.bf16 %v12453_v48, %v546_v16  ;;  %v21135_v14 = vsel %vm15381_vm8, 4294967295, %v21134_v14  ;;  %v21136_v16 = vmov 0  ;;  %vm960_vm8 = vcmp.eq.f32.partialorder %v14701_v10, %v15826_v58 }
 0x375   :  { %v21137_v16 = vsel %vm15385_vm3, 4294967295, %v21136_v16 }
 0x376   :  { %v12456_v4 = vpop.f32.mrb[14].mxu0  ;;  %12698 = vmatprep.subr.bf16.mxu1 %v12697_v38  ;;  %21138 = vst [vmem:[#allocation61_spill] sm:$0xff] %v21137_v16 }
 0x377   :  { %v556_v36 = vpop.f32.mrb[15].mxu0  ;;  %12700 = vmatpush3.bf16.msra.mxu1 %v12697_v38  ;;  %v14_v38 = vld [vmem:[%s20789_s0] sm:$0xff] }
 0x378   :  { %v12701_v18 = vpack.c.bf16 %v12456_v4, %v556_v36  ;;  %v15395_v36 = vpack.c.bf16 %v14510_v49, %v14510_v49  ;;  %v21146_v49 = vmov 0  ;;  %v15535_v4 = vadd.f32 %v15523_v55, %v14487_v39 }
 0x37a   :  { %v12459_v48 = vpop.f32.mrb[16].mxu0  ;;  %12702 = vmatprep.subr.bf16.mxu1 %v12701_v18  ;;  %21139 = vst [vmem:[#allocation62_spill] sm:$0xff] %v15395_v36 }
 0x37b   :  { %v566_v17 = vpop.f32.mrb[17].mxu0  ;;  %12704 = vmatpush3.bf16.msra.mxu1 %v12701_v18  ;;  %v21140_v18 = vmov 0 }
 0x37c   :  { %v12705_v47 = vpack.c.bf16 %v12459_v48, %v566_v17  ;;  %v15539_v17 = vadd.f32 %v15523_v55, %v14491_v41  ;;  %v21169_v48 = vmov 0 }
 0x37e   :  { %12706 = vmatprep.subr.bf16.mxu1 %v12705_v47  ;;  %v780_v31 = vpop.f32.mrb[18].mxu0 }
 0x37f   :  { %v804_v5 = vrot.slane %v780_v31, %v14475_v33  ;;  %12708 = vmatpush3.bf16.msra.mxu1 %v12705_v47  ;;  %v12529_v50 = vpop.f32.mrb[19].mxu0  ;;  %v21143_v47 = vmov 0  ;;  %v21153_v31 = vmov 0.0   ;;  %v21181_v33 = vmov 0 }
 0x380   :  { %v21149_v50 = vmov 0 }
 0x381   :  { %vm805_vm5 = vcmp.eq.f32.partialorder %v14487_v39, %v804_v5  ;;  %vm806_vm14 = vcmp.eq.f32.partialorder %v14491_v41, %v804_v5  ;;  %vm807_vm6 = vcmp.eq.f32.partialorder %v14683_v2, %v804_v5  ;;  %vm808_vm15 = vcmp.eq.f32.partialorder %v14686_v3, %v804_v5 }
 0x382   :  { %12493 = vmatmul.mubr.f32.vlgmr.msra.gmra.mrb[4].mxu1 %v14519_v52  ;;  %vm15400_vm0 = vmpackc.low %vm806_vm14, %vm805_vm5  ;;  %vm809_vm5 = vcmp.eq.f32.partialorder %v14689_v6, %v804_v5  ;;  %vm810_vm14 = vcmp.eq.f32.partialorder %v14692_v7, %v804_v5  ;;  %v21152_v52 = vmov 1.0|1.0  }
 0x383   :  { %v21141_v18 = vsel %vm15400_vm0, 4294967295, %v21140_v18  ;;  %12735 = vmatprep.subr.msk.bf16.mxu1 %vm15400_vm0, %v15395_v36  ;;  %12546 = vmatprep.mubr.f32.mxu1 %v14_v38  ;;  %vm15412_vm1 = vmpackc.low %vm808_vm15, %vm807_vm6  ;;  %vm811_vm6 = vcmp.eq.f32.partialorder %v14695_v8, %v804_v5  ;;  %vm812_vm15 = vcmp.eq.f32.partialorder %v14698_v46, %v804_v5  ;;  %v15_v5 = vld [vmem:[%s20789_s0 + $0x8] sm:$0x3f]  ;;  %s4175_s0 = smul.f32 10.0, %s14703_s22  ;;  %v15563_v38 = vadd.f32 %v15523_v55, %v14689_v6 }
 0x384   :  { %21142 = vst [vmem:[#allocation63_spill] sm:$0xff] %v21141_v18  ;;  %v21144_v47 = vsel %vm15412_vm1, 4294967295, %v21143_v47  ;;  %vm15424_vm3 = vmpackc.low %vm810_vm14, %vm809_vm5  ;;  %vm21154_vm5 = vnez %v20973_v45  ;;  %vm21156_vm14 = vnez %v20981_v57  ;;  %v21166_v57 = vmov 0 }
 0x385   :  { %21145 = vst [vmem:[#allocation64_spill] sm:$0xff] %v21144_v47  ;;  %v21147_v49 = vsel %vm15424_vm3, 4294967295, %v21146_v49  ;;  %v15480_v20 = vstv %s4175_s0  ;;  %v15587_v47 = vadd.f32 %v15523_v55, %v14695_v8  ;;  %v15591_v18 = vadd.f32 %v15523_v55, %v14698_v46 }
 0x386   :  { %21148 = vst [vmem:[#allocation65_spill] sm:$0xff] %v21147_v49  ;;  %v15484_v42 = vadd.f32 %v15480_v20, %v14689_v6  ;;  %v15488_v44 = vadd.f32 %v15480_v20, %v14692_v7  ;;  %v15492_v45 = vadd.f32 %v15480_v20, %v14695_v8  ;;  %v21175_v49 = vmov 0 }
 0x388   :  { %12738 = vmatpush3.bf16.xpose.msk.msra.mxu1 %vm15400_vm0, %v15395_v36  ;;  %vm15436_vm0 = vmpackc.low %vm812_vm15, %vm811_vm6  ;;  %vm4209_vm15 = vcmp.eq.f32.partialorder %v14708_v13, %v15484_v42 }
 0x389   :  { %12741 = vmatprep.subr.msk.bf16.mxu1 %vm15412_vm1, %v15395_v36  ;;  %v21150_v50 = vsel %vm15436_vm0, 4294967295, %v21149_v50 }
 0x38a   :  { %21151 = vst [vmem:[#allocation66_spill] sm:$0xff] %v21150_v50  ;;  %v21172_v50 = vmov 0 }
 0x390   :  { %12744 = vmatpush3.bf16.xpose.msk.msra.mxu1 %vm15412_vm1, %v15395_v36  ;;  %vm4223_vm1 = vcmp.eq.f32.partialorder %v14843_v43, %v15492_v45 }
 0x391   :  { %12747 = vmatprep.subr.msk.bf16.mxu1 %vm15424_vm3, %v15395_v36 }
 0x398   :  { %12750 = vmatpush3.bf16.xpose.msk.msra.mxu1 %vm15424_vm3, %v15395_v36 }
 0x399   :  { %12753 = vmatprep.subr.msk.bf16.mxu1 %vm15436_vm0, %v15395_v36 }
 0x3a0   :  { %12756 = vmatpush3.bf16.xpose.msk.msra.mxu1 %vm15436_vm0, %v15395_v36  ;;  %v21178_v36 = vmov 0 }
 0x3a1   :  { %12790 = vmatprep.subr.msk.bf16.mxu1 %vm14822_vm10, %v21152_v52  ;;  %vm21155_vm10 = vnez %v20975_v54  ;;  %v21160_v54 = vmov 0 }
 0x3a7   :  { %12547 = vmatmul.mubr.f32.vlgmr.msra.gmra.mrb[6].mxu1 %v15_v5  ;;  %v15567_v5 = vadd.f32 %v15523_v55, %v14692_v7 }
 0x3a8   :  { %12792 = vmatpush1.bf16.msk.msra.mxu1 %vm14835_vm12, %v21152_v52  ;;  %1329 = vmatprep.mubr.f32.mxu1 %v21153_v31  ;;  %vm922_vm12 = vcmp.eq.f32.partialorder %v14768_v29, %v14866_v51  ;;  %v15496_v51 = vadd.f32 %v15480_v20, %v14698_v46 }
 0x3a9   :  { %12794 = vmatprep.subr.msk.bf16.mxu1 %vm14848_vm7, %v21152_v52  ;;  %vm928_vm7 = vcmp.eq.f32.partialorder %v14768_v29, %v14870_v53  ;;  %v21157_v53 = vmov 0 }
 0x3aa   :  { %vm12837_vm6 = vmpackc.low %vm928_vm7, %vm922_vm12  ;;  %vm4228_vm12 = vcmp.eq.f32.partialorder %v14701_v10, %v15496_v51 }
 0x3ac   :  { %12796 = vmatpush1.bf16.msk.msra.mxu1 %vm21154_vm5, %v21152_v52  ;;  %vm4215_vm5 = vcmp.eq.f32.partialorder %v14708_v13, %v15488_v44 }
 0x3ad   :  { %12798 = vmatprep.subr.msk.bf16.mxu1 %vm21155_vm10, %v21152_v52  ;;  %vm4222_vm10 = vcmp.eq.f32.partialorder %v14701_v10, %v15492_v45  ;;  %vm15519_vm0 = vmpackc.low %vm4215_vm5, %vm4209_vm15  ;;  %vm4218_vm15 = vcmp.eq.f32.partialorder %v14761_v28, %v15488_v44  ;;  %vm4211_vm5 = vcmp.eq.f32.partialorder %v14843_v43, %v15484_v42 }
 0x3ae   :  { %v21161_v54 = vsel %vm15519_vm0, 4294967295, %v21160_v54  ;;  %vm15525_vm3 = vmpackc.low %vm4228_vm12, %vm4222_vm10  ;;  %vm4217_vm10 = vcmp.eq.f32.partialorder %v14843_v43, %v15488_v44  ;;  %vm4224_vm12 = vcmp.eq.f32.partialorder %v14761_v28, %v15492_v45  ;;  %vm4513_vm0 = vcmp.eq.f32.partialorder %v14708_v13, %v15535_v4 }
 0x3af   :  { %21162 = vst [vmem:[#allocation68_spill] sm:$0xff] %v21161_v54  ;;  %v21164_v56 = vsel %vm15525_vm3, 4294967295, %v21163_v56  ;;  %vm15569_vm3 = vmpackc.low %vm4217_vm10, %vm4211_vm5  ;;  %vm4519_vm5 = vcmp.eq.f32.partialorder %v14708_v13, %v15539_v17  ;;  %v21218_v54 = vmov 0 }
 0x3b0   :  { %12800 = vmatpush1.bf16.msk.msra.mxu1 %vm14883_vm11, %v21152_v52  ;;  %vm4210_vm11 = vcmp.eq.f32.partialorder %v14701_v10, %v15484_v42  ;;  %21165 = vst [vmem:[#allocation69_spill] sm:$0xff] %v21164_v56  ;;  %v21173_v50 = vsel %vm15569_vm3, 4294967295, %v21172_v50  ;;  %vm4544_vm3 = vcmp.eq.f32.partialorder %v14701_v10, %v15567_v5 }
 0x3b1   :  { %12802 = vmatprep.subr.msk.bf16.mxu1 %vm14890_vm13, %v21152_v52  ;;  %vm4216_vm13 = vcmp.eq.f32.partialorder %v14701_v10, %v15488_v44  ;;  %21174 = vst [vmem:[#allocation72_spill] sm:$0xff] %v21173_v50  ;;  %v21199_v50 = vmov 0 }
 0x3b2   :  { %vm15511_vm7 = vmpackc.low %vm4216_vm13, %vm4210_vm11  ;;  %vm4212_vm13 = vcmp.eq.f32.partialorder %v14761_v28, %v15484_v42 }
 0x3b3   :  { %v21158_v53 = vsel %vm15511_vm7, 4294967295, %v21157_v53  ;;  %vm4522_vm7 = vcmp.eq.f32.partialorder %v14761_v28, %v15539_v17 }
 0x3b4   :  { %12804 = vmatpush1.bf16.msk.msra.mxu1 %vm21156_vm14, %v21152_v52  ;;  %21159 = vst [vmem:[#allocation67_spill] sm:$0xff] %v21158_v53  ;;  %vm4221_vm14 = vcmp.eq.f32.partialorder %v14708_v13, %v15492_v45 }
 0x3b5   :  { %12838 = vmatprep.subr.msk.bf16.mxu1 %vm12837_vm6, %v21152_v52  ;;  %vm4227_vm6 = vcmp.eq.f32.partialorder %v14708_v13, %v15496_v51 }
 0x3b6   :  { %vm15529_vm11 = vmpackc.low %vm4227_vm6, %vm4221_vm14  ;;  %vm4230_vm14 = vcmp.eq.f32.partialorder %v14761_v28, %v15496_v51 }
 0x3b7   :  { %v21167_v57 = vsel %vm15529_vm11, 4294967295, %v21166_v57  ;;  %vm15553_vm6 = vmpackc.low %vm4218_vm15, %vm4212_vm13  ;;  %vm4229_vm11 = vcmp.eq.f32.partialorder %v14843_v43, %v15496_v51  ;;  %vm4514_vm13 = vcmp.eq.f32.partialorder %v14701_v10, %v15535_v4  ;;  %vm4520_vm15 = vcmp.eq.f32.partialorder %v14701_v10, %v15539_v17 }
 0x3b8   :  { %21168 = vst [vmem:[#allocation70_spill] sm:$0xff] %v21167_v57  ;;  %v21170_v48 = vsel %vm15553_vm6, 4294967295, %v21169_v48  ;;  %vm15577_vm6 = vmpackc.low %vm4230_vm14, %vm4224_vm12  ;;  %v21213_v57 = vmov 0 }
 0x3b9   :  { %21171 = vst [vmem:[#allocation71_spill] sm:$0xff] %v21170_v48  ;;  %v21176_v49 = vsel %vm15577_vm6, 4294967295, %v21175_v49  ;;  %vm15593_vm10 = vmpackc.low %vm4229_vm11, %vm4223_vm1  ;;  %vm4538_vm6 = vcmp.eq.f32.partialorder %v14701_v10, %v15563_v38  ;;  %vm4537_vm1 = vcmp.eq.f32.partialorder %v14708_v13, %v15563_v38  ;;  %vm4543_vm11 = vcmp.eq.f32.partialorder %v14708_v13, %v15567_v5 }
 0x3ba   :  { %21177 = vst [vmem:[#allocation73_spill] sm:$0xff] %v21176_v49  ;;  %v21179_v36 = vsel %vm15593_vm10, 4294967295, %v21178_v36  ;;  %vm15597_vm12 = vmpackc.low %vm4520_vm15, %vm4514_vm13  ;;  %v21184_v49 = vmov 0  ;;  %vm4550_vm13 = vcmp.eq.f32.partialorder %v14701_v10, %v15587_v47  ;;  %vm4516_vm10 = vcmp.eq.f32.partialorder %v14761_v28, %v15535_v4 }
 0x3bb   :  { %21180 = vst [vmem:[#allocation74_spill] sm:$0xff] %v21179_v36  ;;  %v21182_v33 = vsel %vm15597_vm12, 4294967295, %v21181_v33  ;;  %vm15601_vm14 = vmpackc.low %vm4519_vm5, %vm4513_vm0  ;;  %vm4556_vm0 = vcmp.eq.f32.partialorder %v14701_v10, %v15591_v18  ;;  %vm4549_vm5 = vcmp.eq.f32.partialorder %v14708_v13, %v15587_v47  ;;  %v21193_v36 = vmov 0 }
 0x3bc   :  { %21183 = vst [vmem:[#allocation75_spill] sm:$0xff] %v21182_v33  ;;  %v21185_v49 = vsel %vm15601_vm14, 4294967295, %v21184_v49  ;;  %vm15618_vm15 = vmpackc.low %vm4544_vm3, %vm4538_vm6  ;;  %vm4555_vm14 = vcmp.eq.f32.partialorder %v14708_v13, %v15591_v18  ;;  %v21190_v33 = vmov 0  ;;  %vm4515_vm6 = vcmp.eq.f32.partialorder %v14843_v43, %v15535_v4 }
 0x3bd   :  { %21186 = vst [vmem:[#allocation76_spill] sm:$0xff] %v21185_v49  ;;  %v21187_v49 = vmov 0  ;;  %vm15626_vm12 = vmpackc.low %vm4543_vm11, %vm4537_vm1  ;;  %v21202_v48 = vmov 0 }
 0x3be   :  { %v21188_v49 = vsel %vm15618_vm15, 4294967295, %v21187_v49  ;;  %v21191_v33 = vsel %vm15626_vm12, 4294967295, %v21190_v33  ;;  %vm15634_vm3 = vmpackc.low %vm4556_vm0, %vm4550_vm13  ;;  %vm4521_vm15 = vcmp.eq.f32.partialorder %v14843_v43, %v15539_v17  ;;  %vm4540_vm0 = vcmp.eq.f32.partialorder %v14761_v28, %v15563_v38 }
 0x3bf   :  { %21189 = vst [vmem:[#allocation77_spill] sm:$0xff] %v21188_v49  ;;  %21192 = vst [vmem:[#allocation78_spill] sm:$0xff] %v21191_v33  ;;  %v21194_v36 = vsel %vm15634_vm3, 4294967295, %v21193_v36  ;;  %v21196_v49 = vmov 0  ;;  %v15646_v33 = vstv %s4831_s5  ;;  %vm4546_vm3 = vcmp.eq.f32.partialorder %v14761_v28, %v15567_v5 }
 0x3c0   :  { %21195 = vst [vmem:[#allocation79_spill] sm:$0xff] %v21194_v36  ;;  %vm15642_vm1 = vmpackc.low %vm4555_vm14, %vm4549_vm5  ;;  %vm4539_vm14 = vcmp.eq.f32.partialorder %v14843_v43, %v15563_v38  ;;  %vm4545_vm5 = vcmp.eq.f32.partialorder %v14843_v43, %v15567_v5  ;;  %v21210_v36 = vmov 0  ;;  %v15694_v56 = vadd.f32 %v15646_v33, %v14695_v8 }
 0x3c1   :  { %v21197_v49 = vsel %vm15642_vm1, 4294967295, %v21196_v49  ;;  %vm15648_vm11 = vmpackc.low %vm4522_vm7, %vm4516_vm10  ;;  %vm4552_vm7 = vcmp.eq.f32.partialorder %v14761_v28, %v15587_v47  ;;  %vm4558_vm10 = vcmp.eq.f32.partialorder %v14761_v28, %v15591_v18 }
 0x3c2   :  { %21198 = vst [vmem:[#allocation80_spill] sm:$0xff] %v21197_v49  ;;  %v21200_v50 = vsel %vm15648_vm11, 4294967295, %v21199_v50  ;;  %vm15652_vm13 = vmpackc.low %vm4521_vm15, %vm4515_vm6  ;;  %v15666_v49 = vadd.f32 %v15646_v33, %v14683_v2  ;;  %vm4551_vm6 = vcmp.eq.f32.partialorder %v14843_v43, %v15587_v47 }
 0x3c3   :  { %21201 = vst [vmem:[#allocation81_spill] sm:$0xff] %v21200_v50  ;;  %v21203_v48 = vsel %vm15652_vm13, 4294967295, %v21202_v48  ;;  %v15670_v50 = vadd.f32 %v15646_v33, %v14686_v3  ;;  %vm15676_vm15 = vmpackc.low %vm4546_vm3, %vm4540_vm0  ;;  %vm4557_vm13 = vcmp.eq.f32.partialorder %v14843_v43, %v15591_v18 }
 0x3c4   :  { %21204 = vst [vmem:[#allocation82_spill] sm:$0xff] %v21203_v48  ;;  %21205 = vst [vmem:[#allocation83_spill] sm:$0xff] %v15666_v49  ;;  %v21207_v48 = vmov 0  ;;  %vm4854_vm0 = vcmp.eq.f32.partialorder %v14701_v10, %v15666_v49 }
 0x3c5   :  { %21206 = vst [vmem:[#allocation84_spill] sm:$0xff] %v15670_v50  ;;  %v21208_v48 = vsel %vm15676_vm15, 4294967295, %v21207_v48  ;;  %vm15684_vm11 = vmpackc.low %vm4545_vm5, %vm4539_vm14  ;;  %vm4860_vm14 = vcmp.eq.f32.partialorder %v14701_v10, %v15670_v50  ;;  %vm4853_vm5 = vcmp.eq.f32.partialorder %v14708_v13, %v15666_v49 }
 0x3c6   :  { %21209 = vst [vmem:[#allocation85_spill] sm:$0xff] %v21208_v48  ;;  %v21211_v36 = vsel %vm15684_vm11, 4294967295, %v21210_v36  ;;  %vm15688_vm1 = vmpackc.low %vm4558_vm10, %vm4552_vm7  ;;  %v15698_v48 = vadd.f32 %v15646_v33, %v14698_v46  ;;  %vm4859_vm7 = vcmp.eq.f32.partialorder %v14708_v13, %v15670_v50 }
 0x3c7   :  { %21212 = vst [vmem:[#allocation86_spill] sm:$0xff] %v21211_v36  ;;  %v21214_v57 = vsel %vm15688_vm1, 4294967295, %v21213_v57  ;;  %21216 = vst [vmem:[#allocation88_spill] sm:$0xff] %v15694_v56  ;;  %v21224_v36 = vmov 0  ;;  %vm4877_vm1 = vcmp.eq.f32.partialorder %v14708_v13, %v15694_v56 }
 0x3c8   :  { %21215 = vst [vmem:[#allocation87_spill] sm:$0xff] %v21214_v57  ;;  %21217 = vst [vmem:[#allocation89_spill] sm:$0xff] %v15698_v48  ;;  %v21221_v57 = vmov 0  ;;  %vm4883_vm11 = vcmp.eq.f32.partialorder %v14708_v13, %v15698_v48 }
 0x3c9   :  { %vm15700_vm3 = vmpackc.low %vm4557_vm13, %vm4551_vm6  ;;  %vm4878_vm6 = vcmp.eq.f32.partialorder %v14701_v10, %v15694_v56 }
 0x3ca   :  { %v21219_v54 = vsel %vm15700_vm3, 4294967295, %v21218_v54  ;;  %vm15712_vm10 = vmpackc.low %vm4860_vm14, %vm4854_vm0  ;;  %vm4884_vm3 = vcmp.eq.f32.partialorder %v14701_v10, %v15698_v48 }
 0x3cb   :  { %21220 = vst [vmem:[#allocation90_spill] sm:$0xff] %v21219_v54  ;;  %v21222_v57 = vsel %vm15712_vm10, 4294967295, %v21221_v57  ;;  %vm15716_vm13 = vmpackc.low %vm4859_vm7, %vm4853_vm5  ;;  %v21227_v54 = vmov 0  ;;  %vm4856_vm5 = vcmp.eq.f32.partialorder %v14761_v28, %v15666_v49  ;;  %vm4862_vm7 = vcmp.eq.f32.partialorder %v14761_v28, %v15670_v50 }
 0x3cc   :  { %21223 = vst [vmem:[#allocation91_spill] sm:$0xff] %v21222_v57  ;;  %v21225_v36 = vsel %vm15716_vm13, 4294967295, %v21224_v36  ;;  %vm15728_vm0 = vmpackc.low %vm4884_vm3, %vm4878_vm6  ;;  %v21230_v57 = vmov 0  ;;  %vm4855_vm13 = vcmp.eq.f32.partialorder %v14843_v43, %v15666_v49  ;;  %vm4861_vm10 = vcmp.eq.f32.partialorder %v14843_v43, %v15670_v50 }
 0x3cd   :  { %21226 = vst [vmem:[#allocation92_spill] sm:$0xff] %v21225_v36  ;;  %v21228_v54 = vsel %vm15728_vm0, 4294967295, %v21227_v54  ;;  %vm15732_vm14 = vmpackc.low %vm4883_vm11, %vm4877_vm1  ;;  %v21233_v36 = vmov 0  ;;  %vm4880_vm11 = vcmp.eq.f32.partialorder %v14761_v28, %v15694_v56  ;;  %vm4886_vm6 = vcmp.eq.f32.partialorder %v14761_v28, %v15698_v48 }
 0x3ce   :  { %21229 = vst [vmem:[#allocation93_spill] sm:$0xff] %v21228_v54  ;;  %v21231_v57 = vsel %vm15732_vm14, 4294967295, %v21230_v57  ;;  %vm15744_vm3 = vmpackc.low %vm4862_vm7, %vm4856_vm5  ;;  %v21236_v54 = vmov 0  ;;  %vm4879_vm14 = vcmp.eq.f32.partialorder %v14843_v43, %v15694_v56  ;;  %vm4885_vm0 = vcmp.eq.f32.partialorder %v14843_v43, %v15698_v48 }
 0x3cf   :  { %21232 = vst [vmem:[#allocation94_spill] sm:$0xff] %v21231_v57  ;;  %v21234_v36 = vsel %vm15744_vm3, 4294967295, %v21233_v36  ;;  %vm15748_vm1 = vmpackc.low %vm4861_vm10, %vm4855_vm13  ;;  %v21239_v57 = vmov 0  ;;  %v15776_v48 = vadd.f32 %v14830_v40, %v14683_v2  ;;  %vm20926_vm13 = vcmask 523264  }
 0x3d0   :  { %21235 = vst [vmem:[#allocation95_spill] sm:$0xff] %v21234_v36  ;;  %v21237_v54 = vsel %vm15748_vm1, 4294967295, %v21236_v54  ;;  %vm15760_vm5 = vmpackc.low %vm4886_vm6, %vm4880_vm11  ;;  %v21242_v36 = vmov 0  ;;  %vm21247_vm7 = vnez %v20985_v59  ;;  %v1552_v59 = vstv %s1551_s6 }
 0x3d1   :  { %21238 = vst [vmem:[#allocation96_spill] sm:$0xff] %v21237_v54  ;;  %v21240_v57 = vsel %vm15760_vm5, 4294967295, %v21239_v57  ;;  %vm15764_vm10 = vmpackc.low %vm4885_vm0, %vm4879_vm14  ;;  %vm934_vm0 = vcmp.eq.f32.partialorder %v14768_v29, %v15776_v48  ;;  %vm933_vm6 = vcmp.eq.f32.partialorder %v14775_v30, %v15776_v48  ;;  %vm21250_vm3 = vnez %v20991_v62 }
 0x3d2   :  { %21241 = vst [vmem:[#allocation97_spill] sm:$0xff] %v21240_v57  ;;  %v21243_v36 = vsel %vm15764_vm10, 4294967295, %v21242_v36  ;;  %v15780_v57 = vadd.f32 %v14830_v40, %v14686_v3  ;;  %v15872_v62 = vadd.f32 %v1552_v59, %v14686_v3 }
 0x3d3   :  { %21244 = vst [vmem:[#allocation98_spill] sm:$0xff] %v21243_v36  ;;  %v21318_v36 = vld [vmem:[#allocation31_spill] sm:$0xff] }
 0x3d4   :  { %vm940_vm14 = vcmp.eq.f32.partialorder %v14768_v29, %v15780_v57  ;;  %vm939_vm10 = vcmp.eq.f32.partialorder %v14775_v30, %v15780_v57  ;;  %vm1583_vm12 = vcmp.eq.f32.partialorder %v14775_v30, %v15872_v62 }
 0x3d5   :  { %vm12841_vm11 = vmpackc.low %vm940_vm14, %vm934_vm0 }
 0x3d6   :  { %vm12843_vm14 = vmpackc.low %vm939_vm10, %vm933_vm6  ;;  %vm964_vm10 = vcmp.eq.f32.partialorder %v14768_v29, %v15826_v58 }
 0x455   :  { %v12494_v54 = vpop.f32.mrb[4].mxu1 }
 0x456   :  { %v15769_v53 = vadd.f32 %v12494_v54, %v14549_v24  ;;  %v643_v50 = vpop.f32.mrb[5].mxu1  ;;  %v15814_v54 = vadd.f32 %v14830_v40, %v14695_v8 }
 0x457   :  { %v15772_v49 = vadd.f32 %v643_v50, %v14547_v22  ;;  %v15793_v22 = vadd.f32 %v14830_v40, %v14689_v6  ;;  %v15797_v50 = vadd.f32 %v14830_v40, %v14692_v7  ;;  %v15847_v40 = vadd.f32 %v1552_v59, %v14487_v39 }
 0x458   :  { %21245 = vst [vmem:[#allocation99_spill] sm:$0xff] %v15769_v53  ;;  %vm958_vm1 = vcmp.eq.f32.partialorder %v14768_v29, %v15814_v54  ;;  %v3848_v53 = vstv %s3847_s10 }
 0x459   :  { %21246 = vst [vmem:[#allocation100_spill] sm:$0xff] %v15772_v49  ;;  %vm952_vm0 = vcmp.eq.f32.partialorder %v14768_v29, %v15797_v50  ;;  %vm951_vm5 = vcmp.eq.f32.partialorder %v14775_v30, %v15797_v50  ;;  %v16584_v49 = vadd.f32 %v3848_v53, %v14491_v41 }
 0x47a   :  { %v15782_v56 = vpop.f32.mrb[6].mxu1 }
 0x47b   :  { %v15784_v16 = vpop.f32.mrb[7].mxu1 }
 0x47c   :  { %v1119_v24 = vrot.slane %v15784_v16, 1 }
 0x47e   :  { %10869 = vmatmul.mubr.msk.f32.vlgmr.msra.gmra.mrb[20].mxu0 %vm20926_vm13, %v1119_v24  ;;  %10903 = vmatmul.mubr.msk.f32.vlgmr.msra.gmra.mrb[8].mxu1 %vm20926_vm13, %v1119_v24  ;;  %vm21248_vm13 = vnez %v20987_v60  ;;  %v15850_v60 = vadd.f32 %v1552_v59, %v14491_v41 }
 0x47f   :  { %12776 = vmatpush1.bf16.msk.msra.mxu0 %vm14910_vm2, %v21152_v52  ;;  %12840 = vmatpush1.bf16.msk.msra.mxu1 %vm21247_vm7, %v21152_v52  ;;  %vm946_vm2 = vcmp.eq.f32.partialorder %v14768_v29, %v15793_v22 }
 0x480   :  { %12778 = vmatprep.subr.msk.bf16.mxu0 %vm21248_vm13, %v21152_v52  ;;  %12842 = vmatprep.subr.msk.bf16.mxu1 %vm12841_vm11, %v21152_v52  ;;  %vm21249_vm13 = vnez %v20989_v61  ;;  %vm12845_vm7 = vmpackc.low %vm952_vm0, %vm946_vm2  ;;  %vm945_vm11 = vcmp.eq.f32.partialorder %v14775_v30, %v15793_v22  ;;  %vm21251_vm2 = vnez %v20993_v63  ;;  %v15861_v61 = vadd.f32 %v1552_v59, %v14683_v2 }
 0x481   :  { %1258 = vmatprep.mubr.f32.mxu0 %v21153_v31  ;;  %1544 = vmatprep.mubr.f32.mxu1 %v21153_v31  ;;  %vm12847_vm6 = vmpackc.low %vm951_vm5, %vm945_vm11  ;;  %vm1566_vm5 = vcmp.eq.f32.partialorder %v14768_v29, %v15847_v40  ;;  %vm1565_vm11 = vcmp.eq.f32.partialorder %v14775_v30, %v15847_v40  ;;  %v15895_v63 = vadd.f32 %v1552_v59, %v14689_v6 }
 0x482   :  { %vm12849_vm0 = vmpackc.low %vm964_vm10, %vm958_vm1  ;;  %vm1572_vm1 = vcmp.eq.f32.partialorder %v14768_v29, %v15850_v60  ;;  %vm1571_vm10 = vcmp.eq.f32.partialorder %v14775_v30, %v15850_v60  ;;  %vm1577_vm15 = vcmp.eq.f32.partialorder %v14775_v30, %v15861_v61 }
 0x483   :  { %12780 = vmatpush1.bf16.msk.msra.mxu0 %vm21249_vm13, %v21152_v52  ;;  %12844 = vmatpush1.bf16.msk.msra.mxu1 %vm12843_vm14, %v21152_v52  ;;  %vm963_vm14 = vcmp.eq.f32.partialorder %v14775_v30, %v15826_v58  ;;  %vm21252_vm13 = vnez %v20995_v32  ;;  %v15898_v32 = vadd.f32 %v1552_v59, %v14692_v7 }
 0x484   :  { %12782 = vmatprep.subr.msk.bf16.mxu0 %vm21250_vm3, %v21152_v52  ;;  %12846 = vmatprep.subr.msk.bf16.mxu1 %vm12845_vm7, %v21152_v52  ;;  %vm957_vm3 = vcmp.eq.f32.partialorder %v14775_v30, %v15814_v54 }
 0x485   :  { %vm12851_vm7 = vmpackc.low %vm963_vm14, %vm957_vm3  ;;  %vm21254_vm14 = vnez %v20999_v9  ;;  %vm21255_vm3 = vcmask 523264   ;;  %v15935_v9 = vadd.f32 %v1552_v59, %v14698_v46 }
 0x487   :  { %12784 = vmatpush1.bf16.msk.msra.mxu0 %vm21251_vm2, %v21152_v52  ;;  %12848 = vmatpush1.bf16.msk.msra.mxu1 %vm12847_vm6, %v21152_v52  ;;  %vm21253_vm6 = vnez %v20997_v1  ;;  %vm12885_vm2 = vmpackc.low %vm1572_vm1, %vm1566_vm5  ;;  %vm929_vm1 = vcmp.eq.f32.partialorder %v14708_v13, %v15776_v48  ;;  %v15923_v1 = vadd.f32 %v1552_v59, %v14695_v8  ;;  %v21273_v59 = vld [vmem:[#allocation28_spill] sm:$0xff] }
 0x488   :  { %12786 = vmatprep.subr.msk.bf16.mxu0 %vm21252_vm13, %v21152_v52  ;;  %12850 = vmatprep.subr.msk.bf16.mxu1 %vm12849_vm0, %v21152_v52  ;;  %vm930_vm0 = vcmp.eq.f32.partialorder %v14701_v10, %v15776_v48  ;;  %vm936_vm13 = vcmp.eq.f32.partialorder %v14701_v10, %v15780_v57  ;;  %vm12887_vm5 = vmpackc.low %vm1571_vm10, %vm1565_vm11  ;;  %vm21257_vm11 = vnez %v21001_v11  ;;  %vm21258_vm10 = vcmp.eq.f32.partialorder %v14768_v29, %v15861_v61 }
 0x489   :  { %v15990_v11 = vrot.slane %v15784_v16, 2 }
 0x48b   :  { %12788 = vmatpush1.bf16.msk.msra.mxu0 %vm21253_vm6, %v21152_v52  ;;  %12852 = vmatpush1.bf16.msk.msra.mxu1 %vm12851_vm7, %v21152_v52  ;;  %vm1584_vm6 = vcmp.eq.f32.partialorder %v14768_v29, %v15872_v62  ;;  %vm935_vm7 = vcmp.eq.f32.partialorder %v14708_v13, %v15780_v57 }
 0x48c   :  { %12806 = vmatprep.subr.msk.bf16.mxu0 %vm21254_vm14, %v21152_v52  ;;  %12886 = vmatprep.subr.msk.bf16.mxu1 %vm12885_vm2, %v21152_v52  ;;  %vm21256_vm2 = vmmov %vm21255_vm3 }
 0x48d   :  { %vm12809_vm14 = vmpackc.low %vm936_vm13, %vm930_vm0  ;;  %vm948_vm0 = vcmp.eq.f32.partialorder %v14701_v10, %v15797_v50 }
 0x48e   :  { %10886 = vmatmul.mubr.msk.f32.vlgmr.msra.gmra.mrb[22].mxu0 %vm21255_vm3, %v1119_v24  ;;  %10954 = vmatmul.mubr.msk.f32.vlgmr.msra.gmra.mrb[8].mxu1 %vm21256_vm2, %v15784_v16  ;;  %vm12889_vm3 = vmpackc.low %vm1584_vm6, %vm21258_vm10  ;;  %vm942_vm2 = vcmp.eq.f32.partialorder %v14701_v10, %v15793_v22  ;;  %vm1590_vm6 = vcmp.eq.f32.partialorder %v14768_v29, %v15895_v63  ;;  %vm941_vm10 = vcmp.eq.f32.partialorder %v14708_v13, %v15793_v22  ;;  %v21266_v24 = vld [vmem:[#allocation19_spill] sm:$0xff] }
 0x48f   :  { %12808 = vmatpush1.bf16.msk.msra.mxu0 %vm21257_vm11, %v21152_v52  ;;  %12888 = vmatpush1.bf16.msk.msra.mxu1 %vm12887_vm5, %v21152_v52  ;;  %vm12811_vm13 = vmpackc.low %vm935_vm7, %vm929_vm1  ;;  %vm1596_vm5 = vcmp.eq.f32.partialorder %v14768_v29, %v15898_v32  ;;  %vm1589_vm7 = vcmp.eq.f32.partialorder %v14775_v30, %v15895_v63 }
 0x490   :  { %12810 = vmatprep.subr.msk.bf16.mxu0 %vm12809_vm14, %v21152_v52  ;;  %12890 = vmatprep.subr.msk.bf16.mxu1 %vm12889_vm3, %v21152_v52  ;;  %vm12891_vm11 = vmpackc.low %vm1583_vm12, %vm1577_vm15  ;;  %vm947_vm14 = vcmp.eq.f32.partialorder %v14708_v13, %v15797_v50  ;;  %vm1595_vm3 = vcmp.eq.f32.partialorder %v14775_v30, %v15898_v32  ;;  %vm954_vm15 = vcmp.eq.f32.partialorder %v14701_v10, %v15814_v54 }
 0x491   :  { %1402 = vmatprep.mubr.f32.mxu0 %v21153_v31  ;;  %1866 = vmatprep.mubr.f32.mxu1 %v21153_v31  ;;  %vm12813_vm1 = vmpackc.low %vm948_vm0, %vm942_vm2  ;;  %vm1602_vm0 = vcmp.eq.f32.partialorder %v14768_v29, %v15923_v1 }
 0x492   :  { %vm12893_vm12 = vmpackc.low %vm1596_vm5, %vm1590_vm6  ;;  %vm953_vm6 = vcmp.eq.f32.partialorder %v14708_v13, %v15814_v54  ;;  %vm959_vm5 = vcmp.eq.f32.partialorder %v14708_v13, %v15826_v58 }
 0x493   :  { %12812 = vmatpush1.bf16.msk.msra.mxu0 %vm12811_vm13, %v21152_v52  ;;  %12892 = vmatpush1.bf16.msk.msra.mxu1 %vm12891_vm11, %v21152_v52  ;;  %vm12815_vm2 = vmpackc.low %vm947_vm14, %vm941_vm10  ;;  %vm1608_vm13 = vcmp.eq.f32.partialorder %v14768_v29, %v15935_v9  ;;  %vm1601_vm10 = vcmp.eq.f32.partialorder %v14775_v30, %v15923_v1  ;;  %vm1607_vm14 = vcmp.eq.f32.partialorder %v14775_v30, %v15935_v9 }
 0x494   :  { %12814 = vmatprep.subr.msk.bf16.mxu0 %vm12813_vm1, %v21152_v52  ;;  %12894 = vmatprep.subr.msk.bf16.mxu1 %vm12893_vm12, %v21152_v52  ;;  %vm12895_vm9 = vmpackc.low %vm1595_vm3, %vm1589_vm7  ;;  %vm1900_vm7 = vcmp.eq.f32.partialorder %v14768_v29, %v14999_v21 }
 0x495   :  { %vm12817_vm11 = vmpackc.low %vm960_vm8, %vm954_vm15  ;;  %vm1894_vm8 = vcmp.eq.f32.partialorder %v14768_v29, %v14996_v19  ;;  %vm1899_vm15 = vcmp.eq.f32.partialorder %v14775_v30, %v14999_v21 }
 0x496   :  { %vm12897_vm1 = vmpackc.low %vm1608_vm13, %vm1602_vm0  ;;  %vm932_vm0 = vcmp.eq.f32.partialorder %v14761_v28, %v15776_v48  ;;  %vm938_vm13 = vcmp.eq.f32.partialorder %v14761_v28, %v15780_v57 }
 0x497   :  { %12816 = vmatpush1.bf16.msk.msra.mxu0 %vm12815_vm2, %v21152_v52  ;;  %12896 = vmatpush1.bf16.msk.msra.mxu1 %vm12895_vm9, %v21152_v52  ;;  %vm12819_vm3 = vmpackc.low %vm959_vm5, %vm953_vm6  ;;  %vm1893_vm9 = vcmp.eq.f32.partialorder %v14775_v30, %v14996_v19  ;;  %vm1906_vm6 = vcmp.eq.f32.partialorder %v14768_v29, %v15002_v23  ;;  %vm1912_vm5 = vcmp.eq.f32.partialorder %v14768_v29, %v15005_v25 }
 0x498   :  { %12818 = vmatprep.subr.msk.bf16.mxu0 %vm12817_vm11, %v21152_v52  ;;  %12898 = vmatprep.subr.msk.bf16.mxu1 %vm12897_vm1, %v21152_v52  ;;  %vm12899_vm12 = vmpackc.low %vm1607_vm14, %vm1601_vm10  ;;  %vm21259_vm11 = vnez %v21003_v12  ;;  %vm931_vm10 = vcmp.eq.f32.partialorder %v14843_v43, %v15776_v48  ;;  %vm937_vm14 = vcmp.eq.f32.partialorder %v14843_v43, %v15780_v57  ;;  %v21263_v12 = vld [vmem:[#allocation12_spill] sm:$0xff]  ;;  %v16081_v48 = vrot.slane %v15784_v16, 3 }
 0x499   :  { %vm12933_vm2 = vmpackc.low %vm1900_vm7, %vm1894_vm8  ;;  %vm21260_vm8 = vcmask 523264   ;;  %v21265_v57 = vld [vmem:[#allocation16_spill] sm:$0xff] }
 0x49a   :  { %vm12935_vm1 = vmpackc.low %vm1899_vm15, %vm1893_vm9  ;;  %vm21262_vm9 = vnez %v21005_v15  ;;  %v21264_v15 = vld [vmem:[#allocation15_spill] sm:$0xff] }
 0x49b   :  { %12820 = vmatpush1.bf16.msk.msra.mxu0 %vm12819_vm3, %v21152_v52  ;;  %12900 = vmatpush1.bf16.msk.msra.mxu1 %vm12899_vm12, %v21152_v52  ;;  %vm21261_vm7 = vmmov %vm21260_vm8  ;;  %vm1905_vm12 = vcmp.eq.f32.partialorder %v14775_v30, %v15002_v23 }
 0x49c   :  { %12822 = vmatprep.subr.msk.bf16.mxu0 %vm21259_vm11, %v21152_v52  ;;  %12934 = vmatprep.subr.msk.bf16.mxu1 %vm12933_vm2, %v21152_v52  ;;  %vm12825_vm3 = vmpackc.low %vm938_vm13, %vm932_vm0  ;;  %vm1911_vm2 = vcmp.eq.f32.partialorder %v14775_v30, %v15005_v25  ;;  %vm944_vm11 = vcmp.eq.f32.partialorder %v14761_v28, %v15793_v22  ;;  %vm1918_vm13 = vcmp.eq.f32.partialorder %v14768_v29, %v15020_v27 }
 0x49d   :  { %vm12937_vm15 = vmpackc.low %vm1912_vm5, %vm1906_vm6  ;;  %vm943_vm6 = vcmp.eq.f32.partialorder %v14843_v43, %v15793_v22  ;;  %vm949_vm5 = vcmp.eq.f32.partialorder %v14843_v43, %v15797_v50  ;;  %v21267_v22 = vld [vmem:[#allocation20_spill] sm:$0xff] }
 0x49e   :  { %10920 = vmatmul.mubr.msk.f32.vlgmr.msra.gmra.mrb[20].mxu0 %vm21260_vm8, %v15784_v16  ;;  %11005 = vmatmul.mubr.msk.f32.vlgmr.msra.gmra.mrb[8].mxu1 %vm21261_vm7, %v15990_v11  ;;  %vm950_vm8 = vcmp.eq.f32.partialorder %v14761_v28, %v15797_v50  ;;  %vm12827_vm0 = vmpackc.low %vm937_vm14, %vm931_vm10  ;;  %vm1924_vm7 = vcmp.eq.f32.partialorder %v14768_v29, %v15023_v34  ;;  %vm1917_vm10 = vcmp.eq.f32.partialorder %v14775_v30, %v15020_v27  ;;  %v21270_v50 = vld [vmem:[#allocation23_spill] sm:$0xff] }
 0x49f   :  { %12824 = vmatpush1.bf16.msk.msra.mxu0 %vm21262_vm9, %v21152_v52  ;;  %12936 = vmatpush1.bf16.msk.msra.mxu1 %vm12935_vm1, %v21152_v52  ;;  %vm12939_vm9 = vmpackc.low %vm1911_vm2, %vm1905_vm12  ;;  %vm1923_vm14 = vcmp.eq.f32.partialorder %v14775_v30, %v15023_v34  ;;  %vm956_vm12 = vcmp.eq.f32.partialorder %v14761_v28, %v15814_v54  ;;  %vm962_vm2 = vcmp.eq.f32.partialorder %v14761_v28, %v15826_v58 }
 0x4a0   :  { %12826 = vmatprep.subr.msk.bf16.mxu0 %vm12825_vm3, %v21152_v52  ;;  %12938 = vmatprep.subr.msk.bf16.mxu1 %vm12937_vm15, %v21152_v52  ;;  %vm12829_vm1 = vmpackc.low %vm950_vm8, %vm944_vm11  ;;  %vm1930_vm11 = vcmp.eq.f32.partialorder %v14768_v29, %v15043_v37  ;;  %vm1936_vm8 = vcmp.eq.f32.partialorder %v14768_v29, %v21263_v12  ;;  %21317 = vst [vmem:[#allocation20_spill] sm:$0xff] %v16584_v49 }
 0x4a1   :  { %1473 = vmatprep.mubr.f32.mxu0 %v21153_v31  ;;  %2194 = vmatprep.mubr.f32.mxu1 %v21153_v31  ;;  %vm12941_vm3 = vmpackc.low %vm1924_vm7, %vm1918_vm13  ;;  %vm955_vm13 = vcmp.eq.f32.partialorder %v14843_v43, %v15814_v54  ;;  %vm961_vm7 = vcmp.eq.f32.partialorder %v14843_v43, %v15826_v58  ;;  %v21271_v54 = vld [vmem:[#allocation24_spill] sm:$0xff]  ;;  %v21272_v58 = vld [vmem:[#allocation27_spill] sm:$0xff] }
 0x4a2   :  { %vm12831_vm15 = vmpackc.low %vm949_vm5, %vm943_vm6  ;;  %vm1935_vm6 = vcmp.eq.f32.partialorder %v14775_v30, %v21263_v12 }
 0x4a3   :  { %12828 = vmatpush1.bf16.msk.msra.mxu0 %vm12827_vm0, %v21152_v52  ;;  %12940 = vmatpush1.bf16.msk.msra.mxu1 %vm12939_vm9, %v21152_v52  ;;  %vm12943_vm0 = vmpackc.low %vm1923_vm14, %vm1917_vm10  ;;  %vm1562_vm10 = vcmp.eq.f32.partialorder %v14701_v10, %v15847_v40  ;;  %vm1568_vm14 = vcmp.eq.f32.partialorder %v14701_v10, %v15850_v60 }
 0x4a4   :  { %12830 = vmatprep.subr.msk.bf16.mxu0 %vm12829_vm1, %v21152_v52  ;;  %12942 = vmatprep.subr.msk.bf16.mxu1 %vm12941_vm3, %v21152_v52  ;;  %vm12833_vm9 = vmpackc.low %vm962_vm2, %vm956_vm12  ;;  %vm1929_vm1 = vcmp.eq.f32.partialorder %v14775_v30, %v15043_v37  ;;  %vm2222_vm12 = vcmp.eq.f32.partialorder %v14768_v29, %v21264_v15  ;;  %vm2228_vm2 = vcmp.eq.f32.partialorder %v14768_v29, %v21265_v57 }
 0x4a5   :  { %vm12945_vm5 = vmpackc.low %vm1936_vm8, %vm1930_vm11  ;;  %vm1561_vm11 = vcmp.eq.f32.partialorder %v14708_v13, %v15847_v40  ;;  %vm1567_vm8 = vcmp.eq.f32.partialorder %v14708_v13, %v15850_v60 }
 0x4a6   :  { %vm12835_vm3 = vmpackc.low %vm961_vm7, %vm955_vm13  ;;  %vm2227_vm13 = vcmp.eq.f32.partialorder %v14775_v30, %v21265_v57 }
 0x4a7   :  { %12832 = vmatpush1.bf16.msk.msra.mxu0 %vm12831_vm15, %v21152_v52  ;;  %12944 = vmatpush1.bf16.msk.msra.mxu1 %vm12943_vm0, %v21152_v52  ;;  %vm12947_vm15 = vmpackc.low %vm1935_vm6, %vm1929_vm1  ;;  %vm1574_vm1 = vcmp.eq.f32.partialorder %v14701_v10, %v15861_v61  ;;  %vm1580_vm6 = vcmp.eq.f32.partialorder %v14701_v10, %v15872_v62 }
 0x4a8   :  { %12834 = vmatprep.subr.msk.bf16.mxu0 %vm12833_vm9, %v21152_v52  ;;  %12946 = vmatprep.subr.msk.bf16.mxu1 %vm12945_vm5, %v21152_v52  ;;  %vm12853_vm0 = vmpackc.low %vm1568_vm14, %vm1562_vm10  ;;  %vm2221_vm9 = vcmp.eq.f32.partialorder %v14775_v30, %v21264_v15  ;;  %vm2234_vm10 = vcmp.eq.f32.partialorder %v14768_v29, %v21266_v24  ;;  %vm2240_vm14 = vcmp.eq.f32.partialorder %v14768_v29, %v21267_v22 }
 0x4a9   :  { %vm12981_vm7 = vmpackc.low %vm2228_vm2, %vm2222_vm12  ;;  %vm1573_vm12 = vcmp.eq.f32.partialorder %v14708_v13, %v15861_v61  ;;  %vm1579_vm2 = vcmp.eq.f32.partialorder %v14708_v13, %v15872_v62 }
 0x4aa   :  { %vm12855_vm5 = vmpackc.low %vm1567_vm8, %vm1561_vm11  ;;  %vm2233_vm8 = vcmp.eq.f32.partialorder %v14775_v30, %v21266_v24 }
 0x4ab   :  { %12836 = vmatpush1.bf16.msk.msra.mxu0 %vm12835_vm3, %v21152_v52  ;;  %12948 = vmatpush1.bf16.msk.msra.mxu1 %vm12947_vm15, %v21152_v52  ;;  %vm12983_vm3 = vmpackc.low %vm2227_vm13, %vm2221_vm9  ;;  %vm21268_vm15 = vcmask 523264   ;;  %vm1586_vm13 = vcmp.eq.f32.partialorder %v14701_v10, %v15895_v63 }
 0x4ac   :  { %12854 = vmatprep.subr.msk.bf16.mxu0 %vm12853_vm0, %v21152_v52  ;;  %12982 = vmatprep.subr.msk.bf16.mxu1 %vm12981_vm7, %v21152_v52  ;;  %vm21269_vm0 = vmmov %vm21268_vm15  ;;  %vm2239_vm7 = vcmp.eq.f32.partialorder %v14775_v30, %v21267_v22 }
 0x4ad   :  { %vm12857_vm11 = vmpackc.low %vm1580_vm6, %vm1574_vm1  ;;  %vm2246_vm6 = vcmp.eq.f32.partialorder %v14768_v29, %v21270_v50 }
 0x4ae   :  { %10937 = vmatmul.mubr.msk.f32.vlgmr.msra.gmra.mrb[22].mxu0 %vm21268_vm15, %v15784_v16  ;;  %11056 = vmatmul.mubr.msk.f32.vlgmr.msra.gmra.mrb[8].mxu1 %vm21269_vm0, %v16081_v48  ;;  %vm12985_vm9 = vmpackc.low %vm2240_vm14, %vm2234_vm10  ;;  %vm1592_vm15 = vcmp.eq.f32.partialorder %v14701_v10, %v15898_v32  ;;  %vm1585_vm10 = vcmp.eq.f32.partialorder %v14708_v13, %v15895_v63  ;;  %vm1591_vm14 = vcmp.eq.f32.partialorder %v14708_v13, %v15898_v32 }
 0x4af   :  { %12856 = vmatpush1.bf16.msk.msra.mxu0 %vm12855_vm5, %v21152_v52  ;;  %12984 = vmatpush1.bf16.msk.msra.mxu1 %vm12983_vm3, %v21152_v52  ;;  %vm12859_vm1 = vmpackc.low %vm1579_vm2, %vm1573_vm12  ;;  %vm2252_vm5 = vcmp.eq.f32.partialorder %v14768_v29, %v21271_v54  ;;  %vm2245_vm12 = vcmp.eq.f32.partialorder %v14775_v30, %v21270_v50  ;;  %vm2251_vm2 = vcmp.eq.f32.partialorder %v14775_v30, %v21271_v54  ;;  %v21287_v54 = vld [vmem:[#allocation10_spill] sm:$0xff] }
 0x4b0   :  { %12858 = vmatprep.subr.msk.bf16.mxu0 %vm12857_vm11, %v21152_v52  ;;  %12986 = vmatprep.subr.msk.bf16.mxu1 %vm12985_vm9, %v21152_v52  ;;  %vm12987_vm0 = vmpackc.low %vm2239_vm7, %vm2233_vm8  ;;  %vm1598_vm8 = vcmp.eq.f32.partialorder %v14701_v10, %v15923_v1  ;;  %vm1604_vm7 = vcmp.eq.f32.partialorder %v14701_v10, %v15935_v9 }
 0x4b1   :  { %1724 = vmatprep.mubr.f32.mxu0 %v21153_v31  ;;  %2522 = vmatprep.mubr.f32.mxu1 %v21153_v31  ;;  %vm12861_vm3 = vmpackc.low %vm1592_vm15, %vm1586_vm13  ;;  %vm2258_vm13 = vcmp.eq.f32.partialorder %v14768_v29, %v21272_v58  ;;  %vm2264_vm15 = vcmp.eq.f32.partialorder %v14768_v29, %v21273_v59 }
 0x4b2   :  { %vm12989_vm11 = vmpackc.low %vm2252_vm5, %vm2246_vm6  ;;  %vm1597_vm6 = vcmp.eq.f32.partialorder %v14708_v13, %v15923_v1  ;;  %vm1603_vm5 = vcmp.eq.f32.partialorder %v14708_v13, %v15935_v9 }
 0x4b3   :  { %12860 = vmatpush1.bf16.msk.msra.mxu0 %vm12859_vm1, %v21152_v52  ;;  %12988 = vmatpush1.bf16.msk.msra.mxu1 %vm12987_vm0, %v21152_v52  ;;  %vm12863_vm9 = vmpackc.low %vm1591_vm14, %vm1585_vm10  ;;  %vm2263_vm10 = vcmp.eq.f32.partialorder %v14775_v30, %v21273_v59  ;;  %v21289_v59 = vld [vmem:[#allocation11_spill] sm:$0xff] }
 0x4b4   :  { %12862 = vmatprep.subr.msk.bf16.mxu0 %vm12861_vm3, %v21152_v52  ;;  %12990 = vmatprep.subr.msk.bf16.mxu1 %vm12989_vm11, %v21152_v52  ;;  %vm12991_vm1 = vmpackc.low %vm2251_vm2, %vm2245_vm12  ;;  %vm2257_vm3 = vcmp.eq.f32.partialorder %v14775_v30, %v21272_v58  ;;  %vm1564_vm12 = vcmp.eq.f32.partialorder %v14761_v28, %v15847_v40  ;;  %vm1570_vm2 = vcmp.eq.f32.partialorder %v14761_v28, %v15850_v60 }
 0x4b5   :  { %vm12865_vm0 = vmpackc.low %vm1604_vm7, %vm1598_vm8  ;;  %vm2550_vm8 = vcmp.eq.f32.partialorder %v14768_v29, %v15218_v0  ;;  %vm2556_vm7 = vcmp.eq.f32.partialorder %v14768_v29, %v15221_v35 }
 0x4b6   :  { %vm12993_vm14 = vmpackc.low %vm2264_vm15, %vm2258_vm13  ;;  %vm1563_vm13 = vcmp.eq.f32.partialorder %v14843_v43, %v15847_v40  ;;  %vm1569_vm15 = vcmp.eq.f32.partialorder %v14843_v43, %v15850_v60  ;;  %v21278_v40 = vld [vmem:[#allocation45_spill] sm:$0xff]  ;;  %v16208_v60 = vstv %s2863_s7 }
 0x4b7   :  { %12864 = vmatpush1.bf16.msk.msra.mxu0 %vm12863_vm9, %v21152_v52  ;;  %12992 = vmatpush1.bf16.msk.msra.mxu1 %vm12991_vm1, %v21152_v52  ;;  %vm12867_vm11 = vmpackc.low %vm1603_vm5, %vm1597_vm6  ;;  %vm2555_vm6 = vcmp.eq.f32.partialorder %v14775_v30, %v15221_v35  ;;  %v21274_v35 = vld [vmem:[#allocation41_spill] sm:$0xff]  ;;  %v16236_v15 = vadd.f32 %v16208_v60, %v14487_v39  ;;  %v16240_v57 = vadd.f32 %v16208_v60, %v14491_v41 }
 0x4b8   :  { %12866 = vmatprep.subr.msk.bf16.mxu0 %vm12865_vm0, %v21152_v52  ;;  %12994 = vmatprep.subr.msk.bf16.mxu1 %vm12993_vm14, %v21152_v52  ;;  %vm12995_vm9 = vmpackc.low %vm2263_vm10, %vm2257_vm3  ;;  %vm2549_vm0 = vcmp.eq.f32.partialorder %v14775_v30, %v15218_v0  ;;  %vm1576_vm3 = vcmp.eq.f32.partialorder %v14761_v28, %v15861_v61  ;;  %vm1582_vm10 = vcmp.eq.f32.partialorder %v14761_v28, %v15872_v62  ;;  %v16170_v0 = vrot.slane %v15784_v16, 4 }
 0x4b9   :  { %vm12869_vm1 = vmpackc.low %vm1570_vm2, %vm1564_vm12  ;;  %vm2562_vm12 = vcmp.eq.f32.partialorder %v14768_v29, %v15240_v26  ;;  %vm2568_vm2 = vcmp.eq.f32.partialorder %v14768_v29, %v21274_v35 }
 0x4ba   :  { %vm13029_vm5 = vmpackc.low %vm2556_vm7, %vm2550_vm8  ;;  %vm1575_vm8 = vcmp.eq.f32.partialorder %v14843_v43, %v15861_v61  ;;  %vm1581_vm7 = vcmp.eq.f32.partialorder %v14843_v43, %v15872_v62  ;;  %v21279_v61 = vld [vmem:[#allocation48_spill] sm:$0xff]  ;;  %v21280_v62 = vld [vmem:[#allocation49_spill] sm:$0xff] }
 0x4bb   :  { %12868 = vmatpush1.bf16.msk.msra.mxu0 %vm12867_vm11, %v21152_v52  ;;  %12996 = vmatpush1.bf16.msk.msra.mxu1 %vm12995_vm9, %v21152_v52  ;;  %vm12871_vm14 = vmpackc.low %vm1569_vm15, %vm1563_vm13  ;;  %vm21275_vm9 = vcmask 523264   ;;  %vm2561_vm15 = vcmp.eq.f32.partialorder %v14775_v30, %v15240_v26  ;;  %v21277_v26 = vld [vmem:[#allocation44_spill] sm:$0xff] }
 0x4bc   :  { %12870 = vmatprep.subr.msk.bf16.mxu0 %vm12869_vm1, %v21152_v52  ;;  %13030 = vmatprep.subr.msk.bf16.mxu1 %vm13029_vm5, %v21152_v52  ;;  %vm13031_vm11 = vmpackc.low %vm2555_vm6, %vm2549_vm0  ;;  %vm2567_vm0 = vcmp.eq.f32.partialorder %v14775_v30, %v21274_v35  ;;  %vm1588_vm5 = vcmp.eq.f32.partialorder %v14761_v28, %v15895_v63 }
 0x4bd   :  { %vm21276_vm1 = vmmov %vm21275_vm9 }
 0x4be   :  { %10971 = vmatmul.mubr.msk.f32.vlgmr.msra.gmra.mrb[20].mxu0 %vm21275_vm9, %v15990_v11  ;;  %11107 = vmatmul.mubr.msk.f32.vlgmr.msra.gmra.mrb[8].mxu1 %vm21276_vm1, %v16170_v0  ;;  %vm12873_vm13 = vmpackc.low %vm1582_vm10, %vm1576_vm3  ;;  %vm1594_vm9 = vcmp.eq.f32.partialorder %v14761_v28, %v15898_v32  ;;  %vm2574_vm10 = vcmp.eq.f32.partialorder %v14768_v29, %v21277_v26  ;;  %vm2579_vm1 = vcmp.eq.f32.partialorder %v14775_v30, %v21278_v40 }
 0x4bf   :  { %12872 = vmatpush1.bf16.msk.msra.mxu0 %vm12871_vm14, %v21152_v52  ;;  %13032 = vmatpush1.bf16.msk.msra.mxu1 %vm13031_vm11, %v21152_v52  ;;  %vm13033_vm6 = vmpackc.low %vm2568_vm2, %vm2562_vm12  ;;  %vm2580_vm14 = vcmp.eq.f32.partialorder %v14768_v29, %v21278_v40  ;;  %vm1587_vm2 = vcmp.eq.f32.partialorder %v14843_v43, %v15895_v63  ;;  %vm1593_vm11 = vcmp.eq.f32.partialorder %v14843_v43, %v15898_v32  ;;  %v21291_v40 = vld [vmem:[#allocation13_spill] sm:$0xff] }
 0x4c0   :  { %12874 = vmatprep.subr.msk.bf16.mxu0 %vm12873_vm13, %v21152_v52  ;;  %13034 = vmatprep.subr.msk.bf16.mxu1 %vm13033_vm6, %v21152_v52  ;;  %vm12875_vm3 = vmpackc.low %vm1581_vm7, %vm1575_vm8  ;;  %vm2573_vm7 = vcmp.eq.f32.partialorder %v14775_v30, %v21277_v26  ;;  %vm2586_vm6 = vcmp.eq.f32.partialorder %v14768_v29, %v21279_v61  ;;  %v16261_v63 = vadd.f32 %v16208_v60, %v14683_v2  ;;  %v3520_v26 = vstv %s3519_s9 }
 0x4c1   :  { %vm13035_vm12 = vmpackc.low %vm2567_vm0, %vm2561_vm15  ;;  %1795 = vmatprep.mubr.f32.mxu0 %v21153_v31  ;;  %2850 = vmatprep.mubr.f32.mxu1 %v21153_v31  ;;  %vm1600_vm15 = vcmp.eq.f32.partialorder %v14761_v28, %v15923_v1  ;;  %vm1606_vm0 = vcmp.eq.f32.partialorder %v14761_v28, %v15935_v9  ;;  %v16271_v32 = vadd.f32 %v16208_v60, %v14686_v3 }
 0x4c2   :  { %vm12877_vm8 = vmpackc.low %vm1594_vm9, %vm1588_vm5  ;;  %vm2592_vm9 = vcmp.eq.f32.partialorder %v14768_v29, %v21280_v62 }
 0x4c3   :  { %12876 = vmatpush1.bf16.msk.msra.mxu0 %vm12875_vm3, %v21152_v52  ;;  %13036 = vmatpush1.bf16.msk.msra.mxu1 %vm13035_vm12, %v21152_v52  ;;  %vm13037_vm13 = vmpackc.low %vm2580_vm14, %vm2574_vm10  ;;  %vm1599_vm10 = vcmp.eq.f32.partialorder %v14843_v43, %v15923_v1  ;;  %vm1605_vm14 = vcmp.eq.f32.partialorder %v14843_v43, %v15935_v9  ;;  %v16302_v1 = vadd.f32 %v16208_v60, %v14692_v7 }
 0x4c4   :  { %12878 = vmatprep.subr.msk.bf16.mxu0 %vm12877_vm8, %v21152_v52  ;;  %13038 = vmatprep.subr.msk.bf16.mxu1 %vm13037_vm13, %v21152_v52  ;;  %vm12879_vm5 = vmpackc.low %vm1593_vm11, %vm1587_vm2  ;;  %vm2585_vm2 = vcmp.eq.f32.partialorder %v14775_v30, %v21279_v61  ;;  %vm2591_vm11 = vcmp.eq.f32.partialorder %v14775_v30, %v21280_v62  ;;  %v16337_v9 = vadd.f32 %v16208_v60, %v14695_v8  ;;  %v21293_v61 = vld [vmem:[#allocation14_spill] sm:$0xff] }
 0x4c5   :  { %vm13039_vm3 = vmpackc.low %vm2579_vm1, %vm2573_vm7  ;;  %vm1890_vm7 = vcmp.eq.f32.partialorder %v14701_v10, %v14996_v19  ;;  %vm1896_vm1 = vcmp.eq.f32.partialorder %v14701_v10, %v14999_v21  ;;  %v16486_v62 = vadd.f32 %v3520_v26, %v14491_v41 }
 0x4c6   :  { %vm12881_vm12 = vmpackc.low %vm1606_vm0, %vm1600_vm15  ;;  %vm2878_vm15 = vcmp.eq.f32.partialorder %v14768_v29, %v16236_v15  ;;  %vm2884_vm0 = vcmp.eq.f32.partialorder %v14768_v29, %v16240_v57 }
 0x4c7   :  { %12880 = vmatpush1.bf16.msk.msra.mxu0 %vm12879_vm5, %v21152_v52  ;;  %13040 = vmatpush1.bf16.msk.msra.mxu1 %vm13039_vm3, %v21152_v52  ;;  %vm13041_vm8 = vmpackc.low %vm2592_vm9, %vm2586_vm6  ;;  %vm1889_vm5 = vcmp.eq.f32.partialorder %v14708_v13, %v14996_v19  ;;  %vm1895_vm9 = vcmp.eq.f32.partialorder %v14708_v13, %v14999_v21  ;;  %v16292_v19 = vrot.slane %v15784_v16, 5  ;;  %v16298_v21 = vadd.f32 %v16208_v60, %v14689_v6 }
 0x4c8   :  { %12882 = vmatprep.subr.msk.bf16.mxu0 %vm12881_vm12, %v21152_v52  ;;  %13042 = vmatprep.subr.msk.bf16.mxu1 %vm13041_vm8, %v21152_v52  ;;  %vm12883_vm13 = vmpackc.low %vm1605_vm14, %vm1599_vm10  ;;  %vm2877_vm10 = vcmp.eq.f32.partialorder %v14775_v30, %v16236_v15  ;;  %vm2883_vm14 = vcmp.eq.f32.partialorder %v14775_v30, %v16240_v57  ;;  %vm2890_vm8 = vcmp.eq.f32.partialorder %v14768_v29, %v16261_v63 }
 0x4c9   :  { %vm13043_vm6 = vmpackc.low %vm2591_vm11, %vm2585_vm2  ;;  %vm1902_vm2 = vcmp.eq.f32.partialorder %v14701_v10, %v15002_v23  ;;  %vm1908_vm11 = vcmp.eq.f32.partialorder %v14701_v10, %v15005_v25 }
 0x4ca   :  { %vm12901_vm3 = vmpackc.low %vm1896_vm1, %vm1890_vm7  ;;  %vm2896_vm1 = vcmp.eq.f32.partialorder %v14768_v29, %v16271_v32 }
 0x4cb   :  { %12884 = vmatpush1.bf16.msk.msra.mxu0 %vm12883_vm13, %v21152_v52  ;;  %13044 = vmatpush1.bf16.msk.msra.mxu1 %vm13043_vm6, %v21152_v52  ;;  %vm13077_vm12 = vmpackc.low %vm2884_vm0, %vm2878_vm15  ;;  %vm1901_vm15 = vcmp.eq.f32.partialorder %v14708_v13, %v15002_v23  ;;  %vm1907_vm0 = vcmp.eq.f32.partialorder %v14708_v13, %v15005_v25  ;;  %vm21281_vm6 = vcmask 523264   ;;  %v3192_v23 = vstv %s3191_s8 }
 0x4cc   :  { %12902 = vmatprep.subr.msk.bf16.mxu0 %vm12901_vm3, %v21152_v52  ;;  %13078 = vmatprep.subr.msk.bf16.mxu1 %vm13077_vm12, %v21152_v52  ;;  %vm12903_vm7 = vmpackc.low %vm1895_vm9, %vm1889_vm5  ;;  %vm2889_vm3 = vcmp.eq.f32.partialorder %v14775_v30, %v16261_v63  ;;  %vm1914_vm12 = vcmp.eq.f32.partialorder %v14701_v10, %v15020_v27  ;;  %v16387_v25 = vadd.f32 %v3192_v23, %v14487_v39 }
 0x4cd   :  { %vm13079_vm13 = vmpackc.low %vm2883_vm14, %vm2877_vm10  ;;  %vm2895_vm10 = vcmp.eq.f32.partialorder %v14775_v30, %v16271_v32  ;;  %v16390_v24 = vadd.f32 %v3192_v23, %v14491_v41  ;;  %v16432_v22 = vadd.f32 %v3192_v23, %v14689_v6  ;;  %v16435_v50 = vadd.f32 %v3192_v23, %v14692_v7 }
 0x4ce   :  { %10988 = vmatmul.mubr.msk.f32.vlgmr.msra.gmra.mrb[22].mxu0 %vm21281_vm6, %v15990_v11  ;;  %vm21282_vm5 = vmmov %vm21281_vm6  ;;  %v16353_v11 = vadd.f32 %v16208_v60, %v14698_v46  ;;  %vm1919_vm6 = vcmp.eq.f32.partialorder %v14708_v13, %v15023_v34  ;;  %v16451_v58 = vadd.f32 %v3192_v23, %v14695_v8  ;;  %v16462_v35 = vadd.f32 %v3192_v23, %v14698_v46 }
 0x4cf   :  { %11158 = vmatmul.mubr.msk.f32.vlgmr.msra.gmra.mrb[8].mxu1 %vm21282_vm5, %v16292_v19  ;;  %vm12905_vm9 = vmpackc.low %vm1908_vm11, %vm1902_vm2  ;;  %12904 = vmatpush1.bf16.msk.msra.mxu0 %vm12903_vm7, %v21152_v52  ;;  %vm1920_vm2 = vcmp.eq.f32.partialorder %v14701_v10, %v15023_v34  ;;  %vm2908_vm7 = vcmp.eq.f32.partialorder %v14768_v29, %v16302_v1  ;;  %vm2907_vm5 = vcmp.eq.f32.partialorder %v14775_v30, %v16302_v1 }
 0x4d0   :  { %13080 = vmatpush1.bf16.msk.msra.mxu1 %vm13079_vm13, %v21152_v52  ;;  %vm13081_vm14 = vmpackc.low %vm2896_vm1, %vm2890_vm8  ;;  %12906 = vmatprep.subr.msk.bf16.mxu0 %vm12905_vm9, %v21152_v52  ;;  %vm2902_vm8 = vcmp.eq.f32.partialorder %v14768_v29, %v16298_v21  ;;  %vm1913_vm13 = vcmp.eq.f32.partialorder %v14708_v13, %v15020_v27  ;;  %v16403_v27 = vadd.f32 %v3192_v23, %v14683_v2 }
 0x4d1   :  { %13082 = vmatprep.subr.msk.bf16.mxu1 %vm13081_vm14, %v21152_v52  ;;  %vm12907_vm11 = vmpackc.low %vm1907_vm0, %vm1901_vm15  ;;  %2052 = vmatprep.mubr.f32.mxu0 %v21153_v31  ;;  %vm2901_vm0 = vcmp.eq.f32.partialorder %v14775_v30, %v16298_v21  ;;  %vm2914_vm14 = vcmp.eq.f32.partialorder %v14768_v29, %v16337_v9  ;;  %v16412_v34 = vadd.f32 %v3192_v23, %v14686_v3  ;;  %v21295_v23 = vld [vmem:[#allocation17_spill] sm:$0xff] }
 0x4d2   :  { %vm13083_vm1 = vmpackc.low %vm2895_vm10, %vm2889_vm3  ;;  %3178 = vmatprep.mubr.f32.mxu1 %v21153_v31  ;;  %vm1926_vm3 = vcmp.eq.f32.partialorder %v14701_v10, %v15043_v37  ;;  %vm1932_vm10 = vcmp.eq.f32.partialorder %v14701_v10, %v21263_v12  ;;  %v16475_v60 = vadd.f32 %v3520_v26, %v14487_v39 }
 0x4d3   :  { %vm12909_vm15 = vmpackc.low %vm1920_vm2, %vm1914_vm12  ;;  %12908 = vmatpush1.bf16.msk.msra.mxu0 %vm12907_vm11, %v21152_v52  ;;  %vm2920_vm2 = vcmp.eq.f32.partialorder %v14768_v29, %v16353_v11 }
 0x4d4   :  { %13084 = vmatpush1.bf16.msk.msra.mxu1 %vm13083_vm1, %v21152_v52  ;;  %vm13085_vm9 = vmpackc.low %vm2908_vm7, %vm2902_vm8  ;;  %12910 = vmatprep.subr.msk.bf16.mxu0 %vm12909_vm15, %v21152_v52  ;;  %vm1925_vm7 = vcmp.eq.f32.partialorder %v14708_v13, %v15043_v37  ;;  %vm1931_vm1 = vcmp.eq.f32.partialorder %v14708_v13, %v21263_v12  ;;  %vm2919_vm15 = vcmp.eq.f32.partialorder %v14775_v30, %v16353_v11  ;;  %v21283_v37 = vld [vmem:[#allocation9_spill] sm:$0xff]  ;;  %v16427_v12 = vrot.slane %v15784_v16, 6 }
 0x4d5   :  { %13086 = vmatprep.subr.msk.bf16.mxu1 %vm13085_vm9, %v21152_v52  ;;  %vm12911_vm12 = vmpackc.low %vm1919_vm6, %vm1913_vm13  ;;  %vm2913_vm6 = vcmp.eq.f32.partialorder %v14775_v30, %v16337_v9 }
 0x4d6   :  { %vm13087_vm11 = vmpackc.low %vm2907_vm5, %vm2901_vm0  ;;  %vm3206_vm0 = vcmp.eq.f32.partialorder %v14768_v29, %v16387_v25  ;;  %vm3212_vm5 = vcmp.eq.f32.partialorder %v14768_v29, %v16390_v24 }
 0x4d7   :  { %vm12913_vm8 = vmpackc.low %vm1932_vm10, %vm1926_vm3  ;;  %12912 = vmatpush1.bf16.msk.msra.mxu0 %vm12911_vm12, %v21152_v52  ;;  %vm3211_vm12 = vcmp.eq.f32.partialorder %v14775_v30, %v16390_v24 }
 0x4d8   :  { %13088 = vmatpush1.bf16.msk.msra.mxu1 %vm13087_vm11, %v21152_v52  ;;  %vm13089_vm13 = vmpackc.low %vm2920_vm2, %vm2914_vm14  ;;  %12914 = vmatprep.subr.msk.bf16.mxu0 %vm12913_vm8, %v21152_v52  ;;  %vm3205_vm14 = vcmp.eq.f32.partialorder %v14775_v30, %v16387_v25  ;;  %vm3218_vm2 = vcmp.eq.f32.partialorder %v14768_v29, %v16403_v27  ;;  %vm21284_vm11 = vnez %v21283_v37  ;;  %vm3224_vm8 = vcmp.eq.f32.partialorder %v14768_v29, %v16412_v34  ;;  %v21297_v37 = vld [vmem:[#allocation18_spill] sm:$0xff] }
 0x4d9   :  { %13090 = vmatprep.subr.msk.bf16.mxu1 %vm13089_vm13, %v21152_v52  ;;  %vm12915_vm9 = vmpackc.low %vm1931_vm1, %vm1925_vm7  ;;  %vm21285_vm7 = vcmask 523264  }
 0x4da   :  { %vm13091_vm3 = vmpackc.low %vm2919_vm15, %vm2913_vm6  ;;  %vm21288_vm6 = vnez %v21287_v54  ;;  %v16505_v54 = vadd.f32 %v3520_v26, %v14683_v2 }
 0x4db   :  { %12916 = vmatpush1.bf16.msk.msra.mxu0 %vm12915_vm9, %v21152_v52  ;;  %vm13125_vm10 = vmpackc.low %vm3212_vm5, %vm3206_vm0  ;;  %vm3217_vm0 = vcmp.eq.f32.partialorder %v14775_v30, %v16403_v27  ;;  %vm3223_vm5 = vcmp.eq.f32.partialorder %v14775_v30, %v16412_v34  ;;  %vm21290_vm9 = vnez %v21289_v59  ;;  %v16508_v59 = vadd.f32 %v3520_v26, %v14686_v3 }
 0x4dc   :  { %13092 = vmatpush1.bf16.msk.msra.mxu1 %vm13091_vm3, %v21152_v52  ;;  %12918 = vmatprep.subr.msk.bf16.mxu0 %vm21284_vm11, %v21152_v52  ;;  %vm21286_vm1 = vmmov %vm21285_vm7  ;;  %vm3230_vm3 = vcmp.eq.f32.partialorder %v14768_v29, %v16432_v22  ;;  %vm3229_vm11 = vcmp.eq.f32.partialorder %v14775_v30, %v16432_v22 }
 0x4dd   :  { %13126 = vmatprep.subr.msk.bf16.mxu1 %vm13125_vm10, %v21152_v52  ;;  %vm13127_vm13 = vmpackc.low %vm3211_vm12, %vm3205_vm14  ;;  %vm3236_vm10 = vcmp.eq.f32.partialorder %v14768_v29, %v16435_v50  ;;  %vm21292_vm12 = vnez %v21291_v40  ;;  %v21299_v40 = vld [vmem:[#allocation21_spill] sm:$0xff] }
 0x4de   :  { %11022 = vmatmul.mubr.msk.f32.vlgmr.msra.gmra.mrb[20].mxu0 %vm21285_vm7, %v16081_v48  ;;  %vm13129_vm15 = vmpackc.low %vm3224_vm8, %vm3218_vm2  ;;  %vm3235_vm8 = vcmp.eq.f32.partialorder %v14775_v30, %v16435_v50  ;;  %vm21294_vm7 = vnez %v21293_v61  ;;  %v16519_v61 = vadd.f32 %v3520_v26, %v14689_v6 }
 0x4df   :  { %11209 = vmatmul.mubr.msk.f32.vlgmr.msra.gmra.mrb[8].mxu1 %vm21286_vm1, %v16427_v12  ;;  %12920 = vmatpush1.bf16.msk.msra.mxu0 %vm21288_vm6, %v21152_v52  ;;  %vm13131_vm14 = vmpackc.low %vm3223_vm5, %vm3217_vm0  ;;  %vm3242_vm1 = vcmp.eq.f32.partialorder %v14768_v29, %v16451_v58  ;;  %vm3241_vm5 = vcmp.eq.f32.partialorder %v14775_v30, %v16451_v58 }
 0x4e0   :  { %13128 = vmatpush1.bf16.msk.msra.mxu1 %vm13127_vm13, %v21152_v52  ;;  %12922 = vmatprep.subr.msk.bf16.mxu0 %vm21290_vm9, %v21152_v52  ;;  %vm13133_vm2 = vmpackc.low %vm3236_vm10, %vm3230_vm3  ;;  %vm3248_vm13 = vcmp.eq.f32.partialorder %v14768_v29, %v16462_v35  ;;  %vm3247_vm9 = vcmp.eq.f32.partialorder %v14775_v30, %v16462_v35  ;;  %vm3534_vm3 = vcmp.eq.f32.partialorder %v14768_v29, %v16475_v60 }
 0x4e1   :  { %13130 = vmatprep.subr.msk.bf16.mxu1 %vm13129_vm15, %v21152_v52  ;;  %2123 = vmatprep.mubr.f32.mxu0 %v21153_v31  ;;  %vm13135_vm6 = vmpackc.low %vm3235_vm8, %vm3229_vm11  ;;  %vm21296_vm15 = vnez %v21295_v23  ;;  %vm21298_vm10 = vnez %v21297_v37  ;;  %vm3533_vm8 = vcmp.eq.f32.partialorder %v14775_v30, %v16475_v60  ;;  %v21301_v23 = vld [vmem:[#allocation22_spill] sm:$0xff]  ;;  %v16526_v37 = vrot.slane %v15784_v16, 7  ;;  %v21306_v16 = vld [vmem:[#allocation25_spill] sm:$0xff] }
 0x4e2   :  { %3506 = vmatprep.mubr.f32.mxu1 %v21153_v31  ;;  %vm13137_vm0 = vmpackc.low %vm3248_vm13, %vm3242_vm1  ;;  %vm21302_vm1 = vnez %v21301_v23  ;;  %vm3546_vm13 = vcmp.eq.f32.partialorder %v14768_v29, %v16505_v54  ;;  %v16549_v23 = vadd.f32 %v3520_v26, %v14695_v8 }
 0x4e3   :  { %12924 = vmatpush1.bf16.msk.msra.mxu0 %vm21292_vm12, %v21152_v52  ;;  %vm13139_vm12 = vmpackc.low %vm3247_vm9, %vm3241_vm5  ;;  %vm21307_vm9 = vnez %v21306_v16  ;;  %v16560_v16 = vadd.f32 %v3520_v26, %v14698_v46 }
 0x4e4   :  { %13132 = vmatpush1.bf16.msk.msra.mxu1 %vm13131_vm14, %v21152_v52  ;;  %12926 = vmatprep.subr.msk.bf16.mxu0 %vm21294_vm7, %v21152_v52  ;;  %vm3540_vm14 = vcmp.eq.f32.partialorder %v14768_v29, %v16486_v62  ;;  %vm3539_vm7 = vcmp.eq.f32.partialorder %v14775_v30, %v16486_v62  ;;  %21308 = vst [vmem:[#allocation15_spill] sm:$0xff] %v16549_v23 }
 0x4e5   :  { %13134 = vmatprep.subr.msk.bf16.mxu1 %vm13133_vm2, %v21152_v52  ;;  %vm21300_vm2 = vnez %v21299_v40  ;;  %vm13173_vm11 = vmpackc.low %vm3540_vm14, %vm3534_vm3  ;;  %v16533_v40 = vadd.f32 %v3520_v26, %v14692_v7  ;;  %vm3551_vm14 = vcmp.eq.f32.partialorder %v14775_v30, %v16508_v59  ;;  %21311 = vst [vmem:[#allocation16_spill] sm:$0xff] %v16560_v16  ;;  %v21314_v26 = vld [vmem:[#allocation30_spill] sm:$0xff] }
 0x4e6   :  { %vm13175_vm5 = vmpackc.low %vm3539_vm7, %vm3533_vm8 }
 0x4e7   :  { %12928 = vmatpush1.bf16.msk.msra.mxu0 %vm21296_vm15, %v21152_v52  ;;  %21303 = vst [vmem:[#allocation12_spill] sm:$0xff] %v16533_v40  ;;  %vm21304_vm15 = vcmask 523264  }
 0x4e8   :  { %13136 = vmatpush1.bf16.msk.msra.mxu1 %vm13135_vm6, %v21152_v52  ;;  %12930 = vmatprep.subr.msk.bf16.mxu0 %vm21298_vm10, %v21152_v52  ;;  %vm3552_vm6 = vcmp.eq.f32.partialorder %v14768_v29, %v16508_v59  ;;  %vm3545_vm10 = vcmp.eq.f32.partialorder %v14775_v30, %v16505_v54 }
 0x4e9   :  { %13138 = vmatprep.subr.msk.bf16.mxu1 %vm13137_vm0, %v21152_v52  ;;  %vm21305_vm0 = vmmov %vm21304_vm15 }
 0x4ea   :  { %vm13177_vm3 = vmpackc.low %vm3552_vm6, %vm3546_vm13  ;;  %vm3557_vm13 = vcmp.eq.f32.partialorder %v14775_v30, %v16519_v61  ;;  %vm3563_vm6 = vcmp.eq.f32.partialorder %v14775_v30, %v16533_v40 }
 0x4eb   :  { %12932 = vmatpush1.bf16.msk.msra.mxu0 %vm21300_vm2, %v21152_v52  ;;  %vm3558_vm2 = vcmp.eq.f32.partialorder %v14768_v29, %v16519_v61  ;;  %vm13179_vm8 = vmpackc.low %vm3551_vm14, %vm3545_vm10  ;;  %vm3569_vm14 = vcmp.eq.f32.partialorder %v14775_v30, %v16549_v23 }
 0x4ec   :  { %13140 = vmatpush1.bf16.msk.msra.mxu1 %vm13139_vm12, %v21152_v52  ;;  %12950 = vmatprep.subr.msk.bf16.mxu0 %vm21302_vm1, %v21152_v52 }
 0x4ed   :  { %13174 = vmatprep.subr.msk.bf16.mxu1 %vm13173_vm11, %v21152_v52  ;;  %vm3564_vm11 = vcmp.eq.f32.partialorder %v14768_v29, %v16533_v40  ;;  %v21320_v40 = vld [vmem:[#allocation32_spill] sm:$0xff] }
 0x4ee   :  { %11039 = vmatmul.mubr.msk.f32.vlgmr.msra.gmra.mrb[22].mxu0 %vm21304_vm15, %v16081_v48  ;;  %v21309_v48 = vld [vmem:[#allocation26_spill] sm:$0xff]  ;;  %vm13181_vm1 = vmpackc.low %vm3564_vm11, %vm3558_vm2  ;;  %vm3570_vm15 = vcmp.eq.f32.partialorder %v14768_v29, %v16549_v23  ;;  %vm21321_vm2 = vnez %v21320_v40  ;;  %v21332_v23 = vld [vmem:[#allocation36_spill] sm:$0xff] }
 0x4ef   :  { %11260 = vmatmul.mubr.msk.f32.vlgmr.msra.gmra.mrb[8].mxu1 %vm21305_vm0, %v16526_v37  ;;  %12952 = vmatpush1.bf16.msk.msra.mxu0 %vm21307_vm9, %v21152_v52  ;;  %vm21310_vm12 = vnez %v21309_v48  ;;  %v21312_v48 = vld [vmem:[#allocation29_spill] sm:$0xff]  ;;  %vm21315_vm0 = vnez %v21314_v26  ;;  %vm13183_vm9 = vmpackc.low %vm3563_vm6, %vm3557_vm13  ;;  %v16595_v26 = vadd.f32 %v3848_v53, %v14683_v2  ;;  %v21325_v40 = vld [vmem:[#allocation34_spill] sm:$0xff] }
 0x4f0   :  { %13176 = vmatpush1.bf16.msk.msra.mxu1 %vm13175_vm5, %v21152_v52  ;;  %12954 = vmatprep.subr.msk.bf16.mxu0 %vm21310_vm12, %v21152_v52  ;;  %vm21313_vm7 = vnez %v21312_v48  ;;  %vm3576_vm5 = vcmp.eq.f32.partialorder %v14768_v29, %v16560_v16  ;;  %v16581_v48 = vadd.f32 %v3848_v53, %v14487_v39  ;;  %vm3575_vm12 = vcmp.eq.f32.partialorder %v14775_v30, %v16560_v16  ;;  %v21323_v16 = vld [vmem:[#allocation33_spill] sm:$0xff] }
 0x4f1   :  { %13178 = vmatprep.subr.msk.bf16.mxu1 %vm13177_vm3, %v21152_v52  ;;  %2380 = vmatprep.mubr.f32.mxu0 %v21153_v31  ;;  %vm21319_vm3 = vnez %v21318_v36  ;;  %vm13185_vm10 = vmpackc.low %vm3576_vm5, %vm3570_vm15  ;;  %v16606_v36 = vadd.f32 %v3848_v53, %v14686_v3  ;;  %vm3867_vm15 = vcmp.eq.f32.partialorder %v14775_v30, %v16584_v49  ;;  %vm21326_vm5 = vnez %v21325_v40 }
 0x4f2   :  { %3834 = vmatprep.mubr.f32.mxu1 %v21153_v31  ;;  %21316 = vst [vmem:[#allocation19_spill] sm:$0xff] %v16581_v48  ;;  %vm3862_vm11 = vcmp.eq.f32.partialorder %v14768_v29, %v16581_v48  ;;  %vm3861_vm6 = vcmp.eq.f32.partialorder %v14775_v30, %v16581_v48  ;;  %v16628_v48 = vadd.f32 %v3848_v53, %v14692_v7 }
 0x4f3   :  { %12956 = vmatpush1.bf16.msk.msra.mxu0 %vm21313_vm7, %v21152_v52  ;;  %21322 = vst [vmem:[#allocation23_spill] sm:$0xff] %v16606_v36  ;;  %vm13187_vm7 = vmpackc.low %vm3575_vm12, %vm3569_vm14  ;;  %v16654_v40 = vadd.f32 %v3848_v53, %v14698_v46 }
 0x4f4   :  { %13180 = vmatpush1.bf16.msk.msra.mxu1 %vm13179_vm8, %v21152_v52  ;;  %12958 = vmatprep.subr.msk.bf16.mxu0 %vm21315_vm0, %v21152_v52  ;;  %vm3868_vm8 = vcmp.eq.f32.partialorder %v14768_v29, %v16584_v49  ;;  %vm3874_vm0 = vcmp.eq.f32.partialorder %v14768_v29, %v16595_v26  ;;  %21328 = vst [vmem:[#allocation27_spill] sm:$0xff] %v16628_v48  ;;  %vm13223_vm14 = vmpackc.low %vm3867_vm15, %vm3861_vm6 }
 0x4f5   :  { %13182 = vmatprep.subr.msk.bf16.mxu1 %vm13181_vm1, %v21152_v52  ;;  %vm21324_vm1 = vnez %v21323_v16  ;;  %vm13221_vm13 = vmpackc.low %vm3868_vm8, %vm3862_vm11  ;;  %v16625_v16 = vadd.f32 %v3848_v53, %v14689_v6  ;;  %vm3879_vm11 = vcmp.eq.f32.partialorder %v14775_v30, %v16606_v36  ;;  %v16643_v49 = vadd.f32 %v3848_v53, %v14695_v8  ;;  %21334 = vst [vmem:[#allocation28_spill] sm:$0xff] %v16654_v40  ;;  %v21337_v53 = vld [vmem:[#allocation38_spill] sm:$0xff] }
 0x4f6   :  { %vm21333_vm8 = vnez %v21332_v23  ;;  %v16676_v23 = vadd.f32 %v15480_v20, %v14487_v39 }
 0x4f7   :  { %12960 = vmatpush1.bf16.msk.msra.mxu0 %vm21319_vm3, %v21152_v52  ;;  %21327 = vst [vmem:[#allocation24_spill] sm:$0xff] %v16625_v16  ;;  %vm21329_vm3 = vcmask 523264   ;;  %vm3885_vm15 = vcmp.eq.f32.partialorder %v14775_v30, %v16625_v16 }
 0x4f8   :  { %13184 = vmatpush1.bf16.msk.msra.mxu1 %vm13183_vm9, %v21152_v52  ;;  %12962 = vmatprep.subr.msk.bf16.mxu0 %vm21321_vm2, %v21152_v52  ;;  %vm3880_vm9 = vcmp.eq.f32.partialorder %v14768_v29, %v16606_v36  ;;  %vm3873_vm2 = vcmp.eq.f32.partialorder %v14775_v30, %v16595_v26  ;;  %v21335_v36 = vld [vmem:[#allocation37_spill] sm:$0xff] }
 0x4f9   :  { %13186 = vmatprep.subr.msk.bf16.mxu1 %vm13185_vm10, %v21152_v52  ;;  %vm21330_vm10 = vmmov %vm21329_vm3 }
 0x4fa   :  { %vm13225_vm12 = vmpackc.low %vm3880_vm9, %vm3874_vm0  ;;  %vm3891_vm0 = vcmp.eq.f32.partialorder %v14775_v30, %v16628_v48  ;;  %vm21338_vm9 = vnez %v21337_v53  ;;  %v16692_v53 = vadd.f32 %v15480_v20, %v14683_v2 }
 0x4fb   :  { %12964 = vmatpush1.bf16.msk.msra.mxu0 %vm21324_vm1, %v21152_v52  ;;  %vm13227_vm1 = vmpackc.low %vm3879_vm11, %vm3873_vm2  ;;  %vm3897_vm2 = vcmp.eq.f32.partialorder %v14775_v30, %v16643_v49  ;;  %vm3903_vm11 = vcmp.eq.f32.partialorder %v14775_v30, %v16654_v40 }
 0x4fc   :  { %13188 = vmatpush1.bf16.msk.msra.mxu1 %vm13187_vm7, %v21152_v52  ;;  %12966 = vmatprep.subr.msk.bf16.mxu0 %vm21326_vm5, %v21152_v52  ;;  %vm3892_vm7 = vcmp.eq.f32.partialorder %v14768_v29, %v16628_v48  ;;  %vm3898_vm5 = vcmp.eq.f32.partialorder %v14768_v29, %v16643_v49  ;;  %v21339_v48 = vld [vmem:[#allocation39_spill] sm:$0xff] }
 0x4fd   :  { %13222 = vmatprep.subr.msk.bf16.mxu1 %vm13221_vm13, %v21152_v52  ;;  %vm21336_vm13 = vnez %v21335_v36  ;;  %v16680_v36 = vadd.f32 %v15480_v20, %v14491_v41 }
 0x4fe   :  { %11073 = vmatmul.mubr.msk.f32.vlgmr.msra.gmra.mrb[20].mxu0 %vm21329_vm3, %v16170_v0  ;;  %vm3904_vm3 = vcmp.eq.f32.partialorder %v14768_v29, %v16654_v40  ;;  %v21343_v40 = vld [vmem:[#allocation42_spill] sm:$0xff] }
 0x4ff   :  { %11311 = vmatmul.mubr.msk.f32.vlgmr.msra.gmra.mrb[8].mxu1 %vm21330_vm10, %v15782_v56  ;;  %12968 = vmatpush1.bf16.msk.msra.mxu0 %vm15189_vm4, %v21152_v52  ;;  %vm3886_vm4 = vcmp.eq.f32.partialorder %v14768_v29, %v16625_v16  ;;  %vm13231_vm10 = vmpackc.low %vm3891_vm0, %vm3885_vm15  ;;  %v21341_v16 = vld [vmem:[#allocation40_spill] sm:$0xff]  ;;  %vm4189_vm15 = vcmp.eq.f32.partialorder %v14775_v30, %v16676_v23  ;;  %vm4195_vm0 = vcmp.eq.f32.partialorder %v14775_v30, %v16680_v36 }
 0x500   :  { %13224 = vmatpush1.bf16.msk.msra.mxu1 %vm13223_vm14, %v21152_v52  ;;  %12970 = vmatprep.subr.msk.bf16.mxu0 %vm21333_vm8, %v21152_v52  ;;  %vm13229_vm6 = vmpackc.low %vm3892_vm7, %vm3886_vm4  ;;  %vm21340_vm14 = vnez %v21339_v48  ;;  %vm21342_vm8 = vnez %v21341_v16  ;;  %vm4190_vm4 = vcmp.eq.f32.partialorder %v14768_v29, %v16676_v23  ;;  %vm4196_vm7 = vcmp.eq.f32.partialorder %v14768_v29, %v16680_v36  ;;  %v21345_v16 = vld [vmem:[#allocation43_spill] sm:$0xff] }
 0x501   :  { %13226 = vmatprep.subr.msk.bf16.mxu1 %vm13225_vm12, %v21152_v52  ;;  %2451 = vmatprep.mubr.f32.mxu0 %v21153_v31  ;;  %vm13233_vm12 = vmpackc.low %vm3904_vm3, %vm3898_vm5  ;;  %v16704_v48 = vadd.f32 %v15480_v20, %v14686_v3  ;;  %vm21346_vm5 = vnez %v21345_v16  ;;  %v16719_v20 = vrot.slane %v15782_v56, 1  ;;  %v21351_v16 = vld [vmem:[#allocation47_spill] sm:$0xff] }
 0x502   :  { %4162 = vmatprep.mubr.f32.mxu1 %v21153_v31 }
 0x503   :  { %12972 = vmatpush1.bf16.msk.msra.mxu0 %vm21336_vm13, %v21152_v52  ;;  %vm21344_vm13 = vnez %v21343_v40  ;;  %vm4208_vm3 = vcmp.eq.f32.partialorder %v14768_v29, %v16704_v48  ;;  %v21349_v40 = vld [vmem:[#allocation46_spill] sm:$0xff] }
 0x504   :  { %13228 = vmatpush1.bf16.msk.msra.mxu1 %vm13227_vm1, %v21152_v52  ;;  %12974 = vmatprep.subr.msk.bf16.mxu0 %vm21338_vm9, %v21152_v52  ;;  %vm13235_vm1 = vmpackc.low %vm3903_vm11, %vm3897_vm2  ;;  %vm4202_vm9 = vcmp.eq.f32.partialorder %v14768_v29, %v16692_v53  ;;  %vm21350_vm2 = vnez %v21349_v40  ;;  %v21355_v40 = vld [vmem:[#allocation51_spill] sm:$0xff] }
 0x505   :  { %13230 = vmatprep.subr.msk.bf16.mxu1 %vm13229_vm6, %v21152_v52  ;;  %vm13269_vm6 = vmpackc.low %vm4196_vm7, %vm4190_vm4  ;;  %vm4207_vm4 = vcmp.eq.f32.partialorder %v14775_v30, %v16704_v48  ;;  %vm21352_vm7 = vnez %v21351_v16  ;;  %v21357_v16 = vld [vmem:[#allocation52_spill] sm:$0xff] }
 0x506   :  { %vm13273_vm11 = vmpackc.low %vm4208_vm3, %vm4202_vm9  ;;  %vm4219_vm9 = vcmp.eq.f32.partialorder %v14775_v30, %v15488_v44  ;;  %vm21356_vm3 = vnez %v21355_v40  ;;  %v21371_v40 = vld [vmem:[#allocation58_spill] sm:$0xff] }
 0x507   :  { %12976 = vmatpush1.bf16.msk.msra.mxu0 %vm21340_vm14, %v21152_v52 }
 0x508   :  { %13232 = vmatpush1.bf16.msk.msra.mxu1 %vm13231_vm10, %v21152_v52  ;;  %12978 = vmatprep.subr.msk.bf16.mxu0 %vm21342_vm8, %v21152_v52  ;;  %vm21347_vm10 = vcmask 523264   ;;  %vm4201_vm8 = vcmp.eq.f32.partialorder %v14775_v30, %v16692_v53 }
 0x509   :  { %13234 = vmatprep.subr.msk.bf16.mxu1 %vm13233_vm12, %v21152_v52  ;;  %vm21348_vm14 = vmmov %vm21347_vm10 }
 0x50a   :  { %vm13271_vm12 = vmpackc.low %vm4195_vm0, %vm4189_vm15 }
 0x50b   :  { %12980 = vmatpush1.bf16.msk.msra.mxu0 %vm21344_vm13, %v21152_v52  ;;  %vm4220_vm13 = vcmp.eq.f32.partialorder %v14768_v29, %v15488_v44  ;;  %v21359_v44 = vld [vmem:[#allocation53_spill] sm:$0xff] }
 0x50c   :  { %13236 = vmatpush1.bf16.msk.msra.mxu1 %vm13235_vm1, %v21152_v52  ;;  %12998 = vmatprep.subr.msk.bf16.mxu0 %vm21346_vm5, %v21152_v52  ;;  %vm4214_vm1 = vcmp.eq.f32.partialorder %v14768_v29, %v15484_v42  ;;  %vm4213_vm5 = vcmp.eq.f32.partialorder %v14775_v30, %v15484_v42  ;;  %v16773_v42 = vadd.f32 %v15523_v55, %v14683_v2 }
 0x50d   :  { %13270 = vmatprep.subr.msk.bf16.mxu1 %vm13269_vm6, %v21152_v52  ;;  %vm13275_vm6 = vmpackc.low %vm4207_vm4, %vm4201_vm8  ;;  %vm4225_vm8 = vcmp.eq.f32.partialorder %v14775_v30, %v15492_v45  ;;  %vm4231_vm4 = vcmp.eq.f32.partialorder %v14775_v30, %v15496_v51 }
 0x50e   :  { %11090 = vmatmul.mubr.msk.f32.vlgmr.msra.gmra.mrb[22].mxu0 %vm21347_vm10, %v16170_v0  ;;  %v21353_v0 = vld [vmem:[#allocation50_spill] sm:$0xff]  ;;  %vm13277_vm0 = vmpackc.low %vm4220_vm13, %vm4214_vm1  ;;  %vm4226_vm10 = vcmp.eq.f32.partialorder %v14768_v29, %v15492_v45  ;;  %vm4518_vm1 = vcmp.eq.f32.partialorder %v14768_v29, %v15535_v4  ;;  %vm4524_vm13 = vcmp.eq.f32.partialorder %v14768_v29, %v15539_v17  ;;  %v16785_v45 = vadd.f32 %v15523_v55, %v14686_v3 }
 0x50f   :  { %11362 = vmatmul.mubr.msk.f32.vlgmr.msra.gmra.mrb[8].mxu1 %vm21348_vm14, %v16719_v20  ;;  %13000 = vmatpush1.bf16.msk.msra.mxu0 %vm21350_vm2, %v21152_v52  ;;  %vm21354_vm15 = vnez %v21353_v0  ;;  %vm4232_vm14 = vcmp.eq.f32.partialorder %v14768_v29, %v15496_v51  ;;  %vm21358_vm2 = vnez %v21357_v16  ;;  %v21361_v51 = vld [vmem:[#allocation54_spill] sm:$0xff]  ;;  %v21363_v0 = vld [vmem:[#allocation55_spill] sm:$0xff]  ;;  %v16800_v55 = vrot.slane %v15782_v56, 2 }
 0x510   :  { %13272 = vmatpush1.bf16.msk.msra.mxu1 %vm13271_vm12, %v21152_v52  ;;  %13002 = vmatprep.subr.msk.bf16.mxu0 %vm21352_vm7, %v21152_v52  ;;  %vm13279_vm12 = vmpackc.low %vm4219_vm9, %vm4213_vm5  ;;  %vm21360_vm7 = vnez %v21359_v44  ;;  %vm4517_vm5 = vcmp.eq.f32.partialorder %v14775_v30, %v15535_v4  ;;  %vm4523_vm9 = vcmp.eq.f32.partialorder %v14775_v30, %v15539_v17  ;;  %v21367_v4 = vld [vmem:[#allocation56_spill] sm:$0xff]  ;;  %v21369_v17 = vld [vmem:[#allocation57_spill] sm:$0xff]  ;;  %v16846_v44 = vadd.f32 %v15646_v33, %v14487_v39 }
 0x511   :  { %13274 = vmatprep.subr.msk.bf16.mxu1 %vm13273_vm11, %v21152_v52  ;;  %2708 = vmatprep.mubr.f32.mxu0 %v21153_v31  ;;  %vm13281_vm11 = vmpackc.low %vm4232_vm14, %vm4226_vm10  ;;  %vm4530_vm10 = vcmp.eq.f32.partialorder %v14768_v29, %v16773_v42  ;;  %vm4536_vm14 = vcmp.eq.f32.partialorder %v14768_v29, %v16785_v45  ;;  %v21373_v16 = vld [vmem:[#allocation59_spill] sm:$0xff] }
 0x512   :  { %4490 = vmatprep.mubr.f32.mxu1 %v21153_v31 }
 0x513   :  { %13004 = vmatpush1.bf16.msk.msra.mxu0 %vm21354_vm15, %v21152_v52  ;;  %vm21362_vm15 = vnez %v21361_v51  ;;  %v21380_v51 = vld [vmem:[#allocation83_spill] sm:$0xff] }
 0x514   :  { %13276 = vmatpush1.bf16.msk.msra.mxu1 %vm13275_vm6, %v21152_v52  ;;  %13006 = vmatprep.subr.msk.bf16.mxu0 %vm21356_vm3, %v21152_v52  ;;  %vm13283_vm6 = vmpackc.low %vm4231_vm4, %vm4225_vm8  ;;  %vm21364_vm3 = vnez %v21363_v0  ;;  %vm21368_vm8 = vnez %v21367_v4  ;;  %v21381_v0 = vld [vmem:[#allocation84_spill] sm:$0xff]  ;;  %v16903_v4 = vadd.f32 %v15646_v33, %v14692_v7 }
 0x515   :  { %13278 = vmatprep.subr.msk.bf16.mxu1 %vm13277_vm0, %v21152_v52  ;;  %vm13317_vm0 = vmpackc.low %vm4524_vm13, %vm4518_vm1  ;;  %vm4535_vm1 = vcmp.eq.f32.partialorder %v14775_v30, %v16785_v45  ;;  %vm21370_vm13 = vnez %v21369_v17  ;;  %v21385_v17 = vld [vmem:[#allocation89_spill] sm:$0xff] }
 0x516   :  { %vm13321_vm4 = vmpackc.low %vm4536_vm14, %vm4530_vm10  ;;  %vm4547_vm10 = vcmp.eq.f32.partialorder %v14775_v30, %v15567_v5  ;;  %vm4554_vm14 = vcmp.eq.f32.partialorder %v14768_v29, %v15587_v47 }
 0x517   :  { %13008 = vmatpush1.bf16.msk.msra.mxu0 %vm21358_vm2, %v21152_v52 }
 0x518   :  { %13280 = vmatpush1.bf16.msk.msra.mxu1 %vm13279_vm12, %v21152_v52  ;;  %13010 = vmatprep.subr.msk.bf16.mxu0 %vm21360_vm7, %v21152_v52  ;;  %vm21365_vm12 = vcmask 523264   ;;  %vm4529_vm7 = vcmp.eq.f32.partialorder %v14775_v30, %v16773_v42 }
 0x519   :  { %13282 = vmatprep.subr.msk.bf16.mxu1 %vm13281_vm11, %v21152_v52  ;;  %vm21366_vm2 = vmmov %vm21365_vm12 }
 0x51a   :  { %vm13319_vm11 = vmpackc.low %vm4523_vm9, %vm4517_vm5  ;;  %vm21372_vm5 = vnez %v21371_v40 }
 0x51b   :  { %13012 = vmatpush1.bf16.msk.msra.mxu0 %vm21362_vm15, %v21152_v52  ;;  %vm4548_vm15 = vcmp.eq.f32.partialorder %v14768_v29, %v15567_v5  ;;  %v21375_v5 = vld [vmem:[#allocation60_spill] sm:$0xff] }
 0x51c   :  { %13284 = vmatpush1.bf16.msk.msra.mxu1 %vm13283_vm6, %v21152_v52  ;;  %13014 = vmatprep.subr.msk.bf16.mxu0 %vm21364_vm3, %v21152_v52  ;;  %vm4542_vm6 = vcmp.eq.f32.partialorder %v14768_v29, %v15563_v38  ;;  %vm4541_vm3 = vcmp.eq.f32.partialorder %v14775_v30, %v15563_v38  ;;  %v16850_v38 = vadd.f32 %v15646_v33, %v14491_v41 }
 0x51d   :  { %13318 = vmatprep.subr.msk.bf16.mxu1 %vm13317_vm0, %v21152_v52  ;;  %vm13323_vm0 = vmpackc.low %vm4535_vm1, %vm4529_vm7  ;;  %vm21376_vm7 = vnez %v21375_v5 }
 0x51e   :  { %11124 = vmatmul.mubr.msk.f32.vlgmr.msra.gmra.mrb[20].mxu0 %vm21365_vm12, %v16292_v19  ;;  %vm13325_vm9 = vmpackc.low %vm4548_vm15, %vm4542_vm6  ;;  %vm21374_vm12 = vnez %v21373_v16  ;;  %vm2880_vm6 = vcmp.eq.f32.partialorder %v14701_v10, %v16240_v57  ;;  %vm21377_vm15 = vnez %v21135_v14  ;;  %v21378_v14 = vld [vmem:[#allocation61_spill] sm:$0xff] }
 0x51f   :  { %11413 = vmatmul.mubr.msk.f32.vlgmr.msra.gmra.mrb[8].mxu1 %vm21366_vm2, %v16800_v55  ;;  %13016 = vmatpush1.bf16.msk.msra.mxu0 %vm21368_vm8, %v21152_v52  ;;  %vm4560_vm2 = vcmp.eq.f32.partialorder %v14768_v29, %v15591_v18  ;;  %vm4553_vm8 = vcmp.eq.f32.partialorder %v14775_v30, %v15587_v47  ;;  %v16895_v47 = vrot.slane %v15782_v56, 3 }
 0x520   :  { %13320 = vmatpush1.bf16.msk.msra.mxu1 %vm13319_vm11, %v21152_v52  ;;  %13018 = vmatprep.subr.msk.bf16.mxu0 %vm21370_vm13, %v21152_v52  ;;  %vm13327_vm11 = vmpackc.low %vm4547_vm10, %vm4541_vm3  ;;  %vm2874_vm13 = vcmp.eq.f32.partialorder %v14701_v10, %v16236_v15  ;;  %vm2873_vm3 = vcmp.eq.f32.partialorder %v14708_v13, %v16236_v15  ;;  %vm2879_vm10 = vcmp.eq.f32.partialorder %v14708_v13, %v16240_v57 }
 0x521   :  { %13322 = vmatprep.subr.msk.bf16.mxu1 %vm13321_vm4, %v21152_v52  ;;  %2779 = vmatprep.mubr.f32.mxu0 %v21153_v31  ;;  %vm4559_vm4 = vcmp.eq.f32.partialorder %v14775_v30, %v15591_v18  ;;  %vm13329_vm1 = vmpackc.low %vm4560_vm2, %vm4554_vm14  ;;  %vm4851_vm2 = vcmp.eq.f32.partialorder %v14775_v30, %v16850_v38  ;;  %v16890_v18 = vadd.f32 %v15646_v33, %v14689_v6  ;;  %v16946_v33 = vstv %s5159_s11 }
 0x522   :  { %4818 = vmatprep.mubr.f32.mxu1 %v21153_v31  ;;  %vm13045_vm14 = vmpackc.low %vm2880_vm6, %vm2874_vm13  ;;  %vm4858_vm13 = vcmp.eq.f32.partialorder %v14768_v29, %v21380_v51  ;;  %vm4864_vm6 = vcmp.eq.f32.partialorder %v14768_v29, %v21381_v0  ;;  %v16974_v40 = vadd.f32 %v16946_v33, %v14487_v39  ;;  %v16978_v16 = vadd.f32 %v16946_v33, %v14491_v41 }
 0x523   :  { %13020 = vmatpush1.bf16.msk.msra.mxu0 %vm21372_vm5, %v21152_v52  ;;  %vm4852_vm5 = vcmp.eq.f32.partialorder %v14768_v29, %v16850_v38  ;;  %v16999_v5 = vadd.f32 %v16946_v33, %v14683_v2 }
 0x524   :  { %13324 = vmatpush1.bf16.msk.msra.mxu1 %vm13323_vm0, %v21152_v52  ;;  %13022 = vmatprep.subr.msk.bf16.mxu0 %vm21374_vm12, %v21152_v52  ;;  %vm4846_vm0 = vcmp.eq.f32.partialorder %v14768_v29, %v16846_v44  ;;  %vm4845_vm12 = vcmp.eq.f32.partialorder %v14775_v30, %v16846_v44 }
 0x525   :  { %13326 = vmatprep.subr.msk.bf16.mxu1 %vm13325_vm9, %v21152_v52  ;;  %vm13331_vm9 = vmpackc.low %vm4559_vm4, %vm4553_vm8  ;;  %vm2886_vm4 = vcmp.eq.f32.partialorder %v14701_v10, %v16261_v63 }
 0x526   :  { %vm13365_vm8 = vmpackc.low %vm4852_vm5, %vm4846_vm0  ;;  %vm2885_vm0 = vcmp.eq.f32.partialorder %v14708_v13, %v16261_v63  ;;  %vm2891_vm5 = vcmp.eq.f32.partialorder %v14708_v13, %v16271_v32 }
 0x527   :  { %13024 = vmatpush1.bf16.msk.msra.mxu0 %vm21376_vm7, %v21152_v52  ;;  %vm2892_vm7 = vcmp.eq.f32.partialorder %v14701_v10, %v16271_v32 }
 0x528   :  { %13328 = vmatpush1.bf16.msk.msra.mxu1 %vm13327_vm11, %v21152_v52  ;;  %13026 = vmatprep.subr.msk.bf16.mxu0 %vm21377_vm15, %v21152_v52  ;;  %vm21379_vm11 = vnez %v21378_v14  ;;  %vm13367_vm15 = vmpackc.low %vm4851_vm2, %vm4845_vm12  ;;  %vm4863_vm12 = vcmp.eq.f32.partialorder %v14775_v30, %v21381_v0  ;;  %v17009_v14 = vadd.f32 %v16946_v33, %v14686_v3  ;;  %v17081_v0 = vadd.f32 %v16946_v33, %v14698_v46 }
 0x529   :  { %13330 = vmatprep.subr.msk.bf16.mxu1 %vm13329_vm1, %v21152_v52  ;;  %vm13047_vm1 = vmpackc.low %vm2879_vm10, %vm2873_vm3 }
 0x52a   :  { %vm13049_vm10 = vmpackc.low %vm2892_vm7, %vm2886_vm4  ;;  %vm4870_vm7 = vcmp.eq.f32.partialorder %v14768_v29, %v16890_v18 }
 0x52b   :  { %13028 = vmatpush1.bf16.msk.msra.mxu0 %vm21379_vm11, %v21152_v52  ;;  %vm13369_vm2 = vmpackc.low %vm4864_vm6, %vm4858_vm13  ;;  %vm2898_vm11 = vcmp.eq.f32.partialorder %v14701_v10, %v16298_v21  ;;  %vm2897_vm6 = vcmp.eq.f32.partialorder %v14708_v13, %v16298_v21 }
 0x52c   :  { %13332 = vmatpush1.bf16.msk.msra.mxu1 %vm13331_vm9, %v21152_v52  ;;  %13046 = vmatprep.subr.msk.bf16.mxu0 %vm13045_vm14, %v21152_v52  ;;  %vm21382_vm9 = vcmask 523264   ;;  %vm4857_vm14 = vcmp.eq.f32.partialorder %v14775_v30, %v21380_v51  ;;  %vm13051_vm4 = vmpackc.low %vm2891_vm5, %vm2885_vm0  ;;  %vm4869_vm5 = vcmp.eq.f32.partialorder %v14775_v30, %v16890_v18  ;;  %v17040_v51 = vadd.f32 %v16946_v33, %v14692_v7 }
 0x52d   :  { %13366 = vmatprep.subr.msk.bf16.mxu1 %vm13365_vm8, %v21152_v52  ;;  %vm21383_vm3 = vmmov %vm21382_vm9  ;;  %vm2904_vm8 = vcmp.eq.f32.partialorder %v14701_v10, %v16302_v1 }
 0x52e   :  { %11141 = vmatmul.mubr.msk.f32.vlgmr.msra.gmra.mrb[22].mxu0 %vm21382_vm9, %v16292_v19  ;;  %vm13371_vm13 = vmpackc.low %vm4863_vm12, %vm4857_vm14  ;;  %vm4875_vm9 = vcmp.eq.f32.partialorder %v14775_v30, %v16903_v4  ;;  %vm2916_vm14 = vcmp.eq.f32.partialorder %v14701_v10, %v16353_v11  ;;  %v21384_v19 = vld [vmem:[#allocation88_spill] sm:$0xff] }
 0x52f   :  { %11464 = vmatmul.mubr.msk.f32.vlgmr.msra.gmra.mrb[8].mxu1 %vm21383_vm3, %v16895_v47  ;;  %13048 = vmatpush1.bf16.msk.msra.mxu0 %vm13047_vm1, %v21152_v52  ;;  %vm4876_vm1 = vcmp.eq.f32.partialorder %v14768_v29, %v16903_v4  ;;  %vm13053_vm0 = vmpackc.low %vm2904_vm8, %vm2898_vm11  ;;  %vm4882_vm12 = vcmp.eq.f32.partialorder %v14768_v29, %v21384_v19  ;;  %vm4888_vm11 = vcmp.eq.f32.partialorder %v14768_v29, %v21385_v17 }
 0x530   :  { %13368 = vmatpush1.bf16.msk.msra.mxu1 %vm13367_vm15, %v21152_v52  ;;  %13050 = vmatprep.subr.msk.bf16.mxu0 %vm13049_vm10, %v21152_v52  ;;  %vm2903_vm15 = vcmp.eq.f32.partialorder %v14708_v13, %v16302_v1  ;;  %vm13373_vm3 = vmpackc.low %vm4876_vm1, %vm4870_vm7  ;;  %vm2910_vm10 = vcmp.eq.f32.partialorder %v14701_v10, %v16337_v9  ;;  %vm2915_vm7 = vcmp.eq.f32.partialorder %v14708_v13, %v16353_v11 }
 0x531   :  { %13370 = vmatprep.subr.msk.bf16.mxu1 %vm13369_vm2, %v21152_v52  ;;  %3036 = vmatprep.mubr.f32.mxu0 %v21153_v31  ;;  %vm13055_vm2 = vmpackc.low %vm2903_vm15, %vm2897_vm6  ;;  %vm4887_vm6 = vcmp.eq.f32.partialorder %v14775_v30, %v21385_v17  ;;  %v21458_v17 = vld [vmem:[#allocation95_spill] sm:$0xff] }
 0x532   :  { %5146 = vmatprep.mubr.f32.mxu1 %v21153_v31  ;;  %vm13375_vm8 = vmpackc.low %vm4875_vm9, %vm4869_vm5  ;;  %vm2882_vm5 = vcmp.eq.f32.partialorder %v14761_v28, %v16240_v57 }
 0x533   :  { %13052 = vmatpush1.bf16.msk.msra.mxu0 %vm13051_vm4, %v21152_v52  ;;  %vm2909_vm4 = vcmp.eq.f32.partialorder %v14708_v13, %v16337_v9  ;;  %vm13057_vm1 = vmpackc.low %vm2916_vm14, %vm2910_vm10  ;;  %vm5180_vm10 = vcmp.eq.f32.partialorder %v14768_v29, %v16978_v16 }
 0x534   :  { %13372 = vmatpush1.bf16.msk.msra.mxu1 %vm13371_vm13, %v21152_v52  ;;  %13054 = vmatprep.subr.msk.bf16.mxu0 %vm13053_vm0, %v21152_v52  ;;  %vm4881_vm13 = vcmp.eq.f32.partialorder %v14775_v30, %v21384_v19  ;;  %vm13377_vm15 = vmpackc.low %vm4888_vm11, %vm4882_vm12  ;;  %vm2876_vm0 = vcmp.eq.f32.partialorder %v14761_v28, %v16236_v15  ;;  %vm2875_vm12 = vcmp.eq.f32.partialorder %v14843_v43, %v16236_v15  ;;  %v21455_v19 = vld [vmem:[#allocation94_spill] sm:$0xff] }
 0x535   :  { %13374 = vmatprep.subr.msk.bf16.mxu1 %vm13373_vm3, %v21152_v52  ;;  %vm13059_vm9 = vmpackc.low %vm2915_vm7, %vm2909_vm4  ;;  %vm5174_vm3 = vcmp.eq.f32.partialorder %v14768_v29, %v16974_v40  ;;  %vm5179_vm4 = vcmp.eq.f32.partialorder %v14775_v30, %v16978_v16  ;;  %v17027_v15 = vadd.f32 %v16946_v33, %v14689_v6 }
 0x536   :  { %vm13379_vm14 = vmpackc.low %vm4887_vm6, %vm4881_vm13  ;;  %vm2894_vm13 = vcmp.eq.f32.partialorder %v14761_v28, %v16271_v32 }
 0x537   :  { %13056 = vmatpush1.bf16.msk.msra.mxu0 %vm13055_vm2, %v21152_v52  ;;  %vm2881_vm2 = vcmp.eq.f32.partialorder %v14843_v43, %v16240_v57  ;;  %vm13061_vm11 = vmpackc.low %vm2882_vm5, %vm2876_vm0  ;;  %v17032_v57 = vrot.slane %v15782_v56, 4  ;;  %vm5192_vm0 = vcmp.eq.f32.partialorder %v14768_v29, %v17009_v14 }
 0x538   :  { %13376 = vmatpush1.bf16.msk.msra.mxu1 %vm13375_vm8, %v21152_v52  ;;  %13058 = vmatprep.subr.msk.bf16.mxu0 %vm13057_vm1, %v21152_v52  ;;  %vm5173_vm8 = vcmp.eq.f32.partialorder %v14775_v30, %v16974_v40  ;;  %vm13413_vm7 = vmpackc.low %vm5180_vm10, %vm5174_vm3  ;;  %vm2888_vm1 = vcmp.eq.f32.partialorder %v14761_v28, %v16261_v63  ;;  %vm2893_vm3 = vcmp.eq.f32.partialorder %v14843_v43, %v16271_v32  ;;  %vm21386_vm10 = vcmask 523264  }
 0x539   :  { %13378 = vmatprep.subr.msk.bf16.mxu1 %vm13377_vm15, %v21152_v52  ;;  %vm13063_vm6 = vmpackc.low %vm2881_vm2, %vm2875_vm12  ;;  %vm5186_vm15 = vcmp.eq.f32.partialorder %v14768_v29, %v16999_v5  ;;  %vm5185_vm2 = vcmp.eq.f32.partialorder %v14775_v30, %v16999_v5  ;;  %v17077_v32 = vadd.f32 %v16946_v33, %v14695_v8  ;;  %v21451_v33 = vld [vmem:[#allocation92_spill] sm:$0xff] }
 0x53a   :  { %vm13415_vm5 = vmpackc.low %vm5179_vm4, %vm5173_vm8  ;;  %vm2900_vm4 = vcmp.eq.f32.partialorder %v14761_v28, %v16298_v21 }
 0x53b   :  { %13060 = vmatpush1.bf16.msk.msra.mxu0 %vm13059_vm9, %v21152_v52  ;;  %vm2887_vm9 = vcmp.eq.f32.partialorder %v14843_v43, %v16261_v63  ;;  %vm13065_vm12 = vmpackc.low %vm2894_vm13, %vm2888_vm1  ;;  %vm5198_vm1 = vcmp.eq.f32.partialorder %v14768_v29, %v17027_v15  ;;  %v17132_v63 = vrot.slane %v15782_v56, 5 }
 0x53c   :  { %13380 = vmatpush1.bf16.msk.msra.mxu1 %vm13379_vm14, %v21152_v52  ;;  %13062 = vmatprep.subr.msk.bf16.mxu0 %vm13061_vm11, %v21152_v52  ;;  %vm21387_vm14 = vmmov %vm21386_vm10  ;;  %vm5191_vm11 = vcmp.eq.f32.partialorder %v14775_v30, %v17009_v14 }
 0x53d   :  { %13414 = vmatprep.subr.msk.bf16.mxu1 %vm13413_vm7, %v21152_v52  ;;  %vm13417_vm8 = vmpackc.low %vm5192_vm0, %vm5186_vm15  ;;  %vm2906_vm7 = vcmp.eq.f32.partialorder %v14761_v28, %v16302_v1  ;;  %vm2899_vm0 = vcmp.eq.f32.partialorder %v14843_v43, %v16298_v21  ;;  %v21392_v21 = vld [vmem:[#allocation12_spill] sm:$0xff] }
 0x53e   :  { %11175 = vmatmul.mubr.msk.f32.vlgmr.msra.gmra.mrb[20].mxu0 %vm21386_vm10, %v16427_v12  ;;  %vm13067_vm13 = vmpackc.low %vm2893_vm3, %vm2887_vm9  ;;  %vm5197_vm3 = vcmp.eq.f32.partialorder %v14775_v30, %v17027_v15  ;;  %vm5203_vm10 = vcmp.eq.f32.partialorder %v14775_v30, %v17040_v51 }
 0x53f   :  { %11515 = vmatmul.mubr.msk.f32.vlgmr.msra.gmra.mrb[8].mxu1 %vm21387_vm14, %v17032_v57  ;;  %13064 = vmatpush1.bf16.msk.msra.mxu0 %vm13063_vm6, %v21152_v52  ;;  %vm5204_vm6 = vcmp.eq.f32.partialorder %v14768_v29, %v17040_v51  ;;  %vm13419_vm15 = vmpackc.low %vm5191_vm11, %vm5185_vm2  ;;  %vm2918_vm2 = vcmp.eq.f32.partialorder %v14761_v28, %v16353_v11 }
 0x540   :  { %13416 = vmatpush1.bf16.msk.msra.mxu1 %vm13415_vm5, %v21152_v52  ;;  %13066 = vmatprep.subr.msk.bf16.mxu0 %vm13065_vm12, %v21152_v52  ;;  %vm2905_vm5 = vcmp.eq.f32.partialorder %v14843_v43, %v16302_v1  ;;  %vm13069_vm9 = vmpackc.low %vm2906_vm7, %vm2900_vm4  ;;  %vm2912_vm12 = vcmp.eq.f32.partialorder %v14761_v28, %v16337_v9  ;;  %vm5216_vm4 = vcmp.eq.f32.partialorder %v14768_v29, %v17081_v0  ;;  %v21393_v1 = vld [vmem:[#allocation15_spill] sm:$0xff] }
 0x541   :  { %13418 = vmatprep.subr.msk.bf16.mxu1 %vm13417_vm8, %v21152_v52  ;;  %3107 = vmatprep.mubr.f32.mxu0 %v21153_v31  ;;  %vm13421_vm14 = vmpackc.low %vm5204_vm6, %vm5198_vm1  ;;  %vm5210_vm8 = vcmp.eq.f32.partialorder %v14768_v29, %v17077_v32  ;;  %vm2911_vm1 = vcmp.eq.f32.partialorder %v14843_v43, %v16337_v9  ;;  %vm2917_vm6 = vcmp.eq.f32.partialorder %v14843_v43, %v16353_v11  ;;  %v21394_v9 = vld [vmem:[#allocation16_spill] sm:$0xff]  ;;  %v21396_v11 = vld [vmem:[#allocation19_spill] sm:$0xff] }
 0x542   :  { %5474 = vmatprep.mubr.f32.mxu1 %v21153_v31  ;;  %vm13071_vm11 = vmpackc.low %vm2905_vm5, %vm2899_vm0  ;;  %vm5209_vm0 = vcmp.eq.f32.partialorder %v14775_v30, %v17077_v32  ;;  %vm5215_vm5 = vcmp.eq.f32.partialorder %v14775_v30, %v17081_v0 }
 0x543   :  { %13068 = vmatpush1.bf16.msk.msra.mxu0 %vm13067_vm13, %v21152_v52  ;;  %vm13423_vm7 = vmpackc.low %vm5203_vm10, %vm5197_vm3  ;;  %vm3208_vm3 = vcmp.eq.f32.partialorder %v14701_v10, %v16390_v24 }
 0x544   :  { %13420 = vmatpush1.bf16.msk.msra.mxu1 %vm13419_vm15, %v21152_v52  ;;  %13070 = vmatprep.subr.msk.bf16.mxu0 %vm13069_vm9, %v21152_v52  ;;  %vm13073_vm13 = vmpackc.low %vm2918_vm2, %vm2912_vm12  ;;  %vm3202_vm9 = vcmp.eq.f32.partialorder %v14701_v10, %v16387_v25  ;;  %vm3201_vm2 = vcmp.eq.f32.partialorder %v14708_v13, %v16387_v25 }
 0x545   :  { %13422 = vmatprep.subr.msk.bf16.mxu1 %vm13421_vm14, %v21152_v52  ;;  %vm13425_vm15 = vmpackc.low %vm5216_vm4, %vm5210_vm8  ;;  %vm3214_vm8 = vcmp.eq.f32.partialorder %v14701_v10, %v16403_v27  ;;  %vm3220_vm4 = vcmp.eq.f32.partialorder %v14701_v10, %v16412_v34 }
 0x546   :  { %vm13075_vm10 = vmpackc.low %vm2917_vm6, %vm2911_vm1 }
 0x547   :  { %13072 = vmatpush1.bf16.msk.msra.mxu0 %vm13071_vm11, %v21152_v52  ;;  %vm13427_vm14 = vmpackc.low %vm5215_vm5, %vm5209_vm0  ;;  %vm3207_vm11 = vcmp.eq.f32.partialorder %v14708_v13, %v16390_v24  ;;  %vm3219_vm0 = vcmp.eq.f32.partialorder %v14708_v13, %v16412_v34  ;;  %vm3226_vm5 = vcmp.eq.f32.partialorder %v14701_v10, %v16432_v22 }
 0x548   :  { %13424 = vmatpush1.bf16.msk.msra.mxu1 %vm13423_vm7, %v21152_v52  ;;  %13074 = vmatprep.subr.msk.bf16.mxu0 %vm13073_vm13, %v21152_v52  ;;  %vm13093_vm12 = vmpackc.low %vm3208_vm3, %vm3202_vm9  ;;  %vm21388_vm7 = vcmask 523264   ;;  %vm3232_vm9 = vcmp.eq.f32.partialorder %v14701_v10, %v16435_v50 }
 0x549   :  { %13426 = vmatprep.subr.msk.bf16.mxu1 %vm13425_vm15, %v21152_v52  ;;  %vm21389_vm13 = vmmov %vm21388_vm7  ;;  %vm3213_vm15 = vcmp.eq.f32.partialorder %v14708_v13, %v16403_v27 }
 0x54a   :  { %vm13095_vm1 = vmpackc.low %vm3207_vm11, %vm3201_vm2  ;;  %vm3238_vm2 = vcmp.eq.f32.partialorder %v14701_v10, %v16451_v58  ;;  %vm3244_vm11 = vcmp.eq.f32.partialorder %v14701_v10, %v16462_v35 }
 0x54b   :  { %13076 = vmatpush1.bf16.msk.msra.mxu0 %vm13075_vm10, %v21152_v52  ;;  %vm13097_vm6 = vmpackc.low %vm3220_vm4, %vm3214_vm8 }
 0x54c   :  { %13428 = vmatpush1.bf16.msk.msra.mxu1 %vm13427_vm14, %v21152_v52  ;;  %13094 = vmatprep.subr.msk.bf16.mxu0 %vm13093_vm12, %v21152_v52  ;;  %vm13099_vm3 = vmpackc.low %vm3219_vm0, %vm3213_vm15  ;;  %vm3225_vm14 = vcmp.eq.f32.partialorder %v14708_v13, %v16432_v22  ;;  %vm3231_vm12 = vcmp.eq.f32.partialorder %v14708_v13, %v16435_v50 }
 0x54d   :  { %vm13101_vm10 = vmpackc.low %vm3232_vm9, %vm3226_vm5  ;;  %vm3203_vm5 = vcmp.eq.f32.partialorder %v14843_v43, %v16387_v25  ;;  %vm3209_vm9 = vcmp.eq.f32.partialorder %v14843_v43, %v16390_v24 }
 0x54e   :  { %11192 = vmatmul.mubr.msk.f32.vlgmr.msra.gmra.mrb[22].mxu0 %vm21388_vm7, %v16427_v12  ;;  %vm13103_vm8 = vmpackc.low %vm3231_vm12, %vm3225_vm14  ;;  %vm3237_vm7 = vcmp.eq.f32.partialorder %v14708_v13, %v16451_v58  ;;  %vm21390_vm14 = vcmask 523264   ;;  %v17408_v12 = vmul.f32 14.0, %v14491_v41  ;;  %v17425_v41 = vmul.f32 14.0, %v14686_v3  ;;  %v21409_v3 = vld [vmem:[#allocation69_spill] sm:$0xff] }
 0x54f   :  { %11566 = vmatmul.mubr.msk.f32.vlgmr.msra.gmra.mrb[8].mxu1 %vm21389_vm13, %v17132_v63  ;;  %13096 = vmatpush1.bf16.msk.msra.mxu0 %vm13095_vm1, %v21152_v52  ;;  %vm13105_vm4 = vmpackc.low %vm3244_vm11, %vm3238_vm2  ;;  %vm3243_vm13 = vcmp.eq.f32.partialorder %v14708_v13, %v16462_v35  ;;  %vm3204_vm1 = vcmp.eq.f32.partialorder %v14761_v28, %v16387_v25  ;;  %vm3215_vm11 = vcmp.eq.f32.partialorder %v14843_v43, %v16403_v27  ;;  %v21397_v25 = vld [vmem:[#allocation20_spill] sm:$0xff] }
 0x550   :  { %3364 = vmatprep.mubr.f32.mxu0 %v21153_v31  ;;  %13098 = vmatprep.subr.msk.bf16.mxu0 %vm13097_vm6, %v21152_v52  ;;  %vm3210_vm6 = vcmp.eq.f32.partialorder %v14761_v28, %v16390_v24  ;;  %vm13107_vm15 = vmpackc.low %vm3243_vm13, %vm3237_vm7  ;;  %vm3234_vm7 = vcmp.eq.f32.partialorder %v14761_v28, %v16435_v50  ;;  %v21398_v24 = vld [vmem:[#allocation23_spill] sm:$0xff] }
 0x551   :  { %vm13109_vm0 = vmpackc.low %vm3210_vm6, %vm3204_vm1  ;;  %vm3227_vm6 = vcmp.eq.f32.partialorder %v14843_v43, %v16432_v22 }
 0x552   :  { %vm13111_vm12 = vmpackc.low %vm3209_vm9, %vm3203_vm5  ;;  %vm3246_vm5 = vcmp.eq.f32.partialorder %v14761_v28, %v16462_v35 }
 0x553   :  { %13100 = vmatpush1.bf16.msk.msra.mxu0 %vm13099_vm3, %v21152_v52  ;;  %vm3216_vm3 = vcmp.eq.f32.partialorder %v14761_v28, %v16403_v27  ;;  %v21400_v27 = vld [vmem:[#allocation24_spill] sm:$0xff] }
 0x554   :  { %13102 = vmatprep.subr.msk.bf16.mxu0 %vm13101_vm10, %v21152_v52  ;;  %vm3222_vm10 = vcmp.eq.f32.partialorder %v14761_v28, %v16412_v34 }
 0x555   :  { %vm13113_vm2 = vmpackc.low %vm3222_vm10, %vm3216_vm3  ;;  %vm3239_vm10 = vcmp.eq.f32.partialorder %v14843_v43, %v16451_v58 }
 0x557   :  { %13104 = vmatpush1.bf16.msk.msra.mxu0 %vm13103_vm8, %v21152_v52  ;;  %vm3221_vm8 = vcmp.eq.f32.partialorder %v14843_v43, %v16412_v34  ;;  %v21401_v34 = vld [vmem:[#allocation27_spill] sm:$0xff] }
 0x558   :  { %13106 = vmatprep.subr.msk.bf16.mxu0 %vm13105_vm4, %v21152_v52  ;;  %vm3228_vm4 = vcmp.eq.f32.partialorder %v14761_v28, %v16432_v22  ;;  %vm13115_vm13 = vmpackc.low %vm3221_vm8, %vm3215_vm11  ;;  %v21405_v22 = vld [vmem:[#allocation67_spill] sm:$0xff] }
 0x559   :  { %vm13117_vm1 = vmpackc.low %vm3234_vm7, %vm3228_vm4  ;;  %vm3529_vm4 = vcmp.eq.f32.partialorder %v14708_v13, %v16475_v60  ;;  %vm3535_vm7 = vcmp.eq.f32.partialorder %v14708_v13, %v16486_v62 }
 0x55b   :  { %13108 = vmatpush1.bf16.msk.msra.mxu0 %vm13107_vm15, %v21152_v52  ;;  %vm3233_vm15 = vcmp.eq.f32.partialorder %v14843_v43, %v16435_v50  ;;  %v17453_v50 = vmul.f32 14.0, %v14689_v6  ;;  %v17490_v6 = vmul.f32 14.0, %v14695_v8  ;;  %v21416_v8 = vld [vmem:[#allocation72_spill] sm:$0xff] }
 0x55c   :  { %13110 = vmatprep.subr.msk.bf16.mxu0 %vm13109_vm0, %v21152_v52  ;;  %vm3240_vm0 = vcmp.eq.f32.partialorder %v14761_v28, %v16451_v58  ;;  %vm13119_vm9 = vmpackc.low %vm3233_vm15, %vm3227_vm6  ;;  %vm21391_vm6 = vcmask 523264   ;;  %v17456_v58 = vmul.f32 14.0, %v14692_v7  ;;  %v17493_v7 = vmul.f32 14.0, %v14698_v46  ;;  %v21418_v46 = vld [vmem:[#allocation73_spill] sm:$0xff] }
 0x55d   :  { %vm13121_vm3 = vmpackc.low %vm3246_vm5, %vm3240_vm0  ;;  %vm3541_vm5 = vcmp.eq.f32.partialorder %v14708_v13, %v16505_v54 }
 0x55e   :  { %11226 = vmatmul.mubr.msk.f32.vlgmr.msra.gmra.mrb[20].mxu0 %vm21390_vm14, %v16526_v37  ;;  %vm3245_vm14 = vcmp.eq.f32.partialorder %v14843_v43, %v16462_v35  ;;  %vm13143_vm15 = vmpackc.low %vm3535_vm7, %vm3529_vm4  ;;  %vm3572_vm4 = vcmp.eq.f32.partialorder %v14701_v10, %v21394_v9  ;;  %v21411_v35 = vld [vmem:[#allocation70_spill] sm:$0xff] }
 0x55f   :  { %13112 = vmatpush1.bf16.msk.msra.mxu0 %vm13111_vm12, %v21152_v52  ;;  %3435 = vmatprep.mubr.f32.mxu0 %v21153_v31  ;;  %vm3530_vm12 = vcmp.eq.f32.partialorder %v14701_v10, %v16475_v60  ;;  %vm13123_vm11 = vmpackc.low %vm3245_vm14, %vm3239_vm10  ;;  %vm3560_vm10 = vcmp.eq.f32.partialorder %v14701_v10, %v21392_v21 }
 0x560   :  { %13114 = vmatprep.subr.msk.bf16.mxu0 %vm13113_vm2, %v21152_v52  ;;  %vm3536_vm2 = vcmp.eq.f32.partialorder %v14701_v10, %v16486_v62 }
 0x561   :  { %vm13141_vm8 = vmpackc.low %vm3536_vm2, %vm3530_vm12  ;;  %vm3553_vm2 = vcmp.eq.f32.partialorder %v14708_v13, %v16519_v61 }
 0x563   :  { %13116 = vmatpush1.bf16.msk.msra.mxu0 %vm13115_vm13, %v21152_v52  ;;  %vm3542_vm13 = vcmp.eq.f32.partialorder %v14701_v10, %v16505_v54 }
 0x564   :  { %13118 = vmatprep.subr.msk.bf16.mxu0 %vm13117_vm1, %v21152_v52  ;;  %vm3548_vm1 = vcmp.eq.f32.partialorder %v14701_v10, %v16508_v59 }
 0x565   :  { %vm13145_vm0 = vmpackc.low %vm3548_vm1, %vm3542_vm13  ;;  %vm3565_vm1 = vcmp.eq.f32.partialorder %v14708_v13, %v21393_v1 }
 0x567   :  { %13120 = vmatpush1.bf16.msk.msra.mxu0 %vm13119_vm9, %v21152_v52  ;;  %vm3547_vm9 = vcmp.eq.f32.partialorder %v14708_v13, %v16508_v59 }
 0x568   :  { %13122 = vmatprep.subr.msk.bf16.mxu0 %vm13121_vm3, %v21152_v52  ;;  %vm3554_vm3 = vcmp.eq.f32.partialorder %v14701_v10, %v16519_v61  ;;  %vm13147_vm14 = vmpackc.low %vm3547_vm9, %vm3541_vm5 }
 0x569   :  { %vm13149_vm12 = vmpackc.low %vm3560_vm10, %vm3554_vm3  ;;  %vm3531_vm3 = vcmp.eq.f32.partialorder %v14843_v43, %v16475_v60  ;;  %vm3537_vm10 = vcmp.eq.f32.partialorder %v14843_v43, %v16486_v62 }
 0x56b   :  { %13124 = vmatpush1.bf16.msk.msra.mxu0 %vm13123_vm11, %v21152_v52  ;;  %vm3559_vm11 = vcmp.eq.f32.partialorder %v14708_v13, %v21392_v21 }
 0x56c   :  { %13142 = vmatprep.subr.msk.bf16.mxu0 %vm13141_vm8, %v21152_v52  ;;  %vm3566_vm8 = vcmp.eq.f32.partialorder %v14701_v10, %v21393_v1  ;;  %vm13151_vm7 = vmpackc.low %vm3559_vm11, %vm3553_vm2  ;;  %vm21395_vm2 = vcmask 523264  }
 0x56d   :  { %vm13153_vm13 = vmpackc.low %vm3572_vm4, %vm3566_vm8  ;;  %vm3543_vm4 = vcmp.eq.f32.partialorder %v14843_v43, %v16505_v54 }
 0x56e   :  { %11243 = vmatmul.mubr.msk.f32.vlgmr.msra.gmra.mrb[22].mxu0 %vm21391_vm6, %v16526_v37  ;;  %vm3571_vm6 = vcmp.eq.f32.partialorder %v14708_v13, %v21394_v9  ;;  %vm13159_vm11 = vmpackc.low %vm3537_vm10, %vm3531_vm3  ;;  %vm3574_vm3 = vcmp.eq.f32.partialorder %v14761_v28, %v21394_v9  ;;  %v21429_v37 = vld [vmem:[#allocation78_spill] sm:$0xff] }
 0x56f   :  { %13144 = vmatpush1.bf16.msk.msra.mxu0 %vm13143_vm15, %v21152_v52  ;;  %3692 = vmatprep.mubr.f32.mxu0 %v21153_v31  ;;  %vm3532_vm15 = vcmp.eq.f32.partialorder %v14761_v28, %v16475_v60  ;;  %vm13155_vm5 = vmpackc.low %vm3571_vm6, %vm3565_vm1  ;;  %vm3562_vm1 = vcmp.eq.f32.partialorder %v14761_v28, %v21392_v21  ;;  %v21414_v60 = vld [vmem:[#allocation71_spill] sm:$0xff] }
 0x570   :  { %13146 = vmatprep.subr.msk.bf16.mxu0 %vm13145_vm0, %v21152_v52  ;;  %vm3538_vm0 = vcmp.eq.f32.partialorder %v14761_v28, %v16486_v62  ;;  %v21420_v62 = vld [vmem:[#allocation74_spill] sm:$0xff] }
 0x571   :  { %vm13157_vm9 = vmpackc.low %vm3538_vm0, %vm3532_vm15  ;;  %vm3555_vm0 = vcmp.eq.f32.partialorder %v14843_v43, %v16519_v61 }
 0x573   :  { %13148 = vmatpush1.bf16.msk.msra.mxu0 %vm13147_vm14, %v21152_v52  ;;  %vm3544_vm14 = vcmp.eq.f32.partialorder %v14761_v28, %v16505_v54  ;;  %v21422_v54 = vld [vmem:[#allocation75_spill] sm:$0xff] }
 0x574   :  { %13150 = vmatprep.subr.msk.bf16.mxu0 %vm13149_vm12, %v21152_v52  ;;  %vm3550_vm12 = vcmp.eq.f32.partialorder %v14761_v28, %v16508_v59 }
 0x575   :  { %vm13161_vm8 = vmpackc.low %vm3550_vm12, %vm3544_vm14  ;;  %vm3567_vm12 = vcmp.eq.f32.partialorder %v14843_v43, %v21393_v1 }
 0x577   :  { %13152 = vmatpush1.bf16.msk.msra.mxu0 %vm13151_vm7, %v21152_v52  ;;  %vm3549_vm7 = vcmp.eq.f32.partialorder %v14843_v43, %v16508_v59  ;;  %v21425_v59 = vld [vmem:[#allocation76_spill] sm:$0xff] }
 0x578   :  { %13154 = vmatprep.subr.msk.bf16.mxu0 %vm13153_vm13, %v21152_v52  ;;  %vm3556_vm13 = vcmp.eq.f32.partialorder %v14761_v28, %v16519_v61  ;;  %vm13163_vm6 = vmpackc.low %vm3549_vm7, %vm3543_vm4  ;;  %v21427_v61 = vld [vmem:[#allocation77_spill] sm:$0xff] }
 0x579   :  { %vm13165_vm15 = vmpackc.low %vm3562_vm1, %vm3556_vm13  ;;  %vm3857_vm13 = vcmp.eq.f32.partialorder %v14708_v13, %v21396_v11  ;;  %vm3863_vm1 = vcmp.eq.f32.partialorder %v14708_v13, %v21397_v25 }
 0x57b   :  { %13156 = vmatpush1.bf16.msk.msra.mxu0 %vm13155_vm5, %v21152_v52  ;;  %vm3561_vm5 = vcmp.eq.f32.partialorder %v14843_v43, %v21392_v21  ;;  %v21536_v21 = vmov 0 }
 0x57c   :  { %13158 = vmatprep.subr.msk.bf16.mxu0 %vm13157_vm9, %v21152_v52  ;;  %vm3568_vm9 = vcmp.eq.f32.partialorder %v14761_v28, %v21393_v1  ;;  %vm13167_vm10 = vmpackc.low %vm3561_vm5, %vm3555_vm0  ;;  %vm21399_vm0 = vcmask 523264  }
 0x57d   :  { %vm13169_vm14 = vmpackc.low %vm3574_vm3, %vm3568_vm9  ;;  %vm3869_vm3 = vcmp.eq.f32.partialorder %v14708_v13, %v16595_v26 }
 0x57e   :  { %11277 = vmatmul.mubr.msk.f32.vlgmr.msra.gmra.mrb[20].mxu0 %vm21395_vm2, %v15782_v56  ;;  %vm3573_vm2 = vcmp.eq.f32.partialorder %v14843_v43, %v21394_v9  ;;  %vm13191_vm5 = vmpackc.low %vm3863_vm1, %vm3857_vm13 }
 0x57f   :  { %13160 = vmatpush1.bf16.msk.msra.mxu0 %vm13159_vm11, %v21152_v52  ;;  %3763 = vmatprep.mubr.f32.mxu0 %v21153_v31  ;;  %vm3858_vm11 = vcmp.eq.f32.partialorder %v14701_v10, %v21396_v11  ;;  %vm13171_vm4 = vmpackc.low %vm3573_vm2, %vm3567_vm12  ;;  %vm3888_vm12 = vcmp.eq.f32.partialorder %v14701_v10, %v21401_v34 }
 0x580   :  { %13162 = vmatprep.subr.msk.bf16.mxu0 %vm13161_vm8, %v21152_v52  ;;  %vm3864_vm8 = vcmp.eq.f32.partialorder %v14701_v10, %v21397_v25 }
 0x581   :  { %vm13189_vm7 = vmpackc.low %vm3864_vm8, %vm3858_vm11  ;;  %vm3881_vm8 = vcmp.eq.f32.partialorder %v14708_v13, %v21400_v27 }
 0x583   :  { %13164 = vmatpush1.bf16.msk.msra.mxu0 %vm13163_vm6, %v21152_v52  ;;  %vm3870_vm6 = vcmp.eq.f32.partialorder %v14701_v10, %v16595_v26 }
 0x584   :  { %13166 = vmatprep.subr.msk.bf16.mxu0 %vm13165_vm15, %v21152_v52  ;;  %vm3876_vm15 = vcmp.eq.f32.partialorder %v14701_v10, %v21398_v24 }
 0x585   :  { %vm13193_vm9 = vmpackc.low %vm3876_vm15, %vm3870_vm6  ;;  %vm3893_vm15 = vcmp.eq.f32.partialorder %v14708_v13, %v16643_v49 }
 0x587   :  { %13168 = vmatpush1.bf16.msk.msra.mxu0 %vm13167_vm10, %v21152_v52  ;;  %vm3875_vm10 = vcmp.eq.f32.partialorder %v14708_v13, %v21398_v24 }
 0x588   :  { %13170 = vmatprep.subr.msk.bf16.mxu0 %vm13169_vm14, %v21152_v52  ;;  %vm3882_vm14 = vcmp.eq.f32.partialorder %v14701_v10, %v21400_v27  ;;  %vm13195_vm2 = vmpackc.low %vm3875_vm10, %vm3869_vm3 }
 0x589   :  { %vm13197_vm11 = vmpackc.low %vm3888_vm12, %vm3882_vm14  ;;  %vm3859_vm14 = vcmp.eq.f32.partialorder %v14843_v43, %v21396_v11  ;;  %vm3865_vm12 = vcmp.eq.f32.partialorder %v14843_v43, %v21397_v25 }
 0x58b   :  { %13172 = vmatpush1.bf16.msk.msra.mxu0 %vm13171_vm4, %v21152_v52  ;;  %vm3887_vm4 = vcmp.eq.f32.partialorder %v14708_v13, %v21401_v34 }
 0x58c   :  { %13190 = vmatprep.subr.msk.bf16.mxu0 %vm13189_vm7, %v21152_v52  ;;  %vm3894_vm7 = vcmp.eq.f32.partialorder %v14701_v10, %v16643_v49  ;;  %vm13199_vm1 = vmpackc.low %vm3887_vm4, %vm3881_vm8  ;;  %vm21403_vm8 = vcmask 523264  }
 0x58d   :  { %vm13207_vm4 = vmpackc.low %vm3865_vm12, %vm3859_vm14 }
 0x58e   :  { %11294 = vmatmul.mubr.msk.f32.vlgmr.msra.gmra.mrb[22].mxu0 %vm21399_vm0, %v15782_v56  ;;  %v21402_v56 = vld [vmem:[#allocation28_spill] sm:$0xff] }
 0x58f   :  { %13192 = vmatpush1.bf16.msk.msra.mxu0 %vm13191_vm5, %v21152_v52  ;;  %4020 = vmatprep.mubr.f32.mxu0 %v21153_v31  ;;  %vm3900_vm13 = vcmp.eq.f32.partialorder %v14701_v10, %v21402_v56  ;;  %vm3899_vm0 = vcmp.eq.f32.partialorder %v14708_v13, %v21402_v56  ;;  %vm3860_vm5 = vcmp.eq.f32.partialorder %v14761_v28, %v21396_v11  ;;  %v18321_v11 = vadd.f32 7.0, %v17408_v12 }
 0x590   :  { %13194 = vmatprep.subr.msk.bf16.mxu0 %vm13193_vm9, %v21152_v52  ;;  %vm13201_vm6 = vmpackc.low %vm3900_vm13, %vm3894_vm7  ;;  %vm3866_vm9 = vcmp.eq.f32.partialorder %v14761_v28, %v21397_v25  ;;  %vm3871_vm13 = vcmp.eq.f32.partialorder %v14843_v43, %v16595_v26  ;;  %vm3902_vm14 = vcmp.eq.f32.partialorder %v14761_v28, %v21402_v56 }
 0x591   :  { %vm13203_vm3 = vmpackc.low %vm3899_vm0, %vm3893_vm15  ;;  %vm3890_vm15 = vcmp.eq.f32.partialorder %v14761_v28, %v21401_v34 }
 0x592   :  { %vm13205_vm10 = vmpackc.low %vm3866_vm9, %vm3860_vm5  ;;  %vm3883_vm9 = vcmp.eq.f32.partialorder %v14843_v43, %v21400_v27 }
 0x593   :  { %13196 = vmatpush1.bf16.msk.msra.mxu0 %vm13195_vm2, %v21152_v52  ;;  %vm3872_vm2 = vcmp.eq.f32.partialorder %v14761_v28, %v16595_v26  ;;  %v21431_v26 = vld [vmem:[#allocation79_spill] sm:$0xff] }
 0x594   :  { %13198 = vmatprep.subr.msk.bf16.mxu0 %vm13197_vm11, %v21152_v52  ;;  %vm3878_vm11 = vcmp.eq.f32.partialorder %v14761_v28, %v21398_v24 }
 0x595   :  { %vm13209_vm7 = vmpackc.low %vm3878_vm11, %vm3872_vm2  ;;  %vm3895_vm11 = vcmp.eq.f32.partialorder %v14843_v43, %v16643_v49 }
 0x597   :  { %13200 = vmatpush1.bf16.msk.msra.mxu0 %vm13199_vm1, %v21152_v52  ;;  %vm3877_vm1 = vcmp.eq.f32.partialorder %v14843_v43, %v21398_v24  ;;  %v21564_v24 = vmov 0 }
 0x598   :  { %13202 = vmatprep.subr.msk.bf16.mxu0 %vm13201_vm6, %v21152_v52  ;;  %vm3884_vm6 = vcmp.eq.f32.partialorder %v14761_v28, %v21400_v27  ;;  %vm13211_vm0 = vmpackc.low %vm3877_vm1, %vm3871_vm13 }
 0x599   :  { %vm13213_vm5 = vmpackc.low %vm3890_vm15, %vm3884_vm6  ;;  %vm4185_vm6 = vcmp.eq.f32.partialorder %v14708_v13, %v16676_v23  ;;  %vm4191_vm15 = vcmp.eq.f32.partialorder %v14708_v13, %v16680_v36 }
 0x59b   :  { %13204 = vmatpush1.bf16.msk.msra.mxu0 %vm13203_vm3, %v21152_v52  ;;  %vm3889_vm3 = vcmp.eq.f32.partialorder %v14843_v43, %v21401_v34  ;;  %v17873_v34 = vadd.f32 1.0, %v17408_v12 }
 0x59c   :  { %13206 = vmatprep.subr.msk.bf16.mxu0 %vm13205_vm10, %v21152_v52  ;;  %vm3896_vm10 = vcmp.eq.f32.partialorder %v14761_v28, %v16643_v49  ;;  %vm13215_vm12 = vmpackc.low %vm3889_vm3, %vm3883_vm9  ;;  %vm4197_vm9 = vcmp.eq.f32.partialorder %v14708_v13, %v16692_v53  ;;  %vm4203_vm3 = vcmp.eq.f32.partialorder %v14708_v13, %v16704_v48  ;;  %v17405_v49 = vmul.f32 14.0, %v14487_v39 }
 0x59d   :  { %vm13217_vm2 = vmpackc.low %vm3902_vm14, %vm3896_vm10  ;;  %vm21404_vm10 = vcmask 523264   ;;  %v17422_v39 = vmul.f32 14.0, %v14683_v2  ;;  %v21407_v2 = vld [vmem:[#allocation68_spill] sm:$0xff] }
 0x59e   :  { %11328 = vmatmul.mubr.msk.f32.vlgmr.msra.gmra.mrb[20].mxu0 %vm21403_vm8, %v16719_v20  ;;  %vm3901_vm8 = vcmp.eq.f32.partialorder %v14843_v43, %v21402_v56  ;;  %vm13239_vm14 = vmpackc.low %vm4191_vm15, %vm4185_vm6  ;;  %vm21406_vm6 = vnez %v21405_v22  ;;  %v17870_v27 = vadd.f32 1.0, %v17405_v49  ;;  %v17882_v22 = vadd.f32 5.0, %v17405_v49 }
 0x59f   :  { %13208 = vmatpush1.bf16.msk.msra.mxu0 %vm13207_vm4, %v21152_v52  ;;  %4091 = vmatprep.mubr.f32.mxu0 %v21153_v31  ;;  %vm4186_vm4 = vcmp.eq.f32.partialorder %v14701_v10, %v16676_v23  ;;  %vm13219_vm13 = vmpackc.low %vm3901_vm8, %vm3895_vm11  ;;  %vm5510_vm11 = vcmp.eq.f32.partialorder %v14701_v10, %v17405_v49  ;;  %vm5516_vm8 = vcmp.eq.f32.partialorder %v14701_v10, %v17408_v12  ;;  %v18318_v1 = vadd.f32 7.0, %v17405_v49 }
 0x5a0   :  { %13210 = vmatprep.subr.msk.bf16.mxu0 %vm13209_vm7, %v21152_v52  ;;  %vm4192_vm7 = vcmp.eq.f32.partialorder %v14701_v10, %v16680_v36  ;;  %vm5522_vm15 = vcmp.eq.f32.partialorder %v14701_v10, %v17422_v39  ;;  %v21519_v56 = vmov 0 }
 0x5a1   :  { %vm13237_vm1 = vmpackc.low %vm4192_vm7, %vm4186_vm4  ;;  %vm5509_vm7 = vcmp.eq.f32.partialorder %v14708_v13, %v17405_v49 }
 0x5a2   :  { %vm13429_vm4 = vmpackc.low %vm5516_vm8, %vm5510_vm11  ;;  %vm21412_vm8 = vnez %v21411_v35  ;;  %v17894_v35 = vadd.f32 1.0, %v17422_v39 }
 0x5a3   :  { %13212 = vmatpush1.bf16.msk.msra.mxu0 %vm13211_vm0, %v21152_v52  ;;  %vm4198_vm0 = vcmp.eq.f32.partialorder %v14701_v10, %v16692_v53  ;;  %13430 = vmatprep.subr.msk.bf16.mxu1 %vm13429_vm4, %v21152_v52 }
 0x5a4   :  { %13214 = vmatprep.subr.msk.bf16.mxu0 %vm13213_vm5, %v21152_v52  ;;  %vm4204_vm5 = vcmp.eq.f32.partialorder %v14701_v10, %v16704_v48 }
 0x5a7   :  { %13216 = vmatpush1.bf16.msk.msra.mxu0 %vm13215_vm12, %v21152_v52  ;;  %vm13241_vm12 = vmpackc.low %vm4204_vm5, %vm4198_vm0  ;;  %vm5528_vm0 = vcmp.eq.f32.partialorder %v14701_v10, %v17425_v41 }
 0x5a8   :  { %13218 = vmatprep.subr.msk.bf16.mxu0 %vm13217_vm2, %v21152_v52  ;;  %vm13243_vm2 = vmpackc.low %vm4203_vm3, %vm4197_vm9  ;;  %vm5521_vm9 = vcmp.eq.f32.partialorder %v14708_v13, %v17422_v39  ;;  %vm5527_vm3 = vcmp.eq.f32.partialorder %v14708_v13, %v17425_v41 }
 0x5a9   :  { %vm13433_vm5 = vmpackc.low %vm5528_vm0, %vm5522_vm15  ;;  %vm5534_vm15 = vcmp.eq.f32.partialorder %v14701_v10, %v17453_v50  ;;  %vm5540_vm0 = vcmp.eq.f32.partialorder %v14701_v10, %v17456_v58 }
 0x5aa   :  { %vm13435_vm11 = vmpackc.low %vm5527_vm3, %vm5521_vm9  ;;  %vm5533_vm9 = vcmp.eq.f32.partialorder %v14708_v13, %v17453_v50  ;;  %vm5539_vm3 = vcmp.eq.f32.partialorder %v14708_v13, %v17456_v58 }
 0x5ab   :  { %13220 = vmatpush1.bf16.msk.msra.mxu0 %vm13219_vm13, %v21152_v52  ;;  %vm5515_vm13 = vcmp.eq.f32.partialorder %v14708_v13, %v17408_v12 }
 0x5ac   :  { %13238 = vmatprep.subr.msk.bf16.mxu0 %vm13237_vm1, %v21152_v52  ;;  %vm13431_vm1 = vmpackc.low %vm5515_vm13, %vm5509_vm7  ;;  %vm4187_vm7 = vcmp.eq.f32.partialorder %v14843_v43, %v16676_v23  ;;  %vm4193_vm13 = vcmp.eq.f32.partialorder %v14843_v43, %v16680_v36 }
 0x5ad   :  { %13432 = vmatpush1.bf16.xpose.msk.msra.mxu1 %vm13431_vm1, %v21152_v52  ;;  %vm4200_vm1 = vcmp.eq.f32.partialorder %v14761_v28, %v16692_v53 }
 0x5ae   :  { %11345 = vmatmul.mubr.msk.f32.vlgmr.msra.gmra.mrb[22].mxu0 %vm21404_vm10, %v16719_v20  ;;  %13434 = vmatprep.subr.msk.bf16.mxu1 %vm13433_vm5, %v21152_v52  ;;  %vm21408_vm10 = vnez %v21407_v2  ;;  %vm13437_vm5 = vmpackc.low %vm5540_vm0, %vm5534_vm15  ;;  %vm5545_vm15 = vcmp.eq.f32.partialorder %v14708_v13, %v17490_v6  ;;  %vm5551_vm0 = vcmp.eq.f32.partialorder %v14708_v13, %v17493_v7  ;;  %v21442_v20 = vld [vmem:[#allocation86_spill] sm:$0xff]  ;;  %v17885_v2 = vadd.f32 5.0, %v17408_v12 }
 0x5af   :  { %13240 = vmatpush1.bf16.msk.msra.mxu0 %vm13239_vm14, %v21152_v52  ;;  %4348 = vmatprep.mubr.f32.mxu0 %v21153_v31  ;;  %vm21410_vm14 = vnez %v21409_v3  ;;  %v21525_v3 = vmov 0 }
 0x5b0   :  { %13242 = vmatprep.subr.msk.bf16.mxu0 %vm13241_vm12, %v21152_v52  ;;  %vm4188_vm12 = vcmp.eq.f32.partialorder %v14761_v28, %v16676_v23  ;;  %v21433_v23 = vld [vmem:[#allocation80_spill] sm:$0xff] }
 0x5b3   :  { %13244 = vmatpush1.bf16.msk.msra.mxu0 %vm13243_vm2, %v21152_v52  ;;  %vm4194_vm2 = vcmp.eq.f32.partialorder %v14761_v28, %v16680_v36  ;;  %v21435_v36 = vld [vmem:[#allocation81_spill] sm:$0xff] }
 0x5b4   :  { %13246 = vmatprep.subr.msk.bf16.mxu0 %vm21406_vm6, %v21152_v52  ;;  %vm13253_vm4 = vmpackc.low %vm4194_vm2, %vm4188_vm12  ;;  %vm4206_vm6 = vcmp.eq.f32.partialorder %v14761_v28, %v16704_v48  ;;  %vm4199_vm2 = vcmp.eq.f32.partialorder %v14843_v43, %v16692_v53  ;;  %v21438_v53 = vld [vmem:[#allocation82_spill] sm:$0xff] }
 0x5b5   :  { %13436 = vmatpush1.bf16.xpose.msk.msra.mxu1 %vm13435_vm11, %v21152_v52  ;;  %vm13257_vm12 = vmpackc.low %vm4206_vm6, %vm4200_vm1  ;;  %vm4205_vm11 = vcmp.eq.f32.partialorder %v14843_v43, %v16704_v48  ;;  %vm5552_vm1 = vcmp.eq.f32.partialorder %v14701_v10, %v17493_v7  ;;  %v21440_v48 = vld [vmem:[#allocation85_spill] sm:$0xff] }
 0x5b6   :  { %13438 = vmatprep.subr.msk.bf16.mxu1 %vm13437_vm5, %v21152_v52  ;;  %vm21417_vm5 = vnez %v21416_v8  ;;  %v18569_v8 = vadd.f32 7.0, %v17422_v39 }
 0x5b7   :  { %13248 = vmatpush1.bf16.msk.msra.mxu0 %vm21408_vm10, %v21152_v52  ;;  %vm21413_vm10 = vcmask 523264  }
 0x5b8   :  { %13250 = vmatprep.subr.msk.bf16.mxu0 %vm21410_vm14, %v21152_v52  ;;  %vm13255_vm14 = vmpackc.low %vm4193_vm13, %vm4187_vm7  ;;  %vm21415_vm7 = vnez %v21414_v60  ;;  %vm5546_vm13 = vcmp.eq.f32.partialorder %v14701_v10, %v17490_v6  ;;  %v17907_v60 = vadd.f32 1.0, %v17425_v41 }
 0x5b9   :  { %vm13441_vm6 = vmpackc.low %vm5552_vm1, %vm5546_vm13  ;;  %vm4531_vm13 = vcmp.eq.f32.partialorder %v14708_v13, %v16785_v45 }
 0x5bb   :  { %13252 = vmatpush1.bf16.msk.msra.mxu0 %vm21412_vm8, %v21152_v52  ;;  %vm13439_vm8 = vmpackc.low %vm5539_vm3, %vm5533_vm9  ;;  %vm21419_vm9 = vnez %v21418_v46  ;;  %v21485_v46 = vmov 0 }
 0x5bc   :  { %13254 = vmatprep.subr.msk.bf16.mxu0 %vm13253_vm4, %v21152_v52  ;;  %vm13259_vm4 = vmpackc.low %vm4205_vm11, %vm4199_vm2  ;;  %vm4532_vm2 = vcmp.eq.f32.partialorder %v14701_v10, %v16785_v45  ;;  %vm21424_vm11 = vcmask 523264  }
 0x5bd   :  { %13440 = vmatpush1.bf16.xpose.msk.msra.mxu1 %vm13439_vm8, %v21152_v52  ;;  %vm13443_vm3 = vmpackc.low %vm5551_vm0, %vm5545_vm15  ;;  %vm21426_vm8 = vnez %v21425_v59  ;;  %vm21430_vm15 = vnez %v21429_v37  ;;  %vm21432_vm0 = vnez %v21431_v26  ;;  %v21491_v59 = vmov 0 }
 0x5be   :  { %11379 = vmatmul.mubr.msk.f32.vlgmr.msra.gmra.mrb[20].mxu0 %vm21413_vm10, %v16800_v55  ;;  %13442 = vmatprep.subr.msk.bf16.mxu1 %vm13441_vm6, %v21152_v52  ;;  %vm21421_vm10 = vnez %v21420_v62  ;;  %vm21428_vm6 = vnez %v21427_v61  ;;  %v21487_v62 = vmov 0  ;;  %v21493_v61 = vmov 0 }
 0x5bf   :  { %13256 = vmatpush1.bf16.msk.msra.mxu0 %vm13255_vm14, %v21152_v52  ;;  %4419 = vmatprep.mubr.f32.mxu0 %v21153_v31  ;;  %vm21423_vm14 = vnez %v21422_v54  ;;  %v17968_v37 = vadd.f32 1.0, %v17453_v50  ;;  %v17971_v26 = vadd.f32 1.0, %v17456_v58  ;;  %v18598_v54 = vadd.f32 7.0, %v17456_v58 }
 0x5c0   :  { %13258 = vmatprep.subr.msk.bf16.mxu0 %vm13257_vm12, %v21152_v52  ;;  %vm4526_vm12 = vcmp.eq.f32.partialorder %v14701_v10, %v16773_v42 }
 0x5c3   :  { %13260 = vmatpush1.bf16.msk.msra.mxu0 %vm13259_vm4, %v21152_v52  ;;  %vm13289_vm4 = vmpackc.low %vm4532_vm2, %vm4526_vm12  ;;  %vm21439_vm12 = vnez %v21438_v53 }
 0x5c4   :  { %13262 = vmatprep.subr.msk.bf16.mxu0 %vm21415_vm7, %v21152_v52  ;;  %vm4525_vm7 = vcmp.eq.f32.partialorder %v14708_v13, %v16773_v42 }
 0x5c5   :  { %13444 = vmatpush1.bf16.xpose.msk.msra.mxu1 %vm13443_vm3, %v21152_v52  ;;  %vm13291_vm1 = vmpackc.low %vm4531_vm13, %vm4525_vm7  ;;  %vm4528_vm3 = vcmp.eq.f32.partialorder %v14761_v28, %v16773_v42  ;;  %vm21441_vm7 = vnez %v21440_v48  ;;  %vm21443_vm13 = vnez %v21442_v20  ;;  %v21499_v48 = vmov 0 }
 0x5c7   :  { %13264 = vmatpush1.bf16.msk.msra.mxu0 %vm21417_vm5, %v21152_v52  ;;  %vm21434_vm5 = vnez %v21433_v23  ;;  %v21530_v23 = vmov 0 }
 0x5c8   :  { %13266 = vmatprep.subr.msk.bf16.mxu0 %vm21419_vm9, %v21152_v52  ;;  %vm21436_vm9 = vnez %v21435_v36  ;;  %v21497_v36 = vmov 0 }
 0x5cb   :  { %13268 = vmatpush1.bf16.msk.msra.mxu0 %vm21421_vm10, %v21152_v52  ;;  %vm4534_vm10 = vcmp.eq.f32.partialorder %v14761_v28, %v16785_v45 }
 0x5cc   :  { %13286 = vmatprep.subr.msk.bf16.mxu0 %vm21423_vm14, %v21152_v52  ;;  %vm21437_vm14 = vmmov %vm21424_vm11 }
 0x5cd   :  { %vm13305_vm2 = vmpackc.low %vm4534_vm10, %vm4528_vm3  ;;  %vm4847_vm3 = vcmp.eq.f32.partialorder %v14708_v13, %v16850_v38 }
 0x5ce   :  { %11396 = vmatmul.mubr.msk.f32.vlgmr.msra.gmra.mrb[22].mxu0 %vm21424_vm11, %v16800_v55  ;;  %vm4527_vm11 = vcmp.eq.f32.partialorder %v14843_v43, %v16773_v42  ;;  %v21444_v42 = vld [vmem:[#allocation87_spill] sm:$0xff]  ;;  %vm21448_vm10 = vmmov %vm21437_vm14 }
 0x5cf   :  { %13288 = vmatpush1.bf16.msk.msra.mxu0 %vm21426_vm8, %v21152_v52  ;;  %4676 = vmatprep.mubr.f32.mxu0 %v21153_v31  ;;  %vm4533_vm8 = vcmp.eq.f32.partialorder %v14843_v43, %v16785_v45  ;;  %v21446_v45 = vld [vmem:[#allocation90_spill] sm:$0xff]  ;;  %v21449_v55 = vld [vmem:[#allocation91_spill] sm:$0xff] }
 0x5d0   :  { %13290 = vmatprep.subr.msk.bf16.mxu0 %vm13289_vm4, %v21152_v52  ;;  %vm13307_vm4 = vmpackc.low %vm4533_vm8, %vm4527_vm11  ;;  %vm4872_vm11 = vcmp.eq.f32.partialorder %v14701_v10, %v16903_v4  ;;  %vm21452_vm8 = vnez %v21451_v33  ;;  %v14393_v33 = vmov 3  }
 0x5d1   :  { %14334 = vset.pattern.permute.xlu0 %v14393_v33  ;;  %v18414_v33 = vadd.f32 2.0, %v17456_v58 }
 0x5d3   :  { %13292 = vmatpush1.bf16.msk.msra.mxu0 %vm13291_vm1, %v21152_v52  ;;  %vm21445_vm1 = vnez %v21444_v42  ;;  %v18026_v42 = vadd.f32 1.0, %v17490_v6 }
 0x5d4   :  { %13294 = vmatprep.subr.msk.bf16.mxu0 %vm21428_vm6, %v21152_v52  ;;  %vm4842_vm6 = vcmp.eq.f32.partialorder %v14701_v10, %v16846_v44 }
 0x5d7   :  { %13296 = vmatpush1.bf16.msk.msra.mxu0 %vm21430_vm15, %v21152_v52  ;;  %vm4848_vm15 = vcmp.eq.f32.partialorder %v14701_v10, %v16850_v38 }
 0x5d8   :  { %13298 = vmatprep.subr.msk.bf16.mxu0 %vm21432_vm0, %v21152_v52  ;;  %vm21447_vm0 = vnez %v21446_v45  ;;  %v18029_v45 = vadd.f32 1.0, %v17493_v7 }
 0x5db   :  { %13300 = vmatpush1.bf16.msk.msra.mxu0 %vm21434_vm5, %v21152_v52  ;;  %vm13333_vm5 = vmpackc.low %vm4848_vm15, %vm4842_vm6  ;;  %vm4844_vm15 = vcmp.eq.f32.partialorder %v14761_v28, %v16846_v44 }
 0x5dc   :  { %13302 = vmatprep.subr.msk.bf16.mxu0 %vm21436_vm9, %v21152_v52  ;;  %vm4841_vm9 = vcmp.eq.f32.partialorder %v14708_v13, %v16846_v44 }
 0x5de   :  { %11430 = vmatmul.mubr.msk.f32.vlgmr.msra.gmra.mrb[20].mxu0 %vm21437_vm14, %v16895_v47  ;;  %vm13335_vm14 = vmpackc.low %vm4847_vm3, %vm4841_vm9  ;;  %vm4843_vm3 = vcmp.eq.f32.partialorder %v14843_v43, %v16846_v44  ;;  %v21460_v44 = vld [vmem:[#allocation96_spill] sm:$0xff] }
 0x5df   :  { %13304 = vmatpush1.bf16.msk.msra.mxu0 %vm21439_vm12, %v21152_v52  ;;  %4747 = vmatprep.mubr.f32.mxu0 %v21153_v31  ;;  %vm21450_vm12 = vnez %v21449_v55  ;;  %v18411_v55 = vadd.f32 2.0, %v17453_v50 }
 0x5e0   :  { %13306 = vmatprep.subr.msk.bf16.mxu0 %vm13305_vm2, %v21152_v52  ;;  %vm4866_vm2 = vcmp.eq.f32.partialorder %v14701_v10, %v16890_v18 }
 0x5e3   :  { %13308 = vmatpush1.bf16.msk.msra.mxu0 %vm13307_vm4, %v21152_v52  ;;  %vm13341_vm4 = vmpackc.low %vm4872_vm11, %vm4866_vm2  ;;  %vm21459_vm2 = vnez %v21458_v17  ;;  %vm4868_vm11 = vcmp.eq.f32.partialorder %v14761_v28, %v16890_v18  ;;  %v21505_v17 = vmov 0 }
 0x5e4   :  { %13310 = vmatprep.subr.msk.bf16.mxu0 %vm21441_vm7, %v21152_v52  ;;  %vm4865_vm7 = vcmp.eq.f32.partialorder %v14708_v13, %v16890_v18 }
 0x5e7   :  { %13312 = vmatpush1.bf16.msk.msra.mxu0 %vm21443_vm13, %v21152_v52  ;;  %vm4871_vm13 = vcmp.eq.f32.partialorder %v14708_v13, %v16903_v4 }
 0x5e8   :  { %13314 = vmatprep.subr.msk.bf16.mxu0 %vm21445_vm1, %v21152_v52  ;;  %vm13343_vm1 = vmpackc.low %vm4871_vm13, %vm4865_vm7  ;;  %vm4867_vm13 = vcmp.eq.f32.partialorder %v14843_v43, %v16890_v18  ;;  %v21464_v18 = vld [vmem:[#allocation98_spill] sm:$0xff] }
 0x5eb   :  { %13316 = vmatpush1.bf16.msk.msra.mxu0 %vm21447_vm0, %v21152_v52  ;;  %vm4850_vm0 = vcmp.eq.f32.partialorder %v14761_v28, %v16850_v38 }
 0x5ec   :  { %13334 = vmatprep.subr.msk.bf16.mxu0 %vm13333_vm5, %v21152_v52  ;;  %vm21456_vm5 = vnez %v21455_v19  ;;  %vm13349_vm9 = vmpackc.low %vm4850_vm0, %vm4844_vm15  ;;  %vm5170_vm0 = vcmp.eq.f32.partialorder %v14701_v10, %v16974_v40  ;;  %v18068_v19 = vld [vmem:[%s20790_s2 + $0x86] sm:$0x7f] }
 0x5ed   :  { %6789 = vperm.xlu0 %14334, %v18068_v19  }
 0x5ee   :  { %11447 = vmatmul.mubr.msk.f32.vlgmr.msra.gmra.mrb[22].mxu0 %vm21448_vm10, %v16895_v47  ;;  %v21453_v47 = vld [vmem:[#allocation93_spill] sm:$0xff]  ;;  %vm4849_vm10 = vcmp.eq.f32.partialorder %v14843_v43, %v16850_v38 }
 0x5ef   :  { %13336 = vmatpush1.bf16.msk.msra.mxu0 %vm13335_vm14, %v21152_v52  ;;  %5004 = vmatprep.mubr.f32.mxu0 %v21153_v31  ;;  %vm21454_vm6 = vnez %v21453_v47  ;;  %vm21457_vm14 = vcmask 523264   ;;  %v21462_v38 = vld [vmem:[#allocation97_spill] sm:$0xff]  ;;  %v21503_v47 = vmov 0 }
 0x5f0   :  { %13338 = vmatprep.subr.msk.bf16.mxu0 %vm21450_vm12, %v21152_v52  ;;  %vm13351_vm12 = vmpackc.low %vm4849_vm10, %vm4843_vm3  ;;  %vm21463_vm15 = vnez %v21462_v38  ;;  %vm5169_vm10 = vcmp.eq.f32.partialorder %v14708_v13, %v16974_v40  ;;  %v18168_v38 = vadd.f32 5.0, %v17425_v41 }
 0x5f3   :  { %13340 = vmatpush1.bf16.msk.msra.mxu0 %vm21452_vm8, %v21152_v52  ;;  %vm4874_vm8 = vcmp.eq.f32.partialorder %v14761_v28, %v16903_v4 }
 0x5f4   :  { %13342 = vmatprep.subr.msk.bf16.mxu0 %vm13341_vm4, %v21152_v52  ;;  %vm21461_vm4 = vnez %v21460_v44  ;;  %vm13357_vm7 = vmpackc.low %vm4874_vm8, %vm4868_vm11  ;;  %vm21466_vm11 = vcmask 523264   ;;  %v18165_v44 = vadd.f32 5.0, %v17422_v39 }
 0x5f7   :  { %13344 = vmatpush1.bf16.msk.msra.mxu0 %vm13343_vm1, %v21152_v52  ;;  %vm4873_vm1 = vcmp.eq.f32.partialorder %v14843_v43, %v16903_v4 }
 0x5f8   :  { %13346 = vmatprep.subr.msk.bf16.mxu0 %vm21454_vm6, %v21152_v52  ;;  %vm13359_vm6 = vmpackc.low %vm4873_vm1, %vm4867_vm13  ;;  %vm5187_vm13 = vcmp.eq.f32.partialorder %v14708_v13, %v17009_v14  ;;  %vm5194_vm1 = vcmp.eq.f32.partialorder %v14701_v10, %v17027_v15 }
 0x5fb   :  { %13348 = vmatpush1.bf16.msk.msra.mxu0 %vm21456_vm5, %v21152_v52  ;;  %vm5176_vm5 = vcmp.eq.f32.partialorder %v14701_v10, %v16978_v16 }
 0x5fc   :  { %13350 = vmatprep.subr.msk.bf16.mxu0 %vm13349_vm9, %v21152_v52  ;;  %vm21465_vm9 = vnez %v21464_v18  ;;  %vm13381_vm3 = vmpackc.low %vm5176_vm5, %vm5170_vm0  ;;  %vm5193_vm5 = vcmp.eq.f32.partialorder %v14708_v13, %v17027_v15  ;;  %v18191_v18 = vadd.f32 5.0, %v17453_v50 }
 0x5fe   :  { %11481 = vmatmul.mubr.msk.f32.vlgmr.msra.gmra.mrb[20].mxu0 %vm21457_vm14, %v17032_v57  ;;  %vm5175_vm14 = vcmp.eq.f32.partialorder %v14708_v13, %v16978_v16 }
 0x5ff   :  { %13352 = vmatpush1.bf16.msk.msra.mxu0 %vm13351_vm12, %v21152_v52  ;;  %5075 = vmatprep.mubr.f32.mxu0 %v21153_v31  ;;  %vm5182_vm12 = vcmp.eq.f32.partialorder %v14701_v10, %v16999_v5  ;;  %vm13383_vm8 = vmpackc.low %vm5175_vm14, %vm5169_vm10  ;;  %vm5212_vm10 = vcmp.eq.f32.partialorder %v14701_v10, %v17081_v0 }
 0x600   :  { %13354 = vmatprep.subr.msk.bf16.mxu0 %vm21459_vm2, %v21152_v52  ;;  %vm5188_vm2 = vcmp.eq.f32.partialorder %v14701_v10, %v17009_v14 }
 0x603   :  { %13356 = vmatpush1.bf16.msk.msra.mxu0 %vm21461_vm4, %v21152_v52  ;;  %vm13385_vm4 = vmpackc.low %vm5188_vm2, %vm5182_vm12  ;;  %vm5205_vm2 = vcmp.eq.f32.partialorder %v14708_v13, %v17077_v32 }
 0x604   :  { %13358 = vmatprep.subr.msk.bf16.mxu0 %vm13357_vm7, %v21152_v52  ;;  %vm5181_vm7 = vcmp.eq.f32.partialorder %v14708_v13, %v16999_v5 }
 0x607   :  { %13360 = vmatpush1.bf16.msk.msra.mxu0 %vm13359_vm6, %v21152_v52  ;;  %vm5200_vm6 = vcmp.eq.f32.partialorder %v14701_v10, %v17040_v51 }
 0x608   :  { %13362 = vmatprep.subr.msk.bf16.mxu0 %vm21463_vm15, %v21152_v52  ;;  %vm13387_vm15 = vmpackc.low %vm5187_vm13, %vm5181_vm7 }
 0x609   :  { %vm13389_vm0 = vmpackc.low %vm5200_vm6, %vm5194_vm1  ;;  %vm5171_vm1 = vcmp.eq.f32.partialorder %v14843_v43, %v16974_v40  ;;  %vm5177_vm6 = vcmp.eq.f32.partialorder %v14843_v43, %v16978_v16 }
 0x60b   :  { %13364 = vmatpush1.bf16.msk.msra.mxu0 %vm21465_vm9, %v21152_v52  ;;  %vm5199_vm9 = vcmp.eq.f32.partialorder %v14708_v13, %v17040_v51 }
 0x60c   :  { %13382 = vmatprep.subr.msk.bf16.mxu0 %vm13381_vm3, %v21152_v52  ;;  %vm5206_vm3 = vcmp.eq.f32.partialorder %v14701_v10, %v17077_v32  ;;  %vm13391_vm14 = vmpackc.low %vm5199_vm9, %vm5193_vm5  ;;  %vm21467_vm5 = vcmask 523264  }
 0x60d   :  { %vm13393_vm12 = vmpackc.low %vm5212_vm10, %vm5206_vm3  ;;  %vm5183_vm10 = vcmp.eq.f32.partialorder %v14843_v43, %v16999_v5 }
 0x60e   :  { %11498 = vmatmul.mubr.msk.f32.vlgmr.msra.gmra.mrb[22].mxu0 %vm21466_vm11, %v17032_v57  ;;  %vm5211_vm11 = vcmp.eq.f32.partialorder %v14708_v13, %v17081_v0  ;;  %vm13399_vm9 = vmpackc.low %vm5177_vm6, %vm5171_vm1  ;;  %vm5214_vm1 = vcmp.eq.f32.partialorder %v14761_v28, %v17081_v0  ;;  %v17769_v57 = vadd.f32 3.0, %v17453_v50 }
 0x60f   :  { %13384 = vmatpush1.bf16.msk.msra.mxu0 %vm13383_vm8, %v21152_v52  ;;  %5332 = vmatprep.mubr.f32.mxu0 %v21153_v31  ;;  %vm5172_vm8 = vcmp.eq.f32.partialorder %v14761_v28, %v16974_v40  ;;  %vm13395_vm7 = vmpackc.low %vm5211_vm11, %vm5205_vm2  ;;  %vm5202_vm2 = vcmp.eq.f32.partialorder %v14761_v28, %v17040_v51 }
 0x610   :  { %13386 = vmatprep.subr.msk.bf16.mxu0 %vm13385_vm4, %v21152_v52  ;;  %vm5178_vm4 = vcmp.eq.f32.partialorder %v14761_v28, %v16978_v16  ;;  %v17725_v16 = vadd.f32 3.0, %v17405_v49 }
 0x611   :  { %vm13397_vm13 = vmpackc.low %vm5178_vm4, %vm5172_vm8  ;;  %vm5195_vm4 = vcmp.eq.f32.partialorder %v14843_v43, %v17027_v15 }
 0x613   :  { %13388 = vmatpush1.bf16.msk.msra.mxu0 %vm13387_vm15, %v21152_v52  ;;  %vm5184_vm15 = vcmp.eq.f32.partialorder %v14761_v28, %v16999_v5  ;;  %v17728_v5 = vadd.f32 3.0, %v17408_v12 }
 0x614   :  { %13390 = vmatprep.subr.msk.bf16.mxu0 %vm13389_vm0, %v21152_v52  ;;  %vm5190_vm0 = vcmp.eq.f32.partialorder %v14761_v28, %v17009_v14 }
 0x615   :  { %vm13401_vm3 = vmpackc.low %vm5190_vm0, %vm5184_vm15  ;;  %vm6483_vm15 = vcmp.eq.f32.partialorder %v14701_v10, %v17725_v16  ;;  %vm6489_vm0 = vcmp.eq.f32.partialorder %v14701_v10, %v17728_v5 }
 0x617   :  { %13392 = vmatpush1.bf16.msk.msra.mxu0 %vm13391_vm14, %v21152_v52  ;;  %vm5189_vm14 = vcmp.eq.f32.partialorder %v14843_v43, %v17009_v14  ;;  %v17752_v14 = vadd.f32 3.0, %v17422_v39 }
 0x618   :  { %13394 = vmatprep.subr.msk.bf16.mxu0 %vm13393_vm12, %v21152_v52  ;;  %vm5196_vm12 = vcmp.eq.f32.partialorder %v14761_v28, %v17027_v15  ;;  %vm13403_vm11 = vmpackc.low %vm5189_vm14, %vm5183_vm10  ;;  %v17755_v15 = vadd.f32 3.0, %v17425_v41 }
 0x619   :  { %vm13405_vm8 = vmpackc.low %vm5202_vm2, %vm5196_vm12  ;;  %vm21468_vm12 = vcmask 523264   ;;  %vm6482_vm2 = vcmp.eq.f32.partialorder %v14708_v13, %v17725_v16 }
 0x61a   :  { %vm13573_vm10 = vmpackc.low %vm6489_vm0, %vm6483_vm15  ;;  %vm6507_vm15 = vcmp.eq.f32.partialorder %v14701_v10, %v17769_v57 }
 0x61b   :  { %13396 = vmatpush1.bf16.msk.msra.mxu0 %vm13395_vm7, %v21152_v52  ;;  %vm5201_vm7 = vcmp.eq.f32.partialorder %v14843_v43, %v17040_v51  ;;  %v17772_v51 = vadd.f32 3.0, %v17456_v58 }
 0x61c   :  { %13398 = vmatprep.subr.msk.bf16.mxu0 %vm13397_vm13, %v21152_v52  ;;  %vm5208_vm13 = vcmp.eq.f32.partialorder %v14761_v28, %v17077_v32  ;;  %vm13407_vm6 = vmpackc.low %vm5201_vm7, %vm5195_vm4  ;;  %vm6501_vm4 = vcmp.eq.f32.partialorder %v14701_v10, %v17755_v15 }
 0x61d   :  { %vm6513_vm0 = vcmp.eq.f32.partialorder %v14701_v10, %v17772_v51 }
 0x61e   :  { %11532 = vmatmul.mubr.msk.f32.vlgmr.msra.gmra.mrb[20].mxu0 %vm21467_vm5, %v17132_v63  ;;  %vm13409_vm5 = vmpackc.low %vm5214_vm1, %vm5208_vm13  ;;  %vm6494_vm1 = vcmp.eq.f32.partialorder %v14708_v13, %v17752_v14 }
 0x61f   :  { %13400 = vmatpush1.bf16.msk.msra.mxu0 %vm13399_vm9, %v21152_v52  ;;  %5403 = vmatprep.mubr.f32.mxu0 %v21153_v31  ;;  %vm5207_vm9 = vcmp.eq.f32.partialorder %v14843_v43, %v17077_v32  ;;  %v17785_v32 = vadd.f32 3.0, %v17490_v6  ;;  %v19308_v31 = vadd.f32 11.0, %v17493_v7 }
 0x620   :  { %13402 = vmatprep.subr.msk.bf16.mxu0 %vm13401_vm3, %v21152_v52  ;;  %vm5213_vm3 = vcmp.eq.f32.partialorder %v14843_v43, %v17081_v0  ;;  %v17788_v0 = vadd.f32 3.0, %v17493_v7 }
 0x621   :  { %vm13411_vm14 = vmpackc.low %vm5213_vm3, %vm5207_vm9  ;;  %vm6506_vm3 = vcmp.eq.f32.partialorder %v14708_v13, %v17769_v57 }
 0x622   :  { %v17720_v4 = vpop.f32.mrb[8].mxu1  ;;  %vm13581_vm9 = vmpackc.low %vm6513_vm0, %vm6507_vm15  ;;  %vm6491_vm15 = vcmp.eq.f32.partialorder %v14761_v28, %v17728_v5 }
 0x623   :  { %v17722_v40 = vpop.f32.mrb[9].mxu1  ;;  %13404 = vmatpush1.bf16.msk.msra.mxu0 %vm13403_vm11, %v21152_v52  ;;  %vm6488_vm11 = vcmp.eq.f32.partialorder %v14708_v13, %v17728_v5 }
 0x624   :  { %13406 = vmatprep.subr.msk.bf16.mxu0 %vm13405_vm8, %v21152_v52  ;;  %vm6495_vm8 = vcmp.eq.f32.partialorder %v14701_v10, %v17752_v14  ;;  %vm13575_vm7 = vmpackc.low %vm6488_vm11, %vm6482_vm2 }
 0x625   :  { %vm13577_vm13 = vmpackc.low %vm6501_vm4, %vm6495_vm8  ;;  %vm6518_vm8 = vcmp.eq.f32.partialorder %v14708_v13, %v17785_v32  ;;  %vm6524_vm4 = vcmp.eq.f32.partialorder %v14708_v13, %v17788_v0 }
 0x627   :  { %13408 = vmatpush1.bf16.msk.msra.mxu0 %vm13407_vm6, %v21152_v52  ;;  %vm6500_vm6 = vcmp.eq.f32.partialorder %v14708_v13, %v17755_v15 }
 0x628   :  { %13410 = vmatprep.subr.msk.bf16.mxu0 %vm13409_vm5, %v21152_v52  ;;  %vm13579_vm5 = vmpackc.low %vm6500_vm6, %vm6494_vm1  ;;  %vm5518_vm1 = vcmp.eq.f32.partialorder %v14761_v28, %v17408_v12  ;;  %vm6485_vm6 = vcmp.eq.f32.partialorder %v14761_v28, %v17725_v16 }
 0x62b   :  { %13412 = vmatpush1.bf16.msk.msra.mxu0 %vm13411_vm14, %v21152_v52  ;;  %vm6519_vm14 = vcmp.eq.f32.partialorder %v14701_v10, %v17785_v32 }
 0x62c   :  { %13574 = vmatprep.subr.msk.bf16.mxu0 %vm13573_vm10, %v21152_v52  ;;  %vm6512_vm10 = vcmp.eq.f32.partialorder %v14708_v13, %v17772_v51 }
 0x62d   :  { %vm13583_vm2 = vmpackc.low %vm6512_vm10, %vm6506_vm3  ;;  %vm5517_vm3 = vcmp.eq.f32.partialorder %v14843_v43, %v17408_v12  ;;  %vm6484_vm10 = vcmp.eq.f32.partialorder %v14843_v43, %v17725_v16 }
 0x62e   :  { %11549 = vmatmul.mubr.msk.f32.vlgmr.msra.gmra.mrb[22].mxu0 %vm21468_vm12, %v17132_v63  ;;  %vm6525_vm12 = vcmp.eq.f32.partialorder %v14701_v10, %v17788_v0  ;;  %v18311_v63 = vadd.f32 2.0, %v17408_v12 }
 0x62f   :  { %vm13585_vm11 = vmpackc.low %vm6525_vm12, %vm6519_vm14  ;;  %vm6490_vm14 = vcmp.eq.f32.partialorder %v14843_v43, %v17728_v5  ;;  %vm5524_vm12 = vcmp.eq.f32.partialorder %v14761_v28, %v17422_v39 }
 0x634   :  { %13576 = vmatpush1.bf16.xpose.msk.msra.mxu0 %vm13575_vm7, %v21152_v52  ;;  %vm13587_vm7 = vmpackc.low %vm6524_vm4, %vm6518_vm8  ;;  %vm6497_vm8 = vcmp.eq.f32.partialorder %v14761_v28, %v17752_v14  ;;  %vm6503_vm4 = vcmp.eq.f32.partialorder %v14761_v28, %v17755_v15 }
 0x635   :  { %13578 = vmatprep.subr.msk.bf16.mxu0 %vm13577_vm13, %v21152_v52  ;;  %vm5512_vm13 = vcmp.eq.f32.partialorder %v14761_v28, %v17405_v49 }
 0x636   :  { %vm13445_vm0 = vmpackc.low %vm5518_vm1, %vm5512_vm13  ;;  %vm5523_vm13 = vcmp.eq.f32.partialorder %v14843_v43, %v17422_v39  ;;  %vm5529_vm1 = vcmp.eq.f32.partialorder %v14843_v43, %v17425_v41 }
 0x637   :  { %13446 = vmatprep.subr.msk.bf16.mxu1 %vm13445_vm0, %v21152_v52  ;;  %vm6502_vm0 = vcmp.eq.f32.partialorder %v14843_v43, %v17755_v15 }
 0x63c   :  { %13580 = vmatpush1.bf16.xpose.msk.msra.mxu0 %vm13579_vm5, %v21152_v52  ;;  %vm13589_vm5 = vmpackc.low %vm6491_vm15, %vm6485_vm6  ;;  %vm6496_vm15 = vcmp.eq.f32.partialorder %v14843_v43, %v17752_v14 }
 0x63d   :  { %13582 = vmatprep.subr.msk.bf16.mxu0 %vm13581_vm9, %v21152_v52  ;;  %vm5511_vm9 = vcmp.eq.f32.partialorder %v14843_v43, %v17405_v49 }
 0x644   :  { %13584 = vmatpush1.bf16.xpose.msk.msra.mxu0 %vm13583_vm2, %v21152_v52  ;;  %vm5530_vm2 = vcmp.eq.f32.partialorder %v14761_v28, %v17425_v41 }
 0x645   :  { %13586 = vmatprep.subr.msk.bf16.mxu0 %vm13585_vm11, %v21152_v52  ;;  %vm17829_vm11 = vmpackc.low %vm5517_vm3, %vm5511_vm9  ;;  %vm5536_vm9 = vcmp.eq.f32.partialorder %v14761_v28, %v17453_v50  ;;  %vm5542_vm3 = vcmp.eq.f32.partialorder %v14761_v28, %v17456_v58 }
 0x646   :  { %vm17845_vm6 = vmpackc.low %vm5530_vm2, %vm5524_vm12  ;;  %vm5839_vm2 = vcmp.eq.f32.partialorder %v14768_v29, %v17870_v27 }
 0x647   :  { %vm17889_vm12 = vmpackc.low %vm5542_vm3, %vm5536_vm9  ;;  %vm7140_vm9 = vcmp.eq.f32.partialorder %v14775_v30, %v17885_v2  ;;  %vm6515_vm3 = vcmp.eq.f32.partialorder %v14761_v28, %v17772_v51 }
 0x64c   :  { %13588 = vmatpush1.bf16.xpose.msk.msra.mxu0 %vm13587_vm7, %v21152_v52  ;;  %vm17837_vm7 = vmpackc.low %vm6490_vm14, %vm6484_vm10 }
 0x64d   :  { %13590 = vmatprep.subr.msk.bf16.mxu0 %vm13589_vm5, %v21152_v52  ;;  %vm17855_vm5 = vmpackc.low %vm6503_vm4, %vm6497_vm8  ;;  %vm5845_vm8 = vcmp.eq.f32.partialorder %v14768_v29, %v17873_v34 }
 0x64e   :  { %vm17865_vm10 = vmpackc.low %vm5529_vm1, %vm5523_vm13  ;;  %vm7135_vm13 = vcmp.eq.f32.partialorder %v14768_v29, %v17882_v22  ;;  %vm7141_vm1 = vcmp.eq.f32.partialorder %v14768_v29, %v17885_v2 }
 0x64f   :  { %vm17877_vm14 = vmpackc.low %vm6502_vm0, %vm6496_vm15  ;;  %vm5844_vm15 = vcmp.eq.f32.partialorder %v14775_v30, %v17873_v34  ;;  %vm7134_vm0 = vcmp.eq.f32.partialorder %v14775_v30, %v17882_v22 }
 0x650   :  { %vm17909_vm4 = vmpackc.low %vm5845_vm8, %vm5839_vm2  ;;  %vm5851_vm2 = vcmp.eq.f32.partialorder %v14768_v29, %v17894_v35  ;;  %vm5857_vm8 = vcmp.eq.f32.partialorder %v14768_v29, %v17907_v60 }
 0x6f1   :  { %v17853_v9 = vpop.f32.mrb[20].mxu0 }
 0x6f2   :  { %v17863_v25 = vpop.f32.mrb[21].mxu0 }
 0x6f3   :  { %5669 = vmatprep.mubr.f32.mxu1 %v17863_v25  ;;  %6642 = vmatprep.mubr.f32.mxu0 %v17863_v25 }
 0x6f4   :  { %5670 = vmatmul.mubr.f32.vlgmr.msra.gmra.mrb[10].mxu1 %v17853_v9  ;;  %6643 = vmatmul.mubr.f32.vlgmr.msra.gmra.mrb[24].mxu0 %v17853_v9 }
 0x6f5   :  { %13448 = vmatpush1.bf16.xpose.msk.msra.mxu1 %vm17829_vm11, %v21152_v52  ;;  %13592 = vmatpush1.bf16.xpose.msk.msra.mxu0 %vm17837_vm7, %v21152_v52  ;;  %vm5838_vm11 = vcmp.eq.f32.partialorder %v14775_v30, %v17870_v27  ;;  %vm17925_vm7 = vmpackc.low %vm7141_vm1, %vm7135_vm13  ;;  %vm5850_vm1 = vcmp.eq.f32.partialorder %v14775_v30, %v17894_v35 }
 0x6f6   :  { %13450 = vmatprep.subr.msk.bf16.mxu1 %vm17845_vm6, %v21152_v52  ;;  %13594 = vmatprep.subr.msk.bf16.mxu0 %vm17855_vm5, %v21152_v52  ;;  %v21486_v46 = vsel %vm17925_vm7, 4294967295, %v21485_v46  ;;  %vm6509_vm6 = vcmp.eq.f32.partialorder %v14761_v28, %v17769_v57  ;;  %vm17939_vm5 = vmpackc.low %vm5844_vm15, %vm5838_vm11  ;;  %vm5856_vm7 = vcmp.eq.f32.partialorder %v14775_v30, %v17907_v60 }
 0x6f7   :  { %v21488_v62 = vsel %vm17939_vm5, 4294967295, %v21487_v62  ;;  %vm17947_vm13 = vmpackc.low %vm7140_vm9, %vm7134_vm0  ;;  %vm5535_vm5 = vcmp.eq.f32.partialorder %v14843_v43, %v17453_v50  ;;  %vm5541_vm0 = vcmp.eq.f32.partialorder %v14843_v43, %v17456_v58 }
 0x6f8   :  { %vm17955_vm11 = vmpackc.low %vm5857_vm8, %vm5851_vm2  ;;  %vm5548_vm2 = vcmp.eq.f32.partialorder %v14761_v28, %v17490_v6  ;;  %vm5554_vm8 = vcmp.eq.f32.partialorder %v14761_v28, %v17493_v7 }
 0x6f9   :  { %v21492_v59 = vsel %vm17955_vm11, 4294967295, %v21491_v59  ;;  %vm13597_vm15 = vmpackc.low %vm6515_vm3, %vm6509_vm6  ;;  %vm6514_vm6 = vcmp.eq.f32.partialorder %v14843_v43, %v17772_v51 }
 0x6fa   :  { %vm17963_vm9 = vmpackc.low %vm5856_vm7, %vm5850_vm1  ;;  %vm6508_vm7 = vcmp.eq.f32.partialorder %v14843_v43, %v17769_v57 }
 0x6fb   :  { %v21494_v61 = vsel %vm17963_vm9, 4294967295, %v21493_v61  ;;  %vm17987_vm3 = vmpackc.low %vm5541_vm0, %vm5535_vm5  ;;  %vm5868_vm5 = vcmp.eq.f32.partialorder %v14775_v30, %v17971_v26  ;;  %vm6521_vm0 = vcmp.eq.f32.partialorder %v14761_v28, %v17785_v32  ;;  %vm6527_vm9 = vcmp.eq.f32.partialorder %v14761_v28, %v17788_v0 }
 0x6fd   :  { %13452 = vmatpush1.bf16.xpose.msk.msra.mxu1 %vm17865_vm10, %v21152_v52  ;;  %13596 = vmatpush1.bf16.xpose.msk.msra.mxu0 %vm17877_vm14, %v21152_v52  ;;  %vm5863_vm10 = vcmp.eq.f32.partialorder %v14768_v29, %v17968_v37  ;;  %vm5869_vm14 = vcmp.eq.f32.partialorder %v14768_v29, %v17971_v26 }
 0x6fe   :  { %13454 = vmatprep.subr.msk.bf16.mxu1 %vm17889_vm12, %v21152_v52  ;;  %13598 = vmatprep.subr.msk.bf16.mxu0 %vm13597_vm15, %v21152_v52  ;;  %vm17999_vm1 = vmpackc.low %vm5869_vm14, %vm5863_vm10  ;;  %vm5862_vm12 = vcmp.eq.f32.partialorder %v14775_v30, %v17968_v37  ;;  %vm5553_vm14 = vcmp.eq.f32.partialorder %v14843_v43, %v17493_v7 }
 0x6ff   :  { %v21498_v36 = vsel %vm17999_vm1, 4294967295, %v21497_v36  ;;  %vm13599_vm15 = vmpackc.low %vm6514_vm6, %vm6508_vm7  ;;  %vm5547_vm6 = vcmp.eq.f32.partialorder %v14843_v43, %v17490_v6  ;;  %vm5842_vm1 = vcmp.eq.f32.partialorder %v14843_v43, %v17873_v34 }
 0x700   :  { %vm18013_vm11 = vmpackc.low %vm5868_vm5, %vm5862_vm12  ;;  %vm5875_vm12 = vcmp.eq.f32.partialorder %v14768_v29, %v18026_v42  ;;  %vm5514_vm5 = vcmp.eq.f32.partialorder %v14768_v29, %v17405_v49 }
 0x701   :  { %v18011_v53 = vpop.f32.mrb[22].mxu0  ;;  %v21500_v48 = vsel %vm18013_vm11, 4294967295, %v21499_v48  ;;  %vm13457_vm10 = vmpackc.low %vm5554_vm8, %vm5548_vm2  ;;  %vm6526_vm2 = vcmp.eq.f32.partialorder %v14843_v43, %v17788_v0  ;;  %vm6493_vm11 = vcmp.eq.f32.partialorder %v14768_v29, %v17728_v5 }
 0x702   :  { %v18017_v20 = vpop.f32.mrb[23].mxu0  ;;  %vm13601_vm7 = vmpackc.low %vm6527_vm9, %vm6521_vm0  ;;  %vm6520_vm9 = vcmp.eq.f32.partialorder %v14843_v43, %v17785_v32 }
 0x703   :  { %5739 = vmatprep.mubr.f32.mxu1 %v18017_v20  ;;  %6712 = vmatprep.mubr.f32.mxu0 %v18017_v20  ;;  %vm18041_vm8 = vmpackc.low %vm5553_vm14, %vm5547_vm6  ;;  %vm6487_vm14 = vcmp.eq.f32.partialorder %v14768_v29, %v17725_v16 }
 0x704   :  { %vm13603_vm6 = vmpackc.low %vm6526_vm2, %vm6520_vm9  ;;  %vm5513_vm9 = vcmp.eq.f32.partialorder %v14775_v30, %v17405_v49  ;;  %vm5519_vm2 = vcmp.eq.f32.partialorder %v14775_v30, %v17408_v12 }
 0x705   :  { %13456 = vmatpush1.bf16.xpose.msk.msra.mxu1 %vm17987_vm3, %v21152_v52  ;;  %13600 = vmatpush1.bf16.xpose.msk.msra.mxu0 %vm13599_vm15, %v21152_v52  ;;  %vm5881_vm3 = vcmp.eq.f32.partialorder %v14768_v29, %v18029_v45  ;;  %vm5520_vm15 = vcmp.eq.f32.partialorder %v14768_v29, %v17408_v12 }
 0x706   :  { %13458 = vmatprep.subr.msk.bf16.mxu1 %vm13457_vm10, %v21152_v52  ;;  %13602 = vmatprep.subr.msk.bf16.mxu0 %vm13601_vm7, %v21152_v52  ;;  %vm18053_vm0 = vmpackc.low %vm5881_vm3, %vm5875_vm12  ;;  %vm5874_vm10 = vcmp.eq.f32.partialorder %v14775_v30, %v18026_v42  ;;  %vm5880_vm7 = vcmp.eq.f32.partialorder %v14775_v30, %v18029_v45 }
 0x707   :  { %v21504_v47 = vsel %vm18053_vm0, 4294967295, %v21503_v47  ;;  %vm18071_vm12 = vmpackc.low %vm5880_vm7, %vm5874_vm10  ;;  %vm6505_vm7 = vcmp.eq.f32.partialorder %v14768_v29, %v17755_v15 }
 0x708   :  { %v21506_v17 = vsel %vm18071_vm12, 4294967295, %v21505_v17  ;;  %vm13461_vm3 = vmpackc.low %vm5520_vm15, %vm5514_vm5  ;;  %vm6486_vm5 = vcmp.eq.f32.partialorder %v14775_v30, %v17725_v16  ;;  %vm5532_vm15 = vcmp.eq.f32.partialorder %v14768_v29, %v17425_v41  ;;  %vm5537_vm12 = vcmp.eq.f32.partialorder %v14775_v30, %v17453_v50 }
 0x709   :  { %vm13605_vm0 = vmpackc.low %vm6493_vm11, %vm6487_vm14  ;;  %vm6492_vm11 = vcmp.eq.f32.partialorder %v14775_v30, %v17728_v5  ;;  %v18194_v16 = vadd.f32 5.0, %v17456_v58  ;;  %v18219_v5 = vadd.f32 5.0, %v17490_v6 }
 0x70a   :  { %vm13463_vm10 = vmpackc.low %vm5519_vm2, %vm5513_vm9  ;;  %vm5525_vm9 = vcmp.eq.f32.partialorder %v14775_v30, %v17422_v39  ;;  %vm5531_vm2 = vcmp.eq.f32.partialorder %v14775_v30, %v17425_v41 }
 0x70d   :  { %13460 = vmatpush1.bf16.xpose.msk.msra.mxu1 %vm18041_vm8, %v21152_v52  ;;  %13604 = vmatpush1.bf16.xpose.msk.msra.mxu0 %vm13603_vm6, %v21152_v52  ;;  %vm5526_vm8 = vcmp.eq.f32.partialorder %v14768_v29, %v17422_v39  ;;  %vm13607_vm6 = vmpackc.low %vm6492_vm11, %vm6486_vm5  ;;  %vm6498_vm5 = vcmp.eq.f32.partialorder %v14775_v30, %v17752_v14  ;;  %vm6504_vm11 = vcmp.eq.f32.partialorder %v14775_v30, %v17755_v15  ;;  %v21534_v15 = vmov 0 }
 0x70e   :  { %13462 = vmatprep.subr.msk.bf16.mxu1 %vm13461_vm3, %v21152_v52  ;;  %13606 = vmatprep.subr.msk.bf16.mxu0 %vm13605_vm0, %v21152_v52  ;;  %vm6499_vm0 = vcmp.eq.f32.partialorder %v14768_v29, %v17752_v14  ;;  %vm13465_vm14 = vmpackc.low %vm5532_vm15, %vm5526_vm8  ;;  %vm5538_vm8 = vcmp.eq.f32.partialorder %v14768_v29, %v17453_v50  ;;  %vm5544_vm15 = vcmp.eq.f32.partialorder %v14768_v29, %v17456_v58  ;;  %v18222_v14 = vadd.f32 5.0, %v17493_v7 }
 0x70f   :  { %vm13609_vm3 = vmpackc.low %vm6505_vm7, %vm6499_vm0  ;;  %vm6511_vm0 = vcmp.eq.f32.partialorder %v14768_v29, %v17769_v57  ;;  %vm6517_vm7 = vcmp.eq.f32.partialorder %v14768_v29, %v17772_v51 }
 0x714   :  { %5740 = vmatmul.mubr.f32.vlgmr.msra.gmra.mrb[10].mxu1 %v18011_v53  ;;  %6713 = vmatmul.mubr.f32.vlgmr.msra.gmra.mrb[24].mxu0 %v18011_v53 }
 0x715   :  { %13464 = vmatpush1.bf16.xpose.msk.msra.mxu1 %vm13463_vm10, %v21152_v52  ;;  %5809 = vmatprep.mubr.f32.mxu1 %v17722_v40  ;;  %vm13467_vm10 = vmpackc.low %vm5531_vm2, %vm5525_vm9  ;;  %vm5543_vm9 = vcmp.eq.f32.partialorder %v14775_v30, %v17456_v58  ;;  %vm6510_vm2 = vcmp.eq.f32.partialorder %v14775_v30, %v17769_v57  ;;  %v18458_v57 = vadd.f32 2.0, %v17490_v6 }
 0x716   :  { %13608 = vmatpush1.bf16.xpose.msk.msra.mxu0 %vm13607_vm6, %v21152_v52  ;;  %6782 = vmatprep.mubr.f32.mxu0 %v17722_v40  ;;  %vm13611_vm6 = vmpackc.low %vm6504_vm11, %vm6498_vm5  ;;  %vm6516_vm5 = vcmp.eq.f32.partialorder %v14775_v30, %v17772_v51  ;;  %vm5550_vm11 = vcmp.eq.f32.partialorder %v14768_v29, %v17490_v6  ;;  %v18461_v51 = vadd.f32 2.0, %v17493_v7 }
 0x717   :  { %13466 = vmatprep.subr.msk.bf16.mxu1 %vm13465_vm14, %v21152_v52  ;;  %13610 = vmatprep.subr.msk.bf16.mxu0 %vm13609_vm3, %v21152_v52  ;;  %vm13469_vm14 = vmpackc.low %vm5544_vm15, %vm5538_vm8  ;;  %vm5556_vm8 = vcmp.eq.f32.partialorder %v14768_v29, %v17493_v7 }
 0x718   :  { %vm13613_vm3 = vmpackc.low %vm6517_vm7, %vm6511_vm0  ;;  %vm6529_vm0 = vcmp.eq.f32.partialorder %v14768_v29, %v17788_v0 }
 0x719   :  { %vm13471_vm15 = vmpackc.low %vm5543_vm9, %vm5537_vm12  ;;  %vm5555_vm12 = vcmp.eq.f32.partialorder %v14775_v30, %v17493_v7  ;;  %vm6522_vm9 = vcmp.eq.f32.partialorder %v14775_v30, %v17785_v32 }
 0x71a   :  { %vm13615_vm7 = vmpackc.low %vm6516_vm5, %vm6510_vm2  ;;  %vm6528_vm2 = vcmp.eq.f32.partialorder %v14775_v30, %v17788_v0  ;;  %vm5835_vm5 = vcmp.eq.f32.partialorder %v14701_v10, %v17870_v27  ;;  %v18308_v0 = vadd.f32 2.0, %v17405_v49 }
 0x71d   :  { %13468 = vmatpush1.bf16.xpose.msk.msra.mxu1 %vm13467_vm10, %v21152_v52  ;;  %vm6523_vm10 = vcmp.eq.f32.partialorder %v14768_v29, %v17785_v32  ;;  %v14396_v32 = vmov 4  }
 0x71e   :  { %13612 = vmatpush1.bf16.xpose.msk.msra.mxu0 %vm13611_vm6, %v21152_v52  ;;  %13470 = vmatprep.subr.msk.bf16.mxu1 %vm13469_vm14, %v21152_v52  ;;  %vm13473_vm6 = vmpackc.low %vm5556_vm8, %vm5550_vm11  ;;  %vm5841_vm11 = vcmp.eq.f32.partialorder %v14701_v10, %v17873_v34 }
 0x71f   :  { %13614 = vmatprep.subr.msk.bf16.mxu0 %vm13613_vm3, %v21152_v52  ;;  %vm13617_vm14 = vmpackc.low %vm6529_vm0, %vm6523_vm10  ;;  %vm5549_vm3 = vcmp.eq.f32.partialorder %v14775_v30, %v17490_v6  ;;  %vm7137_vm10 = vcmp.eq.f32.partialorder %v14701_v10, %v17885_v2 }
 0x720   :  { %vm13475_vm8 = vmpackc.low %vm5555_vm12, %vm5549_vm3  ;;  %vm5840_vm3 = vcmp.eq.f32.partialorder %v14708_v13, %v17873_v34  ;;  %vm7130_vm12 = vcmp.eq.f32.partialorder %v14708_v13, %v17882_v22 }
 0x721   :  { %vm13619_vm0 = vmpackc.low %vm6528_vm2, %vm6522_vm9  ;;  %vm7136_vm9 = vcmp.eq.f32.partialorder %v14708_v13, %v17885_v2  ;;  %vm5847_vm2 = vcmp.eq.f32.partialorder %v14701_v10, %v17894_v35 }
 0x725   :  { %13472 = vmatpush1.bf16.xpose.msk.msra.mxu1 %vm13471_vm15, %v21152_v52  ;;  %vm7131_vm15 = vcmp.eq.f32.partialorder %v14701_v10, %v17882_v22 }
 0x726   :  { %13616 = vmatpush1.bf16.xpose.msk.msra.mxu0 %vm13615_vm7, %v21152_v52  ;;  %13474 = vmatprep.subr.msk.bf16.mxu1 %vm13473_vm6, %v21152_v52  ;;  %vm13477_vm7 = vmpackc.low %vm5841_vm11, %vm5835_vm5  ;;  %vm5853_vm5 = vcmp.eq.f32.partialorder %v14701_v10, %v17907_v60 }
 0x727   :  { %13618 = vmatprep.subr.msk.bf16.mxu0 %vm13617_vm14, %v21152_v52  ;;  %vm13669_vm6 = vmpackc.low %vm7137_vm10, %vm7131_vm15  ;;  %vm5834_vm14 = vcmp.eq.f32.partialorder %v14708_v13, %v17870_v27  ;;  %vm7149_vm15 = vcmp.eq.f32.partialorder %v14701_v10, %v18168_v38 }
 0x728   :  { %vm13479_vm11 = vmpackc.low %vm5840_vm3, %vm5834_vm14  ;;  %vm5852_vm14 = vcmp.eq.f32.partialorder %v14708_v13, %v17907_v60  ;;  %vm7142_vm3 = vcmp.eq.f32.partialorder %v14708_v13, %v18165_v44 }
 0x729   :  { %vm13671_vm10 = vmpackc.low %vm7136_vm9, %vm7130_vm12  ;;  %vm7148_vm12 = vcmp.eq.f32.partialorder %v14708_v13, %v18168_v38  ;;  %vm5859_vm9 = vcmp.eq.f32.partialorder %v14701_v10, %v17968_v37 }
 0x72d   :  { %13476 = vmatpush1.bf16.xpose.msk.msra.mxu1 %vm13475_vm8, %v21152_v52  ;;  %vm7143_vm8 = vcmp.eq.f32.partialorder %v14701_v10, %v18165_v44 }
 0x72e   :  { %13620 = vmatpush1.bf16.xpose.msk.msra.mxu0 %vm13619_vm0, %v21152_v52  ;;  %13478 = vmatprep.subr.msk.bf16.mxu1 %vm13477_vm7, %v21152_v52  ;;  %vm13481_vm0 = vmpackc.low %vm5853_vm5, %vm5847_vm2  ;;  %vm5865_vm2 = vcmp.eq.f32.partialorder %v14701_v10, %v17971_v26 }
 0x72f   :  { %13670 = vmatprep.subr.msk.bf16.mxu0 %vm13669_vm6, %v21152_v52  ;;  %vm13673_vm7 = vmpackc.low %vm7149_vm15, %vm7143_vm8  ;;  %vm5846_vm6 = vcmp.eq.f32.partialorder %v14708_v13, %v17894_v35  ;;  %vm7161_vm8 = vcmp.eq.f32.partialorder %v14701_v10, %v18194_v16 }
 0x730   :  { %vm13483_vm5 = vmpackc.low %vm5852_vm14, %vm5846_vm6  ;;  %vm5864_vm6 = vcmp.eq.f32.partialorder %v14708_v13, %v17971_v26  ;;  %vm7154_vm14 = vcmp.eq.f32.partialorder %v14708_v13, %v18191_v18 }
 0x731   :  { %vm13675_vm15 = vmpackc.low %vm7148_vm12, %vm7142_vm3  ;;  %vm7160_vm3 = vcmp.eq.f32.partialorder %v14708_v13, %v18194_v16  ;;  %vm5871_vm12 = vcmp.eq.f32.partialorder %v14701_v10, %v18026_v42 }
 0x734   :  { %5810 = vmatmul.mubr.f32.vlgmr.msra.gmra.mrb[10].mxu1 %v17720_v4 }
 0x735   :  { %6783 = vmatmul.mubr.f32.vlgmr.msra.gmra.mrb[24].mxu0 %v17720_v4  ;;  %13480 = vmatpush1.bf16.xpose.msk.msra.mxu1 %vm13479_vm11, %v21152_v52  ;;  %vm7155_vm11 = vcmp.eq.f32.partialorder %v14701_v10, %v18191_v18 }
 0x736   :  { %5994 = vmatprep.mubr.f32.mxu1 %v17863_v25  ;;  %13672 = vmatpush1.bf16.xpose.msk.msra.mxu0 %vm13671_vm10, %v21152_v52  ;;  %vm13485_vm10 = vmpackc.low %vm5865_vm2, %vm5859_vm9  ;;  %vm5877_vm9 = vcmp.eq.f32.partialorder %v14701_v10, %v18029_v45 }
 0x737   :  { %7290 = vmatprep.mubr.f32.mxu0 %v17863_v25  ;;  %13482 = vmatprep.subr.msk.bf16.mxu1 %vm13481_vm0, %v21152_v52  ;;  %vm13677_vm0 = vmpackc.low %vm7161_vm8, %vm7155_vm11  ;;  %vm7173_vm11 = vcmp.eq.f32.partialorder %v14701_v10, %v18222_v14 }
 0x738   :  { %13674 = vmatprep.subr.msk.bf16.mxu0 %vm13673_vm7, %v21152_v52  ;;  %vm5858_vm7 = vcmp.eq.f32.partialorder %v14708_v13, %v17968_v37  ;;  %vm13679_vm8 = vmpackc.low %vm7160_vm3, %vm7154_vm14  ;;  %vm7172_vm14 = vcmp.eq.f32.partialorder %v14708_v13, %v18222_v14  ;;  %vm5837_vm3 = vcmp.eq.f32.partialorder %v14761_v28, %v17870_v27 }
 0x739   :  { %vm13487_vm2 = vmpackc.low %vm5864_vm6, %vm5858_vm7  ;;  %vm5876_vm7 = vcmp.eq.f32.partialorder %v14708_v13, %v18029_v45  ;;  %vm7166_vm6 = vcmp.eq.f32.partialorder %v14708_v13, %v18219_v5 }
 0x73d   :  { %13484 = vmatpush1.bf16.xpose.msk.msra.mxu1 %vm13483_vm5, %v21152_v52  ;;  %vm7167_vm5 = vcmp.eq.f32.partialorder %v14701_v10, %v18219_v5 }
 0x73e   :  { %13676 = vmatpush1.bf16.xpose.msk.msra.mxu0 %vm13675_vm15, %v21152_v52  ;;  %13486 = vmatprep.subr.msk.bf16.mxu1 %vm13485_vm10, %v21152_v52  ;;  %vm13489_vm15 = vmpackc.low %vm5877_vm9, %vm5871_vm12  ;;  %vm5843_vm12 = vcmp.eq.f32.partialorder %v14761_v28, %v17873_v34  ;;  %v18342_v34 = vadd.f32 2.0, %v17425_v41 }
 0x73f   :  { %13678 = vmatprep.subr.msk.bf16.mxu0 %vm13677_vm0, %v21152_v52  ;;  %vm13681_vm10 = vmpackc.low %vm7173_vm11, %vm7167_vm5  ;;  %vm5870_vm0 = vcmp.eq.f32.partialorder %v14708_v13, %v18026_v42  ;;  %vm7139_vm5 = vcmp.eq.f32.partialorder %v14761_v28, %v17885_v2 }
 0x740   :  { %vm13491_vm9 = vmpackc.low %vm5876_vm7, %vm5870_vm0  ;;  %vm7132_vm0 = vcmp.eq.f32.partialorder %v14843_v43, %v17882_v22  ;;  %vm7138_vm7 = vcmp.eq.f32.partialorder %v14843_v43, %v17885_v2  ;;  %v21523_v2 = vmov 0 }
 0x741   :  { %vm13683_vm11 = vmpackc.low %vm7172_vm14, %vm7166_vm6  ;;  %vm5849_vm6 = vcmp.eq.f32.partialorder %v14761_v28, %v17894_v35  ;;  %vm5855_vm14 = vcmp.eq.f32.partialorder %v14761_v28, %v17907_v60 }
 0x745   :  { %13488 = vmatpush1.bf16.xpose.msk.msra.mxu1 %vm13487_vm2, %v21152_v52  ;;  %vm7133_vm2 = vcmp.eq.f32.partialorder %v14761_v28, %v17882_v22  ;;  %v21521_v22 = vmov 0 }
 0x746   :  { %13680 = vmatpush1.bf16.xpose.msk.msra.mxu0 %vm13679_vm8, %v21152_v52  ;;  %13490 = vmatprep.subr.msk.bf16.mxu1 %vm13489_vm15, %v21152_v52  ;;  %vm13493_vm8 = vmpackc.low %vm5843_vm12, %vm5837_vm3  ;;  %vm7145_vm12 = vcmp.eq.f32.partialorder %v14761_v28, %v18165_v44 }
 0x747   :  { %13682 = vmatprep.subr.msk.bf16.mxu0 %vm13681_vm10, %v21152_v52  ;;  %vm13685_vm15 = vmpackc.low %vm7139_vm5, %vm7133_vm2  ;;  %vm5836_vm10 = vcmp.eq.f32.partialorder %v14843_v43, %v17870_v27  ;;  %vm5848_vm5 = vcmp.eq.f32.partialorder %v14843_v43, %v17894_v35  ;;  %v18331_v27 = vadd.f32 2.0, %v17422_v39  ;;  %v20946_v35 = vmov 1  }
 0x748   :  { %vm18279_vm3 = vmpackc.low %vm5842_vm1, %vm5836_vm10  ;;  %14332 = vset.pattern.permute.xlu1 %v20946_v35  ;;  %v21581_v35 = vmov 0 }
 0x749   :  { %vm18287_vm2 = vmpackc.low %vm7138_vm7, %vm7132_vm0  ;;  %6141 = vperm.xlu1 %14332, %v18068_v19  }
 0x74a   :  { %vm18295_vm1 = vmpackc.low %vm5855_vm14, %vm5849_vm6  ;;  %vm6163_vm14 = vcmp.eq.f32.partialorder %v14768_v29, %v18308_v0  ;;  %vm6181_vm6 = vcmp.eq.f32.partialorder %v14768_v29, %v18342_v34 }
 0x74d   :  { %13492 = vmatpush1.bf16.xpose.msk.msra.mxu1 %vm13491_vm9, %v21152_v52  ;;  %vm7151_vm9 = vcmp.eq.f32.partialorder %v14761_v28, %v18168_v38 }
 0x74e   :  { %13684 = vmatpush1.bf16.xpose.msk.msra.mxu0 %vm13683_vm11, %v21152_v52  ;;  %13494 = vmatprep.subr.msk.bf16.mxu1 %vm13493_vm8, %v21152_v52  ;;  %vm5854_vm11 = vcmp.eq.f32.partialorder %v14843_v43, %v17907_v60  ;;  %vm7144_vm8 = vcmp.eq.f32.partialorder %v14843_v43, %v18165_v44  ;;  %vm18303_vm10 = vmpackc.low %vm7151_vm9, %vm7145_vm12  ;;  %vm6169_vm12 = vcmp.eq.f32.partialorder %v14768_v29, %v18311_v63 }
 0x74f   :  { %13686 = vmatprep.subr.msk.bf16.mxu0 %vm13685_vm15, %v21152_v52  ;;  %vm7150_vm15 = vcmp.eq.f32.partialorder %v14843_v43, %v18168_v38  ;;  %vm18313_vm0 = vmpackc.low %vm5854_vm11, %vm5848_vm5  ;;  %vm7783_vm5 = vcmp.eq.f32.partialorder %v14768_v29, %v18318_v1  ;;  %vm7789_vm11 = vcmp.eq.f32.partialorder %v14768_v29, %v18321_v11 }
 0x750   :  { %vm18324_vm7 = vmpackc.low %vm7150_vm15, %vm7144_vm8  ;;  %vm6162_vm8 = vcmp.eq.f32.partialorder %v14775_v30, %v18308_v0  ;;  %vm6168_vm15 = vcmp.eq.f32.partialorder %v14775_v30, %v18311_v63 }
 0x751   :  { %vm18344_vm9 = vmpackc.low %vm6169_vm12, %vm6163_vm14  ;;  %vm7782_vm14 = vcmp.eq.f32.partialorder %v14775_v30, %v18318_v1  ;;  %vm7788_vm12 = vcmp.eq.f32.partialorder %v14775_v30, %v18321_v11 }
 0x752   :  { %v21520_v56 = vsel %vm18344_vm9, 4294967295, %v21519_v56 }
 0x754   :  { %5995 = vmatmul.mubr.f32.vlgmr.msra.gmra.mrb[12].mxu1 %v17853_v9 }
 0x755   :  { %7291 = vmatmul.mubr.f32.vlgmr.msra.gmra.mrb[26].mxu0 %v17853_v9  ;;  %13496 = vmatpush1.bf16.xpose.msk.msra.mxu1 %vm18279_vm3, %v21152_v52  ;;  %vm18358_vm3 = vmpackc.low %vm7789_vm11, %vm7783_vm5  ;;  %vm6175_vm11 = vcmp.eq.f32.partialorder %v14768_v29, %v18331_v27 }
 0x756   :  { %6064 = vmatprep.mubr.f32.mxu1 %v18017_v20  ;;  %13688 = vmatpush1.bf16.xpose.msk.msra.mxu0 %vm18287_vm2, %v21152_v52  ;;  %v21522_v22 = vsel %vm18358_vm3, 4294967295, %v21521_v22  ;;  %vm5867_vm2 = vcmp.eq.f32.partialorder %v14761_v28, %v17971_v26  ;;  %vm18374_vm5 = vmpackc.low %vm6168_vm15, %vm6162_vm8  ;;  %vm6180_vm8 = vcmp.eq.f32.partialorder %v14775_v30, %v18342_v34  ;;  %vm7157_vm15 = vcmp.eq.f32.partialorder %v14761_v28, %v18191_v18 }
 0x757   :  { %7360 = vmatprep.mubr.f32.mxu0 %v18017_v20  ;;  %13498 = vmatprep.subr.msk.bf16.mxu1 %vm18295_vm1, %v21152_v52  ;;  %v21524_v2 = vsel %vm18374_vm5, 4294967295, %v21523_v2  ;;  %vm18385_vm3 = vmpackc.low %vm7788_vm12, %vm7782_vm14  ;;  %vm6174_vm1 = vcmp.eq.f32.partialorder %v14775_v30, %v18331_v27  ;;  %vm7163_vm5 = vcmp.eq.f32.partialorder %v14761_v28, %v18194_v16  ;;  %vm21529_vm14 = vcmp.eq.f32.partialorder %v14761_v28, %v17968_v37 }
 0x758   :  { %13690 = vmatprep.subr.msk.bf16.mxu0 %vm18303_vm10, %v21152_v52  ;;  %v21526_v3 = vsel %vm18385_vm3, 4294967295, %v21525_v3  ;;  %vm18399_vm10 = vmpackc.low %vm6181_vm6, %vm6175_vm11  ;;  %vm5860_vm6 = vcmp.eq.f32.partialorder %v14843_v43, %v17968_v37  ;;  %vm6193_vm11 = vcmp.eq.f32.partialorder %v14768_v29, %v18414_v33  ;;  %v14395_v37 = vmov 2  }
 0x759   :  { %vm13501_vm12 = vmpackc.low %vm5867_vm2, %vm21529_vm14  ;;  %vm5866_vm2 = vcmp.eq.f32.partialorder %v14843_v43, %v17971_v26  ;;  %14333 = vset.pattern.permute.xlu1 %v14395_v37  ;;  %v21532_v26 = vmov 0  ;;  %vm5873_vm14 = vcmp.eq.f32.partialorder %v14761_v28, %v18026_v42  ;;  %v21571_v37 = vmov 0 }
 0x75a   :  { %vm18406_vm3 = vmpackc.low %vm6180_vm8, %vm6174_vm1  ;;  %vm7162_vm1 = vcmp.eq.f32.partialorder %v14843_v43, %v18194_v16  ;;  %6465 = vperm.xlu1 %14333, %v18068_v19  }
 0x75b   :  { %v21531_v23 = vsel %vm18406_vm3, 4294967295, %v21530_v23  ;;  %vm13693_vm9 = vmpackc.low %vm7163_vm5, %vm7157_vm15  ;;  %vm6187_vm5 = vcmp.eq.f32.partialorder %v14768_v29, %v18411_v55 }
 0x75c   :  { %vm18436_vm8 = vmpackc.low %vm6193_vm11, %vm6187_vm5  ;;  %vm7169_vm5 = vcmp.eq.f32.partialorder %v14761_v28, %v18219_v5  ;;  %vm7175_vm11 = vcmp.eq.f32.partialorder %v14761_v28, %v18222_v14 }
 0x75d   :  { %13500 = vmatpush1.bf16.xpose.msk.msra.mxu1 %vm18313_vm0, %v21152_v52  ;;  %vm7156_vm0 = vcmp.eq.f32.partialorder %v14843_v43, %v18191_v18  ;;  %v21533_v26 = vsel %vm18436_vm8, 4294967295, %v21532_v26  ;;  %vm13503_vm15 = vmpackc.low %vm5866_vm2, %vm5860_vm6 }
 0x75e   :  { %13692 = vmatpush1.bf16.xpose.msk.msra.mxu0 %vm18324_vm7, %v21152_v52  ;;  %13502 = vmatprep.subr.msk.bf16.mxu1 %vm13501_vm12, %v21152_v52  ;;  %vm6186_vm7 = vcmp.eq.f32.partialorder %v14775_v30, %v18411_v55  ;;  %vm6192_vm12 = vcmp.eq.f32.partialorder %v14775_v30, %v18414_v33  ;;  %vm13695_vm6 = vmpackc.low %vm7162_vm1, %vm7156_vm0  ;;  %vm6199_vm0 = vcmp.eq.f32.partialorder %v14768_v29, %v18458_v57 }
 0x75f   :  { %13694 = vmatprep.subr.msk.bf16.mxu0 %vm13693_vm9, %v21152_v52  ;;  %vm5879_vm9 = vcmp.eq.f32.partialorder %v14761_v28, %v18029_v45  ;;  %vm18453_vm8 = vmpackc.low %vm6192_vm12, %vm6186_vm7  ;;  %14335 = vset.pattern.permute.xlu1 %v14396_v32  ;;  %vm6205_vm1 = vcmp.eq.f32.partialorder %v14768_v29, %v18461_v51  ;;  %vm5872_vm7 = vcmp.eq.f32.partialorder %v14843_v43, %v18026_v42  ;;  %v14397_v42 = vmov 5  }
 0x760   :  { %v21535_v15 = vsel %vm18453_vm8, 4294967295, %v21534_v15  ;;  %vm13505_vm2 = vmpackc.low %vm5879_vm9, %vm5873_vm14  ;;  %7113 = vperm.xlu1 %14335, %v18068_v19   ;;  %vm6198_vm9 = vcmp.eq.f32.partialorder %v14775_v30, %v18458_v57  ;;  %vm6204_vm12 = vcmp.eq.f32.partialorder %v14775_v30, %v18461_v51  ;;  %v18813_v32 = vadd.f32 4.0, %v17453_v50 }
 0x761   :  { %vm13697_vm3 = vmpackc.low %vm7175_vm11, %vm7169_vm5  ;;  %vm7168_vm5 = vcmp.eq.f32.partialorder %v14843_v43, %v18219_v5 }
 0x762   :  { %vm18476_vm14 = vmpackc.low %vm6205_vm1, %vm6199_vm0  ;;  %vm21540_vm0 = vnez %v21486_v46  ;;  %vm7147_vm1 = vcmp.eq.f32.partialorder %v14768_v29, %v18165_v44  ;;  %v18572_v46 = vadd.f32 7.0, %v17425_v41 }
 0x763   :  { %v21537_v21 = vsel %vm18476_vm14, 4294967295, %v21536_v21  ;;  %vm18488_vm11 = vmpackc.low %vm6204_vm12, %vm6198_vm9  ;;  %vm7146_vm12 = vcmp.eq.f32.partialorder %v14775_v30, %v18165_v44  ;;  %vm6166_vm14 = vcmp.eq.f32.partialorder %v14843_v43, %v18311_v63  ;;  %v18712_v44 = vadd.f32 4.0, %v17405_v49 }
 0x764   :  { %14336 = vset.pattern.permute.xlu1 %v14397_v42  ;;  %v18816_v42 = vadd.f32 4.0, %v17456_v58 }
 0x765   :  { %13504 = vmatpush1.bf16.xpose.msk.msra.mxu1 %vm13503_vm15, %v21152_v52  ;;  %vm5878_vm15 = vcmp.eq.f32.partialorder %v14843_v43, %v18029_v45  ;;  %v21538_v45 = vmov 0  ;;  %7437 = vperm.xlu1 %14336, %v18068_v19  }
 0x766   :  { %13696 = vmatpush1.bf16.xpose.msk.msra.mxu0 %vm13695_vm6, %v21152_v52  ;;  %13506 = vmatprep.subr.msk.bf16.mxu1 %vm13505_vm2, %v21152_v52  ;;  %v21539_v45 = vsel %vm18488_vm11, 4294967295, %v21538_v45  ;;  %vm13507_vm6 = vmpackc.low %vm5878_vm15, %vm5872_vm7  ;;  %vm7153_vm7 = vcmp.eq.f32.partialorder %v14768_v29, %v18168_v38  ;;  %vm21541_vm15 = vnez %v21488_v62  ;;  %v18595_v62 = vadd.f32 7.0, %v17453_v50 }
 0x767   :  { %13698 = vmatprep.subr.msk.bf16.mxu0 %vm13697_vm3, %v21152_v52  ;;  %vm7174_vm3 = vcmp.eq.f32.partialorder %v14843_v43, %v18222_v14  ;;  %vm13705_vm9 = vmpackc.low %vm7153_vm7, %vm7147_vm1  ;;  %vm21544_vm1 = vnez %v21498_v36  ;;  %vm7158_vm7 = vcmp.eq.f32.partialorder %v14775_v30, %v18191_v18  ;;  %v18859_v36 = vadd.f32 4.0, %v17490_v6 }
 0x768   :  { %vm13699_vm2 = vmpackc.low %vm7174_vm3, %vm7168_vm5  ;;  %vm7152_vm5 = vcmp.eq.f32.partialorder %v14775_v30, %v18168_v38  ;;  %vm7159_vm3 = vcmp.eq.f32.partialorder %v14768_v29, %v18191_v18  ;;  %v18715_v38 = vadd.f32 4.0, %v17408_v12  ;;  %v14398_v18 = vmov 7  }
 0x769   :  { %14338 = vset.pattern.permute.xlu1 %v14398_v18  ;;  %v21579_v18 = vmov 0 }
 0x76a   :  { %8085 = vperm.xlu1 %14338, %v18068_v19   ;;  %v21584_v19 = vmov 0 }
 0x76d   :  { %13508 = vmatpush1.bf16.xpose.msk.msra.mxu1 %vm13507_vm6, %v21152_v52  ;;  %vm13707_vm6 = vmpackc.low %vm7152_vm5, %vm7146_vm12 }
 0x76e   :  { %13700 = vmatpush1.bf16.xpose.msk.msra.mxu0 %vm13699_vm2, %v21152_v52  ;;  %13510 = vmatprep.subr.msk.bf16.mxu1 %vm17909_vm4, %v21152_v52  ;;  %vm21542_vm4 = vnez %v21492_v59  ;;  %v18623_v59 = vadd.f32 7.0, %v17490_v6 }
 0x76f   :  { %13702 = vmatprep.subr.msk.bf16.mxu0 %vm21540_vm0, %v21152_v52  ;;  %vm21543_vm0 = vnez %v21494_v61  ;;  %v18626_v61 = vadd.f32 7.0, %v17493_v7 }
 0x774   :  { %6065 = vmatmul.mubr.f32.vlgmr.msra.gmra.mrb[12].mxu1 %v18011_v53 }
 0x775   :  { %7361 = vmatmul.mubr.f32.vlgmr.msra.gmra.mrb[26].mxu0 %v18011_v53  ;;  %13512 = vmatpush1.bf16.xpose.msk.msra.mxu1 %vm21541_vm15, %v21152_v52  ;;  %vm7164_vm15 = vcmp.eq.f32.partialorder %v14775_v30, %v18194_v16 }
 0x776   :  { %6134 = vmatprep.mubr.f32.mxu1 %v17722_v40  ;;  %13704 = vmatpush1.bf16.xpose.msk.msra.mxu0 %vm17947_vm13, %v21152_v52  ;;  %vm7165_vm13 = vcmp.eq.f32.partialorder %v14768_v29, %v18194_v16  ;;  %vm13711_vm12 = vmpackc.low %vm7164_vm15, %vm7158_vm7  ;;  %vm7779_vm7 = vcmp.eq.f32.partialorder %v14701_v10, %v18318_v1  ;;  %vm7785_vm15 = vcmp.eq.f32.partialorder %v14701_v10, %v18321_v11  ;;  %v18722_v16 = vadd.f32 9.0, %v17405_v49 }
 0x777   :  { %7430 = vmatprep.mubr.f32.mxu0 %v17722_v40  ;;  %13514 = vmatprep.subr.msk.bf16.mxu1 %vm21542_vm4, %v21152_v52  ;;  %vm13709_vm2 = vmpackc.low %vm7165_vm13, %vm7159_vm3  ;;  %vm7177_vm4 = vcmp.eq.f32.partialorder %v14768_v29, %v18222_v14  ;;  %vm21545_vm3 = vnez %v21500_v48  ;;  %vm21546_vm13 = vnez %v21504_v47  ;;  %v18862_v48 = vadd.f32 4.0, %v17493_v7 }
 0x778   :  { %13706 = vmatprep.subr.msk.bf16.mxu0 %vm13705_vm9, %v21152_v52  ;;  %vm7171_vm9 = vcmp.eq.f32.partialorder %v14768_v29, %v18219_v5  ;;  %v18865_v47 = vadd.f32 9.0, %v17490_v6 }
 0x779   :  { %vm13713_vm5 = vmpackc.low %vm7177_vm4, %vm7171_vm9 }
 0x77d   :  { %13516 = vmatpush1.bf16.xpose.msk.msra.mxu1 %vm21543_vm0, %v21152_v52  ;;  %vm6159_vm0 = vcmp.eq.f32.partialorder %v14701_v10, %v18308_v0 }
 0x77e   :  { %13708 = vmatpush1.bf16.xpose.msk.msra.mxu0 %vm13707_vm6, %v21152_v52  ;;  %13518 = vmatprep.subr.msk.bf16.mxu1 %vm21544_vm1, %v21152_v52  ;;  %vm7170_vm6 = vcmp.eq.f32.partialorder %v14775_v30, %v18219_v5  ;;  %vm6165_vm1 = vcmp.eq.f32.partialorder %v14701_v10, %v18311_v63  ;;  %v18725_v5 = vadd.f32 9.0, %v17408_v12 }
 0x77f   :  { %13710 = vmatprep.subr.msk.bf16.mxu0 %vm13709_vm2, %v21152_v52  ;;  %vm7176_vm2 = vcmp.eq.f32.partialorder %v14775_v30, %v18222_v14  ;;  %vm13525_vm4 = vmpackc.low %vm6165_vm1, %vm6159_vm0  ;;  %vm6171_vm0 = vcmp.eq.f32.partialorder %v14701_v10, %v18331_v27  ;;  %vm6177_vm1 = vcmp.eq.f32.partialorder %v14701_v10, %v18342_v34 }
 0x780   :  { %vm13715_vm9 = vmpackc.low %vm7176_vm2, %vm7170_vm6  ;;  %vm7778_vm6 = vcmp.eq.f32.partialorder %v14708_v13, %v18318_v1  ;;  %vm7784_vm2 = vcmp.eq.f32.partialorder %v14708_v13, %v18321_v11 }
 0x785   :  { %13520 = vmatpush1.bf16.xpose.msk.msra.mxu1 %vm21545_vm3, %v21152_v52  ;;  %vm6158_vm3 = vcmp.eq.f32.partialorder %v14708_v13, %v18308_v0 }
 0x786   :  { %13712 = vmatpush1.bf16.xpose.msk.msra.mxu0 %vm13711_vm12, %v21152_v52  ;;  %13522 = vmatprep.subr.msk.bf16.mxu1 %vm21546_vm13, %v21152_v52  ;;  %vm13765_vm12 = vmpackc.low %vm7785_vm15, %vm7779_vm7  ;;  %vm6164_vm13 = vcmp.eq.f32.partialorder %v14708_v13, %v18311_v63  ;;  %vm7791_vm15 = vcmp.eq.f32.partialorder %v14701_v10, %v18569_v8 }
 0x787   :  { %13714 = vmatprep.subr.msk.bf16.mxu0 %vm13713_vm5, %v21152_v52  ;;  %vm21547_vm5 = vnez %v21506_v17  ;;  %vm13527_vm7 = vmpackc.low %vm6164_vm13, %vm6158_vm3  ;;  %vm6170_vm3 = vcmp.eq.f32.partialorder %v14708_v13, %v18331_v27  ;;  %vm6176_vm13 = vcmp.eq.f32.partialorder %v14708_v13, %v18342_v34  ;;  %v18873_v17 = vadd.f32 9.0, %v17493_v7 }
 0x78d   :  { %13524 = vmatpush1.bf16.xpose.msk.msra.mxu1 %vm21547_vm5, %v21152_v52 }
 0x78e   :  { %13716 = vmatpush1.bf16.xpose.msk.msra.mxu0 %vm13715_vm9, %v21152_v52  ;;  %13526 = vmatprep.subr.msk.bf16.mxu1 %vm13525_vm4, %v21152_v52  ;;  %vm7797_vm9 = vcmp.eq.f32.partialorder %v14701_v10, %v18572_v46  ;;  %vm13767_vm4 = vmpackc.low %vm7784_vm2, %vm7778_vm6  ;;  %vm7790_vm6 = vcmp.eq.f32.partialorder %v14708_v13, %v18569_v8  ;;  %vm7796_vm2 = vcmp.eq.f32.partialorder %v14708_v13, %v18572_v46 }
 0x78f   :  { %13766 = vmatprep.subr.msk.bf16.mxu0 %vm13765_vm12, %v21152_v52  ;;  %vm13529_vm12 = vmpackc.low %vm6177_vm1, %vm6171_vm0  ;;  %vm6183_vm0 = vcmp.eq.f32.partialorder %v14701_v10, %v18411_v55  ;;  %vm6189_vm1 = vcmp.eq.f32.partialorder %v14701_v10, %v18414_v33 }
 0x790   :  { %vm13769_vm5 = vmpackc.low %vm7797_vm9, %vm7791_vm15  ;;  %vm7803_vm15 = vcmp.eq.f32.partialorder %v14701_v10, %v18595_v62  ;;  %vm7809_vm9 = vcmp.eq.f32.partialorder %v14701_v10, %v18598_v54 }
 0x791   :  { %vm13773_vm11 = vmpackc.low %vm7809_vm9, %vm7803_vm15  ;;  %vm7821_vm15 = vcmp.eq.f32.partialorder %v14701_v10, %v18626_v61 }
 0x794   :  { %6135 = vmatmul.mubr.f32.vlgmr.msra.gmra.mrb[12].mxu1 %v17720_v4 }
 0x795   :  { %7431 = vmatmul.mubr.f32.vlgmr.msra.gmra.mrb[26].mxu0 %v17720_v4  ;;  %13528 = vmatpush1.bf16.xpose.msk.msra.mxu1 %vm13527_vm7, %v21152_v52  ;;  %vm13531_vm7 = vmpackc.low %vm6176_vm13, %vm6170_vm3  ;;  %vm6188_vm3 = vcmp.eq.f32.partialorder %v14708_v13, %v18414_v33  ;;  %vm7802_vm13 = vcmp.eq.f32.partialorder %v14708_v13, %v18595_v62 }
 0x796   :  { %6318 = vmatprep.mubr.f32.mxu1 %v17863_v25  ;;  %13768 = vmatpush1.bf16.xpose.msk.msra.mxu0 %vm13767_vm4, %v21152_v52  ;;  %vm13771_vm4 = vmpackc.low %vm7796_vm2, %vm7790_vm6  ;;  %vm7808_vm6 = vcmp.eq.f32.partialorder %v14708_v13, %v18598_v54  ;;  %vm6195_vm2 = vcmp.eq.f32.partialorder %v14701_v10, %v18458_v57 }
 0x797   :  { %7938 = vmatprep.mubr.f32.mxu0 %v17863_v25  ;;  %13530 = vmatprep.subr.msk.bf16.mxu1 %vm13529_vm12, %v21152_v52  ;;  %vm13533_vm12 = vmpackc.low %vm6189_vm1, %vm6183_vm0  ;;  %vm6201_vm0 = vcmp.eq.f32.partialorder %v14701_v10, %v18461_v51 }
 0x798   :  { %13770 = vmatprep.subr.msk.bf16.mxu0 %vm13769_vm5, %v21152_v52  ;;  %vm6182_vm5 = vcmp.eq.f32.partialorder %v14708_v13, %v18411_v55  ;;  %vm13537_vm9 = vmpackc.low %vm6201_vm0, %vm6195_vm2  ;;  %vm6167_vm2 = vcmp.eq.f32.partialorder %v14761_v28, %v18311_v63  ;;  %v18746_v63 = vadd.f32 4.0, %v17425_v41 }
 0x799   :  { %vm13535_vm1 = vmpackc.low %vm6188_vm3, %vm6182_vm5  ;;  %vm6200_vm5 = vcmp.eq.f32.partialorder %v14708_v13, %v18461_v51  ;;  %vm7814_vm3 = vcmp.eq.f32.partialorder %v14708_v13, %v18623_v59 }
 0x79d   :  { %13532 = vmatpush1.bf16.xpose.msk.msra.mxu1 %vm13531_vm7, %v21152_v52  ;;  %vm7815_vm7 = vcmp.eq.f32.partialorder %v14701_v10, %v18623_v59 }
 0x79e   :  { %13772 = vmatpush1.bf16.xpose.msk.msra.mxu0 %vm13771_vm4, %v21152_v52  ;;  %13534 = vmatprep.subr.msk.bf16.mxu1 %vm13533_vm12, %v21152_v52  ;;  %vm13777_vm4 = vmpackc.low %vm7821_vm15, %vm7815_vm7  ;;  %vm6194_vm12 = vcmp.eq.f32.partialorder %v14708_v13, %v18458_v57  ;;  %vm7787_vm7 = vcmp.eq.f32.partialorder %v14761_v28, %v18321_v11 }
 0x79f   :  { %13774 = vmatprep.subr.msk.bf16.mxu0 %vm13773_vm11, %v21152_v52  ;;  %vm13775_vm11 = vmpackc.low %vm7808_vm6, %vm7802_vm13  ;;  %vm7820_vm13 = vcmp.eq.f32.partialorder %v14708_v13, %v18626_v61  ;;  %vm6161_vm6 = vcmp.eq.f32.partialorder %v14761_v28, %v18308_v0 }
 0x7a0   :  { %vm13539_vm0 = vmpackc.low %vm6200_vm5, %vm6194_vm12  ;;  %vm7780_vm12 = vcmp.eq.f32.partialorder %v14843_v43, %v18318_v1  ;;  %vm7786_vm5 = vcmp.eq.f32.partialorder %v14843_v43, %v18321_v11  ;;  %v21562_v11 = vmov 0 }
 0x7a1   :  { %vm13779_vm15 = vmpackc.low %vm7820_vm13, %vm7814_vm3  ;;  %vm6173_vm3 = vcmp.eq.f32.partialorder %v14761_v28, %v18331_v27  ;;  %vm6179_vm13 = vcmp.eq.f32.partialorder %v14761_v28, %v18342_v34 }
 0x7a5   :  { %13536 = vmatpush1.bf16.xpose.msk.msra.mxu1 %vm13535_vm1, %v21152_v52  ;;  %vm7781_vm1 = vcmp.eq.f32.partialorder %v14761_v28, %v18318_v1  ;;  %v21560_v1 = vmov 0 }
 0x7a6   :  { %13776 = vmatpush1.bf16.xpose.msk.msra.mxu0 %vm13775_vm11, %v21152_v52  ;;  %13538 = vmatprep.subr.msk.bf16.mxu1 %vm13537_vm9, %v21152_v52  ;;  %vm13541_vm11 = vmpackc.low %vm6167_vm2, %vm6161_vm6  ;;  %vm7793_vm2 = vcmp.eq.f32.partialorder %v14761_v28, %v18569_v8 }
 0x7a7   :  { %13778 = vmatprep.subr.msk.bf16.mxu0 %vm13777_vm4, %v21152_v52  ;;  %vm13781_vm9 = vmpackc.low %vm7787_vm7, %vm7781_vm1  ;;  %vm6160_vm4 = vcmp.eq.f32.partialorder %v14843_v43, %v18308_v0  ;;  %vm6172_vm7 = vcmp.eq.f32.partialorder %v14843_v43, %v18331_v27  ;;  %v18735_v0 = vadd.f32 4.0, %v17422_v39  ;;  %v21566_v27 = vmov 0 }
 0x7a8   :  { %vm18683_vm6 = vmpackc.low %vm6166_vm14, %vm6160_vm4 }
 0x7a9   :  { %vm18691_vm1 = vmpackc.low %vm7786_vm5, %vm7780_vm12 }
 0x7aa   :  { %vm18699_vm14 = vmpackc.low %vm6179_vm13, %vm6173_vm3  ;;  %vm6811_vm13 = vcmp.eq.f32.partialorder %v14768_v29, %v18712_v44  ;;  %vm6829_vm3 = vcmp.eq.f32.partialorder %v14768_v29, %v18746_v63 }
 0x7ad   :  { %13540 = vmatpush1.bf16.xpose.msk.msra.mxu1 %vm13539_vm0, %v21152_v52  ;;  %vm7799_vm0 = vcmp.eq.f32.partialorder %v14761_v28, %v18572_v46 }
 0x7ae   :  { %13780 = vmatpush1.bf16.xpose.msk.msra.mxu0 %vm13779_vm15, %v21152_v52  ;;  %13542 = vmatprep.subr.msk.bf16.mxu1 %vm13541_vm11, %v21152_v52  ;;  %vm6178_vm15 = vcmp.eq.f32.partialorder %v14843_v43, %v18342_v34  ;;  %vm7792_vm11 = vcmp.eq.f32.partialorder %v14843_v43, %v18569_v8  ;;  %vm18707_vm4 = vmpackc.low %vm7799_vm0, %vm7793_vm2  ;;  %vm6817_vm2 = vcmp.eq.f32.partialorder %v14768_v29, %v18715_v38  ;;  %v21568_v34 = vmov 0 }
 0x7af   :  { %13782 = vmatprep.subr.msk.bf16.mxu0 %vm13781_vm9, %v21152_v52  ;;  %vm7798_vm9 = vcmp.eq.f32.partialorder %v14843_v43, %v18572_v46  ;;  %vm18717_vm12 = vmpackc.low %vm6178_vm15, %vm6172_vm7  ;;  %vm8431_vm7 = vcmp.eq.f32.partialorder %v14768_v29, %v18722_v16  ;;  %vm8437_vm15 = vcmp.eq.f32.partialorder %v14768_v29, %v18725_v5 }
 0x7b0   :  { %vm18728_vm5 = vmpackc.low %vm7798_vm9, %vm7792_vm11  ;;  %vm6810_vm11 = vcmp.eq.f32.partialorder %v14775_v30, %v18712_v44  ;;  %vm6816_vm9 = vcmp.eq.f32.partialorder %v14775_v30, %v18715_v38 }
 0x7b1   :  { %vm18748_vm0 = vmpackc.low %vm6817_vm2, %vm6811_vm13  ;;  %vm8430_vm13 = vcmp.eq.f32.partialorder %v14775_v30, %v18722_v16  ;;  %vm8436_vm2 = vcmp.eq.f32.partialorder %v14775_v30, %v18725_v5 }
 0x7b2   :  { %v21561_v1 = vsel %vm18748_vm0, 4294967295, %v21560_v1 }
 0x7b4   :  { %6319 = vmatmul.mubr.f32.vlgmr.msra.gmra.mrb[14].mxu1 %v17853_v9 }
 0x7b5   :  { %7939 = vmatmul.mubr.f32.vlgmr.msra.gmra.mrb[28].mxu0 %v17853_v9  ;;  %13544 = vmatpush1.bf16.xpose.msk.msra.mxu1 %vm18683_vm6, %v21152_v52  ;;  %vm18762_vm6 = vmpackc.low %vm8437_vm15, %vm8431_vm7  ;;  %vm6823_vm15 = vcmp.eq.f32.partialorder %v14768_v29, %v18735_v0 }
 0x7b6   :  { %6388 = vmatprep.mubr.f32.mxu1 %v18017_v20  ;;  %13784 = vmatpush1.bf16.xpose.msk.msra.mxu0 %vm18691_vm1, %v21152_v52  ;;  %v21563_v11 = vsel %vm18762_vm6, 4294967295, %v21562_v11  ;;  %vm6191_vm1 = vcmp.eq.f32.partialorder %v14761_v28, %v18414_v33  ;;  %vm18778_vm7 = vmpackc.low %vm6816_vm9, %vm6810_vm11  ;;  %vm6828_vm11 = vcmp.eq.f32.partialorder %v14775_v30, %v18746_v63  ;;  %vm7805_vm9 = vcmp.eq.f32.partialorder %v14761_v28, %v18595_v62 }
 0x7b7   :  { %8008 = vmatprep.mubr.f32.mxu0 %v18017_v20  ;;  %13546 = vmatprep.subr.msk.bf16.mxu1 %vm18699_vm14, %v21152_v52  ;;  %v21565_v24 = vsel %vm18778_vm7, 4294967295, %v21564_v24  ;;  %vm18789_vm6 = vmpackc.low %vm8436_vm2, %vm8430_vm13  ;;  %vm6822_vm14 = vcmp.eq.f32.partialorder %v14775_v30, %v18735_v0  ;;  %vm7811_vm7 = vcmp.eq.f32.partialorder %v14761_v28, %v18598_v54 }
 0x7b8   :  { %13786 = vmatprep.subr.msk.bf16.mxu0 %vm18707_vm4, %v21152_v52  ;;  %v21567_v27 = vsel %vm18789_vm6, 4294967295, %v21566_v27  ;;  %vm18801_vm0 = vmpackc.low %vm6829_vm3, %vm6823_vm15  ;;  %vm21570_vm4 = vcmp.eq.f32.partialorder %v14761_v28, %v18411_v55  ;;  %vm6184_vm3 = vcmp.eq.f32.partialorder %v14843_v43, %v18411_v55  ;;  %vm6841_vm15 = vcmp.eq.f32.partialorder %v14768_v29, %v18816_v42 }
 0x7b9   :  { %v21569_v34 = vsel %vm18801_vm0, 4294967295, %v21568_v34  ;;  %vm13549_vm13 = vmpackc.low %vm6191_vm1, %vm21570_vm4  ;;  %vm6190_vm1 = vcmp.eq.f32.partialorder %v14843_v43, %v18414_v33  ;;  %v21573_v55 = vmov 0  ;;  %v5498_v33 = vpop.permute.xlu0 %5497 }
 0x7ba   :  { %vm18808_vm2 = vmpackc.low %vm6828_vm11, %vm6822_vm14  ;;  %vm7810_vm14 = vcmp.eq.f32.partialorder %v14843_v43, %v18598_v54 }
 0x7bb   :  { %v21572_v37 = vsel %vm18808_vm2, 4294967295, %v21571_v37  ;;  %vm13789_vm6 = vmpackc.low %vm7811_vm7, %vm7805_vm9  ;;  %vm6835_vm7 = vcmp.eq.f32.partialorder %v14768_v29, %v18813_v32  ;;  %vm6840_vm9 = vcmp.eq.f32.partialorder %v14775_v30, %v18816_v42  ;;  %vm7817_vm2 = vcmp.eq.f32.partialorder %v14761_v28, %v18623_v59 }
 0x7bc   :  { %vm18838_vm11 = vmpackc.low %vm6841_vm15, %vm6835_vm7  ;;  %vm7823_vm7 = vcmp.eq.f32.partialorder %v14761_v28, %v18626_v61 }
 0x7bd   :  { %13548 = vmatpush1.bf16.xpose.msk.msra.mxu1 %vm18717_vm12, %v21152_v52  ;;  %vm7804_vm12 = vcmp.eq.f32.partialorder %v14843_v43, %v18595_v62  ;;  %v21574_v55 = vsel %vm18838_vm11, 4294967295, %v21573_v55  ;;  %vm13551_vm4 = vmpackc.low %vm6190_vm1, %vm6184_vm3  ;;  %vm6196_vm3 = vcmp.eq.f32.partialorder %v14843_v43, %v18458_v57  ;;  %vm6202_vm1 = vcmp.eq.f32.partialorder %v14843_v43, %v18461_v51 }
 0x7be   :  { %13788 = vmatpush1.bf16.xpose.msk.msra.mxu0 %vm18728_vm5, %v21152_v52  ;;  %13550 = vmatprep.subr.msk.bf16.mxu1 %vm13549_vm13, %v21152_v52  ;;  %vm6834_vm5 = vcmp.eq.f32.partialorder %v14775_v30, %v18813_v32  ;;  %vm6203_vm13 = vcmp.eq.f32.partialorder %v14761_v28, %v18461_v51  ;;  %vm13791_vm11 = vmpackc.low %vm7810_vm14, %vm7804_vm12  ;;  %vm6853_vm12 = vcmp.eq.f32.partialorder %v14768_v29, %v18862_v48  ;;  %v19242_v51 = vadd.f32 6.0, %v17456_v58 }
 0x7bf   :  { %13790 = vmatprep.subr.msk.bf16.mxu0 %vm13789_vm6, %v21152_v52  ;;  %vm6197_vm6 = vcmp.eq.f32.partialorder %v14761_v28, %v18458_v57  ;;  %vm18854_vm15 = vmpackc.low %vm6840_vm9, %vm6834_vm5  ;;  %vm8467_vm14 = vcmp.eq.f32.partialorder %v14768_v29, %v18865_v47  ;;  %vm6852_vm9 = vcmp.eq.f32.partialorder %v14775_v30, %v18862_v48  ;;  %v19239_v57 = vadd.f32 6.0, %v17453_v50 }
 0x7c0   :  { %vm13553_vm0 = vmpackc.low %vm6203_vm13, %vm6197_vm6 }
 0x7c1   :  { %vm13793_vm8 = vmpackc.low %vm7823_vm7, %vm7817_vm2  ;;  %vm6847_vm2 = vcmp.eq.f32.partialorder %v14768_v29, %v18859_v36 }
 0x7c2   :  { %vm18884_vm5 = vmpackc.low %vm6853_vm12, %vm6847_vm2  ;;  %vm8466_vm12 = vcmp.eq.f32.partialorder %v14775_v30, %v18865_v47 }
 0x7c3   :  { %vm13555_vm7 = vmpackc.low %vm6202_vm1, %vm6196_vm3  ;;  %vm21586_vm3 = vnez %v21522_v22  ;;  %vm7795_vm1 = vcmp.eq.f32.partialorder %v14768_v29, %v18569_v8  ;;  %v19000_v22 = vadd.f32 9.0, %v17425_v41 }
 0x7c5   :  { %13552 = vmatpush1.bf16.xpose.msk.msra.mxu1 %vm13551_vm4, %v21152_v52  ;;  %vm7816_vm4 = vcmp.eq.f32.partialorder %v14843_v43, %v18623_v59 }
 0x7c6   :  { %13792 = vmatpush1.bf16.xpose.msk.msra.mxu0 %vm13791_vm11, %v21152_v52  ;;  %13554 = vmatprep.subr.msk.bf16.mxu1 %vm13553_vm0, %v21152_v52  ;;  %vm8473_vm0 = vcmp.eq.f32.partialorder %v14768_v29, %v18873_v17  ;;  %vm6846_vm11 = vcmp.eq.f32.partialorder %v14775_v30, %v18859_v36 }
 0x7c7   :  { %13794 = vmatprep.subr.msk.bf16.mxu0 %vm13793_vm8, %v21152_v52  ;;  %vm7822_vm8 = vcmp.eq.f32.partialorder %v14843_v43, %v18626_v61  ;;  %vm18899_vm6 = vmpackc.low %vm8473_vm0, %vm8467_vm14  ;;  %vm8472_vm14 = vcmp.eq.f32.partialorder %v14775_v30, %v18873_v17  ;;  %vm21583_vm0 = vnez %v21520_v56  ;;  %v18997_v56 = vadd.f32 9.0, %v17422_v39 }
 0x7c8   :  { %v21580_v18 = vsel %vm18899_vm6, 4294967295, %v21579_v18  ;;  %vm18903_vm13 = vmpackc.low %vm6852_vm9, %vm6846_vm11  ;;  %vm7801_vm9 = vcmp.eq.f32.partialorder %v14768_v29, %v18572_v46  ;;  %vm6814_vm6 = vcmp.eq.f32.partialorder %v14843_v43, %v18715_v38 }
 0x7c9   :  { %v21582_v35 = vsel %vm18903_vm13, 4294967295, %v21581_v35  ;;  %vm13795_vm2 = vmpackc.low %vm7822_vm8, %vm7816_vm4  ;;  %vm21587_vm4 = vnez %v21524_v2  ;;  %v19023_v2 = vadd.f32 9.0, %v17453_v50 }
 0x7ca   :  { %vm18922_vm11 = vmpackc.low %vm8472_vm14, %vm8466_vm12  ;;  %vm7800_vm12 = vcmp.eq.f32.partialorder %v14775_v30, %v18572_v46  ;;  %vm7807_vm14 = vcmp.eq.f32.partialorder %v14768_v29, %v18595_v62  ;;  %v19141_v46 = vadd.f32 6.0, %v17408_v12 }
 0x7cb   :  { %v21585_v19 = vsel %vm18922_vm11, 4294967295, %v21584_v19  ;;  %vm13801_vm8 = vmpackc.low %vm7801_vm9, %vm7795_vm1  ;;  %vm21589_vm9 = vnez %v21531_v23 }
 0x7cd   :  { %13556 = vmatpush1.bf16.xpose.msk.msra.mxu1 %vm13555_vm7, %v21152_v52  ;;  %vm21588_vm7 = vnez %v21526_v3  ;;  %v19026_v3 = vadd.f32 9.0, %v17456_v58 }
 0x7ce   :  { %13796 = vmatpush1.bf16.xpose.msk.msra.mxu0 %vm13795_vm2, %v21152_v52  ;;  %13558 = vmatprep.subr.msk.bf16.mxu1 %vm21583_vm0, %v21152_v52  ;;  %vm7794_vm2 = vcmp.eq.f32.partialorder %v14775_v30, %v18569_v8  ;;  %vm7813_vm0 = vcmp.eq.f32.partialorder %v14768_v29, %v18598_v54  ;;  %v19138_v8 = vadd.f32 6.0, %v17405_v49 }
 0x7cf   :  { %13798 = vmatprep.subr.msk.bf16.mxu0 %vm21586_vm3, %v21152_v52  ;;  %vm13803_vm3 = vmpackc.low %vm7800_vm12, %vm7794_vm2  ;;  %vm7825_vm2 = vcmp.eq.f32.partialorder %v14768_v29, %v18626_v61 }
 0x7d0   :  { %vm13805_vm1 = vmpackc.low %vm7813_vm0, %vm7807_vm14  ;;  %vm21591_vm0 = vnez %v21535_v15 }
 0x7d4   :  { %6389 = vmatmul.mubr.f32.vlgmr.msra.gmra.mrb[14].mxu1 %v18011_v53 }
 0x7d5   :  { %8009 = vmatmul.mubr.f32.vlgmr.msra.gmra.mrb[28].mxu0 %v18011_v53  ;;  %13560 = vmatpush1.bf16.xpose.msk.msra.mxu1 %vm21587_vm4, %v21152_v52  ;;  %vm7806_vm4 = vcmp.eq.f32.partialorder %v14775_v30, %v18595_v62  ;;  %v19294_v62 = vadd.f32 6.0, %v17490_v6 }
 0x7d6   :  { %6458 = vmatprep.mubr.f32.mxu1 %v17722_v40  ;;  %13800 = vmatpush1.bf16.xpose.msk.msra.mxu0 %vm21588_vm7, %v21152_v52  ;;  %vm7819_vm7 = vcmp.eq.f32.partialorder %v14768_v29, %v18623_v59 }
 0x7d7   :  { %8078 = vmatprep.mubr.f32.mxu0 %v17722_v40  ;;  %13562 = vmatprep.subr.msk.bf16.mxu1 %vm18399_vm10, %v21152_v52  ;;  %vm21590_vm10 = vnez %v21533_v26  ;;  %vm13809_vm14 = vmpackc.low %vm7825_vm2, %vm7819_vm7  ;;  %vm8433_vm7 = vcmp.eq.f32.partialorder %v14701_v10, %v18725_v5 }
 0x7d8   :  { %13802 = vmatprep.subr.msk.bf16.mxu0 %vm13801_vm8, %v21152_v52  ;;  %vm7812_vm8 = vcmp.eq.f32.partialorder %v14775_v30, %v18598_v54  ;;  %v19148_v54 = vadd.f32 11.0, %v17405_v49 }
 0x7d9   :  { %vm13807_vm12 = vmpackc.low %vm7812_vm8, %vm7806_vm4  ;;  %vm6813_vm4 = vcmp.eq.f32.partialorder %v14701_v10, %v18715_v38  ;;  %vm8427_vm8 = vcmp.eq.f32.partialorder %v14701_v10, %v18722_v16 }
 0x7dd   :  { %13564 = vmatpush1.bf16.xpose.msk.msra.mxu1 %vm21589_vm9, %v21152_v52  ;;  %vm7824_vm9 = vcmp.eq.f32.partialorder %v14775_v30, %v18626_v61  ;;  %v19297_v61 = vadd.f32 6.0, %v17493_v7 }
 0x7de   :  { %13804 = vmatpush1.bf16.xpose.msk.msra.mxu0 %vm13803_vm3, %v21152_v52  ;;  %13566 = vmatprep.subr.msk.bf16.mxu1 %vm21590_vm10, %v21152_v52  ;;  %vm21592_vm3 = vnez %v21537_v21  ;;  %vm6807_vm10 = vcmp.eq.f32.partialorder %v14701_v10, %v18712_v44  ;;  %v19279_v21 = vld [vmem:[%s20790_s2 + $0x86] sm:$0x7f] }
 0x7df   :  { %13806 = vmatprep.subr.msk.bf16.mxu0 %vm13805_vm1, %v21152_v52  ;;  %vm7818_vm1 = vcmp.eq.f32.partialorder %v14775_v30, %v18623_v59  ;;  %v19151_v59 = vadd.f32 11.0, %v17408_v12 }
 0x7e0   :  { %vm13811_vm2 = vmpackc.low %vm7824_vm9, %vm7818_vm1  ;;  %vm6812_vm1 = vcmp.eq.f32.partialorder %v14708_v13, %v18715_v38  ;;  %vm8426_vm9 = vcmp.eq.f32.partialorder %v14708_v13, %v18722_v16 }
 0x7e5   :  { %13568 = vmatpush1.bf16.xpose.msk.msra.mxu1 %vm21591_vm0, %v21152_v52  ;;  %vm21593_vm0 = vnez %v21539_v45  ;;  %v21622_v45 = vmov 0 }
 0x7e6   :  { %13808 = vmatpush1.bf16.xpose.msk.msra.mxu0 %vm13807_vm12, %v21152_v52  ;;  %13570 = vmatprep.subr.msk.bf16.mxu1 %vm21592_vm3, %v21152_v52  ;;  %vm13621_vm12 = vmpackc.low %vm6813_vm4, %vm6807_vm10  ;;  %vm6806_vm3 = vcmp.eq.f32.partialorder %v14708_v13, %v18712_v44  ;;  %vm8432_vm10 = vcmp.eq.f32.partialorder %v14708_v13, %v18725_v5  ;;  %vm6819_vm4 = vcmp.eq.f32.partialorder %v14701_v10, %v18735_v0 }
 0x7e7   :  { %13810 = vmatprep.subr.msk.bf16.mxu0 %vm13809_vm14, %v21152_v52  ;;  %vm13861_vm14 = vmpackc.low %vm8433_vm7, %vm8427_vm8  ;;  %vm6825_vm8 = vcmp.eq.f32.partialorder %v14701_v10, %v18746_v63 }
 0x7e8   :  { %vm13623_vm7 = vmpackc.low %vm6812_vm1, %vm6806_vm3  ;;  %vm6818_vm3 = vcmp.eq.f32.partialorder %v14708_v13, %v18735_v0  ;;  %vm6824_vm1 = vcmp.eq.f32.partialorder %v14708_v13, %v18746_v63 }
 0x7ed   :  { %13572 = vmatpush1.bf16.xpose.msk.msra.mxu1 %vm21593_vm0, %v21152_v52  ;;  %vm13625_vm0 = vmpackc.low %vm6825_vm8, %vm6819_vm4  ;;  %vm6831_vm4 = vcmp.eq.f32.partialorder %v14701_v10, %v18813_v32  ;;  %vm6837_vm8 = vcmp.eq.f32.partialorder %v14701_v10, %v18816_v42 }
 0x7ee   :  { %13812 = vmatpush1.bf16.xpose.msk.msra.mxu0 %vm13811_vm2, %v21152_v52  ;;  %13622 = vmatprep.subr.msk.bf16.mxu1 %vm13621_vm12, %v21152_v52  ;;  %vm8439_vm2 = vcmp.eq.f32.partialorder %v14701_v10, %v18997_v56  ;;  %vm8445_vm12 = vcmp.eq.f32.partialorder %v14701_v10, %v19000_v22 }
 0x7ef   :  { %13862 = vmatprep.subr.msk.bf16.mxu0 %vm13861_vm14, %v21152_v52  ;;  %vm13863_vm14 = vmpackc.low %vm8432_vm10, %vm8426_vm9  ;;  %vm8438_vm9 = vcmp.eq.f32.partialorder %v14708_v13, %v18997_v56  ;;  %vm8444_vm10 = vcmp.eq.f32.partialorder %v14708_v13, %v19000_v22 }
 0x7f0   :  { %vm13865_vm11 = vmpackc.low %vm8445_vm12, %vm8439_vm2  ;;  %vm8451_vm2 = vcmp.eq.f32.partialorder %v14701_v10, %v19023_v2  ;;  %vm8457_vm12 = vcmp.eq.f32.partialorder %v14701_v10, %v19026_v3 }
 0x7f1   :  { %vm13869_vm13 = vmpackc.low %vm8457_vm12, %vm8451_vm2  ;;  %vm8469_vm2 = vcmp.eq.f32.partialorder %v14701_v10, %v18873_v17 }
 0x7f4   :  { %6459 = vmatmul.mubr.f32.vlgmr.msra.gmra.mrb[14].mxu1 %v17720_v4 }
 0x7f5   :  { %8079 = vmatmul.mubr.f32.vlgmr.msra.gmra.mrb[28].mxu0 %v17720_v4  ;;  %13624 = vmatpush1.bf16.xpose.msk.msra.mxu1 %vm13623_vm7, %v21152_v52  ;;  %vm13627_vm7 = vmpackc.low %vm6824_vm1, %vm6818_vm3  ;;  %vm6836_vm3 = vcmp.eq.f32.partialorder %v14708_v13, %v18816_v42  ;;  %vm8450_vm1 = vcmp.eq.f32.partialorder %v14708_v13, %v19023_v2 }
 0x7f6   :  { %6966 = vmatprep.mubr.f32.mxu1 %v17863_v25  ;;  %13864 = vmatpush1.bf16.xpose.msk.msra.mxu0 %vm13863_vm14, %v21152_v52  ;;  %vm13867_vm14 = vmpackc.low %vm8444_vm10, %vm8438_vm9  ;;  %vm8456_vm9 = vcmp.eq.f32.partialorder %v14708_v13, %v19026_v3  ;;  %vm6843_vm10 = vcmp.eq.f32.partialorder %v14701_v10, %v18859_v36 }
 0x7f7   :  { %8586 = vmatprep.mubr.f32.mxu0 %v17863_v25  ;;  %13626 = vmatprep.subr.msk.bf16.mxu1 %vm13625_vm0, %v21152_v52  ;;  %vm13629_vm0 = vmpackc.low %vm6837_vm8, %vm6831_vm4  ;;  %vm6849_vm4 = vcmp.eq.f32.partialorder %v14701_v10, %v18862_v48 }
 0x7f8   :  { %13866 = vmatprep.subr.msk.bf16.mxu0 %vm13865_vm11, %v21152_v52  ;;  %vm6830_vm11 = vcmp.eq.f32.partialorder %v14708_v13, %v18813_v32  ;;  %vm13633_vm12 = vmpackc.low %vm6849_vm4, %vm6843_vm10  ;;  %vm6815_vm10 = vcmp.eq.f32.partialorder %v14761_v28, %v18715_v38  ;;  %v19172_v38 = vadd.f32 6.0, %v17425_v41 }
 0x7f9   :  { %vm13631_vm8 = vmpackc.low %vm6836_vm3, %vm6830_vm11  ;;  %vm6848_vm11 = vcmp.eq.f32.partialorder %v14708_v13, %v18862_v48  ;;  %vm8462_vm3 = vcmp.eq.f32.partialorder %v14708_v13, %v18865_v47 }
 0x7fd   :  { %13628 = vmatpush1.bf16.xpose.msk.msra.mxu1 %vm13627_vm7, %v21152_v52  ;;  %vm8463_vm7 = vcmp.eq.f32.partialorder %v14701_v10, %v18865_v47 }
 0x7fe   :  { %13868 = vmatpush1.bf16.xpose.msk.msra.mxu0 %vm13867_vm14, %v21152_v52  ;;  %13630 = vmatprep.subr.msk.bf16.mxu1 %vm13629_vm0, %v21152_v52  ;;  %vm13873_vm14 = vmpackc.low %vm8469_vm2, %vm8463_vm7  ;;  %vm6842_vm0 = vcmp.eq.f32.partialorder %v14708_v13, %v18859_v36  ;;  %vm8435_vm7 = vcmp.eq.f32.partialorder %v14761_v28, %v18725_v5 }
 0x7ff   :  { %13870 = vmatprep.subr.msk.bf16.mxu0 %vm13869_vm13, %v21152_v52  ;;  %vm13871_vm13 = vmpackc.low %vm8456_vm9, %vm8450_vm1  ;;  %vm8468_vm1 = vcmp.eq.f32.partialorder %v14708_v13, %v18873_v17  ;;  %vm6809_vm9 = vcmp.eq.f32.partialorder %v14761_v28, %v18712_v44 }
 0x800   :  { %vm13635_vm4 = vmpackc.low %vm6848_vm11, %vm6842_vm0  ;;  %vm8428_vm0 = vcmp.eq.f32.partialorder %v14843_v43, %v18722_v16  ;;  %vm8434_vm11 = vcmp.eq.f32.partialorder %v14843_v43, %v18725_v5  ;;  %v21609_v5 = vmov 0 }
 0x801   :  { %vm13875_vm2 = vmpackc.low %vm8468_vm1, %vm8462_vm3  ;;  %vm6821_vm3 = vcmp.eq.f32.partialorder %v14761_v28, %v18735_v0  ;;  %vm6827_vm1 = vcmp.eq.f32.partialorder %v14761_v28, %v18746_v63 }
 0x805   :  { %13632 = vmatpush1.bf16.xpose.msk.msra.mxu1 %vm13631_vm8, %v21152_v52  ;;  %vm8429_vm8 = vcmp.eq.f32.partialorder %v14761_v28, %v18722_v16  ;;  %v21607_v16 = vmov 0 }
 0x806   :  { %13872 = vmatpush1.bf16.xpose.msk.msra.mxu0 %vm13871_vm13, %v21152_v52  ;;  %13634 = vmatprep.subr.msk.bf16.mxu1 %vm13633_vm12, %v21152_v52  ;;  %vm13637_vm13 = vmpackc.low %vm6815_vm10, %vm6809_vm9  ;;  %vm8441_vm10 = vcmp.eq.f32.partialorder %v14761_v28, %v18997_v56 }
 0x807   :  { %v19076_v60 = vpop.f32.mrb[10].mxu1  ;;  %13874 = vmatprep.subr.msk.bf16.mxu0 %vm13873_vm14, %v21152_v52  ;;  %vm13877_vm12 = vmpackc.low %vm8435_vm7, %vm8429_vm8  ;;  %vm6808_vm14 = vcmp.eq.f32.partialorder %v14843_v43, %v18712_v44  ;;  %vm6820_vm7 = vcmp.eq.f32.partialorder %v14843_v43, %v18735_v0  ;;  %v19161_v44 = vadd.f32 6.0, %v17422_v39  ;;  %v21611_v0 = vmov 0 }
 0x808   :  { %v19083_v23 = vpop.f32.mrb[24].mxu0  ;;  %v5813_v26 = vpop.f32.mrb[11].mxu1  ;;  %vm19109_vm9 = vmpackc.low %vm6814_vm6, %vm6808_vm14 }
 0x809   :  { %21594 = vst [vmem:[#allocation41_spill] sm:$0xff] %v19083_v23  ;;  %v6786_v15 = vpop.f32.mrb[25].mxu0  ;;  %vm19117_vm8 = vmpackc.low %vm8434_vm11, %vm8428_vm0  ;;  %v14400_v23 = vmov 9   ;;  %v19884_v26 = vadd.f32 13.0, %v17453_v50 }
 0x80a   :  { %vm19125_vm6 = vmpackc.low %vm6827_vm1, %vm6821_vm3  ;;  %vm7459_vm1 = vcmp.eq.f32.partialorder %v14768_v29, %v19138_v8  ;;  %vm7477_vm3 = vcmp.eq.f32.partialorder %v14768_v29, %v19172_v38  ;;  %v21618_v15 = vmov 0 }
 0x80d   :  { %13636 = vmatpush1.bf16.xpose.msk.msra.mxu1 %vm13635_vm4, %v21152_v52  ;;  %vm8447_vm4 = vcmp.eq.f32.partialorder %v14761_v28, %v19000_v22 }
 0x80e   :  { %13876 = vmatpush1.bf16.xpose.msk.msra.mxu0 %vm13875_vm2, %v21152_v52  ;;  %13638 = vmatprep.subr.msk.bf16.mxu1 %vm13637_vm13, %v21152_v52  ;;  %vm6826_vm2 = vcmp.eq.f32.partialorder %v14843_v43, %v18746_v63  ;;  %vm8440_vm13 = vcmp.eq.f32.partialorder %v14843_v43, %v18997_v56  ;;  %vm19133_vm14 = vmpackc.low %vm8447_vm4, %vm8441_vm10  ;;  %vm7465_vm10 = vcmp.eq.f32.partialorder %v14768_v29, %v19141_v46  ;;  %v21613_v63 = vmov 0 }
 0x80f   :  { %13878 = vmatprep.subr.msk.bf16.mxu0 %vm13877_vm12, %v21152_v52  ;;  %vm8446_vm12 = vcmp.eq.f32.partialorder %v14843_v43, %v19000_v22  ;;  %vm19143_vm0 = vmpackc.low %vm6826_vm2, %vm6820_vm7  ;;  %vm9079_vm7 = vcmp.eq.f32.partialorder %v14768_v29, %v19148_v54  ;;  %vm9085_vm2 = vcmp.eq.f32.partialorder %v14768_v29, %v19151_v59 }
 0x810   :  { %vm19154_vm11 = vmpackc.low %vm8446_vm12, %vm8440_vm13  ;;  %vm7458_vm13 = vcmp.eq.f32.partialorder %v14775_v30, %v19138_v8  ;;  %vm7464_vm12 = vcmp.eq.f32.partialorder %v14775_v30, %v19141_v46 }
 0x811   :  { %vm19174_vm4 = vmpackc.low %vm7465_vm10, %vm7459_vm1  ;;  %vm9078_vm1 = vcmp.eq.f32.partialorder %v14775_v30, %v19148_v54  ;;  %vm9084_vm10 = vcmp.eq.f32.partialorder %v14775_v30, %v19151_v59 }
 0x812   :  { %v21608_v16 = vsel %vm19174_vm4, 4294967295, %v21607_v16 }
 0x814   :  { %6967 = vmatmul.mubr.f32.vlgmr.msra.gmra.mrb[16].mxu1 %v17853_v9 }
 0x815   :  { %8587 = vmatmul.mubr.f32.vlgmr.msra.gmra.mrb[30].mxu0 %v17853_v9  ;;  %13640 = vmatpush1.bf16.xpose.msk.msra.mxu1 %vm19109_vm9, %v21152_v52  ;;  %vm19188_vm9 = vmpackc.low %vm9085_vm2, %vm9079_vm7  ;;  %vm7471_vm2 = vcmp.eq.f32.partialorder %v14768_v29, %v19161_v44 }
 0x816   :  { %7036 = vmatprep.mubr.f32.mxu1 %v18017_v20  ;;  %13880 = vmatpush1.bf16.xpose.msk.msra.mxu0 %vm19117_vm8, %v21152_v52  ;;  %v21610_v5 = vsel %vm19188_vm9, 4294967295, %v21609_v5  ;;  %vm6839_vm8 = vcmp.eq.f32.partialorder %v14761_v28, %v18816_v42  ;;  %vm19204_vm7 = vmpackc.low %vm7464_vm12, %vm7458_vm13  ;;  %vm7476_vm13 = vcmp.eq.f32.partialorder %v14775_v30, %v19172_v38  ;;  %vm8453_vm12 = vcmp.eq.f32.partialorder %v14761_v28, %v19023_v2 }
 0x817   :  { %8656 = vmatprep.mubr.f32.mxu0 %v18017_v20  ;;  %13642 = vmatprep.subr.msk.bf16.mxu1 %vm19125_vm6, %v21152_v52  ;;  %v21612_v0 = vsel %vm19204_vm7, 4294967295, %v21611_v0  ;;  %vm19215_vm9 = vmpackc.low %vm9084_vm10, %vm9078_vm1  ;;  %vm7470_vm6 = vcmp.eq.f32.partialorder %v14775_v30, %v19161_v44  ;;  %vm8459_vm7 = vcmp.eq.f32.partialorder %v14761_v28, %v19026_v3 }
 0x818   :  { %13882 = vmatprep.subr.msk.bf16.mxu0 %vm19133_vm14, %v21152_v52  ;;  %v21614_v63 = vsel %vm19215_vm9, 4294967295, %v21613_v63  ;;  %vm19227_vm4 = vmpackc.low %vm7477_vm3, %vm7471_vm2  ;;  %vm21617_vm14 = vcmp.eq.f32.partialorder %v14761_v28, %v18813_v32  ;;  %vm6832_vm3 = vcmp.eq.f32.partialorder %v14843_v43, %v18813_v32  ;;  %vm7483_vm2 = vcmp.eq.f32.partialorder %v14768_v29, %v19239_v57 }
 0x819   :  { %vm13645_vm1 = vmpackc.low %vm6839_vm8, %vm21617_vm14  ;;  %vm6838_vm8 = vcmp.eq.f32.partialorder %v14843_v43, %v18816_v42  ;;  %v14399_v32 = vmov 6   ;;  %v21620_v42 = vmov 0 }
 0x81a   :  { %vm19234_vm10 = vmpackc.low %vm7476_vm13, %vm7470_vm6  ;;  %vm8458_vm6 = vcmp.eq.f32.partialorder %v14843_v43, %v19026_v3  ;;  %14337 = vset.pattern.permute.xlu0 %v14399_v32  ;;  %v19300_v32 = vadd.f32 11.0, %v17490_v6 }
 0x81b   :  { %v21619_v15 = vsel %vm19234_vm10, 4294967295, %v21618_v15  ;;  %vm13885_vm9 = vmpackc.low %vm8459_vm7, %vm8453_vm12  ;;  %vm8452_vm7 = vcmp.eq.f32.partialorder %v14843_v43, %v19023_v2  ;;  %vm7488_vm12 = vcmp.eq.f32.partialorder %v14775_v30, %v19242_v51  ;;  %7761 = vperm.xlu0 %14337, %v19279_v21  }
 0x81c   :  { %vm13647_vm14 = vmpackc.low %vm6838_vm8, %vm6832_vm3 }
 0x81d   :  { %13644 = vmatpush1.bf16.xpose.msk.msra.mxu1 %vm19143_vm0, %v21152_v52  ;;  %vm7489_vm0 = vcmp.eq.f32.partialorder %v14768_v29, %v19242_v51  ;;  %vm13887_vm8 = vmpackc.low %vm8458_vm6, %vm8452_vm7  ;;  %vm7495_vm7 = vcmp.eq.f32.partialorder %v14768_v29, %v19294_v62  ;;  %vm7501_vm6 = vcmp.eq.f32.partialorder %v14768_v29, %v19297_v61 }
 0x81e   :  { %13884 = vmatpush1.bf16.xpose.msk.msra.mxu0 %vm19154_vm11, %v21152_v52  ;;  %13646 = vmatprep.subr.msk.bf16.mxu1 %vm13645_vm1, %v21152_v52  ;;  %vm19264_vm13 = vmpackc.low %vm7489_vm0, %vm7483_vm2  ;;  %vm7482_vm11 = vcmp.eq.f32.partialorder %v14775_v30, %v19239_v57  ;;  %vm6845_vm1 = vcmp.eq.f32.partialorder %v14761_v28, %v18859_v36  ;;  %vm8465_vm2 = vcmp.eq.f32.partialorder %v14761_v28, %v18865_v47 }
 0x81f   :  { %13886 = vmatprep.subr.msk.bf16.mxu0 %vm13885_vm9, %v21152_v52  ;;  %v21621_v42 = vsel %vm19264_vm13, 4294967295, %v21620_v42  ;;  %vm6851_vm9 = vcmp.eq.f32.partialorder %v14761_v28, %v18862_v48  ;;  %vm8471_vm0 = vcmp.eq.f32.partialorder %v14761_v28, %v18873_v17  ;;  %vm19286_vm3 = vmpackc.low %vm7488_vm12, %vm7482_vm11  ;;  %vm6844_vm11 = vcmp.eq.f32.partialorder %v14843_v43, %v18859_v36  ;;  %14340 = vset.pattern.permute.xlu0 %v14400_v23 }
 0x820   :  { %v21623_v45 = vsel %vm19286_vm3, 4294967295, %v21622_v45  ;;  %vm13649_vm13 = vmpackc.low %vm6851_vm9, %vm6845_vm1  ;;  %vm6850_vm12 = vcmp.eq.f32.partialorder %v14843_v43, %v18862_v48  ;;  %vm7494_vm9 = vcmp.eq.f32.partialorder %v14775_v30, %v19294_v62  ;;  %8733 = vperm.xlu0 %14340, %v19279_v21   ;;  %v21628_v23 = vmov 0 }
 0x821   :  { %21624 = vst [vmem:[#allocation44_spill] sm:$0xff] %v21623_v45  ;;  %vm13889_vm10 = vmpackc.low %vm8471_vm0, %vm8465_vm2  ;;  %v21625_v45 = vmov 0  ;;  %vm7500_vm2 = vcmp.eq.f32.partialorder %v14775_v30, %v19297_v61  ;;  %vm8464_vm0 = vcmp.eq.f32.partialorder %v14843_v43, %v18865_v47  ;;  %v21633_v36 = vmov 0 }
 0x822   :  { %vm19319_vm1 = vmpackc.low %vm7501_vm6, %vm7495_vm7 }
 0x823   :  { %v21626_v45 = vsel %vm19319_vm1, 4294967295, %v21625_v45  ;;  %vm19338_vm7 = vmpackc.low %vm7500_vm2, %vm7494_vm9  ;;  %vm21632_vm9 = vnez %v21561_v1  ;;  %v19428_v1 = vadd.f32 11.0, %v17422_v39 }
 0x824   :  { %21627 = vst [vmem:[#allocation45_spill] sm:$0xff] %v21626_v45  ;;  %v21630_v45 = vmov 0  ;;  %vm13651_vm6 = vmpackc.low %vm6850_vm12, %vm6844_vm11  ;;  %vm21635_vm11 = vnez %v21563_v11  ;;  %vm8443_vm12 = vcmp.eq.f32.partialorder %v14768_v29, %v18997_v56  ;;  %v19431_v11 = vadd.f32 11.0, %v17425_v41 }
 0x825   :  { %13648 = vmatpush1.bf16.xpose.msk.msra.mxu1 %vm13647_vm14, %v21152_v52  ;;  %vm9115_vm14 = vcmp.eq.f32.partialorder %v14768_v29, %v19300_v32  ;;  %v21631_v45 = vsel %vm19338_vm7, 4294967295, %v21630_v45 }
 0x826   :  { %13888 = vmatpush1.bf16.xpose.msk.msra.mxu0 %vm13887_vm8, %v21152_v52  ;;  %13650 = vmatprep.subr.msk.bf16.mxu1 %vm13649_vm13, %v21152_v52  ;;  %vm9121_vm13 = vcmp.eq.f32.partialorder %v14768_v29, %v19308_v31 }
 0x827   :  { %13890 = vmatprep.subr.msk.bf16.mxu0 %vm13889_vm10, %v21152_v52  ;;  %vm8470_vm10 = vcmp.eq.f32.partialorder %v14843_v43, %v18873_v17  ;;  %vm19334_vm8 = vmpackc.low %vm9121_vm13, %vm9115_vm14  ;;  %vm9114_vm14 = vcmp.eq.f32.partialorder %v14775_v30, %v19300_v32  ;;  %vm9120_vm13 = vcmp.eq.f32.partialorder %v14775_v30, %v19308_v31 }
 0x828   :  { %v21629_v23 = vsel %vm19334_vm8, 4294967295, %v21628_v23  ;;  %vm13891_vm1 = vmpackc.low %vm8470_vm10, %vm8464_vm0  ;;  %vm8449_vm0 = vcmp.eq.f32.partialorder %v14768_v29, %v19000_v22  ;;  %vm7462_vm8 = vcmp.eq.f32.partialorder %v14843_v43, %v19141_v46 }
 0x829   :  { %vm19357_vm2 = vmpackc.low %vm9120_vm13, %vm9114_vm14  ;;  %vm21638_vm14 = vnez %v21569_v34  ;;  %vm8442_vm13 = vcmp.eq.f32.partialorder %v14775_v30, %v18997_v56 }
 0x82a   :  { %v21634_v36 = vsel %vm19357_vm2, 4294967295, %v21633_v36  ;;  %vm13897_vm10 = vmpackc.low %vm8449_vm0, %vm8443_vm12  ;;  %vm8461_vm12 = vcmp.eq.f32.partialorder %v14768_v29, %v19026_v3  ;;  %vm8460_vm2 = vcmp.eq.f32.partialorder %v14775_v30, %v19026_v3  ;;  %v19676_v3 = vadd.f32 8.0, %v17456_v58 }
 0x82d   :  { %13652 = vmatpush1.bf16.xpose.msk.msra.mxu1 %vm13651_vm6, %v21152_v52  ;;  %vm21637_vm6 = vnez %v21567_v27  ;;  %v21644_v27 = vld [vmem:[#allocation2_spill] sm:$0xff] }
 0x82e   :  { %13892 = vmatpush1.bf16.xpose.msk.msra.mxu0 %vm13891_vm1, %v21152_v52  ;;  %13654 = vmatprep.subr.msk.bf16.mxu1 %vm21632_vm9, %v21152_v52  ;;  %vm21636_vm1 = vnez %v21565_v24  ;;  %vm8448_vm9 = vcmp.eq.f32.partialorder %v14775_v30, %v19000_v22  ;;  %v19457_v24 = vadd.f32 11.0, %v17456_v58  ;;  %v5823_v34 = vrot.slane %v19076_v60, %v21644_v27 }
 0x82f   :  { %13894 = vmatprep.subr.msk.bf16.mxu0 %vm21635_vm11, %v21152_v52  ;;  %vm8455_vm11 = vcmp.eq.f32.partialorder %v14768_v29, %v19023_v2  ;;  %vm13899_vm0 = vmpackc.low %vm8448_vm9, %vm8442_vm13  ;;  %vm21641_vm9 = vnez %v21580_v18  ;;  %v21677_v60 = vmov 0 }
 0x834   :  { %7037 = vmatmul.mubr.f32.vlgmr.msra.gmra.mrb[16].mxu1 %v18011_v53 }
 0x835   :  { %8657 = vmatmul.mubr.f32.vlgmr.msra.gmra.mrb[30].mxu0 %v18011_v53  ;;  %13656 = vmatpush1.bf16.xpose.msk.msra.mxu1 %vm21636_vm1, %v21152_v52  ;;  %vm13901_vm1 = vmpackc.low %vm8461_vm12, %vm8455_vm11  ;;  %vm7455_vm11 = vcmp.eq.f32.partialorder %v14701_v10, %v19138_v8  ;;  %vm9075_vm12 = vcmp.eq.f32.partialorder %v14701_v10, %v19148_v54 }
 0x836   :  { %7106 = vmatprep.mubr.f32.mxu1 %v17722_v40  ;;  %13896 = vmatpush1.bf16.xpose.msk.msra.mxu0 %vm21637_vm6, %v21152_v52  ;;  %vm21639_vm6 = vnez %v21572_v37  ;;  %v5818_v37 = vpop.permute.xlu1 %5817 }
 0x837   :  { %8726 = vmatprep.mubr.f32.mxu0 %v17722_v40  ;;  %13658 = vmatprep.subr.msk.bf16.mxu1 %vm21638_vm14, %v21152_v52  ;;  %vm8454_vm14 = vcmp.eq.f32.partialorder %v14775_v30, %v19023_v2 }
 0x838   :  { %13898 = vmatprep.subr.msk.bf16.mxu0 %vm13897_vm10, %v21152_v52  ;;  %vm21640_vm10 = vnez %v21574_v55  ;;  %vm13903_vm13 = vmpackc.low %vm8460_vm2, %vm8454_vm14  ;;  %vm7461_vm2 = vcmp.eq.f32.partialorder %v14701_v10, %v19141_v46  ;;  %vm7460_vm14 = vcmp.eq.f32.partialorder %v14708_v13, %v19141_v46  ;;  %v5824_v55 = vmul.f32 %v5823_v34, %v5818_v37 }
 0x839   :  { %v19585_v34 = vadd.f32 13.0, %v17408_v12  ;;  %v19730_v37 = vadd.f32 13.0, %v17490_v6 }
 0x83a   :  { %v6142_v18 = vpop.permute.xlu1 %6141  ;;  %v5825_v56 = vadd.f32 %v5824_v55, %v5498_v33  ;;  %v19595_v55 = vadd.f32 8.0, %v17422_v39  ;;  %v19606_v33 = vadd.f32 8.0, %v17425_v41 }
 0x83d   :  { %13660 = vmatpush1.bf16.xpose.msk.msra.mxu1 %vm21639_vm6, %v21152_v52  ;;  %vm21643_vm6 = vnez %v21585_v19 }
 0x83e   :  { %13900 = vmatpush1.bf16.xpose.msk.msra.mxu0 %vm13899_vm0, %v21152_v52  ;;  %13662 = vmatprep.subr.msk.bf16.mxu1 %vm21640_vm10, %v21152_v52  ;;  %vm13717_vm0 = vmpackc.low %vm7461_vm2, %vm7455_vm11  ;;  %vm7454_vm10 = vcmp.eq.f32.partialorder %v14708_v13, %v19138_v8  ;;  %vm7467_vm11 = vcmp.eq.f32.partialorder %v14701_v10, %v19161_v44  ;;  %vm7473_vm2 = vcmp.eq.f32.partialorder %v14701_v10, %v19172_v38 }
 0x83f   :  { %13902 = vmatprep.subr.msk.bf16.mxu0 %vm13901_vm1, %v21152_v52 }
 0x845   :  { %13664 = vmatpush1.bf16.xpose.msk.msra.mxu1 %vm18854_vm15, %v21152_v52  ;;  %vm9081_vm15 = vcmp.eq.f32.partialorder %v14701_v10, %v19151_v59 }
 0x846   :  { %13904 = vmatpush1.bf16.xpose.msk.msra.mxu0 %vm13903_vm13, %v21152_v52  ;;  %13666 = vmatprep.subr.msk.bf16.mxu1 %vm18884_vm5, %v21152_v52  ;;  %vm13957_vm1 = vmpackc.low %vm9081_vm15, %vm9075_vm12  ;;  %vm21642_vm5 = vnez %v21582_v35  ;;  %vm9074_vm13 = vcmp.eq.f32.partialorder %v14708_v13, %v19148_v54  ;;  %vm9087_vm15 = vcmp.eq.f32.partialorder %v14701_v10, %v19428_v1  ;;  %v19454_v35 = vadd.f32 11.0, %v17453_v50 }
 0x847   :  { %13906 = vmatprep.subr.msk.bf16.mxu0 %vm21641_vm9, %v21152_v52  ;;  %vm9080_vm9 = vcmp.eq.f32.partialorder %v14708_v13, %v19151_v59  ;;  %vm13719_vm12 = vmpackc.low %vm7460_vm14, %vm7454_vm10  ;;  %vm7466_vm10 = vcmp.eq.f32.partialorder %v14708_v13, %v19161_v44  ;;  %vm7472_vm14 = vcmp.eq.f32.partialorder %v14708_v13, %v19172_v38 }
 0x84d   :  { %13668 = vmatpush1.bf16.xpose.msk.msra.mxu1 %vm21642_vm5, %v21152_v52  ;;  %vm13721_vm5 = vmpackc.low %vm7473_vm2, %vm7467_vm11  ;;  %vm7479_vm11 = vcmp.eq.f32.partialorder %v14701_v10, %v19239_v57  ;;  %vm7485_vm2 = vcmp.eq.f32.partialorder %v14701_v10, %v19242_v51 }
 0x84e   :  { %13908 = vmatpush1.bf16.xpose.msk.msra.mxu0 %vm21643_vm6, %v21152_v52  ;;  %13718 = vmatprep.subr.msk.bf16.mxu1 %vm13717_vm0, %v21152_v52  ;;  %vm9093_vm0 = vcmp.eq.f32.partialorder %v14701_v10, %v19431_v11 }
 0x84f   :  { %13958 = vmatprep.subr.msk.bf16.mxu0 %vm13957_vm1, %v21152_v52  ;;  %vm13959_vm1 = vmpackc.low %vm9080_vm9, %vm9074_vm13  ;;  %vm9086_vm13 = vcmp.eq.f32.partialorder %v14708_v13, %v19428_v1  ;;  %vm9092_vm9 = vcmp.eq.f32.partialorder %v14708_v13, %v19431_v11 }
 0x850   :  { %vm13961_vm6 = vmpackc.low %vm9093_vm0, %vm9087_vm15  ;;  %vm9099_vm15 = vcmp.eq.f32.partialorder %v14701_v10, %v19454_v35  ;;  %vm9105_vm0 = vcmp.eq.f32.partialorder %v14701_v10, %v19457_v24 }
 0x851   :  { %vm13965_vm7 = vmpackc.low %vm9105_vm0, %vm9099_vm15  ;;  %vm9117_vm15 = vcmp.eq.f32.partialorder %v14701_v10, %v19308_v31 }
 0x854   :  { %7107 = vmatmul.mubr.f32.vlgmr.msra.gmra.mrb[16].mxu1 %v17720_v4 }
 0x855   :  { %8727 = vmatmul.mubr.f32.vlgmr.msra.gmra.mrb[30].mxu0 %v17720_v4  ;;  %13720 = vmatpush1.bf16.xpose.msk.msra.mxu1 %vm13719_vm12, %v21152_v52  ;;  %vm13723_vm12 = vmpackc.low %vm7472_vm14, %vm7466_vm10  ;;  %vm7484_vm10 = vcmp.eq.f32.partialorder %v14708_v13, %v19242_v51  ;;  %vm9098_vm14 = vcmp.eq.f32.partialorder %v14708_v13, %v19454_v35 }
 0x856   :  { %7614 = vmatprep.mubr.f32.mxu1 %v17863_v25  ;;  %13960 = vmatpush1.bf16.xpose.msk.msra.mxu0 %vm13959_vm1, %v21152_v52  ;;  %vm13963_vm1 = vmpackc.low %vm9092_vm9, %vm9086_vm13  ;;  %vm9104_vm13 = vcmp.eq.f32.partialorder %v14708_v13, %v19457_v24  ;;  %vm7491_vm9 = vcmp.eq.f32.partialorder %v14701_v10, %v19294_v62 }
 0x857   :  { %9234 = vmatprep.mubr.f32.mxu0 %v17863_v25  ;;  %13722 = vmatprep.subr.msk.bf16.mxu1 %vm13721_vm5, %v21152_v52  ;;  %vm13725_vm5 = vmpackc.low %vm7485_vm2, %vm7479_vm11  ;;  %vm7497_vm11 = vcmp.eq.f32.partialorder %v14701_v10, %v19297_v61 }
 0x858   :  { %13962 = vmatprep.subr.msk.bf16.mxu0 %vm13961_vm6, %v21152_v52  ;;  %vm7478_vm6 = vcmp.eq.f32.partialorder %v14708_v13, %v19239_v57  ;;  %vm13729_vm0 = vmpackc.low %vm7497_vm11, %vm7491_vm9  ;;  %vm7463_vm9 = vcmp.eq.f32.partialorder %v14761_v28, %v19141_v46  ;;  %v19724_v46 = vadd.f32 8.0, %v17490_v6 }
 0x859   :  { %vm13727_vm2 = vmpackc.low %vm7484_vm10, %vm7478_vm6  ;;  %vm7496_vm6 = vcmp.eq.f32.partialorder %v14708_v13, %v19297_v61  ;;  %vm9110_vm10 = vcmp.eq.f32.partialorder %v14708_v13, %v19300_v32 }
 0x85d   :  { %13724 = vmatpush1.bf16.xpose.msk.msra.mxu1 %vm13723_vm12, %v21152_v52  ;;  %vm9111_vm12 = vcmp.eq.f32.partialorder %v14701_v10, %v19300_v32 }
 0x85e   :  { %13964 = vmatpush1.bf16.xpose.msk.msra.mxu0 %vm13963_vm1, %v21152_v52  ;;  %13726 = vmatprep.subr.msk.bf16.mxu1 %vm13725_vm5, %v21152_v52  ;;  %vm13969_vm1 = vmpackc.low %vm9117_vm15, %vm9111_vm12  ;;  %vm7490_vm5 = vcmp.eq.f32.partialorder %v14708_v13, %v19294_v62  ;;  %vm9083_vm12 = vcmp.eq.f32.partialorder %v14761_v28, %v19151_v59 }
 0x85f   :  { %13966 = vmatprep.subr.msk.bf16.mxu0 %vm13965_vm7, %v21152_v52  ;;  %vm13967_vm7 = vmpackc.low %vm9104_vm13, %vm9098_vm14  ;;  %vm9116_vm14 = vcmp.eq.f32.partialorder %v14708_v13, %v19308_v31  ;;  %vm7457_vm13 = vcmp.eq.f32.partialorder %v14761_v28, %v19138_v8 }
 0x860   :  { %vm13731_vm11 = vmpackc.low %vm7496_vm6, %vm7490_vm5  ;;  %vm9076_vm5 = vcmp.eq.f32.partialorder %v14843_v43, %v19148_v54  ;;  %vm9082_vm6 = vcmp.eq.f32.partialorder %v14843_v43, %v19151_v59  ;;  %v19575_v59 = vadd.f32 8.0, %v17408_v12 }
 0x861   :  { %vm13971_vm15 = vmpackc.low %vm9116_vm14, %vm9110_vm10  ;;  %vm7469_vm10 = vcmp.eq.f32.partialorder %v14761_v28, %v19161_v44  ;;  %vm7475_vm14 = vcmp.eq.f32.partialorder %v14761_v28, %v19172_v38 }
 0x865   :  { %13728 = vmatpush1.bf16.xpose.msk.msra.mxu1 %vm13727_vm2, %v21152_v52  ;;  %vm9077_vm2 = vcmp.eq.f32.partialorder %v14761_v28, %v19148_v54  ;;  %v19572_v54 = vadd.f32 8.0, %v17405_v49 }
 0x866   :  { %13968 = vmatpush1.bf16.xpose.msk.msra.mxu0 %vm13967_vm7, %v21152_v52  ;;  %13730 = vmatprep.subr.msk.bf16.mxu1 %vm13729_vm0, %v21152_v52  ;;  %vm13733_vm7 = vmpackc.low %vm7463_vm9, %vm7457_vm13  ;;  %vm9089_vm9 = vcmp.eq.f32.partialorder %v14761_v28, %v19428_v1 }
 0x867   :  { %v6136_v48 = vpop.f32.mrb[12].mxu1  ;;  %13970 = vmatprep.subr.msk.bf16.mxu0 %vm13969_vm1, %v21152_v52  ;;  %vm13973_vm0 = vmpackc.low %vm9083_vm12, %vm9077_vm2  ;;  %vm7456_vm1 = vcmp.eq.f32.partialorder %v14843_v43, %v19138_v8  ;;  %vm7468_vm12 = vcmp.eq.f32.partialorder %v14843_v43, %v19161_v44  ;;  %v19727_v44 = vadd.f32 8.0, %v17493_v7 }
 0x868   :  { %v6147_v47 = vrot.slane %v6136_v48, %v21644_v27  ;;  %v19515_v17 = vpop.f32.mrb[26].mxu0  ;;  %v6138_v14 = vpop.f32.mrb[13].mxu1  ;;  %vm19543_vm13 = vmpackc.low %vm7462_vm8, %vm7456_vm1  ;;  %v21658_v48 = vmov 0 }
 0x869   :  { %21645 = vst [vmem:[#allocation48_spill] sm:$0xff] %v19515_v17  ;;  %v7434_v19 = vpop.f32.mrb[27].mxu0  ;;  %vm19551_vm2 = vmpackc.low %vm9082_vm6, %vm9076_vm5  ;;  %v21662_v14 = vmov 0  ;;  %v19738_v17 = vadd.f32 13.0, %v17493_v7 }
 0x86a   :  { %v6148_v22 = vmul.f32 %v6147_v47, %v6142_v18  ;;  %vm19559_vm8 = vmpackc.low %vm7475_vm14, %vm7469_vm10  ;;  %vm8107_vm14 = vcmp.eq.f32.partialorder %v14768_v29, %v19572_v54  ;;  %v21660_v47 = vmov 0  ;;  %vm8125_vm10 = vcmp.eq.f32.partialorder %v14768_v29, %v19606_v33  ;;  %v21744_v19 = vld [vmem:[#allocation65_spill] sm:$0xff] }
 0x86b   :  { %v21664_v18 = vmov 0 }
 0x86c   :  { %v19525_v2 = vadd.f32 %v6148_v22, %v5825_v56  ;;  %v21669_v56 = vmov 0  ;;  %v19673_v22 = vadd.f32 8.0, %v17453_v50 }
 0x86d   :  { %13732 = vmatpush1.bf16.xpose.msk.msra.mxu1 %vm13731_vm11, %v21152_v52  ;;  %vm9095_vm11 = vcmp.eq.f32.partialorder %v14761_v28, %v19431_v11 }
 0x86e   :  { %13972 = vmatpush1.bf16.xpose.msk.msra.mxu0 %vm13971_vm15, %v21152_v52  ;;  %13734 = vmatprep.subr.msk.bf16.mxu1 %vm13733_vm7, %v21152_v52  ;;  %vm7474_vm15 = vcmp.eq.f32.partialorder %v14843_v43, %v19172_v38  ;;  %vm9088_vm7 = vcmp.eq.f32.partialorder %v14843_v43, %v19428_v1  ;;  %vm19567_vm1 = vmpackc.low %vm9095_vm11, %vm9089_vm9  ;;  %v19582_v38 = vadd.f32 13.0, %v17405_v49  ;;  %vm8113_vm9 = vcmp.eq.f32.partialorder %v14768_v29, %v19575_v59 }
 0x86f   :  { %13974 = vmatprep.subr.msk.bf16.mxu0 %vm13973_vm0, %v21152_v52  ;;  %vm9094_vm0 = vcmp.eq.f32.partialorder %v14843_v43, %v19431_v11  ;;  %vm19577_vm5 = vmpackc.low %vm7474_vm15, %vm7468_vm12  ;;  %vm9733_vm15 = vcmp.eq.f32.partialorder %v14768_v29, %v19585_v34 }
 0x870   :  { %vm19588_vm6 = vmpackc.low %vm9094_vm0, %vm9088_vm7  ;;  %vm9727_vm12 = vcmp.eq.f32.partialorder %v14768_v29, %v19582_v38  ;;  %vm8106_vm7 = vcmp.eq.f32.partialorder %v14775_v30, %v19572_v54  ;;  %vm8112_vm0 = vcmp.eq.f32.partialorder %v14775_v30, %v19575_v59 }
 0x871   :  { %vm19608_vm11 = vmpackc.low %vm8113_vm9, %vm8107_vm14  ;;  %vm9726_vm14 = vcmp.eq.f32.partialorder %v14775_v30, %v19582_v38  ;;  %vm9732_vm9 = vcmp.eq.f32.partialorder %v14775_v30, %v19585_v34 }
 0x872   :  { %v21659_v48 = vsel %vm19608_vm11, 4294967295, %v21658_v48 }
 0x874   :  { %7615 = vmatmul.mubr.f32.vlgmr.msra.gmra.mrb[18].mxu1 %v17853_v9 }
 0x875   :  { %9235 = vmatmul.mubr.f32.vlgmr.msra.gmra.mrb[32].mxu0 %v17853_v9  ;;  %13736 = vmatpush1.bf16.xpose.msk.msra.mxu1 %vm19543_vm13, %v21152_v52  ;;  %vm19622_vm13 = vmpackc.low %vm9733_vm15, %vm9727_vm12  ;;  %vm8119_vm15 = vcmp.eq.f32.partialorder %v14768_v29, %v19595_v55 }
 0x876   :  { %7684 = vmatprep.mubr.f32.mxu1 %v18017_v20  ;;  %13976 = vmatpush1.bf16.xpose.msk.msra.mxu0 %vm19551_vm2, %v21152_v52  ;;  %v21661_v47 = vsel %vm19622_vm13, 4294967295, %v21660_v47  ;;  %vm7487_vm2 = vcmp.eq.f32.partialorder %v14761_v28, %v19242_v51  ;;  %vm19638_vm12 = vmpackc.low %vm8112_vm0, %vm8106_vm7  ;;  %vm8124_vm7 = vcmp.eq.f32.partialorder %v14775_v30, %v19606_v33  ;;  %vm9101_vm0 = vcmp.eq.f32.partialorder %v14761_v28, %v19454_v35 }
 0x877   :  { %9304 = vmatprep.mubr.f32.mxu0 %v18017_v20  ;;  %13738 = vmatprep.subr.msk.bf16.mxu1 %vm19559_vm8, %v21152_v52  ;;  %v21663_v14 = vsel %vm19638_vm12, 4294967295, %v21662_v14  ;;  %vm19649_vm13 = vmpackc.low %vm9732_vm9, %vm9726_vm14  ;;  %vm8118_vm8 = vcmp.eq.f32.partialorder %v14775_v30, %v19595_v55  ;;  %vm9107_vm12 = vcmp.eq.f32.partialorder %v14761_v28, %v19457_v24 }
 0x878   :  { %13978 = vmatprep.subr.msk.bf16.mxu0 %vm19567_vm1, %v21152_v52  ;;  %v21665_v18 = vsel %vm19649_vm13, 4294967295, %v21664_v18  ;;  %vm19661_vm11 = vmpackc.low %vm8125_vm10, %vm8119_vm15  ;;  %vm21668_vm1 = vcmp.eq.f32.partialorder %v14761_v28, %v19239_v57  ;;  %vm7480_vm10 = vcmp.eq.f32.partialorder %v14843_v43, %v19239_v57  ;;  %vm8137_vm15 = vcmp.eq.f32.partialorder %v14768_v29, %v19676_v3 }
 0x879   :  { %vm13741_vm14 = vmpackc.low %vm7487_vm2, %vm21668_vm1  ;;  %vm7486_vm2 = vcmp.eq.f32.partialorder %v14843_v43, %v19242_v51  ;;  %v14401_v57 = vmov 8   ;;  %v21671_v51 = vmov 0  ;;  %vm7499_vm1 = vcmp.eq.f32.partialorder %v14761_v28, %v19297_v61 }
 0x87a   :  { %vm19668_vm9 = vmpackc.low %vm8124_vm7, %vm8118_vm8  ;;  %vm9106_vm8 = vcmp.eq.f32.partialorder %v14843_v43, %v19457_v24  ;;  %14339 = vset.pattern.permute.xlu1 %v14401_v57  ;;  %v14402_v57 = vmov 10  }
 0x87b   :  { %v21670_v56 = vsel %vm19668_vm9, 4294967295, %v21669_v56  ;;  %vm13981_vm13 = vmpackc.low %vm9107_vm12, %vm9101_vm0  ;;  %vm8131_vm12 = vcmp.eq.f32.partialorder %v14768_v29, %v19673_v22  ;;  %8409 = vperm.xlu1 %14339, %v19279_v21  }
 0x87c   :  { %vm19698_vm7 = vmpackc.low %vm8137_vm15, %vm8131_vm12  ;;  %vm9113_vm12 = vcmp.eq.f32.partialorder %v14761_v28, %v19300_v32 }
 0x87d   :  { %13740 = vmatpush1.bf16.xpose.msk.msra.mxu1 %vm19577_vm5, %v21152_v52  ;;  %vm9100_vm5 = vcmp.eq.f32.partialorder %v14843_v43, %v19454_v35  ;;  %v21672_v51 = vsel %vm19698_vm7, 4294967295, %v21671_v51  ;;  %vm19704_vm0 = vmpackc.low %vm7486_vm2, %vm7480_vm10  ;;  %vm9119_vm10 = vcmp.eq.f32.partialorder %v14761_v28, %v19308_v31 }
 0x87e   :  { %13980 = vmatpush1.bf16.xpose.msk.msra.mxu0 %vm19588_vm6, %v21152_v52  ;;  %13742 = vmatprep.subr.msk.bf16.mxu1 %vm13741_vm14, %v21152_v52  ;;  %vm8130_vm6 = vcmp.eq.f32.partialorder %v14775_v30, %v19673_v22  ;;  %vm8136_vm14 = vcmp.eq.f32.partialorder %v14775_v30, %v19676_v3  ;;  %vm13983_vm15 = vmpackc.low %vm9106_vm8, %vm9100_vm5  ;;  %vm7492_vm5 = vcmp.eq.f32.partialorder %v14843_v43, %v19294_v62 }
 0x87f   :  { %13982 = vmatprep.subr.msk.bf16.mxu0 %vm13981_vm13, %v21152_v52  ;;  %vm7493_vm13 = vcmp.eq.f32.partialorder %v14761_v28, %v19294_v62  ;;  %vm19719_vm2 = vmpackc.low %vm8136_vm14, %vm8130_vm6  ;;  %14341 = vset.pattern.permute.xlu1 %v14402_v57  ;;  %vm8143_vm8 = vcmp.eq.f32.partialorder %v14768_v29, %v19724_v46  ;;  %vm8149_vm6 = vcmp.eq.f32.partialorder %v14768_v29, %v19727_v44  ;;  %v14403_v57 = vmov 11   ;;  %v21698_v62 = vld [vmem:[#allocation41_spill] sm:$0xff] }
 0x880   :  { %vm13745_vm7 = vmpackc.low %vm7499_vm1, %vm7493_vm13  ;;  %9057 = vperm.xlu1 %14341, %v19279_v21   ;;  %vm7498_vm13 = vcmp.eq.f32.partialorder %v14843_v43, %v19297_v61  ;;  %vm8142_vm14 = vcmp.eq.f32.partialorder %v14775_v30, %v19724_v46  ;;  %v21680_v61 = vmov 0 }
 0x881   :  { %vm13985_vm9 = vmpackc.low %vm9119_vm10, %vm9113_vm12  ;;  %vm8148_vm12 = vcmp.eq.f32.partialorder %v14775_v30, %v19727_v44  ;;  %vm9112_vm10 = vcmp.eq.f32.partialorder %v14843_v43, %v19300_v32  ;;  %v6795_v32 = vrot.slane %v21698_v62, %v21644_v27  ;;  %v20305_v62 = vadd.f32 12.0, %v17408_v12 }
 0x882   :  { %vm19752_vm1 = vmpackc.low %vm8149_vm6, %vm8143_vm8 }
 0x883   :  { %v21678_v60 = vsel %vm19752_vm1, 4294967295, %v21677_v60  ;;  %vm19770_vm8 = vmpackc.low %vm8148_vm12, %vm8142_vm14  ;;  %vm21684_vm14 = vnez %v21608_v16 }
 0x884   :  { %21679 = vst [vmem:[#allocation49_spill] sm:$0xff] %v21678_v60  ;;  %14342 = vset.pattern.permute.xlu1 %v14403_v57  ;;  %v21682_v60 = vmov 0  ;;  %vm13747_vm6 = vmpackc.low %vm7498_vm13, %vm7492_vm5  ;;  %vm21687_vm5 = vnez %v21610_v5  ;;  %vm9091_vm13 = vcmp.eq.f32.partialorder %v14768_v29, %v19428_v1  ;;  %v21693_v5 = vld [vmem:[#allocation45_spill] sm:$0xff] }
 0x885   :  { %13744 = vmatpush1.bf16.xpose.msk.msra.mxu1 %vm19704_vm0, %v21152_v52  ;;  %vm9763_vm0 = vcmp.eq.f32.partialorder %v14768_v29, %v19730_v37  ;;  %v21683_v60 = vsel %vm19770_vm8, 4294967295, %v21682_v60  ;;  %9381 = vperm.xlu1 %14342, %v19279_v21  }
 0x886   :  { %13984 = vmatpush1.bf16.xpose.msk.msra.mxu0 %vm13983_vm15, %v21152_v52  ;;  %13746 = vmatprep.subr.msk.bf16.mxu1 %vm13745_vm7, %v21152_v52  ;;  %vm9769_vm7 = vcmp.eq.f32.partialorder %v14768_v29, %v19738_v17 }
 0x887   :  { %13986 = vmatprep.subr.msk.bf16.mxu0 %vm13985_vm9, %v21152_v52  ;;  %vm9118_vm9 = vcmp.eq.f32.partialorder %v14843_v43, %v19308_v31  ;;  %vm19766_vm15 = vmpackc.low %vm9769_vm7, %vm9763_vm0  ;;  %vm9762_vm0 = vcmp.eq.f32.partialorder %v14775_v30, %v19730_v37  ;;  %vm9768_vm7 = vcmp.eq.f32.partialorder %v14775_v30, %v19738_v17  ;;  %v21685_v31 = vmov 0 }
 0x888   :  { %v21681_v61 = vsel %vm19766_vm15, 4294967295, %v21680_v61  ;;  %vm13987_vm1 = vmpackc.low %vm9118_vm9, %vm9112_vm10  ;;  %vm9097_vm10 = vcmp.eq.f32.partialorder %v14768_v29, %v19431_v11 }
 0x889   :  { %vm19787_vm12 = vmpackc.low %vm9768_vm7, %vm9762_vm0  ;;  %vm9090_vm0 = vcmp.eq.f32.partialorder %v14775_v30, %v19428_v1  ;;  %vm9096_vm7 = vcmp.eq.f32.partialorder %v14775_v30, %v19431_v11  ;;  %v6466_v11 = vpop.permute.xlu1 %6465 }
 0x88a   :  { %v21686_v31 = vsel %vm19787_vm12, 4294967295, %v21685_v31  ;;  %vm13993_vm9 = vmpackc.low %vm9097_vm10, %vm9091_vm13 }
 0x88b   :  { %vm13995_vm13 = vmpackc.low %vm9096_vm7, %vm9090_vm0  ;;  %vm21694_vm7 = vnez %v21693_v5 }
 0x88d   :  { %13748 = vmatpush1.bf16.xpose.msk.msra.mxu1 %vm13747_vm6, %v21152_v52  ;;  %vm21689_vm6 = vnez %v21614_v63  ;;  %v19861_v63 = vadd.f32 13.0, %v17425_v41 }
 0x88e   :  { %13988 = vmatpush1.bf16.xpose.msk.msra.mxu0 %vm13987_vm1, %v21152_v52  ;;  %13750 = vmatprep.subr.msk.bf16.mxu1 %vm21684_vm14, %v21152_v52  ;;  %vm21688_vm1 = vnez %v21612_v0  ;;  %vm9103_vm14 = vcmp.eq.f32.partialorder %v14768_v29, %v19454_v35  ;;  %v19858_v0 = vadd.f32 13.0, %v17422_v39 }
 0x88f   :  { %13990 = vmatprep.subr.msk.bf16.mxu0 %vm21687_vm5, %v21152_v52  ;;  %vm9109_vm5 = vcmp.eq.f32.partialorder %v14768_v29, %v19457_v24 }
 0x890   :  { %vm13997_vm10 = vmpackc.low %vm9109_vm5, %vm9103_vm14  ;;  %vm21695_vm14 = vnez %v21629_v23  ;;  %vm8103_vm5 = vcmp.eq.f32.partialorder %v14701_v10, %v19572_v54 }
 0x894   :  { %7685 = vmatmul.mubr.f32.vlgmr.msra.gmra.mrb[18].mxu1 %v18011_v53 }
 0x895   :  { %9305 = vmatmul.mubr.f32.vlgmr.msra.gmra.mrb[32].mxu0 %v18011_v53  ;;  %13752 = vmatpush1.bf16.xpose.msk.msra.mxu1 %vm21688_vm1, %v21152_v52  ;;  %vm21690_vm1 = vnez %v21619_v15  ;;  %v19887_v15 = vadd.f32 13.0, %v17456_v58 }
 0x896   :  { %7754 = vmatprep.mubr.f32.mxu1 %v17722_v40  ;;  %13992 = vmatpush1.bf16.xpose.msk.msra.mxu0 %vm21689_vm6, %v21152_v52  ;;  %vm9108_vm6 = vcmp.eq.f32.partialorder %v14775_v30, %v19457_v24 }
 0x897   :  { %9374 = vmatprep.mubr.f32.mxu0 %v17722_v40  ;;  %13754 = vmatprep.subr.msk.bf16.mxu1 %vm19227_vm4, %v21152_v52  ;;  %vm21691_vm4 = vnez %v21621_v42  ;;  %v6790_v42 = vpop.permute.xlu0 %6789 }
 0x898   :  { %13994 = vmatprep.subr.msk.bf16.mxu0 %vm13993_vm9, %v21152_v52  ;;  %vm9102_vm9 = vcmp.eq.f32.partialorder %v14775_v30, %v19454_v35  ;;  %v6796_v57 = vmul.f32 %v6795_v32, %v6790_v42  ;;  %v20000_v42 = vadd.f32 10.0, %v17422_v39  ;;  %v21707_v32 = vmov 0 }
 0x899   :  { %vm13999_vm0 = vmpackc.low %vm9108_vm6, %vm9102_vm9  ;;  %vm21696_vm9 = vnez %v21631_v45  ;;  %vm21697_vm6 = vnez %v21634_v36 }
 0x89d   :  { %13756 = vmatpush1.bf16.xpose.msk.msra.mxu1 %vm21690_vm1, %v21152_v52 }
 0x89e   :  { %13996 = vmatpush1.bf16.xpose.msk.msra.mxu0 %vm13995_vm13, %v21152_v52  ;;  %13758 = vmatprep.subr.msk.bf16.mxu1 %vm21691_vm4, %v21152_v52  ;;  %vm8109_vm13 = vcmp.eq.f32.partialorder %v14701_v10, %v19575_v59 }
 0x89f   :  { %13998 = vmatprep.subr.msk.bf16.mxu0 %vm13997_vm10, %v21152_v52  ;;  %vm9723_vm10 = vcmp.eq.f32.partialorder %v14701_v10, %v19582_v38  ;;  %vm13813_vm1 = vmpackc.low %vm8109_vm13, %vm8103_vm5  ;;  %vm9728_vm5 = vcmp.eq.f32.partialorder %v14708_v13, %v19585_v34  ;;  %vm8115_vm13 = vcmp.eq.f32.partialorder %v14701_v10, %v19595_v55 }
 0x8a5   :  { %13760 = vmatpush1.bf16.xpose.msk.msra.mxu1 %vm19286_vm3, %v21152_v52  ;;  %vm9729_vm3 = vcmp.eq.f32.partialorder %v14701_v10, %v19585_v34 }
 0x8a6   :  { %14000 = vmatpush1.bf16.xpose.msk.msra.mxu0 %vm13999_vm0, %v21152_v52  ;;  %13762 = vmatprep.subr.msk.bf16.mxu1 %vm21694_vm7, %v21152_v52  ;;  %vm14053_vm4 = vmpackc.low %vm9729_vm3, %vm9723_vm10  ;;  %vm8102_vm0 = vcmp.eq.f32.partialorder %v14708_v13, %v19572_v54  ;;  %vm8108_vm7 = vcmp.eq.f32.partialorder %v14708_v13, %v19575_v59  ;;  %vm8121_vm10 = vcmp.eq.f32.partialorder %v14701_v10, %v19606_v33 }
 0x8a7   :  { %14002 = vmatprep.subr.msk.bf16.mxu0 %vm21695_vm14, %v21152_v52  ;;  %vm9722_vm14 = vcmp.eq.f32.partialorder %v14708_v13, %v19582_v38  ;;  %vm13815_vm3 = vmpackc.low %vm8108_vm7, %vm8102_vm0  ;;  %vm8114_vm0 = vcmp.eq.f32.partialorder %v14708_v13, %v19595_v55  ;;  %vm8120_vm7 = vcmp.eq.f32.partialorder %v14708_v13, %v19606_v33 }
 0x8ad   :  { %13764 = vmatpush1.bf16.xpose.msk.msra.mxu1 %vm21696_vm9, %v21152_v52  ;;  %vm14055_vm9 = vmpackc.low %vm9728_vm5, %vm9722_vm14  ;;  %vm9734_vm14 = vcmp.eq.f32.partialorder %v14708_v13, %v19858_v0  ;;  %vm9740_vm5 = vcmp.eq.f32.partialorder %v14708_v13, %v19861_v63 }
 0x8ae   :  { %14004 = vmatpush1.bf16.xpose.msk.msra.mxu0 %vm21697_vm6, %v21152_v52  ;;  %13814 = vmatprep.subr.msk.bf16.mxu1 %vm13813_vm1, %v21152_v52  ;;  %vm9735_vm1 = vcmp.eq.f32.partialorder %v14701_v10, %v19858_v0  ;;  %vm13817_vm6 = vmpackc.low %vm8121_vm10, %vm8115_vm13  ;;  %vm8127_vm13 = vcmp.eq.f32.partialorder %v14701_v10, %v19673_v22  ;;  %vm8133_vm10 = vcmp.eq.f32.partialorder %v14701_v10, %v19676_v3 }
 0x8af   :  { %14054 = vmatprep.subr.msk.bf16.mxu0 %vm14053_vm4, %v21152_v52  ;;  %vm9741_vm4 = vcmp.eq.f32.partialorder %v14701_v10, %v19861_v63 }
 0x8b0   :  { %vm14057_vm12 = vmpackc.low %vm9741_vm4, %vm9735_vm1  ;;  %vm9747_vm1 = vcmp.eq.f32.partialorder %v14701_v10, %v19884_v26  ;;  %vm9753_vm4 = vcmp.eq.f32.partialorder %v14701_v10, %v19887_v15 }
 0x8b1   :  { %vm14061_vm8 = vmpackc.low %vm9753_vm4, %vm9747_vm1  ;;  %vm9765_vm1 = vcmp.eq.f32.partialorder %v14701_v10, %v19738_v17 }
 0x8b4   :  { %7755 = vmatmul.mubr.f32.vlgmr.msra.gmra.mrb[18].mxu1 %v17720_v4 }
 0x8b5   :  { %9375 = vmatmul.mubr.f32.vlgmr.msra.gmra.mrb[32].mxu0 %v17720_v4  ;;  %13816 = vmatpush1.bf16.xpose.msk.msra.mxu1 %vm13815_vm3, %v21152_v52  ;;  %vm13819_vm3 = vmpackc.low %vm8120_vm7, %vm8114_vm0  ;;  %vm8132_vm0 = vcmp.eq.f32.partialorder %v14708_v13, %v19676_v3  ;;  %vm9746_vm7 = vcmp.eq.f32.partialorder %v14708_v13, %v19884_v26 }
 0x8b6   :  { %8262 = vmatprep.mubr.f32.mxu1 %v17863_v25  ;;  %14056 = vmatpush1.bf16.xpose.msk.msra.mxu0 %vm14055_vm9, %v21152_v52  ;;  %vm14059_vm9 = vmpackc.low %vm9740_vm5, %vm9734_vm14  ;;  %vm9752_vm14 = vcmp.eq.f32.partialorder %v14708_v13, %v19887_v15  ;;  %vm8139_vm5 = vcmp.eq.f32.partialorder %v14701_v10, %v19724_v46 }
 0x8b7   :  { %9882 = vmatprep.mubr.f32.mxu0 %v17863_v25  ;;  %13818 = vmatprep.subr.msk.bf16.mxu1 %vm13817_vm6, %v21152_v52  ;;  %vm13821_vm6 = vmpackc.low %vm8133_vm10, %vm8127_vm13  ;;  %vm8145_vm13 = vcmp.eq.f32.partialorder %v14701_v10, %v19727_v44 }
 0x8b8   :  { %14058 = vmatprep.subr.msk.bf16.mxu0 %vm14057_vm12, %v21152_v52  ;;  %vm8126_vm12 = vcmp.eq.f32.partialorder %v14708_v13, %v19673_v22  ;;  %vm13825_vm4 = vmpackc.low %vm8145_vm13, %vm8139_vm5  ;;  %vm8111_vm5 = vcmp.eq.f32.partialorder %v14761_v28, %v19575_v59 }
 0x8b9   :  { %vm13823_vm10 = vmpackc.low %vm8132_vm0, %vm8126_vm12  ;;  %vm8144_vm12 = vcmp.eq.f32.partialorder %v14708_v13, %v19727_v44  ;;  %vm9758_vm0 = vcmp.eq.f32.partialorder %v14708_v13, %v19730_v37 }
 0x8bd   :  { %13820 = vmatpush1.bf16.xpose.msk.msra.mxu1 %vm13819_vm3, %v21152_v52  ;;  %vm9759_vm3 = vcmp.eq.f32.partialorder %v14701_v10, %v19730_v37 }
 0x8be   :  { %14060 = vmatpush1.bf16.xpose.msk.msra.mxu0 %vm14059_vm9, %v21152_v52  ;;  %13822 = vmatprep.subr.msk.bf16.mxu1 %vm13821_vm6, %v21152_v52  ;;  %vm14065_vm9 = vmpackc.low %vm9765_vm1, %vm9759_vm3  ;;  %vm8138_vm6 = vcmp.eq.f32.partialorder %v14708_v13, %v19724_v46  ;;  %vm9731_vm3 = vcmp.eq.f32.partialorder %v14761_v28, %v19585_v34 }
 0x8bf   :  { %14062 = vmatprep.subr.msk.bf16.mxu0 %vm14061_vm8, %v21152_v52  ;;  %vm14063_vm8 = vmpackc.low %vm9752_vm14, %vm9746_vm7  ;;  %vm9764_vm7 = vcmp.eq.f32.partialorder %v14708_v13, %v19738_v17  ;;  %vm8105_vm14 = vcmp.eq.f32.partialorder %v14761_v28, %v19572_v54 }
 0x8c0   :  { %vm13827_vm13 = vmpackc.low %vm8144_vm12, %vm8138_vm6  ;;  %vm8110_vm6 = vcmp.eq.f32.partialorder %v14843_v43, %v19575_v59  ;;  %vm9724_vm12 = vcmp.eq.f32.partialorder %v14843_v43, %v19582_v38  ;;  %v19990_v59 = vadd.f32 10.0, %v17405_v49 }
 0x8c1   :  { %vm14067_vm1 = vmpackc.low %vm9764_vm7, %vm9758_vm0  ;;  %vm9730_vm0 = vcmp.eq.f32.partialorder %v14843_v43, %v19585_v34  ;;  %vm8117_vm7 = vcmp.eq.f32.partialorder %v14761_v28, %v19595_v55 }
 0x8c5   :  { %13824 = vmatpush1.bf16.xpose.msk.msra.mxu1 %vm13823_vm10, %v21152_v52  ;;  %vm9725_vm10 = vcmp.eq.f32.partialorder %v14761_v28, %v19582_v38  ;;  %v19993_v38 = vadd.f32 10.0, %v17408_v12  ;;  %v21751_v12 = vmov 0 }
 0x8c6   :  { %14064 = vmatpush1.bf16.xpose.msk.msra.mxu0 %vm14063_vm8, %v21152_v52  ;;  %13826 = vmatprep.subr.msk.bf16.mxu1 %vm13825_vm4, %v21152_v52  ;;  %vm13829_vm8 = vmpackc.low %vm8111_vm5, %vm8105_vm14  ;;  %vm8123_vm14 = vcmp.eq.f32.partialorder %v14761_v28, %v19606_v33 }
 0x8c7   :  { %v6460_v45 = vpop.f32.mrb[14].mxu1  ;;  %14066 = vmatprep.subr.msk.bf16.mxu0 %vm14065_vm9, %v21152_v52  ;;  %vm14069_vm4 = vmpackc.low %vm9731_vm3, %vm9725_vm10  ;;  %vm8104_vm9 = vcmp.eq.f32.partialorder %v14843_v43, %v19572_v54  ;;  %vm9743_vm10 = vcmp.eq.f32.partialorder %v14761_v28, %v19861_v63 }
 0x8c8   :  { %v6471_v23 = vrot.slane %v6460_v45, %v21644_v27  ;;  %v19945_v36 = vpop.f32.mrb[28].mxu0  ;;  %v6462_v1 = vpop.f32.mrb[15].mxu1  ;;  %vm19977_vm5 = vmpackc.low %vm8110_vm6, %vm8104_vm9  ;;  %v20003_v45 = vadd.f32 10.0, %v17425_v41  ;;  %vm8761_vm9 = vcmp.eq.f32.partialorder %v14768_v29, %v19993_v38  ;;  %vm8754_vm6 = vcmp.eq.f32.partialorder %v14775_v30, %v19990_v59 }
 0x8c9   :  { %v8082_v35 = vpop.f32.mrb[29].mxu0  ;;  %vm19985_vm3 = vmpackc.low %vm9730_vm0, %vm9724_vm12  ;;  %vm8760_vm12 = vcmp.eq.f32.partialorder %v14775_v30, %v19993_v38  ;;  %vm8129_vm0 = vcmp.eq.f32.partialorder %v14761_v28, %v19673_v22 }
 0x8ca   :  { %v6472_v24 = vmul.f32 %v6471_v23, %v6466_v11  ;;  %v21709_v23 = vmov 0  ;;  %v20077_v11 = vadd.f32 10.0, %v17453_v50  ;;  %v20080_v35 = vadd.f32 10.0, %v17456_v58 }
 0x8cc   :  { %v6473_v16 = vadd.f32 %v6472_v24, %v19525_v2  ;;  %v20122_v24 = vadd.f32 10.0, %v17490_v6 }
 0x8cd   :  { %13828 = vmatpush1.bf16.xpose.msk.msra.mxu1 %vm13827_vm13, %v21152_v52  ;;  %vm9737_vm13 = vcmp.eq.f32.partialorder %v14761_v28, %v19858_v0 }
 0x8ce   :  { %14068 = vmatpush1.bf16.xpose.msk.msra.mxu0 %vm14067_vm1, %v21152_v52  ;;  %13830 = vmatprep.subr.msk.bf16.mxu1 %vm13829_vm8, %v21152_v52  ;;  %v19966_v5 = vadd.f32 %v6796_v57, %v6473_v16  ;;  %vm19995_vm1 = vmpackc.low %vm8123_vm14, %vm8117_vm7  ;;  %vm8767_vm14 = vcmp.eq.f32.partialorder %v14768_v29, %v20000_v42  ;;  %v20125_v57 = vadd.f32 10.0, %v17493_v7  ;;  %v14404_v16 = vmov 13  }
 0x8cf   :  { %14070 = vmatprep.subr.msk.bf16.mxu0 %vm14069_vm4, %v21152_v52  ;;  %vm20006_vm8 = vmpackc.low %vm9743_vm10, %vm9737_vm13  ;;  %vm8755_vm4 = vcmp.eq.f32.partialorder %v14768_v29, %v19990_v59  ;;  %vm8773_vm13 = vcmp.eq.f32.partialorder %v14768_v29, %v20003_v45  ;;  %14344 = vset.pattern.permute.xlu1 %v14404_v16  ;;  %v20308_v16 = vadd.f32 12.0, %v17422_v39  ;;  %v14369_v39 = vld [vmem:[%s20791_s1] sm:$0xff] }
 0x8d0   :  { %vm20024_vm7 = vmpackc.low %vm8761_vm9, %vm8755_vm4  ;;  %vm8766_vm4 = vcmp.eq.f32.partialorder %v14775_v30, %v20000_v42  ;;  %vm8772_vm9 = vcmp.eq.f32.partialorder %v14775_v30, %v20003_v45  ;;  %10029 = vperm.xlu1 %14344, %v19279_v21   ;;  %v21731_v21 = vld [vmem:[#allocation49_spill] sm:$0xff] }
 0x8d1   :  { %v21708_v32 = vsel %vm20024_vm7, 4294967295, %v21707_v32  ;;  %vm20038_vm10 = vmpackc.low %vm8760_vm12, %vm8754_vm6  ;;  %vm9742_vm6 = vcmp.eq.f32.partialorder %v14843_v43, %v19861_v63 }
 0x8d2   :  { %v21710_v23 = vsel %vm20038_vm10, 4294967295, %v21709_v23  ;;  %vm20054_vm12 = vmpackc.low %vm8773_vm13, %vm8767_vm14  ;;  %vm21715_vm14 = vcmp.eq.f32.partialorder %v14843_v43, %v19595_v55 }
 0x8d3   :  { %vm20065_vm10 = vmpackc.low %vm8772_vm9, %vm8766_vm4  ;;  %vm8779_vm9 = vcmp.eq.f32.partialorder %v14768_v29, %v20077_v11 }
 0x8d4   :  { %8263 = vmatmul.mubr.f32.vlgmr.msra.gmra.mrb[20].mxu1 %v17853_v9 }
 0x8d5   :  { %9883 = vmatmul.mubr.f32.vlgmr.msra.gmra.mrb[34].mxu0 %v17853_v9  ;;  %13832 = vmatpush1.bf16.xpose.msk.msra.mxu1 %vm19977_vm5, %v21152_v52  ;;  %vm8122_vm5 = vcmp.eq.f32.partialorder %v14843_v43, %v19606_v33  ;;  %v21711_v33 = vmov 0 }
 0x8d6   :  { %8332 = vmatprep.mubr.f32.mxu1 %v18017_v20  ;;  %14072 = vmatpush1.bf16.xpose.msk.msra.mxu0 %vm19985_vm3, %v21152_v52  ;;  %vm9736_vm3 = vcmp.eq.f32.partialorder %v14843_v43, %v19858_v0  ;;  %v21712_v33 = vsel %vm20054_vm12, 4294967295, %v21711_v33  ;;  %vm13835_vm13 = vmpackc.low %vm8122_vm5, %vm21715_vm14  ;;  %vm9749_vm12 = vcmp.eq.f32.partialorder %v14761_v28, %v19884_v26  ;;  %vm8128_vm5 = vcmp.eq.f32.partialorder %v14843_v43, %v19673_v22 }
 0x8d7   :  { %9952 = vmatprep.mubr.f32.mxu0 %v18017_v20  ;;  %13834 = vmatprep.subr.msk.bf16.mxu1 %vm19995_vm1, %v21152_v52  ;;  %vm8135_vm1 = vcmp.eq.f32.partialorder %v14761_v28, %v19676_v3  ;;  %vm14075_vm7 = vmpackc.low %vm9742_vm6, %vm9736_vm3  ;;  %vm8785_vm14 = vcmp.eq.f32.partialorder %v14768_v29, %v20080_v35  ;;  %vm8778_vm6 = vcmp.eq.f32.partialorder %v14775_v30, %v20077_v11 }
 0x8d8   :  { %14074 = vmatprep.subr.msk.bf16.mxu0 %vm20006_vm8, %v21152_v52  ;;  %vm9755_vm8 = vcmp.eq.f32.partialorder %v14761_v28, %v19887_v15  ;;  %vm13837_vm15 = vmpackc.low %vm8135_vm1, %vm8129_vm0  ;;  %vm8134_vm0 = vcmp.eq.f32.partialorder %v14843_v43, %v19676_v3  ;;  %v21718_v3 = vmov 0 }
 0x8d9   :  { %vm14077_vm4 = vmpackc.low %vm9755_vm8, %vm9749_vm12  ;;  %vm8784_vm12 = vcmp.eq.f32.partialorder %v14775_v30, %v20080_v35  ;;  %vm8147_vm8 = vcmp.eq.f32.partialorder %v14761_v28, %v19727_v44 }
 0x8da   :  { %vm20093_vm3 = vmpackc.low %vm8785_vm14, %vm8779_vm9  ;;  %vm9761_vm9 = vcmp.eq.f32.partialorder %v14761_v28, %v19730_v37  ;;  %vm9767_vm14 = vcmp.eq.f32.partialorder %v14761_v28, %v19738_v17 }
 0x8db   :  { %vm20106_vm1 = vmpackc.low %vm8784_vm12, %vm8778_vm6 }
 0x8dc   :  { %v21719_v3 = vsel %vm20106_vm1, 4294967295, %v21718_v3  ;;  %vm14081_vm1 = vmpackc.low %vm9767_vm14, %vm9761_vm9  ;;  %vm9760_vm14 = vcmp.eq.f32.partialorder %v14843_v43, %v19730_v37 }
 0x8dd   :  { %13836 = vmatpush1.bf16.xpose.msk.msra.mxu1 %vm13835_vm13, %v21152_v52  ;;  %vm8141_vm13 = vcmp.eq.f32.partialorder %v14761_v28, %v19724_v46 }
 0x8de   :  { %14076 = vmatpush1.bf16.xpose.msk.msra.mxu0 %vm14075_vm7, %v21152_v52  ;;  %13838 = vmatprep.subr.msk.bf16.mxu1 %vm13837_vm15, %v21152_v52  ;;  %vm9748_vm7 = vcmp.eq.f32.partialorder %v14843_v43, %v19884_v26  ;;  %vm9754_vm15 = vcmp.eq.f32.partialorder %v14843_v43, %v19887_v15  ;;  %vm13841_vm12 = vmpackc.low %vm8147_vm8, %vm8141_vm13  ;;  %vm8796_vm13 = vcmp.eq.f32.partialorder %v14775_v30, %v20125_v57 }
 0x8df   :  { %14078 = vmatprep.subr.msk.bf16.mxu0 %vm14077_vm4, %v21152_v52  ;;  %vm13839_vm4 = vmpackc.low %vm8134_vm0, %vm8128_vm5  ;;  %vm8791_vm5 = vcmp.eq.f32.partialorder %v14768_v29, %v20122_v24  ;;  %vm8797_vm0 = vcmp.eq.f32.partialorder %v14768_v29, %v20125_v57  ;;  %vm8140_vm8 = vcmp.eq.f32.partialorder %v14843_v43, %v19724_v46  ;;  %v21724_v46 = vmov 0  }
 0x8e0   :  { %vm14079_vm6 = vmpackc.low %vm9754_vm15, %vm9748_vm7  ;;  %vm8790_vm15 = vcmp.eq.f32.partialorder %v14775_v30, %v20122_v24  ;;  %14345 = vset.pattern.permute.xlu1 %v21724_v46 }
 0x8e1   :  { %vm20134_vm7 = vmpackc.low %vm8797_vm0, %vm8791_vm5  ;;  %vm21725_vm5 = vnez %v21659_v48  ;;  %vm21726_vm0 = vnez %v21661_v47  ;;  %v21737_v48 = vld [vmem:[#allocation62_spill] sm:$0xff]  ;;  %v21738_v47 = vld [vmem:[#allocation63_spill] sm:$0xff] }
 0x8e2   :  { %vm20147_vm9 = vmpackc.low %vm8796_vm13, %vm8790_vm15  ;;  %vm9739_vm15 = vcmp.eq.f32.partialorder %v14768_v29, %v19858_v0  ;;  %vm9745_vm13 = vcmp.eq.f32.partialorder %v14768_v29, %v19861_v63 }
 0x8e5   :  { %13840 = vmatpush1.bf16.xpose.msk.msra.mxu1 %vm13839_vm4, %v21152_v52  ;;  %vm8146_vm4 = vcmp.eq.f32.partialorder %v14843_v43, %v19727_v44  ;;  %v21748_v44 = vld [vmem:[#allocation48_spill] sm:$0xff] }
 0x8e6   :  { %14080 = vmatpush1.bf16.xpose.msk.msra.mxu0 %vm14079_vm6, %v21152_v52  ;;  %13842 = vmatprep.subr.msk.bf16.mxu1 %vm13841_vm12, %v21152_v52  ;;  %vm9766_vm6 = vcmp.eq.f32.partialorder %v14843_v43, %v19738_v17  ;;  %v21736_v17 = vmov 0.0|0.0   ;;  %v7443_v37 = vrot.slane %v21748_v44, %v21644_v27 }
 0x8e7   :  { %14082 = vmatprep.subr.msk.bf16.mxu0 %vm14081_vm1, %v21152_v52  ;;  %vm13843_vm1 = vmpackc.low %vm8146_vm4, %vm8140_vm8  ;;  %vm21727_vm8 = vnez %v21663_v14  ;;  %v21740_v14 = vmov 0.0  }
 0x8e8   :  { %vm14083_vm12 = vmpackc.low %vm9766_vm6, %vm9760_vm14  ;;  %vm21728_vm14 = vnez %v21665_v18  ;;  %vm9738_vm6 = vcmp.eq.f32.partialorder %v14775_v30, %v19858_v0  ;;  %v21742_v18 = vld [vmem:[#allocation64_spill] sm:$0xff]  ;;  %10794 = vst [vmem:[%s20792_s3 + $0x8] sm:$0xff] %v21740_v14 }
 0x8e9   :  { %vm14089_vm4 = vmpackc.low %vm9745_vm13, %vm9739_vm15  ;;  %vm21729_vm13 = vnez %v21670_v56  ;;  %v21746_v56 = vld [vmem:[#allocation66_spill] sm:$0xff]  ;;  %10793 = vst [vmem:[%s20792_s3] sm:$0xff] %v21740_v14 }
 0x8ea   :  { %10795 = vst [vmem:[%s20792_s3 + $0x10] sm:$0xff] %v21740_v14 }
 0x8ed   :  { %13844 = vmatpush1.bf16.xpose.msk.msra.mxu1 %vm13843_vm1, %v21152_v52  ;;  %vm9744_vm1 = vcmp.eq.f32.partialorder %v14775_v30, %v19861_v63 }
 0x8ee   :  { %14084 = vmatpush1.bf16.xpose.msk.msra.mxu0 %vm14083_vm12, %v21152_v52  ;;  %13846 = vmatprep.subr.msk.bf16.mxu1 %vm21725_vm5, %v21152_v52  ;;  %vm9751_vm12 = vcmp.eq.f32.partialorder %v14768_v29, %v19884_v26  ;;  %vm9757_vm5 = vcmp.eq.f32.partialorder %v14768_v29, %v19887_v15 }
 0x8ef   :  { %14086 = vmatprep.subr.msk.bf16.mxu0 %vm21726_vm0, %v21152_v52  ;;  %vm14091_vm0 = vmpackc.low %vm9744_vm1, %vm9738_vm6  ;;  %vm21732_vm6 = vnez %v21731_v21  ;;  %vm21733_vm1 = vnez %v21681_v61 }
 0x8f0   :  { %vm14093_vm15 = vmpackc.low %vm9757_vm5, %vm9751_vm12  ;;  %vm8751_vm12 = vcmp.eq.f32.partialorder %v14701_v10, %v19990_v59  ;;  %vm8757_vm5 = vcmp.eq.f32.partialorder %v14701_v10, %v19993_v38 }
 0x8f4   :  { %8333 = vmatmul.mubr.f32.vlgmr.msra.gmra.mrb[20].mxu1 %v18011_v53 }
 0x8f5   :  { %9953 = vmatmul.mubr.f32.vlgmr.msra.gmra.mrb[34].mxu0 %v18011_v53  ;;  %13848 = vmatpush1.bf16.xpose.msk.msra.mxu1 %vm21727_vm8, %v21152_v52  ;;  %vm9750_vm8 = vcmp.eq.f32.partialorder %v14775_v30, %v19884_v26 }
 0x8f6   :  { %8402 = vmatprep.mubr.f32.mxu1 %v17722_v40  ;;  %14088 = vmatpush1.bf16.xpose.msk.msra.mxu0 %vm21728_vm14, %v21152_v52 }
 0x8f7   :  { %10022 = vmatprep.mubr.f32.mxu0 %v17722_v40  ;;  %13850 = vmatprep.subr.msk.bf16.mxu1 %vm19661_vm11, %v21152_v52  ;;  %vm21730_vm11 = vnez %v21672_v51  ;;  %v7114_v51 = vpop.permute.xlu1 %7113 }
 0x8f8   :  { %14090 = vmatprep.subr.msk.bf16.mxu0 %vm14089_vm4, %v21152_v52  ;;  %vm9756_vm4 = vcmp.eq.f32.partialorder %v14775_v30, %v19887_v15 }
 0x8f9   :  { %vm14095_vm14 = vmpackc.low %vm9756_vm4, %vm9750_vm8  ;;  %vm8763_vm8 = vcmp.eq.f32.partialorder %v14701_v10, %v20000_v42  ;;  %vm8769_vm4 = vcmp.eq.f32.partialorder %v14701_v10, %v20003_v45 }
 0x8fb   :  { %v7438_v0 = vpop.permute.xlu1 %7437 }
 0x8fc   :  { %v7444_v15 = vmul.f32 %v7443_v37, %v7438_v0 }
 0x8fd   :  { %13852 = vmatpush1.bf16.xpose.msk.msra.mxu1 %vm21729_vm13, %v21152_v52  ;;  %vm8750_vm13 = vcmp.eq.f32.partialorder %v14708_v13, %v19990_v59 }
 0x8fe   :  { %14092 = vmatpush1.bf16.xpose.msk.msra.mxu0 %vm14091_vm0, %v21152_v52  ;;  %13854 = vmatprep.subr.msk.bf16.mxu1 %vm21730_vm11, %v21152_v52  ;;  %vm13909_vm0 = vmpackc.low %vm8757_vm5, %vm8751_vm12  ;;  %vm8756_vm11 = vcmp.eq.f32.partialorder %v14708_v13, %v19993_v38  ;;  %vm8762_vm12 = vcmp.eq.f32.partialorder %v14708_v13, %v20000_v42  ;;  %vm8768_vm5 = vcmp.eq.f32.partialorder %v14708_v13, %v20003_v45 }
 0x8ff   :  { %14094 = vmatprep.subr.msk.bf16.mxu0 %vm14093_vm15, %v21152_v52  ;;  %vm21735_vm15 = vnez %v21686_v31 }
 0x905   :  { %13856 = vmatpush1.bf16.xpose.msk.msra.mxu1 %vm19719_vm2, %v21152_v52  ;;  %vm21734_vm2 = vnez %v21683_v60 }
 0x906   :  { %14096 = vmatpush1.bf16.xpose.msk.msra.mxu0 %vm14095_vm14, %v21152_v52  ;;  %13858 = vmatprep.subr.msk.bf16.mxu1 %vm21732_vm6, %v21152_v52  ;;  %vm13911_vm14 = vmpackc.low %vm8756_vm11, %vm8750_vm13  ;;  %vm21743_vm13 = vnez %v21742_v18 }
 0x907   :  { %14098 = vmatprep.subr.msk.bf16.mxu0 %vm21733_vm1, %v21152_v52  ;;  %vm13913_vm6 = vmpackc.low %vm8769_vm4, %vm8763_vm8  ;;  %vm21739_vm1 = vnez %v21738_v47  ;;  %vm21745_vm4 = vnez %v21744_v19 }
 0x908   :  { %vm13915_vm11 = vmpackc.low %vm8768_vm5, %vm8762_vm12  ;;  %vm8793_vm12 = vcmp.eq.f32.partialorder %v14701_v10, %v20125_v57  ;;  %vm21747_vm5 = vnez %v21746_v56 }
 0x90d   :  { %13860 = vmatpush1.bf16.xpose.msk.msra.mxu1 %vm21734_vm2, %v21152_v52  ;;  %vm8781_vm2 = vcmp.eq.f32.partialorder %v14701_v10, %v20080_v35 }
 0x90e   :  { %14100 = vmatpush1.bf16.xpose.msk.msra.mxu0 %vm21735_vm15, %v21152_v52  ;;  %13910 = vmatprep.subr.msk.bf16.mxu1 %vm13909_vm0, %v21152_v52  ;;  %vm8775_vm0 = vcmp.eq.f32.partialorder %v14701_v10, %v20077_v11  ;;  %vm21741_vm15 = vmmov 0  }
 0x90f   :  { %14101 = vmatprep.subr.bf16.mxu0 %v21736_v17  ;;  %vm13917_vm8 = vmpackc.low %vm8781_vm2, %vm8775_vm0 }
 0x914   :  { %8403 = vmatmul.mubr.f32.vlgmr.msra.gmra.mrb[20].mxu1 %v17720_v4 }
 0x915   :  { %10023 = vmatmul.mubr.f32.vlgmr.msra.gmra.mrb[34].mxu0 %v17720_v4  ;;  %13912 = vmatpush1.bf16.xpose.msk.msra.mxu1 %vm13911_vm14, %v21152_v52  ;;  %vm8774_vm14 = vcmp.eq.f32.partialorder %v14708_v13, %v20077_v11 }
 0x916   :  { %8910 = vmatprep.mubr.f32.mxu1 %v17863_v25  ;;  %14104 = vmatpush3.bf16.msk.msra.mxu0 %vm21739_vm1, %v21737_v48  ;;  %vm8787_vm1 = vcmp.eq.f32.partialorder %v14701_v10, %v20122_v24 }
 0x917   :  { %14105 = vmatprep.subr.bf16.mxu0 %v21736_v17  ;;  %13914 = vmatprep.subr.msk.bf16.mxu1 %vm13913_vm6, %v21152_v52  ;;  %vm8780_vm6 = vcmp.eq.f32.partialorder %v14708_v13, %v20080_v35  ;;  %vm13921_vm2 = vmpackc.low %vm8793_vm12, %vm8787_vm1  ;;  %vm8752_vm1 = vcmp.eq.f32.partialorder %v14843_v43, %v19990_v59  ;;  %vm8758_vm12 = vcmp.eq.f32.partialorder %v14843_v43, %v19993_v38 }
 0x918   :  { %12570 = vmatprep.mubr.msk.f32.mxu0 %vm21741_vm15, %v21740_v14  ;;  %vm13919_vm0 = vmpackc.low %vm8780_vm6, %vm8774_vm14 }
 0x91a   :  { %14108 = vmatpush3.bf16.msk.msra.mxu0 %vm21743_vm13, %v21737_v48  ;;  %vm8786_vm13 = vcmp.eq.f32.partialorder %v14708_v13, %v20122_v24 }
 0x91b   :  { %14109 = vmatprep.subr.bf16.mxu0 %v21736_v17 }
 0x91d   :  { %13916 = vmatpush1.bf16.xpose.msk.msra.mxu1 %vm13915_vm11, %v21152_v52  ;;  %vm8792_vm11 = vcmp.eq.f32.partialorder %v14708_v13, %v20125_v57 }
 0x91e   :  { %14112 = vmatpush3.bf16.msk.msra.mxu0 %vm21745_vm4, %v21737_v48  ;;  %13918 = vmatprep.subr.msk.bf16.mxu1 %vm13917_vm8, %v21152_v52  ;;  %vm8753_vm8 = vcmp.eq.f32.partialorder %v14761_v28, %v19990_v59  ;;  %vm8759_vm4 = vcmp.eq.f32.partialorder %v14761_v28, %v19993_v38  ;;  %vm13923_vm14 = vmpackc.low %vm8792_vm11, %vm8786_vm13  ;;  %v20311_v59 = vadd.f32 12.0, %v17425_v41  ;;  %v20358_v38 = vadd.f32 12.0, %v17453_v50  ;;  %v42_v41 = vld [vmem:[%s20790_s2 + $0x21] sm:$0xff] }
 0x91f   :  { %14113 = vmatprep.subr.bf16.mxu0 %v21736_v17  ;;  %vm13925_vm6 = vmpackc.low %vm8759_vm4, %vm8753_vm8  ;;  %vm9409_vm8 = vcmp.eq.f32.partialorder %v14768_v29, %v20305_v62  ;;  %v21759_v50 = vmov 0 }
 0x922   :  { %14116 = vmatpush3.bf16.msk.msra.mxu0 %vm21747_vm5, %v21737_v48  ;;  %vm8765_vm5 = vcmp.eq.f32.partialorder %v14761_v28, %v20000_v42 }
 0x925   :  { %13920 = vmatpush1.bf16.xpose.msk.msra.mxu1 %vm13919_vm0, %v21152_v52  ;;  %vm8771_vm0 = vcmp.eq.f32.partialorder %v14761_v28, %v20003_v45 }
 0x926   :  { %13922 = vmatprep.subr.msk.bf16.mxu1 %vm13921_vm2, %v21152_v52  ;;  %vm13927_vm2 = vmpackc.low %vm8758_vm12, %vm8752_vm1  ;;  %vm9415_vm1 = vcmp.eq.f32.partialorder %v14768_v29, %v20308_v16  ;;  %vm9421_vm12 = vcmp.eq.f32.partialorder %v14768_v29, %v20311_v59 }
 0x927   :  { %v7108_v8 = vpop.f32.mrb[16].mxu1  ;;  %vm13929_vm13 = vmpackc.low %vm8771_vm0, %vm8765_vm5  ;;  %vm9414_vm0 = vcmp.eq.f32.partialorder %v14775_v30, %v20308_v16 }
 0x928   :  { %v7119_v60 = vrot.slane %v7108_v8, %v21644_v27  ;;  %v20282_v61 = vpop.f32.mrb[30].mxu0  ;;  %v7110_v31 = vpop.f32.mrb[17].mxu1  ;;  %vm20345_vm15 = vmpackc.low %vm9421_vm12, %vm9415_vm1  ;;  %vm9427_vm1 = vcmp.eq.f32.partialorder %v14768_v29, %v20358_v38 }
 0x929   :  { %v8730_v63 = vpop.f32.mrb[31].mxu0 }
 0x92a   :  { %v7120_v26 = vmul.f32 %v7119_v60, %v7114_v51 }
 0x92c   :  { %v7121_v54 = vadd.f32 %v7120_v26, %v19966_v5  ;;  %v20302_v5 = vadd.f32 12.0, %v17405_v49  ;;  %v21749_v49 = vmov 0 }
 0x92d   :  { %13924 = vmatpush1.bf16.xpose.msk.msra.mxu1 %vm13923_vm14, %v21152_v52  ;;  %vm9408_vm14 = vcmp.eq.f32.partialorder %v14775_v30, %v20305_v62 }
 0x92e   :  { %13926 = vmatprep.subr.msk.bf16.mxu1 %vm13925_vm6, %v21152_v52  ;;  %v20291_v34 = vadd.f32 %v7444_v15, %v7121_v54  ;;  %vm9403_vm11 = vcmp.eq.f32.partialorder %v14768_v29, %v20302_v5  ;;  %vm9402_vm4 = vcmp.eq.f32.partialorder %v14775_v30, %v20302_v5 }
 0x92f   :  { %vm20324_vm6 = vmpackc.low %vm9409_vm8, %vm9403_vm11  ;;  %vm8764_vm11 = vcmp.eq.f32.partialorder %v14843_v43, %v20000_v42  ;;  %vm8770_vm8 = vcmp.eq.f32.partialorder %v14843_v43, %v20003_v45  ;;  %v20361_v42 = vadd.f32 12.0, %v17456_v58  ;;  %v20390_v58 = vadd.f32 12.0, %v17490_v6  ;;  %v14367_v6 = vld [vmem:[%s20790_s2 + $0x86] sm:$0x7f] }
 0x930   :  { %v21750_v49 = vsel %vm20324_vm6, 4294967295, %v21749_v49  ;;  %vm20333_vm5 = vmpackc.low %vm9408_vm14, %vm9402_vm4  ;;  %vm8783_vm4 = vcmp.eq.f32.partialorder %v14761_v28, %v20080_v35 }
 0x931   :  { %v21752_v12 = vsel %vm20333_vm5, 4294967295, %v21751_v12  ;;  %vm13931_vm5 = vmpackc.low %vm8770_vm8, %vm8764_vm11  ;;  %vm9433_vm12 = vcmp.eq.f32.partialorder %v14768_v29, %v20361_v42  ;;  %vm9432_vm11 = vcmp.eq.f32.partialorder %v14775_v30, %v20361_v42  ;;  %vm8782_vm8 = vcmp.eq.f32.partialorder %v14843_v43, %v20080_v35 }
 0x934   :  { %8911 = vmatmul.mubr.f32.vlgmr.msra.gmra.mrb[22].mxu1 %v17853_v9 }
 0x935   :  { %13928 = vmatpush1.bf16.xpose.msk.msra.mxu1 %vm13927_vm2, %v21152_v52  ;;  %8980 = vmatprep.mubr.f32.mxu1 %v18017_v20  ;;  %vm9420_vm2 = vcmp.eq.f32.partialorder %v14775_v30, %v20311_v59 }
 0x936   :  { %13930 = vmatprep.subr.msk.bf16.mxu1 %vm13929_vm13, %v21152_v52  ;;  %vm8777_vm13 = vcmp.eq.f32.partialorder %v14761_v28, %v20077_v11  ;;  %vm20353_vm14 = vmpackc.low %vm9420_vm2, %vm9414_vm0  ;;  %vm9426_vm2 = vcmp.eq.f32.partialorder %v14775_v30, %v20358_v38 }
 0x937   :  { %vm13933_vm6 = vmpackc.low %vm8783_vm4, %vm8777_vm13  ;;  %vm8795_vm4 = vcmp.eq.f32.partialorder %v14761_v28, %v20125_v57 }
 0x938   :  { %vm20369_vm0 = vmpackc.low %vm9433_vm12, %vm9427_vm1 }
 0x939   :  { %vm20381_vm13 = vmpackc.low %vm9432_vm11, %vm9426_vm2  ;;  %vm9439_vm2 = vcmp.eq.f32.partialorder %v14768_v29, %v20390_v58 }
 0x93a   :  { %v21760_v50 = vsel %vm20381_vm13, 4294967295, %v21759_v50 }
 0x93d   :  { %13932 = vmatpush1.bf16.xpose.msk.msra.mxu1 %vm13931_vm5, %v21152_v52  ;;  %vm8776_vm5 = vcmp.eq.f32.partialorder %v14843_v43, %v20077_v11  ;;  %v20393_v11 = vadd.f32 12.0, %v17493_v7  ;;  %v21769_v7 = vmov 1  }
 0x93e   :  { %13934 = vmatprep.subr.msk.bf16.mxu1 %vm13933_vm6, %v21152_v52  ;;  %vm8789_vm6 = vcmp.eq.f32.partialorder %v14761_v28, %v20122_v24  ;;  %vm13935_vm1 = vmpackc.low %vm8782_vm8, %vm8776_vm5  ;;  %vm9438_vm5 = vcmp.eq.f32.partialorder %v14775_v30, %v20390_v58 }
 0x93f   :  { %vm13937_vm12 = vmpackc.low %vm8795_vm4, %vm8789_vm6  ;;  %vm9445_vm11 = vcmp.eq.f32.partialorder %v14768_v29, %v20393_v11  ;;  %vm9444_vm8 = vcmp.eq.f32.partialorder %v14775_v30, %v20393_v11  ;;  %vm8788_vm6 = vcmp.eq.f32.partialorder %v14843_v43, %v20122_v24  ;;  %vm8794_vm4 = vcmp.eq.f32.partialorder %v14843_v43, %v20125_v57 }
 0x940   :  { %vm20401_vm13 = vmpackc.low %vm9445_vm11, %vm9439_vm2  ;;  %v21763_v29 = vmov 0  ;;  %vm21765_vm2 = vnez %v21708_v32  ;;  %vm21766_vm11 = vnez %v21710_v23  ;;  %v14405_v30 = vmov 12   ;;  %v14368_v32 = vld [vmem:[%s20790_s2 + $0x96] sm:$0x1] }
 0x941   :  { %14343 = vset.pattern.permute.xlu0 %v14405_v30 }
 0x942   :  { %9705 = vperm.xlu0 %14343, %v14367_v6  }
 0x945   :  { %13936 = vmatpush1.bf16.xpose.msk.msra.mxu1 %vm13935_vm1, %v21152_v52  ;;  %vm20413_vm1 = vmpackc.low %vm9444_vm8, %vm9438_vm5  ;;  %vm21767_vm5 = vnez %v21712_v33  ;;  %vm21768_vm8 = vnez %v21719_v3  ;;  %v8091_v33 = vrot.slane %v19945_v36, %v21644_v27  ;;  %v7762_v3 = vpop.permute.xlu0 %7761 }
 0x946   :  { %13938 = vmatprep.subr.msk.bf16.mxu1 %vm13937_vm12, %v21152_v52  ;;  %v21764_v29 = vsel %vm20413_vm1, 4294967295, %v21763_v29  ;;  %vm13939_vm12 = vmpackc.low %vm8794_vm4, %vm8788_vm6  ;;  %vm9399_vm6 = vcmp.eq.f32.partialorder %v14701_v10, %v20302_v5  ;;  %vm9405_vm4 = vcmp.eq.f32.partialorder %v14701_v10, %v20305_v62  ;;  %14346 = vset.pattern.permute.xlu0 %v21769_v7 }
 0x947   :  { %10121 = vperm.xlu0 %14346, %v14368_v32  }
 0x94d   :  { %13940 = vmatpush1.bf16.xpose.msk.msra.mxu1 %vm13939_vm12, %v21152_v52  ;;  %vm14005_vm12 = vmpackc.low %vm9405_vm4, %vm9399_vm6  ;;  %vm9423_vm6 = vcmp.eq.f32.partialorder %v14701_v10, %v20358_v38  ;;  %vm9429_vm4 = vcmp.eq.f32.partialorder %v14701_v10, %v20361_v42 }
 0x94e   :  { %13942 = vmatprep.subr.msk.bf16.mxu1 %vm21765_vm2, %v21152_v52 }
 0x954   :  { %8981 = vmatmul.mubr.f32.vlgmr.msra.gmra.mrb[22].mxu1 %v18011_v53 }
 0x955   :  { %13944 = vmatpush1.bf16.xpose.msk.msra.mxu1 %vm21766_vm11, %v21152_v52  ;;  %9050 = vmatprep.mubr.f32.mxu1 %v17722_v40 }
 0x956   :  { %13946 = vmatprep.subr.msk.bf16.mxu1 %vm21767_vm5, %v21152_v52  ;;  %vm9410_vm5 = vcmp.eq.f32.partialorder %v14708_v13, %v20308_v16 }
 0x95d   :  { %13948 = vmatpush1.bf16.xpose.msk.msra.mxu1 %vm20065_vm10, %v21152_v52  ;;  %vm9398_vm10 = vcmp.eq.f32.partialorder %v14708_v13, %v20302_v5 }
 0x95e   :  { %13950 = vmatprep.subr.msk.bf16.mxu1 %vm20093_vm3, %v21152_v52  ;;  %vm9404_vm3 = vcmp.eq.f32.partialorder %v14708_v13, %v20305_v62 }
 0x95f   :  { %vm14007_vm2 = vmpackc.low %vm9404_vm3, %vm9398_vm10  ;;  %vm9422_vm3 = vcmp.eq.f32.partialorder %v14708_v13, %v20358_v38 }
 0x960   :  { %vm14013_vm10 = vmpackc.low %vm9429_vm4, %vm9423_vm6  ;;  %vm9401_vm6 = vcmp.eq.f32.partialorder %v14761_v28, %v20302_v5 }
 0x965   :  { %13952 = vmatpush1.bf16.xpose.msk.msra.mxu1 %vm21768_vm8, %v21152_v52  ;;  %vm9416_vm8 = vcmp.eq.f32.partialorder %v14708_v13, %v20311_v59 }
 0x966   :  { %13954 = vmatprep.subr.msk.bf16.mxu1 %vm20134_vm7, %v21152_v52  ;;  %vm9411_vm7 = vcmp.eq.f32.partialorder %v14701_v10, %v20308_v16 }
 0x96d   :  { %13956 = vmatpush1.bf16.xpose.msk.msra.mxu1 %vm20147_vm9, %v21152_v52  ;;  %vm9417_vm9 = vcmp.eq.f32.partialorder %v14701_v10, %v20311_v59 }
 0x96e   :  { %14006 = vmatprep.subr.msk.bf16.mxu1 %vm14005_vm12, %v21152_v52  ;;  %vm14009_vm11 = vmpackc.low %vm9417_vm9, %vm9411_vm7  ;;  %vm9428_vm7 = vcmp.eq.f32.partialorder %v14708_v13, %v20361_v42  ;;  %vm9435_vm9 = vcmp.eq.f32.partialorder %v14701_v10, %v20390_v58 }
 0x96f   :  { %vm14011_vm12 = vmpackc.low %vm9416_vm8, %vm9410_vm5  ;;  %vm9434_vm5 = vcmp.eq.f32.partialorder %v14708_v13, %v20390_v58  ;;  %vm9440_vm8 = vcmp.eq.f32.partialorder %v14708_v13, %v20393_v11 }
 0x970   :  { %vm14019_vm4 = vmpackc.low %vm9440_vm8, %vm9434_vm5  ;;  %vm9412_vm5 = vcmp.eq.f32.partialorder %v14843_v43, %v20308_v16  ;;  %vm9418_vm8 = vcmp.eq.f32.partialorder %v14843_v43, %v20311_v59 }
 0x974   :  { %9051 = vmatmul.mubr.f32.vlgmr.msra.gmra.mrb[22].mxu1 %v17720_v4 }
 0x975   :  { %14008 = vmatpush1.bf16.xpose.msk.msra.mxu1 %vm14007_vm2, %v21152_v52  ;;  %9558 = vmatprep.mubr.f32.mxu1 %v17863_v25  ;;  %vm9441_vm2 = vcmp.eq.f32.partialorder %v14701_v10, %v20393_v11  ;;  %v8086_v25 = vpop.permute.xlu1 %8085 }
 0x976   :  { %14010 = vmatprep.subr.msk.bf16.mxu1 %vm14009_vm11, %v21152_v52  ;;  %vm14015_vm11 = vmpackc.low %vm9428_vm7, %vm9422_vm3  ;;  %v8092_v22 = vmul.f32 %v8091_v33, %v8086_v25  ;;  %vm9406_vm3 = vcmp.eq.f32.partialorder %v14843_v43, %v20305_v62  ;;  %vm9413_vm7 = vcmp.eq.f32.partialorder %v14761_v28, %v20308_v16  ;;  %v21778_v25 = vld [vmem:[#allocation6_spill] sm:$0xff] }
 0x977   :  { %vm14017_vm1 = vmpackc.low %vm9441_vm2, %vm9435_vm9  ;;  %vm9419_vm9 = vcmp.eq.f32.partialorder %v14761_v28, %v20311_v59 }
 0x979   :  { %v8410_v46 = vpop.permute.xlu1 %8409 }
 0x97d   :  { %14012 = vmatpush1.bf16.xpose.msk.msra.mxu1 %vm14011_vm12, %v21152_v52  ;;  %v9058_v18 = vpop.permute.xlu1 %9057 }
 0x97e   :  { %14014 = vmatprep.subr.msk.bf16.mxu1 %vm14013_vm10, %v21152_v52  ;;  %vm9400_vm10 = vcmp.eq.f32.partialorder %v14843_v43, %v20302_v5 }
 0x97f   :  { %vm14023_vm2 = vmpackc.low %vm9406_vm3, %vm9400_vm10  ;;  %vm9424_vm10 = vcmp.eq.f32.partialorder %v14843_v43, %v20358_v38  ;;  %vm9430_vm3 = vcmp.eq.f32.partialorder %v14843_v43, %v20361_v42 }
 0x981   :  { %v9382_v44 = vpop.permute.xlu1 %9381 }
 0x985   :  { %14016 = vmatpush1.bf16.xpose.msk.msra.mxu1 %vm14015_vm11, %v21152_v52  ;;  %vm14025_vm11 = vmpackc.low %vm9419_vm9, %vm9413_vm7  ;;  %vm9437_vm7 = vcmp.eq.f32.partialorder %v14761_v28, %v20390_v58  ;;  %vm9443_vm9 = vcmp.eq.f32.partialorder %v14761_v28, %v20393_v11 }
 0x986   :  { %14018 = vmatprep.subr.msk.bf16.mxu1 %vm14017_vm1, %v21152_v52  ;;  %vm9407_vm1 = vcmp.eq.f32.partialorder %v14761_v28, %v20305_v62 }
 0x987   :  { %v7756_v23 = vpop.f32.mrb[18].mxu1  ;;  %vm14021_vm12 = vmpackc.low %vm9407_vm1, %vm9401_vm6  ;;  %vm9425_vm6 = vcmp.eq.f32.partialorder %v14761_v28, %v20358_v38  ;;  %vm9431_vm1 = vcmp.eq.f32.partialorder %v14761_v28, %v20361_v42  ;;  %v8734_v28 = vpop.permute.xlu0 %8733  ;;  %v43_v38 = vld [vmem:[%s20790_s2 + $0x29] sm:$0xff] }
 0x988   :  { %v7767_v1 = vrot.slane %v7756_v23, %v21644_v27  ;;  %v20495_v10 = vpop.f32.mrb[32].mxu0  ;;  %v7758_v55 = vpop.f32.mrb[19].mxu1  ;;  %v14117_v42 = vpack.c.bf16 %v43_v38, %v42_v41  ;;  %v21779_v23 = vld [vmem:[#allocation100_spill] sm:$0xff]  ;;  %v14372_v41 = vld [vmem:[%s20791_s1 + $0x18] sm:$0xff]  ;;  %v14373_v38 = vld [vmem:[%s20791_s1 + $0x20] sm:$0xff] }
 0x989   :  { %v9378_v24 = vpop.f32.mrb[33].mxu0  ;;  %v9387_v56 = vrot.slane %v20495_v10, %v21644_v27  ;;  %v652_v33 = vmul.f32 %v21779_v23, %v21778_v25 }
 0x98a   :  { %v7768_v57 = vmul.f32 %v7767_v1, %v7762_v3  ;;  %14118 = vmatprep.subr.bf16.mxu0 %v14117_v42  ;;  %v10828_v1 = vld [vmem:[%s20790_s2 + $0x20] ss:$0 sm:$0xff]  ;;  %v21780_v24 = vld [vmem:[#allocation7_spill] sm:$0xff] }
 0x98b   :  { %v9388_v60 = vmul.f32 %v9387_v56, %v9382_v44  ;;  %v658_v55 = vadd.f32 %v10828_v1, %v652_v33  ;;  %v21786_v56 = vld [vmem:[#allocation5_spill] sm:$0xff] }
 0x98c   :  { %v7769_v2 = vadd.f32 %v7768_v57, %v20291_v34  ;;  %v10030_v34 = vpop.permute.xlu1 %10029  ;;  %v21781_v57 = vld [vmem:[#allocation99_spill] sm:$0xff] }
 0x98d   :  { %14020 = vmatpush1.bf16.xpose.msk.msra.mxu1 %vm14019_vm4, %v21152_v52  ;;  %vm14027_vm4 = vmpackc.low %vm9418_vm8, %vm9412_vm5  ;;  %vm9436_vm5 = vcmp.eq.f32.partialorder %v14843_v43, %v20390_v58  ;;  %vm9442_vm8 = vcmp.eq.f32.partialorder %v14843_v43, %v20393_v11 }
 0x98e   :  { %14022 = vmatprep.subr.msk.bf16.mxu1 %vm14021_vm12, %v21152_v52  ;;  %v8093_v36 = vadd.f32 %v8092_v22, %v7769_v2  ;;  %vm14029_vm12 = vmpackc.low %vm9431_vm1, %vm9425_vm6  ;;  %vm21770_vm1 = vnez %v21750_v49  ;;  %v653_v22 = vmul.f32 %v21781_v57, %v21780_v24 }
 0x98f   :  { %vm14035_vm6 = vmpackc.low %vm9442_vm8, %vm9436_vm5  ;;  %vm21783_vm5 = vcmask 523264  }
 0x994   :  { %9559 = vmatmul.mubr.f32.vlgmr.msra.gmra.mrb[24].mxu1 %v17853_v9 }
 0x995   :  { %14024 = vmatpush1.bf16.xpose.msk.msra.mxu1 %vm14023_vm2, %v21152_v52  ;;  %9628 = vmatprep.mubr.f32.mxu1 %v18017_v20  ;;  %vm14031_vm2 = vmpackc.low %vm9430_vm3, %vm9424_vm10  ;;  %vm21773_vm10 = vnez %v21764_v29 }
 0x996   :  { %14026 = vmatprep.subr.msk.bf16.mxu1 %vm14025_vm11, %v21152_v52  ;;  %vm14033_vm11 = vmpackc.low %vm9443_vm9, %vm9437_vm7  ;;  %vm660_vm9 = vcmp.ge.f32.partialorder %v658_v55, 0.0 }
 0x99d   :  { %14028 = vmatpush1.bf16.xpose.msk.msra.mxu1 %vm14027_vm4, %v21152_v52  ;;  %vm21771_vm4 = vnez %v21752_v12  ;;  %v63_v12 = vld [vmem:[%s20790_s2 + $0x94] sm:$0x1] }
 0x99e   :  { %14030 = vmatprep.subr.msk.bf16.mxu1 %vm14029_vm12, %v21152_v52  ;;  %vm21772_vm12 = vnez %v21760_v50 }
 0x9a5   :  { %14032 = vmatpush1.bf16.xpose.msk.msra.mxu1 %vm14031_vm2, %v21152_v52 }
 0x9a6   :  { %14034 = vmatprep.subr.msk.bf16.mxu1 %vm14033_vm11, %v21152_v52  ;;  %vm10211_vm11 = vcmask 261120  }
 0x9ad   :  { %14036 = vmatpush1.bf16.xpose.msk.msra.mxu1 %vm14035_vm6, %v21152_v52 }
 0x9ae   :  { %14038 = vmatprep.subr.msk.bf16.mxu1 %vm21770_vm1, %v21152_v52 }
 0x9b4   :  { %9629 = vmatmul.mubr.f32.vlgmr.msra.gmra.mrb[24].mxu1 %v18011_v53 }
 0x9b5   :  { %14040 = vmatpush1.bf16.xpose.msk.msra.mxu1 %vm21771_vm4, %v21152_v52  ;;  %9698 = vmatprep.mubr.f32.mxu1 %v17722_v40  ;;  %v8739_v40 = vrot.slane %v20282_v61, %v21644_v27 }
 0x9b6   :  { %14042 = vmatprep.subr.msk.bf16.mxu1 %vm20345_vm15, %v21152_v52  ;;  %vm21774_vm15 = vmmov 0  }
 0x9bd   :  { %14044 = vmatpush1.bf16.xpose.msk.msra.mxu1 %vm20353_vm14, %v21152_v52  ;;  %vm21775_vm14 = vcmask 1046528  }
 0x9be   :  { %14046 = vmatprep.subr.msk.bf16.mxu1 %vm20369_vm0, %v21152_v52  ;;  %vm21776_vm0 = vcmask 56320  }
 0x9c1   :  { %v9706_v63 = vpop.permute.xlu0 %9705 }
 0x9c5   :  { %14048 = vmatpush1.bf16.xpose.msk.msra.mxu1 %vm21772_vm12, %v21152_v52 }
 0x9c6   :  { %14050 = vmatprep.subr.msk.bf16.mxu1 %vm20401_vm13, %v21152_v52  ;;  %vm21777_vm13 = vcmask 130048   ;;  %v10122_v58 = vpop.permute.xlu0 %10121 }
 0x9cd   :  { %14052 = vmatpush1.bf16.xpose.msk.msra.mxu1 %vm21773_vm10, %v21152_v52  ;;  %v8740_v52 = vmul.f32 %v8739_v40, %v8734_v28  ;;  %v45_v28 = vld [vmem:[%s20790_s2 + $0x39] sm:$0xff]  ;;  %v21782_v40 = vld [vmem:[#allocation8_spill] sm:$0xff]  ;;  %vm21787_vm10 = vmmov %vm21777_vm13 }
 0x9ce   :  { %12549 = vmatprep.subr.mxu1 %v21740_v14  ;;  %vm10135_vm7 = vcmp.lt.f32.partialorder %v14708_v13, %v21782_v40 }
 0x9d4   :  { %9699 = vmatmul.mubr.f32.vlgmr.msra.gmra.mrb[24].mxu1 %v17720_v4  ;;  %v64_v4 = vld [vmem:[%s20790_s2 + $0x95] sm:$0x1] }
 0x9d5   :  { %12551 = vmatprep.mubr.msk.f32.mxu1 %vm21774_vm15, %v21740_v14  ;;  %10041 = vperm.xlu1 %14345, %v64_v4   ;;  %vm21788_vm15 = vmmov %vm21787_vm10 }
 0x9e7   :  { %v8404_v43 = vpop.f32.mrb[20].mxu1 }
 0x9e8   :  { %v8415_v9 = vrot.slane %v8404_v43, %v21644_v27  ;;  %v10024_v53 = vpop.f32.mrb[34].mxu0  ;;  %v8406_v20 = vpop.f32.mrb[21].mxu1  ;;  %v662_v43 = vmul.f32 0.25, %v658_v55 }
 0x9e9   :  { %v10026_v21 = vpop.f32.mrb[35].mxu0  ;;  %v10035_v26 = vrot.slane %v10024_v53, %v21644_v27  ;;  %v659_v53 = vadd.f32 %v10828_v1, %v653_v22 }
 0x9ea   :  { %v8416_v17 = vmul.f32 %v8415_v9, %v8410_v46  ;;  %v664_v46 = vsel %vm660_vm9, %v658_v55, %v662_v43 }
 0x9eb   :  { %v10036_v62 = vmul.f32 %v10035_v26, %v10030_v34  ;;  %v663_v21 = vmul.f32 0.25, %v659_v53  ;;  %vm661_vm8 = vcmp.ge.f32.partialorder %v659_v53, 0.0 }
 0x9ec   :  { %v8417_v48 = vadd.f32 %v8416_v17, %v8093_v36  ;;  %v44_v36 = vld [vmem:[%s20790_s2 + $0x31] sm:$0xff] }
 0x9ed   :  { %v14121_v9 = vpack.c.bf16 %v45_v28, %v44_v36  ;;  %v665_v17 = vsel %vm661_vm8, %v659_v53, %v663_v21 }
 0x9ee   :  { %v8741_v47 = vadd.f32 %v8740_v52, %v8417_v48 }
 0xa47   :  { %v9052_v19 = vpop.f32.mrb[22].mxu1 }
 0xa48   :  { %v9063_v51 = vrot.slane %v9052_v19, %v21644_v27  ;;  %v9054_v8 = vpop.f32.mrb[23].mxu1 }
 0xa4a   :  { %v9064_v37 = vmul.f32 %v9063_v51, %v9058_v18  ;;  %v21785_v18 = vld [vmem:[#allocation4_spill] sm:$0xff] }
 0xa4c   :  { %v9065_v61 = vadd.f32 %v9064_v37, %v8741_v47  ;;  %v21784_v47 = vld [vmem:[#allocation3_spill] sm:$0xff] }
 0xa4e   :  { %v9389_v31 = vadd.f32 %v9388_v60, %v9065_v61 }
 0xa54   :  { %v10042_v45 = vpop.permute.xlu1 %10041 }
 0xaa7   :  { %v9700_v0 = vpop.f32.mrb[24].mxu1 }
 0xaa8   :  { %v9711_v15 = vrot.slane %v9700_v0, %v21644_v27  ;;  %v9702_v54 = vpop.f32.mrb[25].mxu1 }
 0xaaa   :  { %v9712_v5 = vmul.f32 %v9711_v15, %v9706_v63 }
 0xaac   :  { %v9713_v16 = vadd.f32 %v9712_v5, %v9389_v31 }
 0xaae   :  { %v10037_v59 = vadd.f32 %v10036_v62, %v9713_v16 }
 0xab0   :  { %v10038_v49 = vmax.f32 %v10037_v59, 0.0 }
 0xab2   :  { %12550 = vmatpush3.msk.msra.mxu1 %vm21775_vm14, %v10038_v49  ;;  %vm21789_vm14 = vmmov %vm21787_vm10 }
 0xab3   :  { %12552 = vmatmul.mubr.msk.f32.vlgmr.msra.gmra.mrb[26].mxu1 %vm21776_vm0, %v63_v12  ;;  %v14370_v12 = vld [vmem:[%s20791_s1 + $0x8] sm:$0xff]  ;;  %vm21790_vm0 = vmmov %vm21787_vm10 }
 0xab4   :  { %12588 = vmatprep.mubr.msk.f32.mxu1 %vm21777_vm13, %v14369_v39  ;;  %v14371_v39 = vld [vmem:[%s20791_s1 + $0x10] sm:$0xff]  ;;  %vm21791_vm13 = vmmov %vm21790_vm0 }
 0xab5   :  { %vm21794_vm9 = vmmov %vm21790_vm0 }
 0xab6   :  { %vm21797_vm8 = vmmov %vm21790_vm0 }
 0xb86   :  { %v10116_v50 = vpop.f32.mrb[26].mxu1 }
 0xb87   :  { %v10117_v11 = vadd.f32 %v10116_v50, %v10042_v45  ;;  %v12553_v35 = vpop.f32.mrb[27].mxu1  ;;  %v14375_v45 = vld [vmem:[%s20791_s1 + $0x30] sm:$0xff]  ;;  %v14376_v50 = vld [vmem:[%s20791_s1 + $0x38] sm:$0xff] }
 0xb88   :  { %v14379_v35 = vld [vmem:[%s20791_s1 + $0x50] sm:$0xff] }
 0xb89   :  { %v10124_v29 = vadd.f32 %v10122_v58, %v10117_v11  ;;  %v14377_v58 = vld [vmem:[%s20791_s1 + $0x40] sm:$0xff]  ;;  %v14378_v11 = vld [vmem:[%s20791_s1 + $0x48] sm:$0xff] }
 0xb8b   :  { %v12241_v30 = vmul.f32 -10.0, %v10124_v29  ;;  %v14380_v29 = vld [vmem:[%s20791_s1 + $0x58] sm:$0xff] }
 0xb8d   :  { %v10127_v6 = vmul.f32 1.442695, %v12241_v30  ;;  %v14381_v30 = vld [vmem:[%s20791_s1 + $0x60] sm:$0xff] }
 0xb8f   :  { %14355 = vpow2.f32 %v10127_v6  ;;  %v14382_v6 = vld [vmem:[%s20791_s1 + $0x68] sm:$0xff] }
 0xb99   :  { %v14356_v7 = vpop.eup %14355 }
 0xb9a   :  { %v10129_v32 = vadd.f32 1.0, %v14356_v7  ;;  %v14383_v7 = vld [vmem:[%s20791_s1 + $0x70] sm:$0xff] }
 0xb9c   :  { %14357 = vrcp.f32 %v10129_v32  ;;  %v14384_v32 = vld [vmem:[%s20791_s1 + $0x78] sm:$0xff] }
 0xba6   :  { %v14358_v10 = vpop.eup %14357 }
 0xba7   :  { %v10132_v3 = vmul.f32 1.000001, %v14358_v10 }
 0xba9   :  { %v10133_v2 = vadd.f32 -1e-06, %v10132_v3 }
 0xbab   :  { %vm10134_vm3 = vcmp.gt.f32.partialorder %v10133_v2, 0.0 }
 0xbac   :  { %vm10136_vm2 = vmand %vm10134_vm3, %vm10135_vm7 }
 0xbad   :  { %v10137_v20 = vsel %vm10136_vm2, 1.0, %v21740_v14  ;;  %vm21792_vm3 = vmmov %vm21790_vm0 }
 0xbae   :  { %12571 = vmatmul.mubr.msk.f32.vlgmr.msra.gmra.mrb[36].mxu0 %vm21783_vm5, %v10137_v20  ;;  %vm21793_vm7 = vmmov %vm21790_vm0 }
 0xbaf   :  { %14120 = vmatpush3.bf16.msra.mxu0 %v14117_v42  ;;  %12581 = vmatprep.mubr.msk.f32.mxu0 %vm10211_vm11, %v664_v46  ;;  %v14374_v42 = vld [vmem:[%s20791_s1 + $0x28] sm:$0xff]  ;;  %vm21795_vm2 = vmmov %vm21790_vm0 }
 0xbb0   :  { %14122 = vmatprep.subr.bf16.mxu0 %v14121_v9  ;;  %vm21796_vm5 = vmmov %vm21790_vm0 }
 0xbb3   :  { %14124 = vmatpush3.bf16.msra.mxu0 %v14121_v9 }
 0xbb6   :  { %12582 = vmatmul.mubr.msk.f32.vlgmr.msra.gmra.mrb[38].mxu0 %vm10211_vm11, %v665_v17 }
 0xc81   :  { %v10207_v13 = vpop.f32.mrb[36].mxu0 }
 0xc82   :  { %v10296_v52 = vrot.slane %v10207_v13, %v21644_v27  ;;  %v12572_v48 = vpop.f32.mrb[37].mxu0 }
 0xc84   :  { %v20618_v4 = vmul.f32 %v10296_v52, %v21784_v47  ;;  %v20621_v19 = vmul.f32 %v10296_v52, %v21785_v18  ;;  %v47_v47 = vld [vmem:[%s20790_s2 + $0x42] sm:$0xff] }
 0xc86   :  { %v10300_v51 = vmul.f32 %v20621_v19, %v21786_v56  ;;  %v10299_v8 = vmul.f32 %v20618_v4, %v21786_v56 }
 0xc88   :  { %10303 = vadd.xlane.f32.xlu0 %v10300_v51  ;;  %10301 = vadd.xlane.f32.xlu1 %v10299_v8 }
 0xc89   :  { %v12583_v44 = vpop.f32.mrb[38].mxu0 }
 0xc8a   :  { %v10284_v37 = vpop.f32.mrb[39].mxu0 }
 0xc8c   :  { %10311 = vadd.xlane.f32.xlu0 %v20621_v19  ;;  %10309 = vadd.xlane.f32.xlu1 %v20618_v4 }
 0xd15   :  { %v10304_v27 = vpop.xlane.xlu0 %10303  ;;  %v10302_v60 = vpop.xlane.xlu1 %10301 }
 0xd16   :  { %vm10306_vm6 = vcmp.eq.f32.partialorder %v10304_v27, 0.0  ;;  %vm10305_vm1 = vcmp.eq.f32.partialorder %v10302_v60, 0.0 }
 0xd17   :  { %v20630_v61 = vsel %vm10306_vm6, 1.0, %v21740_v14  ;;  %v20633_v0 = vsel %vm10305_vm1, 1.0, %v21740_v14  ;;  %vm21798_vm6 = vmmov %vm21790_vm0 }
 0xd18   :  { %vm21799_vm1 = vmmov %vm21790_vm0 }
 0xd19   :  { %v10312_v31 = vpop.xlane.xlu0 %10311  ;;  %v10310_v63 = vpop.xlane.xlu1 %10309 }
 0xd1a   :  { %v10314_v26 = vadd.f32 %v10312_v31, %v20630_v61  ;;  %v10313_v15 = vadd.f32 %v10310_v63, %v20633_v0 }
 0xd1c   :  { %14359 = vrsqrt.f32 %v10314_v26  ;;  %vm10316_vm4 = vcmp.gt.f32.partialorder %v10314_v26, 0.0  ;;  %vm10315_vm12 = vcmp.gt.f32.partialorder %v10313_v15, 0.0 }
 0xd1d   :  { %14361 = vrsqrt.f32 %v10313_v15 }
 0xd26   :  { %v14360_v54 = vpop.eup %14359 }
 0xd27   :  { %v14362_v34 = vpop.eup %14361  ;;  %v20637_v5 = vsel %vm10316_vm4, %v14360_v54, 0.0  ;;  %vm21800_vm4 = vmmov %vm21790_vm0 }
 0xd28   :  { %v20640_v62 = vmul.f32 %v12583_v44, %v20637_v5  ;;  %v20642_v16 = vsel %vm10315_vm12, %v14362_v34, 0.0  ;;  %vm21801_vm12 = vmmov %vm21790_vm0  ;;  %v52_v34 = vld [vmem:[%s20790_s2 + $0x55] sm:$0xff] }
 0xd29   :  { %v20645_v59 = vmul.f32 %v20642_v16, %v10284_v37  ;;  %v12269_v37 = vld [vmem:[%s20790_s2 + $0x41] ss:$0 sm:$0xff] }
 0xd2a   :  { %v10469_v56 = vmul.f32 %v20640_v62, %v20630_v61 }
 0xd2b   :  { %v14125_v49 = vpack.c.bf16 %v20640_v62, %v20645_v59  ;;  %v10468_v8 = vmul.f32 %v20645_v59, %v20633_v0  ;;  %v54_v62 = vld [vmem:[%s20790_s2 + $0x65] sm:$0xff]  ;;  %v55_v59 = vld [vmem:[%s20790_s2 + $0x6d] sm:$0xff] }
 0xd2d   :  { %14126 = vmatprep.subr.bf16.mxu1 %v14125_v49 }
 0xd2e   :  { %14128 = vmatpush3.bf16.msra.mxu1 %v14125_v49  ;;  %v14169_v49 = vpack.c.bf16 %v55_v59, %v54_v62 }
 0xd31   :  { %12589 = vmatmul.mubr.msk.f32.vlgmr.msra.gmra.mrb[28].mxu1 %vm21787_vm10, %v14370_v12  ;;  %v12270_v12 = vld [vmem:[%s20790_s2 + $0x52] ss:$0 sm:$0xff] }
 0xd32   :  { %12591 = vmatprep.mubr.msk.f32.mxu1 %vm21788_vm15, %v14371_v39 }
 0xd35   :  { %12592 = vmatmul.mubr.msk.f32.gmra.mrb[30].mxu1 %vm21789_vm14, %v14372_v41  ;;  %vm21802_vm14 = vmmov %vm21790_vm0 }
 0xd36   :  { %12594 = vmatprep.mubr.msk.f32.mxu1 %vm21790_vm0, %v14373_v38 }
 0xd39   :  { %12595 = vmatmul.mubr.msk.f32.gmra.mrb[32].mxu1 %vm21791_vm13, %v14374_v42 }
 0xd3a   :  { %12597 = vmatprep.mubr.msk.f32.mxu1 %vm21792_vm3, %v14375_v45 }
 0xd3d   :  { %12598 = vmatmul.mubr.msk.f32.gmra.mrb[34].mxu1 %vm21793_vm7, %v14376_v50  ;;  %vm21803_vm7 = vmmov %vm21790_vm0 }
 0xd3e   :  { %12600 = vmatprep.mubr.msk.f32.mxu1 %vm21794_vm9, %v14377_v58  ;;  %vm21805_vm9 = vmmov %vm21790_vm0 }
 0xd41   :  { %12601 = vmatmul.mubr.msk.f32.gmra.mrb[36].mxu1 %vm21795_vm2, %v14378_v11  ;;  %vm21806_vm2 = vmmov %vm21790_vm0 }
 0xd42   :  { %12603 = vmatprep.mubr.msk.f32.mxu1 %vm21796_vm5, %v14379_v35  ;;  %vm10799_vm5 = vcmask 0  }
 0xd45   :  { %12604 = vmatmul.mubr.msk.f32.gmra.mrb[38].mxu1 %vm21797_vm8, %v14380_v29 }
 0xd46   :  { %12606 = vmatprep.mubr.msk.f32.mxu1 %vm21798_vm6, %v14381_v30 }
 0xd49   :  { %12607 = vmatmul.mubr.msk.f32.gmra.mrb[40].mxu1 %vm21799_vm1, %v14382_v6 }
 0xd4a   :  { %12609 = vmatprep.mubr.msk.f32.mxu1 %vm21800_vm4, %v14383_v7 }
 0xd4d   :  { %12610 = vmatmul.mubr.msk.f32.gmra.mrb[42].mxu1 %vm21801_vm12, %v14384_v32 }
 0xd4e   :  { %12644 = vmatprep.mubr.f32.mxu1 %v20618_v4  ;;  %v48_v4 = vld [vmem:[%s20790_s2 + $0x4a] sm:$0xff] }
 0xd4f   :  { %v14161_v18 = vpack.c.bf16 %v48_v4, %v47_v47 }
 0xd51   :  { %14162 = vmatprep.subr.bf16.mxu0 %v14161_v18 }
 0xd52   :  { %14164 = vmatpush3.bf16.msra.mxu0 %v14161_v18 }
 0xe04   :  { %v12590_v25 = vpop.f32.mrb[28].mxu1 }
 0xe05   :  { %v10389_v23 = vpop.f32.mrb[29].mxu1 }
 0xe06   :  { %v14129_v33 = vpack.c.bf16 %v12590_v25, %v10389_v23 }
 0xe08   :  { %v12593_v1 = vpop.f32.mrb[30].mxu1  ;;  %14130 = vmatprep.subr.bf16.mxu1 %v14129_v33 }
 0xe09   :  { %v10399_v10 = vpop.f32.mrb[31].mxu1  ;;  %14132 = vmatpush3.bf16.msra.mxu1 %v14129_v33 }
 0xe0a   :  { %v14133_v55 = vpack.c.bf16 %v12593_v1, %v10399_v10 }
 0xe0c   :  { %v12596_v3 = vpop.f32.mrb[32].mxu1  ;;  %14134 = vmatprep.subr.bf16.mxu1 %v14133_v55 }
 0xe0d   :  { %v10409_v24 = vpop.f32.mrb[33].mxu1  ;;  %14136 = vmatpush3.bf16.msra.mxu1 %v14133_v55 }
 0xe0e   :  { %v14137_v57 = vpack.c.bf16 %v12596_v3, %v10409_v24 }
 0xe10   :  { %v12599_v22 = vpop.f32.mrb[34].mxu1  ;;  %14138 = vmatprep.subr.bf16.mxu1 %v14137_v57 }
 0xe11   :  { %v10419_v2 = vpop.f32.mrb[35].mxu1  ;;  %14140 = vmatpush3.bf16.msra.mxu1 %v14137_v57 }
 0xe12   :  { %v14141_v36 = vpack.c.bf16 %v12599_v22, %v10419_v2 }
 0xe14   :  { %v12602_v28 = vpop.f32.mrb[36].mxu1  ;;  %14142 = vmatprep.subr.bf16.mxu1 %v14141_v36 }
 0xe15   :  { %v10429_v43 = vpop.f32.mrb[37].mxu1  ;;  %14144 = vmatpush3.bf16.msra.mxu1 %v14141_v36 }
 0xe16   :  { %v14145_v40 = vpack.c.bf16 %v12602_v28, %v10429_v43 }
 0xe18   :  { %v12605_v9 = vpop.f32.mrb[38].mxu1  ;;  %14146 = vmatprep.subr.bf16.mxu1 %v14145_v40 }
 0xe19   :  { %v10439_v53 = vpop.f32.mrb[39].mxu1  ;;  %14148 = vmatpush3.bf16.msra.mxu1 %v14145_v40 }
 0xe1a   :  { %v14149_v20 = vpack.c.bf16 %v12605_v9, %v10439_v53  ;;  %v12273_v9 = vld [vmem:[%s20790_s2 + $0x53] ss:$0 sm:$0xff] }
 0xe1c   :  { %v12608_v46 = vpop.f32.mrb[40].mxu1  ;;  %14150 = vmatprep.subr.bf16.mxu1 %v14149_v20 }
 0xe1d   :  { %v10449_v21 = vpop.f32.mrb[41].mxu1  ;;  %14152 = vmatpush3.bf16.msra.mxu1 %v14149_v20 }
 0xe1e   :  { %v14153_v17 = vpack.c.bf16 %v12608_v46, %v10449_v21  ;;  %v12274_v46 = vld [vmem:[%s20790_s2 + $0x54] ss:$0 sm:$0xff] }
 0xe20   :  { %v12611_v13 = vpop.f32.mrb[42].mxu1  ;;  %14154 = vmatprep.subr.bf16.mxu1 %v14153_v17 }
 0xe21   :  { %v10459_v52 = vpop.f32.mrb[43].mxu1  ;;  %14156 = vmatpush3.bf16.msra.mxu1 %v14153_v17 }
 0xe22   :  { %v14157_v48 = vpack.c.bf16 %v12611_v13, %v10459_v52 }
 0xe24   :  { %14158 = vmatprep.subr.bf16.mxu1 %v14157_v48 }
 0xe25   :  { %14160 = vmatpush3.bf16.msra.mxu1 %v14157_v48 }
 0xe28   :  { %12645 = vmatmul.mubr.f32.vlgmr.msra.gmra.mrb[44].mxu1 %v20621_v19 }
 0xefb   :  { %v12646_v51 = vpop.f32.mrb[44].mxu1 }
 0xefc   :  { %v10542_v44 = vadd.f32 %v12646_v51, %v10469_v56  ;;  %v10536_v19 = vpop.f32.mrb[45].mxu1  ;;  %v12275_v56 = vld [vmem:[%s20790_s2 + $0x75] ss:$0 sm:$0xff] }
 0xefd   :  { %v10537_v27 = vadd.f32 %v10536_v19, %v10468_v8 }
 0xefe   :  { %v10546_v60 = vmul.f32 %v10542_v44, %v20637_v5  ;;  %v53_v5 = vld [vmem:[%s20790_s2 + $0x5d] sm:$0xff] }
 0xeff   :  { %v10545_v31 = vmul.f32 %v10537_v27, %v20642_v16  ;;  %v14165_v16 = vpack.c.bf16 %v53_v5, %v52_v34 }
 0xf00   :  { %v10552_v63 = vadd.f32 %v12269_v37, %v10546_v60  ;;  %v14386_v60 = vld [vmem:[%s20790_s2] sm:$0xff] }
 0xf01   :  { %v10551_v26 = vadd.f32 %v12269_v37, %v10545_v31  ;;  %14166 = vmatprep.subr.bf16.mxu0 %v14165_v16  ;;  %v14385_v37 = vld [vmem:[%s20790_s2 + $0x8] sm:$0xff] }
 0xf02   :  { %v10556_v15 = vmul.f32 0.25, %v10552_v63  ;;  %vm10554_vm15 = vcmp.ge.f32.partialorder %v10552_v63, 0.0 }
 0xf03   :  { %vm10553_vm10 = vcmp.ge.f32.partialorder %v10551_v26, 0.0  ;;  %v10555_v61 = vmul.f32 0.25, %v10551_v26 }
 0xf04   :  { %v10558_v0 = vsel %vm10554_vm15, %v10552_v63, %v10556_v15 }
 0xf05   :  { %v10557_v54 = vsel %vm10553_vm10, %v10551_v26, %v10555_v61 }
 0xf06   :  { %12651 = vmatprep.mubr.msk.f32.mxu0 %vm21802_vm14, %v10557_v54 }
 0xf07   :  { %12652 = vmatmul.mubr.msk.f32.vlgmr.msra.gmra.mrb[40].mxu0 %vm21790_vm0, %v10558_v0 }
 0xf08   :  { %14168 = vmatpush3.bf16.msra.mxu0 %v14165_v16 }
 0xf09   :  { %14170 = vmatprep.subr.bf16.mxu0 %v14169_v49 }
 0xf0c   :  { %14172 = vmatpush3.bf16.msra.mxu0 %v14169_v49 }
 0xfda   :  { %v12653_v39 = vpop.f32.mrb[40].mxu0 }
 0xfdb   :  { %v10641_v41 = vadd.f32 %v12653_v39, %v12270_v12  ;;  %v10635_v38 = vpop.f32.mrb[41].mxu0 }
 0xfdc   :  { %v10636_v42 = vadd.f32 %v12270_v12, %v10635_v38 }
 0xfdd   :  { %v10645_v45 = vsel %vm10211_vm11, %v10641_v41, 0.0 }
 0xfde   :  { %v10644_v50 = vsel %vm10211_vm11, %v10636_v42, 0.0 }
 0xfdf   :  { %v10646_v58 = vadd.f32 %v10645_v45, %v10644_v50 }
 0xfe1   :  { %v10647_v11 = vrot.slane %v10646_v58, 4 }
 0xfe3   :  { %v10648_v35 = vadd.f32 %v10647_v11, %v10646_v58 }
 0xfe5   :  { %v10649_v29 = vrot.slane %v10648_v35, 2 }
 0xfe7   :  { %v10650_v30 = vadd.f32 %v10649_v29, %v10648_v35 }
 0xfe9   :  { %v10651_v6 = vrot.slane %v10650_v30, 1 }
 0xfeb   :  { %v10652_v7 = vadd.f32 %v10651_v6, %v10650_v30 }
 0xfed   :  { %v10654_v14 = vmul.f32 0.0625, %v10652_v7 }
 0xfef   :  { %v10655_v32 = vsub.f32 %v10636_v42, %v10654_v14  ;;  %v10656_v25 = vsub.f32 %v10641_v41, %v10654_v14 }
 0xff1   :  { %v10657_v23 = vmul.f32 %v10655_v32, %v10655_v32  ;;  %v10658_v33 = vmul.f32 %v10656_v25, %v10656_v25 }
 0xff3   :  { %v10659_v1 = vsel %vm10211_vm11, %v10657_v23, 0.0  ;;  %v10660_v10 = vsel %vm10211_vm11, %v10658_v33, 0.0 }
 0xff4   :  { %v10661_v55 = vadd.f32 %v10660_v10, %v10659_v1 }
 0xff6   :  { %v10662_v3 = vrot.slane %v10661_v55, 4 }
 0xff8   :  { %v10663_v24 = vadd.f32 %v10662_v3, %v10661_v55 }
 0xffa   :  { %v10664_v57 = vrot.slane %v10663_v24, 2 }
 0xffc   :  { %v10665_v22 = vadd.f32 %v10664_v57, %v10663_v24 }
 0xffe   :  { %v10666_v2 = vrot.slane %v10665_v22, 1 }
0x1000   :  { %v10667_v36 = vadd.f32 %v10666_v2, %v10665_v22 }
0x1002   :  { %v10668_v28 = vmul.f32 0.0625, %v10667_v36 }
0x1004   :  { %v10669_v43 = vadd.f32 1e-05, %v10668_v28 }
0x1006   :  { %14363 = vrsqrt.f32 %v10669_v43 }
0x1010   :  { %v14364_v40 = vpop.eup %14363 }
0x1011   :  { %v10671_v53 = vmul.f32 %v14364_v40, %v10655_v32  ;;  %v10672_v20 = vmul.f32 %v14364_v40, %v10656_v25 }
0x1013   :  { %v10677_v21 = vmul.f32 %v12273_v9, %v10671_v53  ;;  %v10678_v17 = vmul.f32 %v12273_v9, %v10672_v20 }
0x1015   :  { %v10683_v13 = vadd.f32 %v12274_v46, %v10677_v21  ;;  %v10684_v52 = vadd.f32 %v12274_v46, %v10678_v17 }
0x1017   :  { %vm10685_vm13 = vcmp.ge.f32.partialorder %v10683_v13, 0.0  ;;  %v10687_v48 = vmul.f32 0.25, %v10683_v13  ;;  %vm10686_vm3 = vcmp.ge.f32.partialorder %v10684_v52, 0.0  ;;  %v10688_v47 = vmul.f32 0.25, %v10684_v52 }
0x1019   :  { %v10689_v4 = vsel %vm10685_vm13, %v10683_v13, %v10687_v48  ;;  %v10690_v18 = vsel %vm10686_vm3, %v10684_v52, %v10688_v47 }
0x101a   :  { %12662 = vmatprep.mubr.msk.f32.mxu0 %vm10211_vm11, %v10689_v4 }
0x101b   :  { %12663 = vmatmul.mubr.msk.f32.vlgmr.msra.gmra.mrb[42].mxu0 %vm10211_vm11, %v10690_v18  ;;  %vm21804_vm11 = vmmov %vm21790_vm0 }
0x10ee   :  { %v12664_v51 = vpop.f32.mrb[42].mxu0 }
0x10ef   :  { %v10773_v8 = vadd.f32 %v12664_v51, %v12275_v56  ;;  %v10767_v44 = vpop.f32.mrb[43].mxu0 }
0x10f0   :  { %v10768_v19 = vadd.f32 %v12275_v56, %v10767_v44 }
0x10f1   :  { %v10777_v27 = vsub.f32 %v10773_v8, %v14385_v37  ;;  %10797 = vst.msk [vmem:[%s20792_s3 + $0x8] sm:$0xff] %vm21803_vm7, %v10773_v8 }
0x10f2   :  { %v10776_v31 = vsub.f32 %v10768_v19, %v14386_v60  ;;  %10796 = vst.msk [vmem:[%s20792_s3] sm:$0xff] %vm21804_vm11, %v10768_v19 }
0x10f3   :  { %v10779_v63 = vmul.f32 %v10777_v27, %v10777_v27 }
0x10f4   :  { %v10778_v26 = vmul.f32 %v10776_v31, %v10776_v31 }
0x10f5   :  { %v10781_v15 = vsel %vm21805_vm9, %v10779_v63, 0.0 }
0x10f6   :  { %v10780_v61 = vsel %vm21806_vm2, %v10778_v26, 0.0 }
0x10f7   :  { %v10782_v54 = vadd.f32 %v10781_v15, %v10780_v61 }
0x10f9   :  { %10783 = vadd.xlane.f32.xlu1 %v10782_v54 }
0x1186   :  { %v10784_v0 = vpop.xlane.xlu1 %10783 }
0x1187   :  { %v10785_v34 = vrot.slane %v10784_v0, 4 }
0x1189   :  { %v10786_v5 = vadd.f32 %v10785_v34, %v10784_v0 }
0x118b   :  { %v10787_v62 = vrot.slane %v10786_v5, 2 }
0x118d   :  { %v10788_v16 = vadd.f32 %v10787_v62, %v10786_v5 }
0x118f   :  { %v10789_v59 = vrot.slane %v10788_v16, 1 }
0x1191   :  { %v10790_v49 = vadd.f32 %v10789_v59, %v10788_v16 }
0x1193   :  { %14309 = vpush %v10790_v49 }
0x11c4   :  { %s14310_s2 = spop %14309 }
0x11c5   :  { %s10792_s16 = smul.f32 0.00390625, %s14310_s2 }
0x11c7   :  { %v10798_v12 = vstv %s10792_s16 }
0x11c8   :  { %10800 = vst.msk [vmem:[%s20792_s3 + $0x10] sm:$0x1] %vm10799_vm5, %v10798_v12 }

</bundles_post_ra>
